<compile_context>
chip_gen: v7x
topology: tpu7x:2x2x1
jax: 0.10.0
libtpu: 0.0.40
codegen_flags: <defaults>
</compile_context>

<pallas_src>
import jax
import jax.numpy as jnp
from jax import lax
from jax.experimental import pallas as pl
from jax.experimental.pallas import tpu as pltpu

FEAT_DIM = 11
FEAT_PAD = 16          # feat_dim zero-padded to an 8-aligned K for the first GEMM
D_MODEL = 32
NHEAD = 4
HEAD_DIM = D_MODEL // NHEAD
QKV_DIM = 3 * D_MODEL  # fused Q|K|V output width (96)
NUM_LAYERS = 2
D_FF = 128
D_CLS = 16
NUM_CLASSES = 2
CLS_PAD = 128          # classifier hidden + logits padded to a full lane width
LN_EPS = 1e-5
NEG_BIG = -1e9


def _layer_norm(x, w, b):
    mu = jnp.mean(x, axis=-1, keepdims=True)
    var = jnp.mean((x - mu) ** 2, axis=-1, keepdims=True)
    return (x - mu) * lax.rsqrt(var + LN_EPS) * w + b


def _encoder_kernel(
    x_ref,        # (BT, N, FEAT_PAD) f32
    mask_ref,     # (BT, N)  f32, 1.0 => pad
    wp_ref, bp_ref,                    # input projection (bf16 weight, f32 bias)
    wqkv_ref, bqkv_ref,                # fused Q|K|V projection  (L, 32, 96)
    wo_ref, bo_ref,                    # fused out projection    (L, 32, 32)
    ln1w_ref, ln1b_ref, ln2w_ref, ln2b_ref,
    f1w_ref, f1b_ref, f2w_ref, f2b_ref,
    c1w_ref, c1b_ref, c2w_ref, c2b_ref,
    out_ref,      # (BT, CLS_PAD) f32
):
    bt, n, f = x_ref.shape
    m = bt * n
    scale = 1.0 / float(HEAD_DIM) ** 0.5
    bf16 = jnp.bfloat16

    # mask-derived tensors, hoisted once (shared by both layers / all heads)
    mask = mask_ref[...]                              # (BT, N), 1.0 => pad
    attn_bias = mask[:, None, :] * NEG_BIG            # (BT, 1, N) key-padding bias
    keep = (1.0 - mask)[:, :, None]                   # (BT, N, 1) pooling keep-mask

    # ---- input projection: one (M, 16) x (16, 32) bf16 GEMM ----
    x = x_ref[...].reshape(m, f).astype(bf16)
    h = jnp.dot(x, wp_ref[...], preferred_element_type=jnp.float32) + bp_ref[...]

    # ---- transformer encoder layers (post-norm, relu FFN, eval dropout) ----
    for l in range(NUM_LAYERS):
        # fused QKV projection: one lane-dense (M, 32) x (32, 96) GEMM
        qkv = jnp.dot(h.astype(bf16), wqkv_ref[l],
                      preferred_element_type=jnp.float32) + bqkv_ref[l]
        qkv = qkv.reshape(bt, n, QKV_DIM)

        ctx_heads = []
        for hd in range(NHEAD):
            q0 = hd * HEAD_DIM
            qh = qkv[:, :, q0:q0 + HEAD_DIM].astype(bf16)
            kh = qkv[:, :, D_MODEL + q0:D_MODEL + q0 + HEAD_DIM].astype(bf16)
            vh = qkv[:, :, 2 * D_MODEL + q0:2 * D_MODEL + q0 + HEAD_DIM].astype(bf16)

            s = jnp.einsum('bqd,bkd->bqk', qh, kh,
                           preferred_element_type=jnp.float32) * scale
            s = s + attn_bias                         # key-padding mask
            s = s - jnp.max(s, axis=-1, keepdims=True)
            p = jnp.exp(s)
            p = p * pl.reciprocal(jnp.sum(p, axis=-1, keepdims=True), approx=True)
            ctx_heads.append(
                jnp.einsum('bqk,bkd->bqd', p.astype(bf16), vh,
                           preferred_element_type=jnp.float32))

        # concat(head outputs) then ONE (M, 32) x (32, 32) out-projection GEMM
        ctx = jnp.concatenate(ctx_heads, axis=-1).reshape(m, D_MODEL)
        attn = jnp.dot(ctx.astype(bf16), wo_ref[l],
                       preferred_element_type=jnp.float32) + bo_ref[l]

        h = _layer_norm(h + attn, ln1w_ref[l], ln1b_ref[l])

        ff = jnp.maximum(
            jnp.dot(h.astype(bf16), f1w_ref[l],
                    preferred_element_type=jnp.float32) + f1b_ref[l], 0.0)
        ff = jnp.dot(ff.astype(bf16), f2w_ref[l],
                     preferred_element_type=jnp.float32) + f2b_ref[l]

        h = _layer_norm(h + ff, ln2w_ref[l], ln2b_ref[l])

    # ---- masked mean pooling over the sequence axis (exact divide, f32) ----
    h3 = h.reshape(bt, n, D_MODEL)
    pooled = jnp.sum(h3 * keep, axis=1)               # (BT, D)
    lengths = jnp.maximum(jnp.sum(keep, axis=1), 1e-9)  # (BT, 1)
    pooled = pooled / lengths

    # ---- classifier head (zero-padded to CLS_PAD lanes -> lane-dense store) --
    hc = jnp.maximum(
        jnp.dot(pooled.astype(bf16), c1w_ref[...],
                preferred_element_type=jnp.float32) + c1b_ref[...], 0.0)
    logits = (jnp.dot(hc.astype(bf16), c2w_ref[...],
                      preferred_element_type=jnp.float32) + c2b_ref[...])
    out_ref[...] = logits


# Fixed fused-parameter ordering (must match kernel signature).
_PARAM_NAMES = [
    "wp", "bp",
    "wqkv", "bqkv",
    "wo", "bo",
    "ln1w", "ln1b", "ln2w", "ln2b",
    "f1w", "f1b", "f2w", "f2b",
    "c1w", "c1b", "c2w", "c2b",
]


def init_params(key):
    """Raw (per-head) parameters, matching the PyTorch module's structure."""
    ks = jax.random.split(key, 9)
    s = 0.05
    L, H = NUM_LAYERS, NHEAD
    return {
        "wp":   s * jax.random.normal(ks[0], (FEAT_DIM, D_MODEL), jnp.float32),
        "bp":   jnp.zeros((1, D_MODEL), jnp.float32),
        "wq":   s * jax.random.normal(ks[1], (L, H, D_MODEL, HEAD_DIM), jnp.float32),
        "bq":   jnp.zeros((L, H, 1, HEAD_DIM), jnp.float32),
        "wk":   s * jax.random.normal(ks[2], (L, H, D_MODEL, HEAD_DIM), jnp.float32),
        "bk":   jnp.zeros((L, H, 1, HEAD_DIM), jnp.float32),
        "wv":   s * jax.random.normal(ks[3], (L, H, D_MODEL, HEAD_DIM), jnp.float32),
        "bv":   jnp.zeros((L, H, 1, HEAD_DIM), jnp.float32),
        "wo":   s * jax.random.normal(ks[4], (L, H, HEAD_DIM, D_MODEL), jnp.float32),
        "bo":   jnp.zeros((L, 1, D_MODEL), jnp.float32),
        "ln1w": jnp.ones((L, 1, D_MODEL), jnp.float32),
        "ln1b": jnp.zeros((L, 1, D_MODEL), jnp.float32),
        "ln2w": jnp.ones((L, 1, D_MODEL), jnp.float32),
        "ln2b": jnp.zeros((L, 1, D_MODEL), jnp.float32),
        "f1w":  s * jax.random.normal(ks[5], (L, D_MODEL, D_FF), jnp.float32),
        "f1b":  jnp.zeros((L, 1, D_FF), jnp.float32),
        "f2w":  s * jax.random.normal(ks[6], (L, D_FF, D_MODEL), jnp.float32),
        "f2b":  jnp.zeros((L, 1, D_MODEL), jnp.float32),
        "c1w":  s * jax.random.normal(ks[7], (D_MODEL, D_CLS), jnp.float32),
        "c1b":  jnp.zeros((1, D_CLS), jnp.float32),
        "c2w":  s * jax.random.normal(ks[8], (D_CLS, NUM_CLASSES), jnp.float32),
        "c2b":  jnp.zeros((1, NUM_CLASSES), jnp.float32),
    }


def prepare_params(params):
    """One-time weight fusion / zero-padding / bf16 cast (do NOT call per step)."""
    L, H = NUM_LAYERS, NHEAD
    bf16 = jnp.bfloat16

    def _heads_to_cols(w):                 # (L, H, A, HEAD_DIM) -> (L, A, H*HEAD_DIM)
        return jnp.concatenate([w[:, h] for h in range(H)], axis=-1)

    wq, wk, wv = (_heads_to_cols(params[k]) for k in ("wq", "wk", "wv"))
    bq, bk, bv = (_heads_to_cols(params[k]) for k in ("bq", "bk", "bv"))
    wqkv = jnp.concatenate([wq, wk, wv], axis=-1)            # (L, 32, 96)
    bqkv = jnp.concatenate([bq, bk, bv], axis=-1)            # (L, 1, 96)
    wo = params["wo"].reshape(L, H * HEAD_DIM, D_MODEL)      # rows ordered h*hd + d

    wp = jnp.pad(params["wp"], ((0, FEAT_PAD - FEAT_DIM), (0, 0)))
    c1w = jnp.pad(params["c1w"], ((0, 0), (0, CLS_PAD - D_CLS)))
    c1b = jnp.pad(params["c1b"], ((0, 0), (0, CLS_PAD - D_CLS)))
    c2w = jnp.pad(params["c2w"], ((0, CLS_PAD - D_CLS), (0, CLS_PAD - NUM_CLASSES)))
    c2b = jnp.pad(params["c2b"], ((0, 0), (0, CLS_PAD - NUM_CLASSES)))

    return {
        "wp": wp.astype(bf16), "bp": params["bp"],
        "wqkv": wqkv.astype(bf16), "bqkv": bqkv,
        "wo": wo.astype(bf16), "bo": params["bo"],
        "ln1w": params["ln1w"], "ln1b": params["ln1b"],
        "ln2w": params["ln2w"], "ln2b": params["ln2b"],
        "f1w": params["f1w"].astype(bf16), "f1b": params["f1b"],
        "f2w": params["f2w"].astype(bf16), "f2b": params["f2b"],
        "c1w": c1w.astype(bf16), "c1b": c1b,
        "c2w": c2w.astype(bf16), "c2b": c2b,
    }


def _const_spec(shape):
    nd = len(shape)
    return pl.BlockSpec(shape, lambda b, _nd=nd: (0,) * _nd)


def _pick_b_tile(B, N):
    """VMEM-budgeted batch tile; >=2 grid steps (when possible) for v7x's 2 TCs."""
    per_seq_bytes = 4 * (
        2 * (N * FEAT_PAD + N)                 # double-buffered x + mask input tiles
        + 2 * CLS_PAD                          # double-buffered output tile
        + N * (QKV_DIM + D_FF + 6 * D_MODEL)   # h / qkv / ffn / residual temporaries
        + 2 * NHEAD * N * N                    # per-head score / prob tensors
    )
    budget = 16 * 1024 * 1024                  # conservative: fits 32 MiB scoped VMEM
    cap = max(8, min(512, budget // per_seq_bytes))
    steps = max(1, -(-B // cap))
    if B > 16:
        steps = max(steps, 2)                  # shard batch across v7x's 2 TensorCores
    tile = -(-B // steps)
    tile = -(-tile // 8) * 8                   # multiple of 8 for the (b_tile, N) mask
    return int(max(8, min(tile, 512)))


def fall_time2vec_transformer(x, mask, prepared):
    """x: (B, N, FEAT_DIM) f32.  mask: (B, N) bool (True = pad) or None.
    `prepared` is the output of prepare_params()."""
    B, N, C = x.shape
    assert C == FEAT_DIM

    if mask is None:
        mask_f = jnp.zeros((B, N), jnp.float32)        # no padding => plain mean
    else:
        mask_f = mask.astype(jnp.float32)

    b_tile = _pick_b_tile(B, N)
    b_pad = pl.cdiv(B, b_tile) * b_tile
    if b_pad > B:
        # pad batch with fully-masked dummy sequences (harmless, sliced off)
        x = jnp.concatenate(
            [x, jnp.zeros((b_pad - B, N, FEAT_DIM), x.dtype)], axis=0)
        mask_f = jnp.concatenate(
            [mask_f, jnp.ones((b_pad - B, N), jnp.float32)], axis=0)

    x = jnp.pad(x.astype(jnp.float32),
                ((0, 0), (0, 0), (0, FEAT_PAD - FEAT_DIM)))

    param_list = [prepared[name] for name in _PARAM_NAMES]

    in_specs = [
        pl.BlockSpec((b_tile, N, FEAT_PAD), lambda b: (b, 0, 0)),
        pl.BlockSpec((b_tile, N), lambda b: (b, 0)),
    ] + [_const_spec(p.shape) for p in param_list]

    # Advisory cost estimate (helps XLA schedule around this short kernel).
    macs_tok = (FEAT_PAD * D_MODEL
                + NUM_LAYERS * (D_MODEL * QKV_DIM + 2 * N * D_MODEL
                                + D_MODEL * D_MODEL + 2 * D_MODEL * D_FF))
    macs_seq = D_MODEL * CLS_PAD + CLS_PAD * CLS_PAD
    flops = 2 * b_pad * (N * macs_tok + macs_seq)
    param_bytes = sum(int(p.size) * p.dtype.itemsize for p in param_list)
    bytes_accessed = (int(x.size) * 4 + int(mask_f.size) * 4
                      + param_bytes + b_pad * CLS_PAD * 4)
    transcendentals = b_pad * NUM_LAYERS * NHEAD * N * N

    out = pl.pallas_call(
        _encoder_kernel,
        grid=(b_pad // b_tile,),
        in_specs=in_specs,
        out_specs=pl.BlockSpec((b_tile, CLS_PAD), lambda b: (b, 0)),
        out_shape=jax.ShapeDtypeStruct((b_pad, CLS_PAD), jnp.float32),
        compiler_params=pltpu.CompilerParams(
            dimension_semantics=("parallel",)),
        cost_estimate=pl.CostEstimate(flops=flops,
                                      transcendentals=transcendentals,
                                      bytes_accessed=bytes_accessed),
    )(x, mask_f, *param_list)

    return out[:B, :NUM_CLASSES]


if __name__ == "__main__":
    key = jax.random.PRNGKey(0)
    kx, kp = jax.random.split(key, 2)

    B, N = 2, 8
    x = jax.random.normal(kx, (B, N, FEAT_DIM), jnp.float32)
    # batch 0: no padding; batch 1: last 3 tokens padded
    mask = jnp.zeros((B, N), dtype=bool).at[1, 5:].set(True)

    params = init_params(kp)
    prepared = prepare_params(params)     # one-time fusion / padding / bf16 cast

    logits = fall_time2vec_transformer(x, mask, prepared)
    jax.block_until_ready(logits)
    assert logits.shape == (B, NUM_CLASSES)
    assert bool(jnp.all(jnp.isfinite(logits)))
    print("KERNEL_OK")
</pallas_src>

<mosaic_0001>
module attributes {stable_mosaic.version = 11 : i64} {
  func.func @_encoder_kernel(%arg0: i32, %arg1: memref<8x8x16xf32, #tpu.memory_space<vmem>>, %arg2: memref<8x8xf32, #tpu.memory_space<vmem>>, %arg3: memref<16x32xbf16, #tpu.memory_space<vmem>>, %arg4: memref<1x32xf32, #tpu.memory_space<vmem>>, %arg5: memref<2x32x96xbf16, #tpu.memory_space<vmem>>, %arg6: memref<2x1x96xf32, #tpu.memory_space<vmem>>, %arg7: memref<2x32x32xbf16, #tpu.memory_space<vmem>>, %arg8: memref<2x1x32xf32, #tpu.memory_space<vmem>>, %arg9: memref<2x1x32xf32, #tpu.memory_space<vmem>>, %arg10: memref<2x1x32xf32, #tpu.memory_space<vmem>>, %arg11: memref<2x1x32xf32, #tpu.memory_space<vmem>>, %arg12: memref<2x1x32xf32, #tpu.memory_space<vmem>>, %arg13: memref<2x32x128xbf16, #tpu.memory_space<vmem>>, %arg14: memref<2x1x128xf32, #tpu.memory_space<vmem>>, %arg15: memref<2x128x32xbf16, #tpu.memory_space<vmem>>, %arg16: memref<2x1x32xf32, #tpu.memory_space<vmem>>, %arg17: memref<32x128xbf16, #tpu.memory_space<vmem>>, %arg18: memref<1x128xf32, #tpu.memory_space<vmem>>, %arg19: memref<128x128xbf16, #tpu.memory_space<vmem>>, %arg20: memref<1x128xf32, #tpu.memory_space<vmem>>, %arg21: memref<8x128xf32, #tpu.memory_space<vmem>>) attributes {dimension_semantics = [#tpu.dimension_semantics<parallel>], iteration_bounds = array<i64: 1>, scalar_prefetch = 0 : i64, scratch_operands = 0 : i64, tpu.core_type = #tpu.core_type<tc>, window_params = [{transform_indices = @transform_0, window_bounds = array<i64: 8, 8, 16>}, {transform_indices = @transform_1, window_bounds = array<i64: 8, 8>}, {pipeline_mode = #tpu.pipeline_mode<synchronous>, transform_indices = @transform_2, window_bounds = array<i64: 16, 32>}, {pipeline_mode = #tpu.pipeline_mode<synchronous>, transform_indices = @transform_3, window_bounds = array<i64: 1, 32>}, {pipeline_mode = #tpu.pipeline_mode<synchronous>, transform_indices = @transform_4, window_bounds = array<i64: 2, 32, 96>}, {pipeline_mode = #tpu.pipeline_mode<synchronous>, transform_indices = @transform_5, window_bounds = array<i64: 2, 1, 96>}, {pipeline_mode = #tpu.pipeline_mode<synchronous>, transform_indices = @transform_6, window_bounds = array<i64: 2, 32, 32>}, {pipeline_mode = #tpu.pipeline_mode<synchronous>, transform_indices = @transform_7, window_bounds = array<i64: 2, 1, 32>}, {pipeline_mode = #tpu.pipeline_mode<synchronous>, transform_indices = @transform_8, window_bounds = array<i64: 2, 1, 32>}, {pipeline_mode = #tpu.pipeline_mode<synchronous>, transform_indices = @transform_9, window_bounds = array<i64: 2, 1, 32>}, {pipeline_mode = #tpu.pipeline_mode<synchronous>, transform_indices = @transform_10, window_bounds = array<i64: 2, 1, 32>}, {pipeline_mode = #tpu.pipeline_mode<synchronous>, transform_indices = @transform_11, window_bounds = array<i64: 2, 1, 32>}, {pipeline_mode = #tpu.pipeline_mode<synchronous>, transform_indices = @transform_12, window_bounds = array<i64: 2, 32, 128>}, {pipeline_mode = #tpu.pipeline_mode<synchronous>, transform_indices = @transform_13, window_bounds = array<i64: 2, 1, 128>}, {pipeline_mode = #tpu.pipeline_mode<synchronous>, transform_indices = @transform_14, window_bounds = array<i64: 2, 128, 32>}, {pipeline_mode = #tpu.pipeline_mode<synchronous>, transform_indices = @transform_15, window_bounds = array<i64: 2, 1, 32>}, {pipeline_mode = #tpu.pipeline_mode<synchronous>, transform_indices = @transform_16, window_bounds = array<i64: 32, 128>}, {pipeline_mode = #tpu.pipeline_mode<synchronous>, transform_indices = @transform_17, window_bounds = array<i64: 1, 128>}, {pipeline_mode = #tpu.pipeline_mode<synchronous>, transform_indices = @transform_18, window_bounds = array<i64: 128, 128>}, {pipeline_mode = #tpu.pipeline_mode<synchronous>, transform_indices = @transform_19, window_bounds = array<i64: 1, 128>}, {transform_indices = @transform_20, window_bounds = array<i64: 8, 128>}]} {
    %c0 = arith.constant 0 : index
    %c0_0 = arith.constant 0 : index
    %0 = vector.load %arg2[%c0, %c0_0] : memref<8x8xf32, #tpu.memory_space<vmem>>, vector<8x8xf32>
    %1 = vector.shape_cast %0 : vector<8x8xf32> to vector<8x1x8xf32>
    %cst = arith.constant -1.000000e+09 : f32
    %2 = vector.broadcast %cst : f32 to vector<8x1x8xf32>
    %3 = arith.mulf %1, %2 : vector<8x1x8xf32>
    %cst_1 = arith.constant 1.000000e+00 : f32
    %4 = vector.broadcast %cst_1 : f32 to vector<8x8xf32>
    %5 = arith.subf %4, %0 : vector<8x8xf32>
    %6 = vector.shape_cast %5 : vector<8x8xf32> to vector<8x8x1xf32>
    %c0_2 = arith.constant 0 : index
    %c0_3 = arith.constant 0 : index
    %c0_4 = arith.constant 0 : index
    %7 = vector.load %arg1[%c0_2, %c0_3, %c0_4] : memref<8x8x16xf32, #tpu.memory_space<vmem>>, vector<8x8x16xf32>
    %8 = vector.shape_cast %7 : vector<8x8x16xf32> to vector<64x16xf32>
    %9 = arith.truncf %8 : vector<64x16xf32> to vector<64x16xbf16>
    %c0_5 = arith.constant 0 : index
    %c0_6 = arith.constant 0 : index
    %10 = vector.load %arg3[%c0_5, %c0_6] : memref<16x32xbf16, #tpu.memory_space<vmem>>, vector<16x32xbf16>
    %cst_7 = arith.constant dense<0.000000e+00> : vector<64x32xf32>
    %11 = tpu.matmul %9, %10, %cst_7 {dimension_numbers = #tpu.dot_dimension_numbers<[1], [0], [0], [1], [0, 0, 1, 1], [], []>} : vector<64x16xbf16>, vector<16x32xbf16>, vector<64x32xf32> -> vector<64x32xf32>
    %c0_8 = arith.constant 0 : index
    %c0_9 = arith.constant 0 : index
    %12 = vector.load %arg4[%c0_8, %c0_9] : memref<1x32xf32, #tpu.memory_space<vmem>>, vector<1x32xf32>
    %13 = vector.broadcast %12 : vector<1x32xf32> to vector<64x32xf32>
    %14 = arith.addf %11, %13 : vector<64x32xf32>
    %15 = arith.truncf %14 : vector<64x32xf32> to vector<64x32xbf16>
    %c0_10 = arith.constant 0 : index
    %c0_11 = arith.constant 0 : index
    %c0_12 = arith.constant 0 : index
    %16 = vector.load %arg5[%c0_10, %c0_11, %c0_12] : memref<2x32x96xbf16, #tpu.memory_space<vmem>>, vector<1x32x96xbf16>
    %17 = vector.shape_cast %16 : vector<1x32x96xbf16> to vector<32x96xbf16>
    %cst_13 = arith.constant dense<0.000000e+00> : vector<64x96xf32>
    %18 = tpu.matmul %15, %17, %cst_13 {dimension_numbers = #tpu.dot_dimension_numbers<[1], [0], [0], [1], [0, 0, 1, 1], [], []>} : vector<64x32xbf16>, vector<32x96xbf16>, vector<64x96xf32> -> vector<64x96xf32>
    %c0_14 = arith.constant 0 : index
    %c0_15 = arith.constant 0 : index
    %c0_16 = arith.constant 0 : index
    %19 = vector.load %arg6[%c0_14, %c0_15, %c0_16] : memref<2x1x96xf32, #tpu.memory_space<vmem>>, vector<1x1x96xf32>
    %20 = vector.shape_cast %19 : vector<1x1x96xf32> to vector<1x96xf32>
    %21 = vector.broadcast %20 : vector<1x96xf32> to vector<64x96xf32>
    %22 = arith.addf %18, %21 : vector<64x96xf32>
    %23 = vector.shape_cast %22 : vector<64x96xf32> to vector<8x8x96xf32>
    %24 = vector.extract_strided_slice %23 {offsets = [0, 0, 0], sizes = [8, 8, 8], strides = [1, 1, 1]} : vector<8x8x96xf32> to vector<8x8x8xf32>
    %25 = arith.truncf %24 : vector<8x8x8xf32> to vector<8x8x8xbf16>
    %26 = vector.extract_strided_slice %23 {offsets = [0, 0, 32], sizes = [8, 8, 8], strides = [1, 1, 1]} : vector<8x8x96xf32> to vector<8x8x8xf32>
    %27 = arith.truncf %26 : vector<8x8x8xf32> to vector<8x8x8xbf16>
    %28 = vector.extract_strided_slice %23 {offsets = [0, 0, 64], sizes = [8, 8, 8], strides = [1, 1, 1]} : vector<8x8x96xf32> to vector<8x8x8xf32>
    %29 = arith.truncf %28 : vector<8x8x8xf32> to vector<8x8x8xbf16>
    "tpu.trace_start"() <{level = 10 : i32, message = "bqd,bkd->bqk"}> : () -> ()
    %cst_17 = arith.constant dense<0.000000e+00> : vector<8x8x8xf32>
    %30 = tpu.matmul %25, %27, %cst_17 {dimension_numbers = #tpu.dot_dimension_numbers<[2], [2], [1], [1], [0, 0, 0, 1, 1, 1], [0], [0]>} : vector<8x8x8xbf16>, vector<8x8x8xbf16>, vector<8x8x8xf32> -> vector<8x8x8xf32>
    "tpu.trace_stop"() : () -> ()
    %cst_18 = arith.constant 0.353553385 : f32
    %31 = vector.broadcast %cst_18 : f32 to vector<8x8x8xf32>
    %32 = arith.mulf %30, %31 : vector<8x8x8xf32>
    %33 = vector.broadcast %3 : vector<8x1x8xf32> to vector<8x8x8xf32>
    %34 = arith.addf %32, %33 : vector<8x8x8xf32>
    %cst_19 = arith.constant dense<0xFF800000> : vector<8x8xf32>
    %35 = vector.multi_reduction <maximumf>, %34, %cst_19 [2] : vector<8x8x8xf32> to vector<8x8xf32>
    %36 = vector.shape_cast %35 : vector<8x8xf32> to vector<8x8x1xf32>
    %37 = vector.broadcast %36 : vector<8x8x1xf32> to vector<8x8x8xf32>
    %38 = arith.subf %34, %37 : vector<8x8x8xf32>
    %39 = math.exp %38 : vector<8x8x8xf32>
    %cst_20 = arith.constant dense<0.000000e+00> : vector<8x8xf32>
    %40 = vector.multi_reduction <add>, %39, %cst_20 [2] : vector<8x8x8xf32> to vector<8x8xf32>
    %41 = vector.shape_cast %40 : vector<8x8xf32> to vector<8x8x1xf32>
    %42 = tpu.reciprocal %41 {approx = true} : vector<8x8x1xf32> -> vector<8x8x1xf32>
    %43 = vector.broadcast %42 : vector<8x8x1xf32> to vector<8x8x8xf32>
    %44 = arith.mulf %39, %43 : vector<8x8x8xf32>
    %45 = arith.truncf %44 : vector<8x8x8xf32> to vector<8x8x8xbf16>
    "tpu.trace_start"() <{level = 10 : i32, message = "bqk,bkd->bqd"}> : () -> ()
    %cst_21 = arith.constant dense<0.000000e+00> : vector<8x8x8xf32>
    %46 = tpu.matmul %45, %29, %cst_21 {dimension_numbers = #tpu.dot_dimension_numbers<[2], [1], [1], [2], [0, 0, 0, 1, 1, 2], [0], [0]>} : vector<8x8x8xbf16>, vector<8x8x8xbf16>, vector<8x8x8xf32> -> vector<8x8x8xf32>
    "tpu.trace_stop"() : () -> ()
    %47 = vector.extract_strided_slice %23 {offsets = [0, 0, 8], sizes = [8, 8, 8], strides = [1, 1, 1]} : vector<8x8x96xf32> to vector<8x8x8xf32>
    %48 = arith.truncf %47 : vector<8x8x8xf32> to vector<8x8x8xbf16>
    %49 = vector.extract_strided_slice %23 {offsets = [0, 0, 40], sizes = [8, 8, 8], strides = [1, 1, 1]} : vector<8x8x96xf32> to vector<8x8x8xf32>
    %50 = arith.truncf %49 : vector<8x8x8xf32> to vector<8x8x8xbf16>
    %51 = vector.extract_strided_slice %23 {offsets = [0, 0, 72], sizes = [8, 8, 8], strides = [1, 1, 1]} : vector<8x8x96xf32> to vector<8x8x8xf32>
    %52 = arith.truncf %51 : vector<8x8x8xf32> to vector<8x8x8xbf16>
    "tpu.trace_start"() <{level = 10 : i32, message = "bqd,bkd->bqk"}> : () -> ()
    %cst_22 = arith.constant dense<0.000000e+00> : vector<8x8x8xf32>
    %53 = tpu.matmul %48, %50, %cst_22 {dimension_numbers = #tpu.dot_dimension_numbers<[2], [2], [1], [1], [0, 0, 0, 1, 1, 1], [0], [0]>} : vector<8x8x8xbf16>, vector<8x8x8xbf16>, vector<8x8x8xf32> -> vector<8x8x8xf32>
    "tpu.trace_stop"() : () -> ()
    %cst_23 = arith.constant 0.353553385 : f32
    %54 = vector.broadcast %cst_23 : f32 to vector<8x8x8xf32>
    %55 = arith.mulf %53, %54 : vector<8x8x8xf32>
    %56 = vector.broadcast %3 : vector<8x1x8xf32> to vector<8x8x8xf32>
    %57 = arith.addf %55, %56 : vector<8x8x8xf32>
    %cst_24 = arith.constant dense<0xFF800000> : vector<8x8xf32>
    %58 = vector.multi_reduction <maximumf>, %57, %cst_24 [2] : vector<8x8x8xf32> to vector<8x8xf32>
    %59 = vector.shape_cast %58 : vector<8x8xf32> to vector<8x8x1xf32>
    %60 = vector.broadcast %59 : vector<8x8x1xf32> to vector<8x8x8xf32>
    %61 = arith.subf %57, %60 : vector<8x8x8xf32>
    %62 = math.exp %61 : vector<8x8x8xf32>
    %cst_25 = arith.constant dense<0.000000e+00> : vector<8x8xf32>
    %63 = vector.multi_reduction <add>, %62, %cst_25 [2] : vector<8x8x8xf32> to vector<8x8xf32>
    %64 = vector.shape_cast %63 : vector<8x8xf32> to vector<8x8x1xf32>
    %65 = tpu.reciprocal %64 {approx = true} : vector<8x8x1xf32> -> vector<8x8x1xf32>
    %66 = vector.broadcast %65 : vector<8x8x1xf32> to vector<8x8x8xf32>
    %67 = arith.mulf %62, %66 : vector<8x8x8xf32>
    %68 = arith.truncf %67 : vector<8x8x8xf32> to vector<8x8x8xbf16>
    "tpu.trace_start"() <{level = 10 : i32, message = "bqk,bkd->bqd"}> : () -> ()
    %cst_26 = arith.constant dense<0.000000e+00> : vector<8x8x8xf32>
    %69 = tpu.matmul %68, %52, %cst_26 {dimension_numbers = #tpu.dot_dimension_numbers<[2], [1], [1], [2], [0, 0, 0, 1, 1, 2], [0], [0]>} : vector<8x8x8xbf16>, vector<8x8x8xbf16>, vector<8x8x8xf32> -> vector<8x8x8xf32>
    "tpu.trace_stop"() : () -> ()
    %70 = vector.extract_strided_slice %23 {offsets = [0, 0, 16], sizes = [8, 8, 8], strides = [1, 1, 1]} : vector<8x8x96xf32> to vector<8x8x8xf32>
    %71 = arith.truncf %70 : vector<8x8x8xf32> to vector<8x8x8xbf16>
    %72 = vector.extract_strided_slice %23 {offsets = [0, 0, 48], sizes = [8, 8, 8], strides = [1, 1, 1]} : vector<8x8x96xf32> to vector<8x8x8xf32>
    %73 = arith.truncf %72 : vector<8x8x8xf32> to vector<8x8x8xbf16>
    %74 = vector.extract_strided_slice %23 {offsets = [0, 0, 80], sizes = [8, 8, 8], strides = [1, 1, 1]} : vector<8x8x96xf32> to vector<8x8x8xf32>
    %75 = arith.truncf %74 : vector<8x8x8xf32> to vector<8x8x8xbf16>
    "tpu.trace_start"() <{level = 10 : i32, message = "bqd,bkd->bqk"}> : () -> ()
    %cst_27 = arith.constant dense<0.000000e+00> : vector<8x8x8xf32>
    %76 = tpu.matmul %71, %73, %cst_27 {dimension_numbers = #tpu.dot_dimension_numbers<[2], [2], [1], [1], [0, 0, 0, 1, 1, 1], [0], [0]>} : vector<8x8x8xbf16>, vector<8x8x8xbf16>, vector<8x8x8xf32> -> vector<8x8x8xf32>
    "tpu.trace_stop"() : () -> ()
    %cst_28 = arith.constant 0.353553385 : f32
    %77 = vector.broadcast %cst_28 : f32 to vector<8x8x8xf32>
    %78 = arith.mulf %76, %77 : vector<8x8x8xf32>
    %79 = vector.broadcast %3 : vector<8x1x8xf32> to vector<8x8x8xf32>
    %80 = arith.addf %78, %79 : vector<8x8x8xf32>
    %cst_29 = arith.constant dense<0xFF800000> : vector<8x8xf32>
    %81 = vector.multi_reduction <maximumf>, %80, %cst_29 [2] : vector<8x8x8xf32> to vector<8x8xf32>
    %82 = vector.shape_cast %81 : vector<8x8xf32> to vector<8x8x1xf32>
    %83 = vector.broadcast %82 : vector<8x8x1xf32> to vector<8x8x8xf32>
    %84 = arith.subf %80, %83 : vector<8x8x8xf32>
    %85 = math.exp %84 : vector<8x8x8xf32>
    %cst_30 = arith.constant dense<0.000000e+00> : vector<8x8xf32>
    %86 = vector.multi_reduction <add>, %85, %cst_30 [2] : vector<8x8x8xf32> to vector<8x8xf32>
    %87 = vector.shape_cast %86 : vector<8x8xf32> to vector<8x8x1xf32>
    %88 = tpu.reciprocal %87 {approx = true} : vector<8x8x1xf32> -> vector<8x8x1xf32>
    %89 = vector.broadcast %88 : vector<8x8x1xf32> to vector<8x8x8xf32>
    %90 = arith.mulf %85, %89 : vector<8x8x8xf32>
    %91 = arith.truncf %90 : vector<8x8x8xf32> to vector<8x8x8xbf16>
    "tpu.trace_start"() <{level = 10 : i32, message = "bqk,bkd->bqd"}> : () -> ()
    %cst_31 = arith.constant dense<0.000000e+00> : vector<8x8x8xf32>
    %92 = tpu.matmul %91, %75, %cst_31 {dimension_numbers = #tpu.dot_dimension_numbers<[2], [1], [1], [2], [0, 0, 0, 1, 1, 2], [0], [0]>} : vector<8x8x8xbf16>, vector<8x8x8xbf16>, vector<8x8x8xf32> -> vector<8x8x8xf32>
    "tpu.trace_stop"() : () -> ()
    %93 = vector.extract_strided_slice %23 {offsets = [0, 0, 24], sizes = [8, 8, 8], strides = [1, 1, 1]} : vector<8x8x96xf32> to vector<8x8x8xf32>
    %94 = arith.truncf %93 : vector<8x8x8xf32> to vector<8x8x8xbf16>
    %95 = vector.extract_strided_slice %23 {offsets = [0, 0, 56], sizes = [8, 8, 8], strides = [1, 1, 1]} : vector<8x8x96xf32> to vector<8x8x8xf32>
    %96 = arith.truncf %95 : vector<8x8x8xf32> to vector<8x8x8xbf16>
    %97 = vector.extract_strided_slice %23 {offsets = [0, 0, 88], sizes = [8, 8, 8], strides = [1, 1, 1]} : vector<8x8x96xf32> to vector<8x8x8xf32>
    %98 = arith.truncf %97 : vector<8x8x8xf32> to vector<8x8x8xbf16>
    "tpu.trace_start"() <{level = 10 : i32, message = "bqd,bkd->bqk"}> : () -> ()
    %cst_32 = arith.constant dense<0.000000e+00> : vector<8x8x8xf32>
    %99 = tpu.matmul %94, %96, %cst_32 {dimension_numbers = #tpu.dot_dimension_numbers<[2], [2], [1], [1], [0, 0, 0, 1, 1, 1], [0], [0]>} : vector<8x8x8xbf16>, vector<8x8x8xbf16>, vector<8x8x8xf32> -> vector<8x8x8xf32>
    "tpu.trace_stop"() : () -> ()
    %cst_33 = arith.constant 0.353553385 : f32
    %100 = vector.broadcast %cst_33 : f32 to vector<8x8x8xf32>
    %101 = arith.mulf %99, %100 : vector<8x8x8xf32>
    %102 = vector.broadcast %3 : vector<8x1x8xf32> to vector<8x8x8xf32>
    %103 = arith.addf %101, %102 : vector<8x8x8xf32>
    %cst_34 = arith.constant dense<0xFF800000> : vector<8x8xf32>
    %104 = vector.multi_reduction <maximumf>, %103, %cst_34 [2] : vector<8x8x8xf32> to vector<8x8xf32>
    %105 = vector.shape_cast %104 : vector<8x8xf32> to vector<8x8x1xf32>
    %106 = vector.broadcast %105 : vector<8x8x1xf32> to vector<8x8x8xf32>
    %107 = arith.subf %103, %106 : vector<8x8x8xf32>
    %108 = math.exp %107 : vector<8x8x8xf32>
    %cst_35 = arith.constant dense<0.000000e+00> : vector<8x8xf32>
    %109 = vector.multi_reduction <add>, %108, %cst_35 [2] : vector<8x8x8xf32> to vector<8x8xf32>
    %110 = vector.shape_cast %109 : vector<8x8xf32> to vector<8x8x1xf32>
    %111 = tpu.reciprocal %110 {approx = true} : vector<8x8x1xf32> -> vector<8x8x1xf32>
    %112 = vector.broadcast %111 : vector<8x8x1xf32> to vector<8x8x8xf32>
    %113 = arith.mulf %108, %112 : vector<8x8x8xf32>
    %114 = arith.truncf %113 : vector<8x8x8xf32> to vector<8x8x8xbf16>
    "tpu.trace_start"() <{level = 10 : i32, message = "bqk,bkd->bqd"}> : () -> ()
    %cst_36 = arith.constant dense<0.000000e+00> : vector<8x8x8xf32>
    %115 = tpu.matmul %114, %98, %cst_36 {dimension_numbers = #tpu.dot_dimension_numbers<[2], [1], [1], [2], [0, 0, 0, 1, 1, 2], [0], [0]>} : vector<8x8x8xbf16>, vector<8x8x8xbf16>, vector<8x8x8xf32> -> vector<8x8x8xf32>
    "tpu.trace_stop"() : () -> ()
    %116 = tpu.concatenate %46, %69, %92, %115 in 2 : vector<8x8x8xf32>, vector<8x8x8xf32>, vector<8x8x8xf32>, vector<8x8x8xf32> -> vector<8x8x32xf32>
    %117 = vector.shape_cast %116 : vector<8x8x32xf32> to vector<64x32xf32>
    %118 = arith.truncf %117 : vector<64x32xf32> to vector<64x32xbf16>
    %c0_37 = arith.constant 0 : index
    %c0_38 = arith.constant 0 : index
    %c0_39 = arith.constant 0 : index
    %119 = vector.load %arg7[%c0_37, %c0_38, %c0_39] : memref<2x32x32xbf16, #tpu.memory_space<vmem>>, vector<1x32x32xbf16>
    %120 = vector.shape_cast %119 : vector<1x32x32xbf16> to vector<32x32xbf16>
    %cst_40 = arith.constant dense<0.000000e+00> : vector<64x32xf32>
    %121 = tpu.matmul %118, %120, %cst_40 {dimension_numbers = #tpu.dot_dimension_numbers<[1], [0], [0], [1], [0, 0, 1, 1], [], []>} : vector<64x32xbf16>, vector<32x32xbf16>, vector<64x32xf32> -> vector<64x32xf32>
    %c0_41 = arith.constant 0 : index
    %c0_42 = arith.constant 0 : index
    %c0_43 = arith.constant 0 : index
    %122 = vector.load %arg8[%c0_41, %c0_42, %c0_43] : memref<2x1x32xf32, #tpu.memory_space<vmem>>, vector<1x1x32xf32>
    %123 = vector.shape_cast %122 : vector<1x1x32xf32> to vector<1x32xf32>
    %124 = vector.broadcast %123 : vector<1x32xf32> to vector<64x32xf32>
    %125 = arith.addf %121, %124 : vector<64x32xf32>
    %126 = arith.addf %14, %125 : vector<64x32xf32>
    %c0_44 = arith.constant 0 : index
    %c0_45 = arith.constant 0 : index
    %c0_46 = arith.constant 0 : index
    %127 = vector.load %arg9[%c0_44, %c0_45, %c0_46] : memref<2x1x32xf32, #tpu.memory_space<vmem>>, vector<1x1x32xf32>
    %128 = vector.shape_cast %127 : vector<1x1x32xf32> to vector<1x32xf32>
    %c0_47 = arith.constant 0 : index
    %c0_48 = arith.constant 0 : index
    %c0_49 = arith.constant 0 : index
    %129 = vector.load %arg10[%c0_47, %c0_48, %c0_49] : memref<2x1x32xf32, #tpu.memory_space<vmem>>, vector<1x1x32xf32>
    %130 = vector.shape_cast %129 : vector<1x1x32xf32> to vector<1x32xf32>
    %cst_50 = arith.constant dense<0.000000e+00> : vector<64xf32>
    %131 = vector.multi_reduction <add>, %126, %cst_50 [1] : vector<64x32xf32> to vector<64xf32>
    %132 = vector.shape_cast %131 : vector<64xf32> to vector<64x1xf32>
    %cst_51 = arith.constant 3.200000e+01 : f32
    %133 = vector.broadcast %cst_51 : f32 to vector<64x1xf32>
    %134 = arith.divf %132, %133 : vector<64x1xf32>
    %135 = vector.broadcast %134 : vector<64x1xf32> to vector<64x32xf32>
    %136 = arith.subf %126, %135 : vector<64x32xf32>
    %137 = arith.mulf %136, %136 : vector<64x32xf32>
    %cst_52 = arith.constant dense<0.000000e+00> : vector<64xf32>
    %138 = vector.multi_reduction <add>, %137, %cst_52 [1] : vector<64x32xf32> to vector<64xf32>
    %139 = vector.shape_cast %138 : vector<64xf32> to vector<64x1xf32>
    %cst_53 = arith.constant 3.200000e+01 : f32
    %140 = vector.broadcast %cst_53 : f32 to vector<64x1xf32>
    %141 = arith.divf %139, %140 : vector<64x1xf32>
    %142 = vector.broadcast %134 : vector<64x1xf32> to vector<64x32xf32>
    %143 = arith.subf %126, %142 : vector<64x32xf32>
    %cst_54 = arith.constant 9.99999974E-6 : f32
    %144 = vector.broadcast %cst_54 : f32 to vector<64x1xf32>
    %145 = arith.addf %141, %144 : vector<64x1xf32>
    %146 = math.rsqrt %145 : vector<64x1xf32>
    %147 = vector.broadcast %146 : vector<64x1xf32> to vector<64x32xf32>
    %148 = arith.mulf %143, %147 : vector<64x32xf32>
    %149 = vector.broadcast %128 : vector<1x32xf32> to vector<64x32xf32>
    %150 = arith.mulf %148, %149 : vector<64x32xf32>
    %151 = vector.broadcast %130 : vector<1x32xf32> to vector<64x32xf32>
    %152 = arith.addf %150, %151 : vector<64x32xf32>
    %153 = arith.truncf %152 : vector<64x32xf32> to vector<64x32xbf16>
    %c0_55 = arith.constant 0 : index
    %c0_56 = arith.constant 0 : index
    %c0_57 = arith.constant 0 : index
    %154 = vector.load %arg13[%c0_55, %c0_56, %c0_57] : memref<2x32x128xbf16, #tpu.memory_space<vmem>>, vector<1x32x128xbf16>
    %155 = vector.shape_cast %154 : vector<1x32x128xbf16> to vector<32x128xbf16>
    %cst_58 = arith.constant dense<0.000000e+00> : vector<64x128xf32>
    %156 = tpu.matmul %153, %155, %cst_58 {dimension_numbers = #tpu.dot_dimension_numbers<[1], [0], [0], [1], [0, 0, 1, 1], [], []>} : vector<64x32xbf16>, vector<32x128xbf16>, vector<64x128xf32> -> vector<64x128xf32>
    %c0_59 = arith.constant 0 : index
    %c0_60 = arith.constant 0 : index
    %c0_61 = arith.constant 0 : index
    %157 = vector.load %arg14[%c0_59, %c0_60, %c0_61] : memref<2x1x128xf32, #tpu.memory_space<vmem>>, vector<1x1x128xf32>
    %158 = vector.shape_cast %157 : vector<1x1x128xf32> to vector<1x128xf32>
    %159 = vector.broadcast %158 : vector<1x128xf32> to vector<64x128xf32>
    %160 = arith.addf %156, %159 : vector<64x128xf32>
    %cst_62 = arith.constant 0.000000e+00 : f32
    %161 = vector.broadcast %cst_62 : f32 to vector<64x128xf32>
    %162 = arith.maximumf %160, %161 : vector<64x128xf32>
    %163 = arith.truncf %162 : vector<64x128xf32> to vector<64x128xbf16>
    %c0_63 = arith.constant 0 : index
    %c0_64 = arith.constant 0 : index
    %c0_65 = arith.constant 0 : index
    %164 = vector.load %arg15[%c0_63, %c0_64, %c0_65] : memref<2x128x32xbf16, #tpu.memory_space<vmem>>, vector<1x128x32xbf16>
    %165 = vector.shape_cast %164 : vector<1x128x32xbf16> to vector<128x32xbf16>
    %cst_66 = arith.constant dense<0.000000e+00> : vector<64x32xf32>
    %166 = tpu.matmul %163, %165, %cst_66 {dimension_numbers = #tpu.dot_dimension_numbers<[1], [0], [0], [1], [0, 0, 1, 1], [], []>} : vector<64x128xbf16>, vector<128x32xbf16>, vector<64x32xf32> -> vector<64x32xf32>
    %c0_67 = arith.constant 0 : index
    %c0_68 = arith.constant 0 : index
    %c0_69 = arith.constant 0 : index
    %167 = vector.load %arg16[%c0_67, %c0_68, %c0_69] : memref<2x1x32xf32, #tpu.memory_space<vmem>>, vector<1x1x32xf32>
    %168 = vector.shape_cast %167 : vector<1x1x32xf32> to vector<1x32xf32>
    %169 = vector.broadcast %168 : vector<1x32xf32> to vector<64x32xf32>
    %170 = arith.addf %166, %169 : vector<64x32xf32>
    %171 = arith.addf %152, %170 : vector<64x32xf32>
    %c0_70 = arith.constant 0 : index
    %c0_71 = arith.constant 0 : index
    %c0_72 = arith.constant 0 : index
    %172 = vector.load %arg11[%c0_70, %c0_71, %c0_72] : memref<2x1x32xf32, #tpu.memory_space<vmem>>, vector<1x1x32xf32>
    %173 = vector.shape_cast %172 : vector<1x1x32xf32> to vector<1x32xf32>
    %c0_73 = arith.constant 0 : index
    %c0_74 = arith.constant 0 : index
    %c0_75 = arith.constant 0 : index
    %174 = vector.load %arg12[%c0_73, %c0_74, %c0_75] : memref<2x1x32xf32, #tpu.memory_space<vmem>>, vector<1x1x32xf32>
    %175 = vector.shape_cast %174 : vector<1x1x32xf32> to vector<1x32xf32>
    %cst_76 = arith.constant dense<0.000000e+00> : vector<64xf32>
    %176 = vector.multi_reduction <add>, %171, %cst_76 [1] : vector<64x32xf32> to vector<64xf32>
    %177 = vector.shape_cast %176 : vector<64xf32> to vector<64x1xf32>
    %cst_77 = arith.constant 3.200000e+01 : f32
    %178 = vector.broadcast %cst_77 : f32 to vector<64x1xf32>
    %179 = arith.divf %177, %178 : vector<64x1xf32>
    %180 = vector.broadcast %179 : vector<64x1xf32> to vector<64x32xf32>
    %181 = arith.subf %171, %180 : vector<64x32xf32>
    %182 = arith.mulf %181, %181 : vector<64x32xf32>
    %cst_78 = arith.constant dense<0.000000e+00> : vector<64xf32>
    %183 = vector.multi_reduction <add>, %182, %cst_78 [1] : vector<64x32xf32> to vector<64xf32>
    %184 = vector.shape_cast %183 : vector<64xf32> to vector<64x1xf32>
    %cst_79 = arith.constant 3.200000e+01 : f32
    %185 = vector.broadcast %cst_79 : f32 to vector<64x1xf32>
    %186 = arith.divf %184, %185 : vector<64x1xf32>
    %187 = vector.broadcast %179 : vector<64x1xf32> to vector<64x32xf32>
    %188 = arith.subf %171, %187 : vector<64x32xf32>
    %cst_80 = arith.constant 9.99999974E-6 : f32
    %189 = vector.broadcast %cst_80 : f32 to vector<64x1xf32>
    %190 = arith.addf %186, %189 : vector<64x1xf32>
    %191 = math.rsqrt %190 : vector<64x1xf32>
    %192 = vector.broadcast %191 : vector<64x1xf32> to vector<64x32xf32>
    %193 = arith.mulf %188, %192 : vector<64x32xf32>
    %194 = vector.broadcast %173 : vector<1x32xf32> to vector<64x32xf32>
    %195 = arith.mulf %193, %194 : vector<64x32xf32>
    %196 = vector.broadcast %175 : vector<1x32xf32> to vector<64x32xf32>
    %197 = arith.addf %195, %196 : vector<64x32xf32>
    %198 = arith.truncf %197 : vector<64x32xf32> to vector<64x32xbf16>
    %c1 = arith.constant 1 : index
    %c0_81 = arith.constant 0 : index
    %c0_82 = arith.constant 0 : index
    %199 = vector.load %arg5[%c1, %c0_81, %c0_82] : memref<2x32x96xbf16, #tpu.memory_space<vmem>>, vector<1x32x96xbf16>
    %200 = vector.shape_cast %199 : vector<1x32x96xbf16> to vector<32x96xbf16>
    %cst_83 = arith.constant dense<0.000000e+00> : vector<64x96xf32>
    %201 = tpu.matmul %198, %200, %cst_83 {dimension_numbers = #tpu.dot_dimension_numbers<[1], [0], [0], [1], [0, 0, 1, 1], [], []>} : vector<64x32xbf16>, vector<32x96xbf16>, vector<64x96xf32> -> vector<64x96xf32>
    %c1_84 = arith.constant 1 : index
    %c0_85 = arith.constant 0 : index
    %c0_86 = arith.constant 0 : index
    %202 = vector.load %arg6[%c1_84, %c0_85, %c0_86] : memref<2x1x96xf32, #tpu.memory_space<vmem>>, vector<1x1x96xf32>
    %203 = vector.shape_cast %202 : vector<1x1x96xf32> to vector<1x96xf32>
    %204 = vector.broadcast %203 : vector<1x96xf32> to vector<64x96xf32>
    %205 = arith.addf %201, %204 : vector<64x96xf32>
    %206 = vector.shape_cast %205 : vector<64x96xf32> to vector<8x8x96xf32>
    %207 = vector.extract_strided_slice %206 {offsets = [0, 0, 0], sizes = [8, 8, 8], strides = [1, 1, 1]} : vector<8x8x96xf32> to vector<8x8x8xf32>
    %208 = arith.truncf %207 : vector<8x8x8xf32> to vector<8x8x8xbf16>
    %209 = vector.extract_strided_slice %206 {offsets = [0, 0, 32], sizes = [8, 8, 8], strides = [1, 1, 1]} : vector<8x8x96xf32> to vector<8x8x8xf32>
    %210 = arith.truncf %209 : vector<8x8x8xf32> to vector<8x8x8xbf16>
    %211 = vector.extract_strided_slice %206 {offsets = [0, 0, 64], sizes = [8, 8, 8], strides = [1, 1, 1]} : vector<8x8x96xf32> to vector<8x8x8xf32>
    %212 = arith.truncf %211 : vector<8x8x8xf32> to vector<8x8x8xbf16>
    "tpu.trace_start"() <{level = 10 : i32, message = "bqd,bkd->bqk"}> : () -> ()
    %cst_87 = arith.constant dense<0.000000e+00> : vector<8x8x8xf32>
    %213 = tpu.matmul %208, %210, %cst_87 {dimension_numbers = #tpu.dot_dimension_numbers<[2], [2], [1], [1], [0, 0, 0, 1, 1, 1], [0], [0]>} : vector<8x8x8xbf16>, vector<8x8x8xbf16>, vector<8x8x8xf32> -> vector<8x8x8xf32>
    "tpu.trace_stop"() : () -> ()
    %cst_88 = arith.constant 0.353553385 : f32
    %214 = vector.broadcast %cst_88 : f32 to vector<8x8x8xf32>
    %215 = arith.mulf %213, %214 : vector<8x8x8xf32>
    %216 = vector.broadcast %3 : vector<8x1x8xf32> to vector<8x8x8xf32>
    %217 = arith.addf %215, %216 : vector<8x8x8xf32>
    %cst_89 = arith.constant dense<0xFF800000> : vector<8x8xf32>
    %218 = vector.multi_reduction <maximumf>, %217, %cst_89 [2] : vector<8x8x8xf32> to vector<8x8xf32>
    %219 = vector.shape_cast %218 : vector<8x8xf32> to vector<8x8x1xf32>
    %220 = vector.broadcast %219 : vector<8x8x1xf32> to vector<8x8x8xf32>
    %221 = arith.subf %217, %220 : vector<8x8x8xf32>
    %222 = math.exp %221 : vector<8x8x8xf32>
    %cst_90 = arith.constant dense<0.000000e+00> : vector<8x8xf32>
    %223 = vector.multi_reduction <add>, %222, %cst_90 [2] : vector<8x8x8xf32> to vector<8x8xf32>
    %224 = vector.shape_cast %223 : vector<8x8xf32> to vector<8x8x1xf32>
    %225 = tpu.reciprocal %224 {approx = true} : vector<8x8x1xf32> -> vector<8x8x1xf32>
    %226 = vector.broadcast %225 : vector<8x8x1xf32> to vector<8x8x8xf32>
    %227 = arith.mulf %222, %226 : vector<8x8x8xf32>
    %228 = arith.truncf %227 : vector<8x8x8xf32> to vector<8x8x8xbf16>
    "tpu.trace_start"() <{level = 10 : i32, message = "bqk,bkd->bqd"}> : () -> ()
    %cst_91 = arith.constant dense<0.000000e+00> : vector<8x8x8xf32>
    %229 = tpu.matmul %228, %212, %cst_91 {dimension_numbers = #tpu.dot_dimension_numbers<[2], [1], [1], [2], [0, 0, 0, 1, 1, 2], [0], [0]>} : vector<8x8x8xbf16>, vector<8x8x8xbf16>, vector<8x8x8xf32> -> vector<8x8x8xf32>
    "tpu.trace_stop"() : () -> ()
    %230 = vector.extract_strided_slice %206 {offsets = [0, 0, 8], sizes = [8, 8, 8], strides = [1, 1, 1]} : vector<8x8x96xf32> to vector<8x8x8xf32>
    %231 = arith.truncf %230 : vector<8x8x8xf32> to vector<8x8x8xbf16>
    %232 = vector.extract_strided_slice %206 {offsets = [0, 0, 40], sizes = [8, 8, 8], strides = [1, 1, 1]} : vector<8x8x96xf32> to vector<8x8x8xf32>
    %233 = arith.truncf %232 : vector<8x8x8xf32> to vector<8x8x8xbf16>
    %234 = vector.extract_strided_slice %206 {offsets = [0, 0, 72], sizes = [8, 8, 8], strides = [1, 1, 1]} : vector<8x8x96xf32> to vector<8x8x8xf32>
    %235 = arith.truncf %234 : vector<8x8x8xf32> to vector<8x8x8xbf16>
    "tpu.trace_start"() <{level = 10 : i32, message = "bqd,bkd->bqk"}> : () -> ()
    %cst_92 = arith.constant dense<0.000000e+00> : vector<8x8x8xf32>
    %236 = tpu.matmul %231, %233, %cst_92 {dimension_numbers = #tpu.dot_dimension_numbers<[2], [2], [1], [1], [0, 0, 0, 1, 1, 1], [0], [0]>} : vector<8x8x8xbf16>, vector<8x8x8xbf16>, vector<8x8x8xf32> -> vector<8x8x8xf32>
    "tpu.trace_stop"() : () -> ()
    %cst_93 = arith.constant 0.353553385 : f32
    %237 = vector.broadcast %cst_93 : f32 to vector<8x8x8xf32>
    %238 = arith.mulf %236, %237 : vector<8x8x8xf32>
    %239 = vector.broadcast %3 : vector<8x1x8xf32> to vector<8x8x8xf32>
    %240 = arith.addf %238, %239 : vector<8x8x8xf32>
    %cst_94 = arith.constant dense<0xFF800000> : vector<8x8xf32>
    %241 = vector.multi_reduction <maximumf>, %240, %cst_94 [2] : vector<8x8x8xf32> to vector<8x8xf32>
    %242 = vector.shape_cast %241 : vector<8x8xf32> to vector<8x8x1xf32>
    %243 = vector.broadcast %242 : vector<8x8x1xf32> to vector<8x8x8xf32>
    %244 = arith.subf %240, %243 : vector<8x8x8xf32>
    %245 = math.exp %244 : vector<8x8x8xf32>
    %cst_95 = arith.constant dense<0.000000e+00> : vector<8x8xf32>
    %246 = vector.multi_reduction <add>, %245, %cst_95 [2] : vector<8x8x8xf32> to vector<8x8xf32>
    %247 = vector.shape_cast %246 : vector<8x8xf32> to vector<8x8x1xf32>
    %248 = tpu.reciprocal %247 {approx = true} : vector<8x8x1xf32> -> vector<8x8x1xf32>
    %249 = vector.broadcast %248 : vector<8x8x1xf32> to vector<8x8x8xf32>
    %250 = arith.mulf %245, %249 : vector<8x8x8xf32>
    %251 = arith.truncf %250 : vector<8x8x8xf32> to vector<8x8x8xbf16>
    "tpu.trace_start"() <{level = 10 : i32, message = "bqk,bkd->bqd"}> : () -> ()
    %cst_96 = arith.constant dense<0.000000e+00> : vector<8x8x8xf32>
    %252 = tpu.matmul %251, %235, %cst_96 {dimension_numbers = #tpu.dot_dimension_numbers<[2], [1], [1], [2], [0, 0, 0, 1, 1, 2], [0], [0]>} : vector<8x8x8xbf16>, vector<8x8x8xbf16>, vector<8x8x8xf32> -> vector<8x8x8xf32>
    "tpu.trace_stop"() : () -> ()
    %253 = vector.extract_strided_slice %206 {offsets = [0, 0, 16], sizes = [8, 8, 8], strides = [1, 1, 1]} : vector<8x8x96xf32> to vector<8x8x8xf32>
    %254 = arith.truncf %253 : vector<8x8x8xf32> to vector<8x8x8xbf16>
    %255 = vector.extract_strided_slice %206 {offsets = [0, 0, 48], sizes = [8, 8, 8], strides = [1, 1, 1]} : vector<8x8x96xf32> to vector<8x8x8xf32>
    %256 = arith.truncf %255 : vector<8x8x8xf32> to vector<8x8x8xbf16>
    %257 = vector.extract_strided_slice %206 {offsets = [0, 0, 80], sizes = [8, 8, 8], strides = [1, 1, 1]} : vector<8x8x96xf32> to vector<8x8x8xf32>
    %258 = arith.truncf %257 : vector<8x8x8xf32> to vector<8x8x8xbf16>
    "tpu.trace_start"() <{level = 10 : i32, message = "bqd,bkd->bqk"}> : () -> ()
    %cst_97 = arith.constant dense<0.000000e+00> : vector<8x8x8xf32>
    %259 = tpu.matmul %254, %256, %cst_97 {dimension_numbers = #tpu.dot_dimension_numbers<[2], [2], [1], [1], [0, 0, 0, 1, 1, 1], [0], [0]>} : vector<8x8x8xbf16>, vector<8x8x8xbf16>, vector<8x8x8xf32> -> vector<8x8x8xf32>
    "tpu.trace_stop"() : () -> ()
    %cst_98 = arith.constant 0.353553385 : f32
    %260 = vector.broadcast %cst_98 : f32 to vector<8x8x8xf32>
    %261 = arith.mulf %259, %260 : vector<8x8x8xf32>
    %262 = vector.broadcast %3 : vector<8x1x8xf32> to vector<8x8x8xf32>
    %263 = arith.addf %261, %262 : vector<8x8x8xf32>
    %cst_99 = arith.constant dense<0xFF800000> : vector<8x8xf32>
    %264 = vector.multi_reduction <maximumf>, %263, %cst_99 [2] : vector<8x8x8xf32> to vector<8x8xf32>
    %265 = vector.shape_cast %264 : vector<8x8xf32> to vector<8x8x1xf32>
    %266 = vector.broadcast %265 : vector<8x8x1xf32> to vector<8x8x8xf32>
    %267 = arith.subf %263, %266 : vector<8x8x8xf32>
    %268 = math.exp %267 : vector<8x8x8xf32>
    %cst_100 = arith.constant dense<0.000000e+00> : vector<8x8xf32>
    %269 = vector.multi_reduction <add>, %268, %cst_100 [2] : vector<8x8x8xf32> to vector<8x8xf32>
    %270 = vector.shape_cast %269 : vector<8x8xf32> to vector<8x8x1xf32>
    %271 = tpu.reciprocal %270 {approx = true} : vector<8x8x1xf32> -> vector<8x8x1xf32>
    %272 = vector.broadcast %271 : vector<8x8x1xf32> to vector<8x8x8xf32>
    %273 = arith.mulf %268, %272 : vector<8x8x8xf32>
    %274 = arith.truncf %273 : vector<8x8x8xf32> to vector<8x8x8xbf16>
    "tpu.trace_start"() <{level = 10 : i32, message = "bqk,bkd->bqd"}> : () -> ()
    %cst_101 = arith.constant dense<0.000000e+00> : vector<8x8x8xf32>
    %275 = tpu.matmul %274, %258, %cst_101 {dimension_numbers = #tpu.dot_dimension_numbers<[2], [1], [1], [2], [0, 0, 0, 1, 1, 2], [0], [0]>} : vector<8x8x8xbf16>, vector<8x8x8xbf16>, vector<8x8x8xf32> -> vector<8x8x8xf32>
    "tpu.trace_stop"() : () -> ()
    %276 = vector.extract_strided_slice %206 {offsets = [0, 0, 24], sizes = [8, 8, 8], strides = [1, 1, 1]} : vector<8x8x96xf32> to vector<8x8x8xf32>
    %277 = arith.truncf %276 : vector<8x8x8xf32> to vector<8x8x8xbf16>
    %278 = vector.extract_strided_slice %206 {offsets = [0, 0, 56], sizes = [8, 8, 8], strides = [1, 1, 1]} : vector<8x8x96xf32> to vector<8x8x8xf32>
    %279 = arith.truncf %278 : vector<8x8x8xf32> to vector<8x8x8xbf16>
    %280 = vector.extract_strided_slice %206 {offsets = [0, 0, 88], sizes = [8, 8, 8], strides = [1, 1, 1]} : vector<8x8x96xf32> to vector<8x8x8xf32>
    %281 = arith.truncf %280 : vector<8x8x8xf32> to vector<8x8x8xbf16>
    "tpu.trace_start"() <{level = 10 : i32, message = "bqd,bkd->bqk"}> : () -> ()
    %cst_102 = arith.constant dense<0.000000e+00> : vector<8x8x8xf32>
    %282 = tpu.matmul %277, %279, %cst_102 {dimension_numbers = #tpu.dot_dimension_numbers<[2], [2], [1], [1], [0, 0, 0, 1, 1, 1], [0], [0]>} : vector<8x8x8xbf16>, vector<8x8x8xbf16>, vector<8x8x8xf32> -> vector<8x8x8xf32>
    "tpu.trace_stop"() : () -> ()
    %cst_103 = arith.constant 0.353553385 : f32
    %283 = vector.broadcast %cst_103 : f32 to vector<8x8x8xf32>
    %284 = arith.mulf %282, %283 : vector<8x8x8xf32>
    %285 = vector.broadcast %3 : vector<8x1x8xf32> to vector<8x8x8xf32>
    %286 = arith.addf %284, %285 : vector<8x8x8xf32>
    %cst_104 = arith.constant dense<0xFF800000> : vector<8x8xf32>
    %287 = vector.multi_reduction <maximumf>, %286, %cst_104 [2] : vector<8x8x8xf32> to vector<8x8xf32>
    %288 = vector.shape_cast %287 : vector<8x8xf32> to vector<8x8x1xf32>
    %289 = vector.broadcast %288 : vector<8x8x1xf32> to vector<8x8x8xf32>
    %290 = arith.subf %286, %289 : vector<8x8x8xf32>
    %291 = math.exp %290 : vector<8x8x8xf32>
    %cst_105 = arith.constant dense<0.000000e+00> : vector<8x8xf32>
    %292 = vector.multi_reduction <add>, %291, %cst_105 [2] : vector<8x8x8xf32> to vector<8x8xf32>
    %293 = vector.shape_cast %292 : vector<8x8xf32> to vector<8x8x1xf32>
    %294 = tpu.reciprocal %293 {approx = true} : vector<8x8x1xf32> -> vector<8x8x1xf32>
    %295 = vector.broadcast %294 : vector<8x8x1xf32> to vector<8x8x8xf32>
    %296 = arith.mulf %291, %295 : vector<8x8x8xf32>
    %297 = arith.truncf %296 : vector<8x8x8xf32> to vector<8x8x8xbf16>
    "tpu.trace_start"() <{level = 10 : i32, message = "bqk,bkd->bqd"}> : () -> ()
    %cst_106 = arith.constant dense<0.000000e+00> : vector<8x8x8xf32>
    %298 = tpu.matmul %297, %281, %cst_106 {dimension_numbers = #tpu.dot_dimension_numbers<[2], [1], [1], [2], [0, 0, 0, 1, 1, 2], [0], [0]>} : vector<8x8x8xbf16>, vector<8x8x8xbf16>, vector<8x8x8xf32> -> vector<8x8x8xf32>
    "tpu.trace_stop"() : () -> ()
    %299 = tpu.concatenate %229, %252, %275, %298 in 2 : vector<8x8x8xf32>, vector<8x8x8xf32>, vector<8x8x8xf32>, vector<8x8x8xf32> -> vector<8x8x32xf32>
    %300 = vector.shape_cast %299 : vector<8x8x32xf32> to vector<64x32xf32>
    %301 = arith.truncf %300 : vector<64x32xf32> to vector<64x32xbf16>
    %c1_107 = arith.constant 1 : index
    %c0_108 = arith.constant 0 : index
    %c0_109 = arith.constant 0 : index
    %302 = vector.load %arg7[%c1_107, %c0_108, %c0_109] : memref<2x32x32xbf16, #tpu.memory_space<vmem>>, vector<1x32x32xbf16>
    %303 = vector.shape_cast %302 : vector<1x32x32xbf16> to vector<32x32xbf16>
    %cst_110 = arith.constant dense<0.000000e+00> : vector<64x32xf32>
    %304 = tpu.matmul %301, %303, %cst_110 {dimension_numbers = #tpu.dot_dimension_numbers<[1], [0], [0], [1], [0, 0, 1, 1], [], []>} : vector<64x32xbf16>, vector<32x32xbf16>, vector<64x32xf32> -> vector<64x32xf32>
    %c1_111 = arith.constant 1 : index
    %c0_112 = arith.constant 0 : index
    %c0_113 = arith.constant 0 : index
    %305 = vector.load %arg8[%c1_111, %c0_112, %c0_113] : memref<2x1x32xf32, #tpu.memory_space<vmem>>, vector<1x1x32xf32>
    %306 = vector.shape_cast %305 : vector<1x1x32xf32> to vector<1x32xf32>
    %307 = vector.broadcast %306 : vector<1x32xf32> to vector<64x32xf32>
    %308 = arith.addf %304, %307 : vector<64x32xf32>
    %309 = arith.addf %197, %308 : vector<64x32xf32>
    %c1_114 = arith.constant 1 : index
    %c0_115 = arith.constant 0 : index
    %c0_116 = arith.constant 0 : index
    %310 = vector.load %arg9[%c1_114, %c0_115, %c0_116] : memref<2x1x32xf32, #tpu.memory_space<vmem>>, vector<1x1x32xf32>
    %311 = vector.shape_cast %310 : vector<1x1x32xf32> to vector<1x32xf32>
    %c1_117 = arith.constant 1 : index
    %c0_118 = arith.constant 0 : index
    %c0_119 = arith.constant 0 : index
    %312 = vector.load %arg10[%c1_117, %c0_118, %c0_119] : memref<2x1x32xf32, #tpu.memory_space<vmem>>, vector<1x1x32xf32>
    %313 = vector.shape_cast %312 : vector<1x1x32xf32> to vector<1x32xf32>
    %cst_120 = arith.constant dense<0.000000e+00> : vector<64xf32>
    %314 = vector.multi_reduction <add>, %309, %cst_120 [1] : vector<64x32xf32> to vector<64xf32>
    %315 = vector.shape_cast %314 : vector<64xf32> to vector<64x1xf32>
    %cst_121 = arith.constant 3.200000e+01 : f32
    %316 = vector.broadcast %cst_121 : f32 to vector<64x1xf32>
    %317 = arith.divf %315, %316 : vector<64x1xf32>
    %318 = vector.broadcast %317 : vector<64x1xf32> to vector<64x32xf32>
    %319 = arith.subf %309, %318 : vector<64x32xf32>
    %320 = arith.mulf %319, %319 : vector<64x32xf32>
    %cst_122 = arith.constant dense<0.000000e+00> : vector<64xf32>
    %321 = vector.multi_reduction <add>, %320, %cst_122 [1] : vector<64x32xf32> to vector<64xf32>
    %322 = vector.shape_cast %321 : vector<64xf32> to vector<64x1xf32>
    %cst_123 = arith.constant 3.200000e+01 : f32
    %323 = vector.broadcast %cst_123 : f32 to vector<64x1xf32>
    %324 = arith.divf %322, %323 : vector<64x1xf32>
    %325 = vector.broadcast %317 : vector<64x1xf32> to vector<64x32xf32>
    %326 = arith.subf %309, %325 : vector<64x32xf32>
    %cst_124 = arith.constant 9.99999974E-6 : f32
    %327 = vector.broadcast %cst_124 : f32 to vector<64x1xf32>
    %328 = arith.addf %324, %327 : vector<64x1xf32>
    %329 = math.rsqrt %328 : vector<64x1xf32>
    %330 = vector.broadcast %329 : vector<64x1xf32> to vector<64x32xf32>
    %331 = arith.mulf %326, %330 : vector<64x32xf32>
    %332 = vector.broadcast %311 : vector<1x32xf32> to vector<64x32xf32>
    %333 = arith.mulf %331, %332 : vector<64x32xf32>
    %334 = vector.broadcast %313 : vector<1x32xf32> to vector<64x32xf32>
    %335 = arith.addf %333, %334 : vector<64x32xf32>
    %336 = arith.truncf %335 : vector<64x32xf32> to vector<64x32xbf16>
    %c1_125 = arith.constant 1 : index
    %c0_126 = arith.constant 0 : index
    %c0_127 = arith.constant 0 : index
    %337 = vector.load %arg13[%c1_125, %c0_126, %c0_127] : memref<2x32x128xbf16, #tpu.memory_space<vmem>>, vector<1x32x128xbf16>
    %338 = vector.shape_cast %337 : vector<1x32x128xbf16> to vector<32x128xbf16>
    %cst_128 = arith.constant dense<0.000000e+00> : vector<64x128xf32>
    %339 = tpu.matmul %336, %338, %cst_128 {dimension_numbers = #tpu.dot_dimension_numbers<[1], [0], [0], [1], [0, 0, 1, 1], [], []>} : vector<64x32xbf16>, vector<32x128xbf16>, vector<64x128xf32> -> vector<64x128xf32>
    %c1_129 = arith.constant 1 : index
    %c0_130 = arith.constant 0 : index
    %c0_131 = arith.constant 0 : index
    %340 = vector.load %arg14[%c1_129, %c0_130, %c0_131] : memref<2x1x128xf32, #tpu.memory_space<vmem>>, vector<1x1x128xf32>
    %341 = vector.shape_cast %340 : vector<1x1x128xf32> to vector<1x128xf32>
    %342 = vector.broadcast %341 : vector<1x128xf32> to vector<64x128xf32>
    %343 = arith.addf %339, %342 : vector<64x128xf32>
    %cst_132 = arith.constant 0.000000e+00 : f32
    %344 = vector.broadcast %cst_132 : f32 to vector<64x128xf32>
    %345 = arith.maximumf %343, %344 : vector<64x128xf32>
    %346 = arith.truncf %345 : vector<64x128xf32> to vector<64x128xbf16>
    %c1_133 = arith.constant 1 : index
    %c0_134 = arith.constant 0 : index
    %c0_135 = arith.constant 0 : index
    %347 = vector.load %arg15[%c1_133, %c0_134, %c0_135] : memref<2x128x32xbf16, #tpu.memory_space<vmem>>, vector<1x128x32xbf16>
    %348 = vector.shape_cast %347 : vector<1x128x32xbf16> to vector<128x32xbf16>
    %cst_136 = arith.constant dense<0.000000e+00> : vector<64x32xf32>
    %349 = tpu.matmul %346, %348, %cst_136 {dimension_numbers = #tpu.dot_dimension_numbers<[1], [0], [0], [1], [0, 0, 1, 1], [], []>} : vector<64x128xbf16>, vector<128x32xbf16>, vector<64x32xf32> -> vector<64x32xf32>
    %c1_137 = arith.constant 1 : index
    %c0_138 = arith.constant 0 : index
    %c0_139 = arith.constant 0 : index
    %350 = vector.load %arg16[%c1_137, %c0_138, %c0_139] : memref<2x1x32xf32, #tpu.memory_space<vmem>>, vector<1x1x32xf32>
    %351 = vector.shape_cast %350 : vector<1x1x32xf32> to vector<1x32xf32>
    %352 = vector.broadcast %351 : vector<1x32xf32> to vector<64x32xf32>
    %353 = arith.addf %349, %352 : vector<64x32xf32>
    %354 = arith.addf %335, %353 : vector<64x32xf32>
    %c1_140 = arith.constant 1 : index
    %c0_141 = arith.constant 0 : index
    %c0_142 = arith.constant 0 : index
    %355 = vector.load %arg11[%c1_140, %c0_141, %c0_142] : memref<2x1x32xf32, #tpu.memory_space<vmem>>, vector<1x1x32xf32>
    %356 = vector.shape_cast %355 : vector<1x1x32xf32> to vector<1x32xf32>
    %c1_143 = arith.constant 1 : index
    %c0_144 = arith.constant 0 : index
    %c0_145 = arith.constant 0 : index
    %357 = vector.load %arg12[%c1_143, %c0_144, %c0_145] : memref<2x1x32xf32, #tpu.memory_space<vmem>>, vector<1x1x32xf32>
    %358 = vector.shape_cast %357 : vector<1x1x32xf32> to vector<1x32xf32>
    %cst_146 = arith.constant dense<0.000000e+00> : vector<64xf32>
    %359 = vector.multi_reduction <add>, %354, %cst_146 [1] : vector<64x32xf32> to vector<64xf32>
    %360 = vector.shape_cast %359 : vector<64xf32> to vector<64x1xf32>
    %cst_147 = arith.constant 3.200000e+01 : f32
    %361 = vector.broadcast %cst_147 : f32 to vector<64x1xf32>
    %362 = arith.divf %360, %361 : vector<64x1xf32>
    %363 = vector.broadcast %362 : vector<64x1xf32> to vector<64x32xf32>
    %364 = arith.subf %354, %363 : vector<64x32xf32>
    %365 = arith.mulf %364, %364 : vector<64x32xf32>
    %cst_148 = arith.constant dense<0.000000e+00> : vector<64xf32>
    %366 = vector.multi_reduction <add>, %365, %cst_148 [1] : vector<64x32xf32> to vector<64xf32>
    %367 = vector.shape_cast %366 : vector<64xf32> to vector<64x1xf32>
    %cst_149 = arith.constant 3.200000e+01 : f32
    %368 = vector.broadcast %cst_149 : f32 to vector<64x1xf32>
    %369 = arith.divf %367, %368 : vector<64x1xf32>
    %370 = vector.broadcast %362 : vector<64x1xf32> to vector<64x32xf32>
    %371 = arith.subf %354, %370 : vector<64x32xf32>
    %cst_150 = arith.constant 9.99999974E-6 : f32
    %372 = vector.broadcast %cst_150 : f32 to vector<64x1xf32>
    %373 = arith.addf %369, %372 : vector<64x1xf32>
    %374 = math.rsqrt %373 : vector<64x1xf32>
    %375 = vector.broadcast %374 : vector<64x1xf32> to vector<64x32xf32>
    %376 = arith.mulf %371, %375 : vector<64x32xf32>
    %377 = vector.broadcast %356 : vector<1x32xf32> to vector<64x32xf32>
    %378 = arith.mulf %376, %377 : vector<64x32xf32>
    %379 = vector.broadcast %358 : vector<1x32xf32> to vector<64x32xf32>
    %380 = arith.addf %378, %379 : vector<64x32xf32>
    %381 = vector.shape_cast %380 : vector<64x32xf32> to vector<8x8x32xf32>
    %382 = vector.broadcast %6 : vector<8x8x1xf32> to vector<8x8x32xf32>
    %383 = arith.mulf %381, %382 : vector<8x8x32xf32>
    %cst_151 = arith.constant dense<0.000000e+00> : vector<8x32xf32>
    %384 = vector.multi_reduction <add>, %383, %cst_151 [1] : vector<8x8x32xf32> to vector<8x32xf32>
    %cst_152 = arith.constant dense<0.000000e+00> : vector<8x1xf32>
    %385 = vector.multi_reduction <add>, %6, %cst_152 [1] : vector<8x8x1xf32> to vector<8x1xf32>
    %cst_153 = arith.constant 9.99999971E-10 : f32
    %386 = vector.broadcast %cst_153 : f32 to vector<8x1xf32>
    %387 = arith.maximumf %385, %386 : vector<8x1xf32>
    %388 = vector.broadcast %387 : vector<8x1xf32> to vector<8x32xf32>
    %389 = arith.divf %384, %388 : vector<8x32xf32>
    %390 = arith.truncf %389 : vector<8x32xf32> to vector<8x32xbf16>
    %c0_154 = arith.constant 0 : index
    %c0_155 = arith.constant 0 : index
    %391 = vector.load %arg17[%c0_154, %c0_155] : memref<32x128xbf16, #tpu.memory_space<vmem>>, vector<32x128xbf16>
    %cst_156 = arith.constant dense<0.000000e+00> : vector<8x128xf32>
    %392 = tpu.matmul %390, %391, %cst_156 {dimension_numbers = #tpu.dot_dimension_numbers<[1], [0], [0], [1], [0, 0, 1, 1], [], []>} : vector<8x32xbf16>, vector<32x128xbf16>, vector<8x128xf32> -> vector<8x128xf32>
    %c0_157 = arith.constant 0 : index
    %c0_158 = arith.constant 0 : index
    %393 = vector.load %arg18[%c0_157, %c0_158] : memref<1x128xf32, #tpu.memory_space<vmem>>, vector<1x128xf32>
    %394 = vector.broadcast %393 : vector<1x128xf32> to vector<8x128xf32>
    %395 = arith.addf %392, %394 : vector<8x128xf32>
    %cst_159 = arith.constant 0.000000e+00 : f32
    %396 = vector.broadcast %cst_159 : f32 to vector<8x128xf32>
    %397 = arith.maximumf %395, %396 : vector<8x128xf32>
    %398 = arith.truncf %397 : vector<8x128xf32> to vector<8x128xbf16>
    %c0_160 = arith.constant 0 : index
    %c0_161 = arith.constant 0 : index
    %399 = vector.load %arg19[%c0_160, %c0_161] : memref<128x128xbf16, #tpu.memory_space<vmem>>, vector<128x128xbf16>
    %cst_162 = arith.constant dense<0.000000e+00> : vector<8x128xf32>
    %400 = tpu.matmul %398, %399, %cst_162 {dimension_numbers = #tpu.dot_dimension_numbers<[1], [0], [0], [1], [0, 0, 1, 1], [], []>} : vector<8x128xbf16>, vector<128x128xbf16>, vector<8x128xf32> -> vector<8x128xf32>
    %c0_163 = arith.constant 0 : index
    %c0_164 = arith.constant 0 : index
    %401 = vector.load %arg20[%c0_163, %c0_164] : memref<1x128xf32, #tpu.memory_space<vmem>>, vector<1x128xf32>
    %402 = vector.broadcast %401 : vector<1x128xf32> to vector<8x128xf32>
    %403 = arith.addf %400, %402 : vector<8x128xf32>
    %c0_165 = arith.constant 0 : index
    %c0_166 = arith.constant 0 : index
    %404 = vector.load %arg21[%c0_165, %c0_166] : memref<8x128xf32, #tpu.memory_space<vmem>>, vector<8x128xf32>
    tpu.vector_store %arg21[%c0_165, %c0_166], %403 {strides = array<i32>} : memref<8x128xf32, #tpu.memory_space<vmem>>, vector<8x128xf32>,
    return
  }
  func.func @transform_0(%arg0: i32) -> (i32, i32, i32) {
    %c0_i32 = arith.constant 0 : i32
    %c0_i32_0 = arith.constant 0 : i32
    %c0_i32_1 = arith.constant 0 : i32
    return %arg0, %c0_i32, %c0_i32_0 : i32, i32, i32
  }
  func.func @transform_1(%arg0: i32) -> (i32, i32) {
    %c0_i32 = arith.constant 0 : i32
    %c0_i32_0 = arith.constant 0 : i32
    return %arg0, %c0_i32 : i32, i32
  }
  func.func @transform_2(%arg0: i32) -> (i32, i32) {
    %c0_i32 = arith.constant 0 : i32
    %c0_i32_0 = arith.constant 0 : i32
    %c0_i32_1 = arith.constant 0 : i32
    return %c0_i32, %c0_i32_0 : i32, i32
  }
  func.func @transform_3(%arg0: i32) -> (i32, i32) {
    %c0_i32 = arith.constant 0 : i32
    %c0_i32_0 = arith.constant 0 : i32
    %c0_i32_1 = arith.constant 0 : i32
    return %c0_i32, %c0_i32_0 : i32, i32
  }
  func.func @transform_4(%arg0: i32) -> (i32, i32, i32) {
    %c0_i32 = arith.constant 0 : i32
    %c0_i32_0 = arith.constant 0 : i32
    %c0_i32_1 = arith.constant 0 : i32
    %c0_i32_2 = arith.constant 0 : i32
    return %c0_i32, %c0_i32_0, %c0_i32_1 : i32, i32, i32
  }
  func.func @transform_5(%arg0: i32) -> (i32, i32, i32) {
    %c0_i32 = arith.constant 0 : i32
    %c0_i32_0 = arith.constant 0 : i32
    %c0_i32_1 = arith.constant 0 : i32
    %c0_i32_2 = arith.constant 0 : i32
    return %c0_i32, %c0_i32_0, %c0_i32_1 : i32, i32, i32
  }
  func.func @transform_6(%arg0: i32) -> (i32, i32, i32) {
    %c0_i32 = arith.constant 0 : i32
    %c0_i32_0 = arith.constant 0 : i32
    %c0_i32_1 = arith.constant 0 : i32
    %c0_i32_2 = arith.constant 0 : i32
    return %c0_i32, %c0_i32_0, %c0_i32_1 : i32, i32, i32
  }
  func.func @transform_7(%arg0: i32) -> (i32, i32, i32) {
    %c0_i32 = arith.constant 0 : i32
    %c0_i32_0 = arith.constant 0 : i32
    %c0_i32_1 = arith.constant 0 : i32
    %c0_i32_2 = arith.constant 0 : i32
    return %c0_i32, %c0_i32_0, %c0_i32_1 : i32, i32, i32
  }
  func.func @transform_8(%arg0: i32) -> (i32, i32, i32) {
    %c0_i32 = arith.constant 0 : i32
    %c0_i32_0 = arith.constant 0 : i32
    %c0_i32_1 = arith.constant 0 : i32
    %c0_i32_2 = arith.constant 0 : i32
    return %c0_i32, %c0_i32_0, %c0_i32_1 : i32, i32, i32
  }
  func.func @transform_9(%arg0: i32) -> (i32, i32, i32) {
    %c0_i32 = arith.constant 0 : i32
    %c0_i32_0 = arith.constant 0 : i32
    %c0_i32_1 = arith.constant 0 : i32
    %c0_i32_2 = arith.constant 0 : i32
    return %c0_i32, %c0_i32_0, %c0_i32_1 : i32, i32, i32
  }
  func.func @transform_10(%arg0: i32) -> (i32, i32, i32) {
    %c0_i32 = arith.constant 0 : i32
    %c0_i32_0 = arith.constant 0 : i32
    %c0_i32_1 = arith.constant 0 : i32
    %c0_i32_2 = arith.constant 0 : i32
    return %c0_i32, %c0_i32_0, %c0_i32_1 : i32, i32, i32
  }
  func.func @transform_11(%arg0: i32) -> (i32, i32, i32) {
    %c0_i32 = arith.constant 0 : i32
    %c0_i32_0 = arith.constant 0 : i32
    %c0_i32_1 = arith.constant 0 : i32
    %c0_i32_2 = arith.constant 0 : i32
    return %c0_i32, %c0_i32_0, %c0_i32_1 : i32, i32, i32
  }
  func.func @transform_12(%arg0: i32) -> (i32, i32, i32) {
    %c0_i32 = arith.constant 0 : i32
    %c0_i32_0 = arith.constant 0 : i32
    %c0_i32_1 = arith.constant 0 : i32
    %c0_i32_2 = arith.constant 0 : i32
    return %c0_i32, %c0_i32_0, %c0_i32_1 : i32, i32, i32
  }
  func.func @transform_13(%arg0: i32) -> (i32, i32, i32) {
    %c0_i32 = arith.constant 0 : i32
    %c0_i32_0 = arith.constant 0 : i32
    %c0_i32_1 = arith.constant 0 : i32
    %c0_i32_2 = arith.constant 0 : i32
    return %c0_i32, %c0_i32_0, %c0_i32_1 : i32, i32, i32
  }
  func.func @transform_14(%arg0: i32) -> (i32, i32, i32) {
    %c0_i32 = arith.constant 0 : i32
    %c0_i32_0 = arith.constant 0 : i32
    %c0_i32_1 = arith.constant 0 : i32
    %c0_i32_2 = arith.constant 0 : i32
    return %c0_i32, %c0_i32_0, %c0_i32_1 : i32, i32, i32
  }
  func.func @transform_15(%arg0: i32) -> (i32, i32, i32) {
    %c0_i32 = arith.constant 0 : i32
    %c0_i32_0 = arith.constant 0 : i32
    %c0_i32_1 = arith.constant 0 : i32
    %c0_i32_2 = arith.constant 0 : i32
    return %c0_i32, %c0_i32_0, %c0_i32_1 : i32, i32, i32
  }
  func.func @transform_16(%arg0: i32) -> (i32, i32) {
    %c0_i32 = arith.constant 0 : i32
    %c0_i32_0 = arith.constant 0 : i32
    %c0_i32_1 = arith.constant 0 : i32
    return %c0_i32, %c0_i32_0 : i32, i32
  }
  func.func @transform_17(%arg0: i32) -> (i32, i32) {
    %c0_i32 = arith.constant 0 : i32
    %c0_i32_0 = arith.constant 0 : i32
    %c0_i32_1 = arith.constant 0 : i32
    return %c0_i32, %c0_i32_0 : i32, i32
  }
  func.func @transform_18(%arg0: i32) -> (i32, i32) {
    %c0_i32 = arith.constant 0 : i32
    %c0_i32_0 = arith.constant 0 : i32
    %c0_i32_1 = arith.constant 0 : i32
    return %c0_i32, %c0_i32_0 : i32, i32
  }
  func.func @transform_19(%arg0: i32) -> (i32, i32) {
    %c0_i32 = arith.constant 0 : i32
    %c0_i32_0 = arith.constant 0 : i32
    %c0_i32_1 = arith.constant 0 : i32
    return %c0_i32, %c0_i32_0 : i32, i32
  }
  func.func @transform_20(%arg0: i32) -> (i32, i32) {
    %c0_i32 = arith.constant 0 : i32
    %c0_i32_0 = arith.constant 0 : i32
    return %arg0, %c0_i32 : i32, i32
  }
}

</mosaic_0001>

<bundles_post_ra>
// kernel: tpu_custom_call.1
= control target key start
LH: loop header
LB: loop body
LE: loop exit
PB: predicated region body
PF: predicated region fallthrough
CT: control target
= control target key end

     0   :  { %s14910_s0 = inlined_call_operand.vmem [shape: f32[8,8,16], index: 0, kind: input, shape index: {}]   ;;  %s14911_s1 = inlined_call_operand.hbm [shape: f32[8,8], index: 1, kind: input, shape index: {}]   ;;  %s14912_s2 = inlined_call_operand.hbm [shape: bf16[16,32], index: 2, kind: input, shape index: {}]   ;;  %s14913_s3 = inlined_call_operand.hbm [shape: f32[1,32], index: 3, kind: input, shape index: {}]   ;;  %s14914_s4 = inlined_call_operand.vmem [shape: bf16[2,32,96], index: 4, kind: input, shape index: {}]   ;;  %s14915_s5 = inlined_call_operand.vmem [shape: f32[2,1,96], index: 5, kind: input, shape index: {}]   ;;  %s14916_s6 = inlined_call_operand.hbm [shape: bf16[2,32,32], index: 6, kind: input, shape index: {}]   ;;  %s14917_s7 = inlined_call_operand.vmem [shape: f32[2,1,32], index: 7, kind: input, shape index: {}]   ;;  %s14918_s8 = inlined_call_operand.hbm [shape: f32[2,1,32], index: 8, kind: input, shape index: {}]   ;;  %s14919_s9 = inlined_call_operand.hbm [shape: f32[2,1,32], index: 9, kind: input, shape index: {}]   ;;  %s14920_s10 = inlined_call_operand.hbm [shape: f32[2,1,32], index: 10, kind: input, shape index: {}]   ;;  %s14921_s11 = inlined_call_operand.hbm [shape: f32[2,1,32], index: 11, kind: input, shape index: {}]   ;;  %s14922_s12 = inlined_call_operand.hbm [shape: bf16[2,32,128], index: 12, kind: input, shape index: {}]   ;;  %s14923_s13 = inlined_call_operand.hbm [shape: f32[2,1,128], index: 13, kind: input, shape index: {}]   ;;  %s14924_s14 = inlined_call_operand.vmem [shape: bf16[2,128,32], index: 14, kind: input, shape index: {}]   ;;  %s14925_s15 = inlined_call_operand.vmem [shape: f32[2,1,32], index: 15, kind: input, shape index: {}]   ;;  %s14926_s16 = inlined_call_operand.vmem [shape: bf16[32,128], index: 16, kind: input, shape index: {}]   ;;  %s14927_s17 = inlined_call_operand.vmem [shape: f32[1,128], index: 17, kind: input, shape index: {}]   ;;  %s14928_s18 = inlined_call_operand.vmem [shape: bf16[128,128], index: 18, kind: input, shape index: {}]   ;;  %s14929_s19 = inlined_call_operand.vmem [shape: f32[1,128], index: 19, kind: input, shape index: {}]   ;;  %s14930_s20 = inlined_call_operand.hbm [shape: f32[8,128], index: 20, kind: output, shape index: {}]  }
   0x1   :  { %14952 = sst [smem:[#allocation33_spill]] %s14910_s0 }
   0x2   :  { %14953 = sst [smem:[#allocation34_spill]] %s14911_s1 }
   0x3   :  { %14954 = sst [smem:[#allocation35_spill]] %s14912_s2 }
   0x4   :  { %14955 = sst [smem:[#allocation36_spill]] %s14913_s3 }
   0x5   :  { %14956 = sst [smem:[#allocation37_spill]] %s14914_s4 }
   0x6   :  { %14957 = sst [smem:[#allocation38_spill]] %s14930_s20 }
   0x7   :  { %25 = vsyncpa [#allocation3], 0 }
   0x8   :  { %26 = vsyncpa [#allocation6], 0 }
   0x9   :  { %27 = vsyncpa [#allocation9], 0 }
   0xa   :  { %28 = vsyncpa [#allocation12], 0 }
   0xb   :  { %29 = vsyncpa [#allocation15], 0 }
   0xc   :  { %30 = vsyncpa [#allocation18], 0 }
   0xd   :  { %31 = vsyncpa [#allocation4], 0  ;;  %s12048_s1 = smov [#allocation5]   ;;  %s14958_s2 = sld [smem:[#allocation35_spill]] }
   0xe   :  { %s49_s22 = sshll.u32 %s12048_s1, 4  ;;  %s50_s22 = int_to_ptr.vmem [resolvable:$true] %s49_s22 }
  0x13   :  { %s11792_s25 = scalar_lea.hbm %s14958_s2, 128 }
  0x14   :  { %p11793_p0 = scmp.ne.s32.totalorder %s14958_s2, %s11792_s25  ;;  %p11796_p1 = scmp.lt.u32.totalorder %s11792_s25, %s14958_s2 }
  0x16   :  { %p11798_p2 = pnand %p11796_p1, %p11793_p0 }
  0x18   :  { %11801 = shalt.err (!%p11798_p2)
}
  0x19   :  { %s11802_s4 = scalar_lea.vmem %s50_s22, 128  ;;  %p11807_p4 = scmp.lt.s32.totalorder %s50_s22, %s50_s22 }
  0x1a   :  { %p11803_p3 = scmp.ne.s32.totalorder %s50_s22, %s11802_s4  ;;  %p11808_p5 = scmp.lt.s32.totalorder %s11802_s4, %s11802_s4 }
  0x1c   :  { %p11809_p6 = por %p11808_p5, %p11807_p4 }
  0x1e   :  { %p11810_p7 = pnand %p11809_p6, %p11803_p3 }
  0x20   :  { %11813 = shalt.err (!%p11810_p7)
}
  0x21   :  { %s14937_s29 = smov 64   ;;  %s12050_s30 = smov 4  }
  0x22   :  { %55 = dma.hbm_to_vmem [thread:$0]  %s14958_s2, 128, %s50_s22, [#allocation6], %s14937_s29, %s14937_s29, %s12050_s30  }
  0x23   :  { %s12051_s1 = smov [#allocation8]   ;;  %s11814_s3 = scalar_lea.hbm %s14916_s6, 512 }
  0x24   :  { %s75_s23 = sshll.u32 %s12051_s1, 4  ;;  %p11815_p8 = scmp.ne.s32.totalorder %s14916_s6, %s11814_s3  ;;  %s76_s23 = int_to_ptr.vmem [resolvable:$true] %s75_s23 }
  0x25   :  { %p11818_p9 = scmp.lt.u32.totalorder %s11814_s3, %s14916_s6 }
  0x27   :  { %p11820_p10 = pnand %p11818_p9, %p11815_p8 }
  0x29   :  { %11823 = shalt.err (!%p11820_p10)
}
  0x2a   :  { %s11824_s20 = scalar_lea.vmem %s76_s23, 512  ;;  %p11829_p12 = scmp.lt.s32.totalorder %s76_s23, %s76_s23 }
  0x2b   :  { %p11825_p11 = scmp.ne.s32.totalorder %s76_s23, %s11824_s20  ;;  %p11830_p13 = scmp.lt.s32.totalorder %s11824_s20, %s11824_s20 }
  0x2d   :  { %p11831_p0 = por %p11830_p13, %p11829_p12 }
  0x2f   :  { %p11832_p1 = pnand %p11831_p0, %p11825_p11 }
  0x31   :  { %11835 = shalt.err (!%p11832_p1)
}
  0x32   :  { %81 = dma.hbm_to_vmem [thread:$0]  %s14916_s6, 512, %s76_s23, [#allocation9], %s14937_s29, %s14937_s29, %s12050_s30  }
  0x33   :  { %s12052_s0 = smov [#allocation11]   ;;  %s12053_s1 = smov [#allocation14]  }
  0x34   :  { %s101_s21 = sshll.u32 %s12052_s0, 4  ;;  %s125_s24 = sshll.u32 %s12053_s1, 4  ;;  %s102_s21 = int_to_ptr.vmem [resolvable:$true] %s101_s21  ;;  %s12213_s24 = int_to_ptr.vmem [resolvable:$true] %s125_s24 }
  0x35   :  { %s11836_s20 = scalar_lea.hbm %s14919_s9, 32 }
  0x36   :  { %p11837_p2 = scmp.ne.s32.totalorder %s14919_s9, %s11836_s20  ;;  %p11840_p3 = scmp.lt.u32.totalorder %s11836_s20, %s14919_s9 }
  0x38   :  { %p11842_p4 = pnand %p11840_p3, %p11837_p2 }
  0x3a   :  { %11845 = shalt.err (!%p11842_p4)
}
  0x3b   :  { %s11846_s6 = scalar_lea.vmem %s102_s21, 32  ;;  %p11851_p6 = scmp.lt.s32.totalorder %s102_s21, %s102_s21 }
  0x3c   :  { %p11847_p5 = scmp.ne.s32.totalorder %s102_s21, %s11846_s6  ;;  %p11852_p7 = scmp.lt.s32.totalorder %s11846_s6, %s11846_s6 }
  0x3e   :  { %p11853_p8 = por %p11852_p7, %p11851_p6 }
  0x40   :  { %p11854_p9 = pnand %p11853_p8, %p11847_p5 }
  0x42   :  { %11857 = shalt.err (!%p11854_p9)
}
  0x43   :  { %s12054_s23 = smov 16   ;;  %s12055_s22 = smov 1  }
  0x44   :  { %107 = dma.hbm_to_vmem [thread:$0]  %s14919_s9, 32, %s102_s21, [#allocation12], %s12054_s23, %s12054_s23, %s12055_s22  }
  0x45   :  { %s11858_s3 = scalar_lea.hbm %s14921_s11, 32 }
  0x46   :  { %p11859_p10 = scmp.ne.s32.totalorder %s14921_s11, %s11858_s3  ;;  %p11862_p11 = scmp.lt.u32.totalorder %s11858_s3, %s14921_s11 }
  0x48   :  { %p11864_p12 = pnand %p11862_p11, %p11859_p10 }
  0x4a   :  { %11867 = shalt.err (!%p11864_p12)
}
  0x4b   :  { %s11868_s4 = scalar_lea.vmem %s12213_s24, 32  ;;  %p11873_p0 = scmp.lt.s32.totalorder %s12213_s24, %s12213_s24 }
  0x4c   :  { %p11869_p13 = scmp.ne.s32.totalorder %s12213_s24, %s11868_s4  ;;  %p11874_p1 = scmp.lt.s32.totalorder %s11868_s4, %s11868_s4 }
  0x4e   :  { %p11875_p2 = por %p11874_p1, %p11873_p0 }
  0x50   :  { %p11876_p3 = pnand %p11875_p2, %p11869_p13 }
  0x52   :  { %11879 = shalt.err (!%p11876_p3)
}
  0x53   :  { %131 = dma.hbm_to_vmem [thread:$0]  %s14921_s11, 32, %s12213_s24, [#allocation15], %s12054_s23, %s12054_s23, %s12055_s22  }
  0x54   :  { %s12056_s6 = smov [#allocation2]   ;;  %s12057_s0 = smov [#allocation7]  }
  0x55   :  { %s40_s2 = sshll.u32 %s12056_s6, 4  ;;  %s62_s1 = sshll.u32 %s12057_s0, 4  ;;  %s41_s2 = int_to_ptr.vmem [resolvable:$true] %s40_s2  ;;  %s63_s1 = int_to_ptr.vmem [resolvable:$true] %s62_s1 }
  0x56   :  { %s14959_s20 = sld [smem:[#allocation34_spill]] }
  0x5c   :  { %s11880_s26 = scalar_lea.hbm %s14959_s20, 128 }
  0x5d   :  { %p11881_p4 = scmp.ne.s32.totalorder %s14959_s20, %s11880_s26  ;;  %p11884_p5 = scmp.lt.u32.totalorder %s11880_s26, %s14959_s20 }
  0x5f   :  { %p11886_p6 = pnand %p11884_p5, %p11881_p4 }
  0x61   :  { %11889 = shalt.err (!%p11886_p6)
}
  0x62   :  { %s11890_s11 = scalar_lea.vmem %s41_s2, 128  ;;  %p11895_p8 = scmp.lt.s32.totalorder %s41_s2, %s41_s2 }
  0x63   :  { %p11891_p7 = scmp.ne.s32.totalorder %s41_s2, %s11890_s11  ;;  %p11896_p9 = scmp.lt.s32.totalorder %s11890_s11, %s11890_s11 }
  0x65   :  { %p11897_p10 = por %p11896_p9, %p11895_p8 }
  0x67   :  { %p11898_p11 = pnand %p11897_p10, %p11891_p7 }
  0x69   :  { %11901 = shalt.err (!%p11898_p11)
}
  0x6a   :  { %43 = dma.hbm_to_vmem [thread:$0]  %s14959_s20, 128, %s41_s2, [#allocation3]  }
  0x6b   :  { %s14960_s0 = sld [smem:[#allocation36_spill]] }
  0x71   :  { %s11902_s25 = scalar_lea.hbm %s14960_s0, 16 }
  0x72   :  { %p11903_p12 = scmp.ne.s32.totalorder %s14960_s0, %s11902_s25  ;;  %p11906_p13 = scmp.lt.u32.totalorder %s11902_s25, %s14960_s0 }
  0x74   :  { %p11908_p0 = pnand %p11906_p13, %p11903_p12 }
  0x76   :  { %11911 = shalt.err (!%p11908_p0)
}
  0x77   :  { %s11912_s28 = scalar_lea.vmem %s63_s1, 16  ;;  %s11916_s4 = scalar_lea.vmem %s63_s1, 32 }
  0x78   :  { %p11913_p1 = scmp.ne.s32.totalorder %s63_s1, %s11912_s28  ;;  %p11917_p2 = scmp.lt.s32.totalorder %s63_s1, %s63_s1 }
  0x79   :  { %p11918_p3 = scmp.lt.s32.totalorder %s11916_s4, %s11912_s28 }
  0x7b   :  { %p11919_p4 = por %p11918_p3, %p11917_p2 }
  0x7d   :  { %p11920_p5 = pnand %p11919_p4, %p11913_p1 }
  0x7f   :  { %11923 = shalt.err (!%p11920_p5)
}
  0x80   :  { %65 = dma.hbm_to_vmem [thread:$0]  %s14960_s0, 16, %s63_s1, [#allocation6]  }
  0x81   :  { %s12058_s11 = smov [#allocation10]   ;;  %s12059_s9 = smov [#allocation13]  }
  0x82   :  { %s89_s24 = sshll.u32 %s12058_s11, 4  ;;  %s113_s21 = sshll.u32 %s12059_s9, 4  ;;  %s90_s24 = int_to_ptr.vmem [resolvable:$true] %s89_s24  ;;  %s12274_s21 = int_to_ptr.vmem [resolvable:$true] %s113_s21 }
  0x83   :  { %s11924_s3 = scalar_lea.hbm %s14918_s8, 32 }
  0x84   :  { %p11925_p6 = scmp.ne.s32.totalorder %s14918_s8, %s11924_s3  ;;  %p11928_p7 = scmp.lt.u32.totalorder %s11924_s3, %s14918_s8 }
  0x86   :  { %p11930_p8 = pnand %p11928_p7, %p11925_p6 }
  0x88   :  { %11933 = shalt.err (!%p11930_p8)
}
  0x89   :  { %s11934_s1 = scalar_lea.vmem %s90_s24, 32  ;;  %p11939_p10 = scmp.lt.s32.totalorder %s90_s24, %s90_s24 }
  0x8a   :  { %p11935_p9 = scmp.ne.s32.totalorder %s90_s24, %s11934_s1  ;;  %p11940_p11 = scmp.lt.s32.totalorder %s11934_s1, %s11934_s1 }
  0x8c   :  { %p11941_p12 = por %p11940_p11, %p11939_p10 }
  0x8e   :  { %p11942_p13 = pnand %p11941_p12, %p11935_p9 }
  0x90   :  { %11945 = shalt.err (!%p11942_p13)
}
  0x91   :  { %95 = dma.hbm_to_vmem [thread:$0]  %s14918_s8, 32, %s90_s24, [#allocation9], %s12054_s23, %s12054_s23, %s12055_s22  }
  0x92   :  { %s11946_s11 = scalar_lea.hbm %s14920_s10, 32 }
  0x93   :  { %p11947_p0 = scmp.ne.s32.totalorder %s14920_s10, %s11946_s11  ;;  %p11950_p1 = scmp.lt.u32.totalorder %s11946_s11, %s14920_s10 }
  0x95   :  { %p11952_p2 = pnand %p11950_p1, %p11947_p0 }
  0x97   :  { %11955 = shalt.err (!%p11952_p2)
}
  0x98   :  { %s11956_s29 = scalar_lea.vmem %s12274_s21, 32  ;;  %p11961_p4 = scmp.lt.s32.totalorder %s12274_s21, %s12274_s21 }
  0x99   :  { %p11957_p3 = scmp.ne.s32.totalorder %s12274_s21, %s11956_s29  ;;  %p11962_p5 = scmp.lt.s32.totalorder %s11956_s29, %s11956_s29 }
  0x9b   :  { %p11963_p6 = por %p11962_p5, %p11961_p4 }
  0x9d   :  { %p11964_p7 = pnand %p11963_p6, %p11957_p3 }
  0x9f   :  { %11967 = shalt.err (!%p11964_p7)
}
  0xa0   :  { %119 = dma.hbm_to_vmem [thread:$0]  %s14920_s10, 32, %s12274_s21, [#allocation12], %s12054_s23, %s12054_s23, %s12055_s22  }
  0xa1   :  { %s12060_s26 = smov [#allocation16]   ;;  %s12061_s28 = smov [#allocation17]  }
  0xa2   :  { %s137_s27 = sshll.u32 %s12060_s26, 4  ;;  %s149_s1 = sshll.u32 %s12061_s28, 4  ;;  %s138_s27 = int_to_ptr.vmem [resolvable:$true] %s137_s27  ;;  %s12311_s1 = int_to_ptr.vmem [resolvable:$true] %s149_s1 }
  0xa3   :  { %s11968_s2 = scalar_lea.hbm %s14922_s12, 512 }
  0xa4   :  { %p11969_p8 = scmp.ne.s32.totalorder %s14922_s12, %s11968_s2  ;;  %p11972_p9 = scmp.lt.u32.totalorder %s11968_s2, %s14922_s12 }
  0xa6   :  { %p11974_p10 = pnand %p11972_p9, %p11969_p8 }
  0xa8   :  { %11977 = shalt.err (!%p11974_p10)
}
  0xa9   :  { %s11978_s10 = scalar_lea.vmem %s138_s27, 512  ;;  %p11983_p12 = scmp.lt.s32.totalorder %s138_s27, %s138_s27 }
  0xaa   :  { %p11979_p11 = scmp.ne.s32.totalorder %s138_s27, %s11978_s10  ;;  %p11984_p13 = scmp.lt.s32.totalorder %s11978_s10, %s11978_s10 }
  0xac   :  { %p11985_p0 = por %p11984_p13, %p11983_p12 }
  0xae   :  { %p11986_p1 = pnand %p11985_p0, %p11979_p11 }
  0xb0   :  { %11989 = shalt.err (!%p11986_p1)
}
  0xb1   :  { %s14961_s21 = smov 64   ;;  %s11990_s24 = scalar_lea.hbm %s14923_s13, 32 }
  0xb2   :  { %143 = dma.hbm_to_vmem [thread:$0]  %s14922_s12, 512, %s138_s27, [#allocation15], %s14961_s21, %s14961_s21, %s12050_s30  }
  0xb3   :  { %p11991_p2 = scmp.ne.s32.totalorder %s14923_s13, %s11990_s24  ;;  %p11994_p3 = scmp.lt.u32.totalorder %s11990_s24, %s14923_s13 }
  0xb5   :  { %p11996_p4 = pnand %p11994_p3, %p11991_p2 }
  0xb7   :  { %11999 = shalt.err (!%p11996_p4)
}
  0xb8   :  { %s12000_s2 = scalar_lea.vmem %s12311_s1, 32  ;;  %p12005_p6 = scmp.lt.s32.totalorder %s12311_s1, %s12311_s1 }
  0xb9   :  { %p12001_p5 = scmp.ne.s32.totalorder %s12311_s1, %s12000_s2  ;;  %p12006_p7 = scmp.lt.s32.totalorder %s12000_s2, %s12000_s2 }
  0xbb   :  { %p12007_p8 = por %p12006_p7, %p12005_p6 }
  0xbd   :  { %p12008_p9 = pnand %p12007_p8, %p12001_p5 }
  0xbf   :  { %12011 = shalt.err (!%p12008_p9)
}
  0xc0   :  { %155 = dma.hbm_to_vmem [thread:$0]  %s14923_s13, 32, %s12311_s1, [#allocation18], %s12054_s23, %s12054_s23, %s12055_s22  }
  0xc1   :  { %12034 = dma.done.wait [#allocation3], 128  }
  0xc2   :  { %12035 = vsyncadd [#allocation3], 4294967168 }
  0xc3   :  { %12036 = dma.done.wait [#allocation6], 144  }
  0xc4   :  { %12037 = vsyncadd [#allocation6], 4294967152 }
  0xc5   :  { %12038 = dma.done.wait [#allocation9], 544  }
  0xc6   :  { %12039 = vsyncadd [#allocation9], 4294966752 }
  0xc7   :  { %12040 = dma.done.wait [#allocation12], 64  }
  0xc8   :  { %12041 = vsyncadd [#allocation12], 4294967232 }
  0xc9   :  { %12042 = dma.done.wait [#allocation15], 544  }
  0xca   :  { %12043 = vsyncadd [#allocation15], 4294966752 }
  0xcb   :  { %12044 = dma.done.wait [#allocation18], 32  }
  0xcc   :  { %12045 = vsyncadd [#allocation18], 4294967264  ;;  %v11415_v0 = vld [vmem:[#allocation5] sm:$0xff]   ;;  %s14962_s11 = sld [smem:[#allocation33_spill]]  ;;  %vm350_vm0 = vcmask 130048   ;;  %s14963_s28 = sld [smem:[#allocation37_spill]] }
  0xcd   :  { %10335 = vmatprep.subr.bf16.mxu0 %v11415_v0  ;;  %v9764_v16 = vld [vmem:[#allocation7] ss:$0 sm:$0xff]  ;;  %vm455_vm1 = vcmask 261120   ;;  %v14939_v36 = vmov 0.0   ;;  %v9770_v37 = vld [vmem:[%s14915_s5] ss:$0 sm:$0xff] }
  0xce   :  { %10336 = vmatpush3.bf16.msra.mxu0 %v11415_v0  ;;  %vm12063_vm2 = vmmov 0   ;;  %s12064_s9 = smov 96   ;;  %vm544_vm3 = vcmask 64512   ;;  %vm1099_vm4 = vcmask 1043456   ;;  %s12066_s6 = smov 88   ;;  %vm4279_vm5 = vcmask 195584  }
  0xcf   :  { %s12067_s13 = smov 120   ;;  %s12068_s22 = smov 56   ;;  %vm9560_vm6 = vcmask 1041409   ;;  %vm9562_vm7 = vcmask 1042434   ;;  %vm9564_vm8 = vcmask 1043459   ;;  %vm9566_vm9 = vcmask 1044484  }
  0xd0   :  { %s12069_s1 = smov 80   ;;  %s12070_s10 = smov 112   ;;  %vm9568_vm10 = vcmask 1045509   ;;  %vm9570_vm11 = vcmask 1046534   ;;  %vm9572_vm12 = vcmask 1047559  }
  0xd1   :  { %s12071_s25 = smov 48   ;;  %s12072_s3 = smov 72  }
  0xd2   :  { %v323_v1 = vld [vmem:[%s14962_s11] sm:$0xff]  ;;  %v324_v2 = vld [vmem:[%s14962_s11 + $0x8] sm:$0xff]  ;;  %v325_v3 = vld [vmem:[%s14962_s11 + $0x10] sm:$0xff]  ;;  %s12073_s29 = smov 104   ;;  %s12074_s8 = smov 40  }
  0xd3   :  { %v331_v4 = vpack.c.bf16 %v324_v2, %v323_v1  ;;  %v326_v5 = vld [vmem:[%s14962_s11 + $0x18] sm:$0xff]  ;;  %v327_v6 = vld [vmem:[%s14962_s11 + $0x20] sm:$0xff]  ;;  %v328_v7 = vld [vmem:[%s14962_s11 + $0x28] sm:$0xff]  ;;  %s12075_s24 = smov 8   ;;  %s12076_s26 = smov 24  }
  0xd4   :  { %v332_v8 = vpack.c.bf16 %v326_v5, %v325_v3  ;;  %v333_v9 = vpack.c.bf16 %v328_v7, %v327_v6  ;;  %v11416_v10 = vld [vmem:[%s14963_s28] sm:$0xff]   ;;  %v329_v11 = vld [vmem:[%s14962_s11 + $0x30] sm:$0xff]  ;;  %v330_v12 = vld [vmem:[%s14962_s11 + $0x38] sm:$0xff]  ;;  %s12077_s4 = smov [#allocation19]  }
  0xd5   :  { %10337 = vmatprep.mubr.msk.bf16.mxu0 %vm350_vm0, %v331_v4  ;;  %10345 = vmatprep.subr.bf16.mxu0 %v11416_v10  ;;  %v334_v13 = vpack.c.bf16 %v330_v12, %v329_v11  ;;  %v11417_v14 = vld [vmem:[%s14963_s28 + $0x8] sm:$0xff]   ;;  %s9750_s2 = sshll.u32 %s12077_s4, 4  ;;  %s9751_s2 = int_to_ptr.vmem [resolvable:$true] %s9750_s2 }
  0xd6   :  { %10338 = vmatmul.mubr.msk.bf16.vlgmr.msra.gmra.mrb[0].mxu0 %vm350_vm0, %v332_v8  ;;  %11261 = vmatprep.subr.bf16.mxu1 %v11416_v10  ;;  %p12017_p11 = scmp.lt.s32.totalorder %s9751_s2, %s9751_s2 }
  0xd7   :  { %10341 = vmatprep.mubr.msk.bf16.mxu0 %vm350_vm0, %v333_v9  ;;  %10346 = vmatpush3.bf16.msra.mxu0 %v11416_v10 }
  0xd8   :  { %11263 = vmatpush3.bf16.msra.mxu1 %v11416_v10  ;;  %10347 = vmatprep.subr.bf16.mxu0 %v11417_v14 }
  0xd9   :  { %11262 = vmatprep.subr.bf16.mxu1 %v11417_v14 }
  0xdb   :  { %10348 = vmatpush3.bf16.msra.mxu0 %v11417_v14 }
  0xdc   :  { %11264 = vmatpush3.bf16.msra.mxu1 %v11417_v14  ;;  %10357 = vmatprep.subr.bf16.mxu0 %v14939_v36 }
  0xdd   :  { %10363 = vmatprep.subr.bf16.mxu1 %v14939_v36 }
  0xde   :  { %10342 = vmatmul.mubr.msk.bf16.gmra.mrb[4].mxu0 %vm350_vm0, %v334_v13 }
 0x1a9   :  { %v10339_v15 = vpop.f32.mrb[0].mxu0 }
 0x1aa   :  { %v397_v17 = vpop.f32.mrb[1].mxu0  ;;  %v12388_v23 = vadd.f32 %v10339_v15, %v9764_v16 }
 0x1ab   :  { %v10340_v18 = vpop.f32.mrb[2].mxu0  ;;  %v12384_v21 = vadd.f32 %v9764_v16, %v397_v17 }
 0x1ac   :  { %v12382_v19 = vadd.f32 %v10340_v18, %v9764_v16  ;;  %v400_v20 = vpop.f32.mrb[3].mxu0  ;;  %v12065_v18 = vmov 1966171168  }
 0x1ad   :  { %v12386_v22 = vadd.f32 %v9764_v16, %v400_v20  ;;  %v203_v20 = vunpack.c.l.s4 %v12065_v18 }
 0x1ae   :  { %v429_v25 = vpack.c.bf16 %v12382_v19, %v12388_v23 }
 0x1af   :  { %v428_v24 = vpack.c.bf16 %v12386_v22, %v12384_v21 }
 0x1b1   :  { %v10343_v26 = vpop.f32.mrb[4].mxu0  ;;  %10349 = vmatprep.mubr.msk.bf16.mxu0 %vm455_vm1, %v428_v24  ;;  %v205_v24 = vlaneseq }
 0x1b2   :  { %v12395_v27 = vadd.f32 %v10343_v26, %v9764_v16  ;;  %v413_v28 = vpop.f32.mrb[5].mxu0  ;;  %10350 = vmatmul.mubr.msk.bf16.vlgmr.msra.gmra.mrb[8].mxu0 %vm455_vm1, %v429_v25  ;;  %v204_v25 = vunpack.c.0.s8 %v203_v20 }
 0x1b3   :  { %v10344_v29 = vpop.f32.mrb[6].mxu0  ;;  %v12398_v30 = vadd.f32 %v9764_v16, %v413_v28  ;;  %10359 = vmatprep.mubr.msk.bf16.mxu0 %vm12063_vm2, %v14939_v36  ;;  %v12511_v26 = vshrl.u32 %v205_v24, 7 }
 0x1b4   :  { %v12400_v31 = vadd.f32 %v10344_v29, %v9764_v16  ;;  %v416_v32 = vpop.f32.mrb[7].mxu0  ;;  %v199_v29 = vld [vmem:[#allocation2] sm:$0xff] }
 0x1b5   :  { %v12402_v33 = vadd.f32 %v9764_v16, %v416_v32  ;;  %14965 = vst [vmem:[#allocation28_spill] sm:$0xff] %v12511_v26  ;;  %v207_v28 = vsub.s32 %v204_v25, %v12511_v26 }
 0x1b6   :  { %14964 = vst [vmem:[#allocation27_spill] sm:$0xff] %v12400_v31  ;;  %v431_v34 = vpack.c.bf16 %v12400_v31, %v12395_v27 }
 0x1b7   :  { %v430_v35 = vpack.c.bf16 %v12402_v33, %v12398_v30  ;;  %v208_v32 = vrot.slane %v199_v29, %v207_v28 }
 0x1b9   :  { %10353 = vmatprep.mubr.msk.bf16.mxu1 %vm455_vm1, %v430_v35  ;;  %v216_v35 = vcombine.high %v208_v32, %v208_v32 }
 0x1ba   :  { %10354 = vmatmul.mubr.msk.bf16.vlgmr.msra.gmra.mrb[0].mxu1 %vm455_vm1, %v431_v34  ;;  %v224_v34 = vrot.slane %v208_v32, %v207_v28 }
 0x1bb   :  { %10365 = vmatprep.mubr.msk.bf16.mxu1 %vm12063_vm2, %v14939_v36 }
 0x285   :  { %v10351_v38 = vpop.f32.mrb[8].mxu0 }
 0x286   :  { %v511_v39 = vadd.f32 %v10351_v38, %v9770_v37  ;;  %v502_v40 = vpop.f32.mrb[9].mxu0  ;;  %v12515_v38 = vsub.s32 0, %v12511_v26 }
 0x287   :  { %v503_v41 = vadd.f32 %v9770_v37, %v502_v40  ;;  %v10352_v42 = vpop.f32.mrb[10].mxu0  ;;  %v246_v40 = vcombine.high %v224_v34, %v224_v34 }
 0x288   :  { %v12419_v43 = vpack.c.bf16 %v511_v39, %v511_v39  ;;  %v514_v44 = vadd.f32 %v10352_v42, %v9770_v37  ;;  %v505_v45 = vpop.f32.mrb[11].mxu0  ;;  %14966 = vst [vmem:[#allocation29_spill] sm:$0xff] %v12515_v38  ;;  %v238_v39 = vrot.slane %v216_v35, %v207_v28 }
 0x289   :  { %v12421_v46 = vpack.c.bf16 %v503_v41, %v503_v41  ;;  %v506_v47 = vadd.f32 %v9770_v37, %v505_v45 }
 0x28a   :  { %641 = vrot.lane.b32.xlu1 %v12419_v43, %s12064_s9  ;;  %v12427_v48 = vpack.c.bf16 %v514_v44, %v514_v44  ;;  %v259_v42 = vmul.f32 -1e+09, %v238_v39  ;;  %v201_v44 = vcombine.high %v199_v29, %v199_v29 }
 0x28b   :  { %542 = vrot.lane.b32.xlu0 %v12421_v46, %s12064_s9  ;;  %v12429_v49 = vpack.c.bf16 %v506_v47, %v506_v47 }
 0x28d   :  { %v10355_v50 = vpop.f32.mrb[0].mxu1 }
 0x28e   :  { %v518_v51 = vpop.f32.mrb[1].mxu1  ;;  %690 = vrot.lane.b32.xlu1 %v12427_v48, %s12064_s9  ;;  %v527_v52 = vadd.f32 %v10355_v50, %v9770_v37 }
 0x28f   :  { %v519_v53 = vadd.f32 %v9770_v37, %v518_v51  ;;  %v10356_v54 = vpop.f32.mrb[2].mxu1  ;;  %592 = vrot.lane.b32.xlu0 %v12429_v49, %s12064_s9 }
 0x290   :  { %v521_v55 = vpop.f32.mrb[3].mxu1  ;;  %v12437_v58 = vpack.c.bf16 %v527_v52, %v527_v52  ;;  %v530_v59 = vadd.f32 %v10356_v54, %v9770_v37  ;;  %v260_v52 = vmul.f32 -1e+09, %v246_v40 }
 0x291   :  { %v12435_v56 = vpack.c.bf16 %v519_v53, %v519_v53  ;;  %v522_v57 = vadd.f32 %v9770_v37, %v521_v55  ;;  %v258_v37 = vmul.f32 -1e+09, %v224_v34  ;;  %v12524_v55 = vrot.slane %v259_v42, %v12515_v38 }
 0x292   :  { %v12445_v61 = vpack.c.bf16 %v530_v59, %v530_v59  ;;  %v215_v59 = vrot.slane %v201_v44, %v207_v28 }
 0x293   :  { %v12439_v60 = vpack.c.bf16 %v522_v57, %v522_v57  ;;  %739 = vrot.lane.b32.xlu0 %v12435_v56, %s12064_s9  ;;  %v12518_v41 = vrot.slane %v258_v37, %v12515_v38  ;;  %14967 = vst [vmem:[#allocation30_spill] sm:$0xff] %v12524_v55  ;;  %v248_v57 = vcombine.high %v238_v39, %v238_v39 }
 0x295   :  { %788 = vrot.lane.b32.xlu1 %v12439_v60, %s12064_s9 }
 0x297   :  { %837 = vrot.lane.b32.xlu0 %v12437_v58, %s12064_s9 }
 0x299   :  { %886 = vrot.lane.b32.xlu1 %v12445_v61, %s12064_s9 }
 0x29b   :  { %1143 = vrot.lane.b32.xlu0 %v12429_v49, %s14961_s21 }
 0x29d   :  { %1094 = vrot.lane.b32.xlu1 %v12421_v46, %s14961_s21 }
 0x2a1   :  { %1191 = vrot.lane.b32.xlu1 %v12419_v43, %s14961_s21 }
 0x2a5   :  { %1239 = vrot.lane.b32.xlu1 %v12427_v48, %s14961_s21 }
 0x2fc   :  { %v642_v0 = vpop.permute.xlu1 %641 }
 0x2fd   :  { %v543_v62 = vpop.permute.xlu0 %542  ;;  %v647_v3 = vsel %vm544_vm3, %v642_v0, 0 }
 0x2fe   :  { %v549_v63 = vsel %vm544_vm3, %v543_v62, 0 }
 0x2ff   :  { %10358 = vmatpush3.bf16.xpose.msra.mxu0 %v549_v63 }
 0x300   :  { %10369 = vmatprep.subr.bf16.mxu0 %v14939_v36  ;;  %v691_v4 = vpop.permute.xlu1 %690 }
 0x301   :  { %v593_v1 = vpop.permute.xlu0 %592  ;;  %v696_v5 = vsel %vm544_vm3, %v691_v4, 0 }
 0x302   :  { %v598_v2 = vsel %vm544_vm3, %v593_v1, 0 }
 0x303   :  { %10364 = vmatpush3.bf16.xpose.msra.mxu1 %v598_v2 }
 0x304   :  { %10375 = vmatprep.subr.bf16.mxu1 %v14939_v36 }
 0x305   :  { %v740_v6 = vpop.permute.xlu0 %739 }
 0x306   :  { %10360 = vmatmul.mubr.msk.bf16.vlgmr.msra.gmra.mrb[12].mxu0 %vm544_vm3, %v12421_v46  ;;  %v745_v7 = vsel %vm544_vm3, %v740_v6, 0  ;;  %v261_v6 = vmul.f32 -1e+09, %v248_v57 }
 0x307   :  { %10370 = vmatpush3.bf16.xpose.msra.mxu0 %v647_v3  ;;  %10371 = vmatprep.mubr.msk.bf16.mxu0 %vm12063_vm2, %v14939_v36  ;;  %v789_v8 = vpop.permute.xlu1 %788  ;;  %v12529_v3 = vrot.slane %v260_v52, %v12515_v38 }
 0x308   :  { %10381 = vmatprep.subr.bf16.mxu0 %v14939_v36  ;;  %v794_v9 = vsel %vm544_vm3, %v789_v8, 0  ;;  %v217_v8 = vcombine.high %v215_v59, %v215_v59 }
 0x309   :  { %v838_v10 = vpop.permute.xlu0 %837 }
 0x30a   :  { %10366 = vmatmul.mubr.msk.bf16.vlgmr.msra.gmra.mrb[4].mxu1 %vm544_vm3, %v12429_v49  ;;  %v843_v12 = vsel %vm544_vm3, %v838_v10, 0  ;;  %v245_v18 = vrot.slane %v217_v8, %v207_v28 }
 0x30b   :  { %10376 = vmatpush3.bf16.xpose.msra.mxu1 %v696_v5  ;;  %10377 = vmatprep.mubr.msk.bf16.mxu1 %vm12063_vm2, %v14939_v36  ;;  %v887_v11 = vpop.permute.xlu1 %886 }
 0x30c   :  { %10387 = vmatprep.subr.bf16.mxu1 %v14939_v36  ;;  %v892_v13 = vsel %vm544_vm3, %v887_v11, 0  ;;  %v263_v39 = vmul.f32 -1e+09, %v245_v18  ;;  %v249_v57 = vcombine.high %v245_v18, %v245_v18 }
 0x30d   :  { %v1144_v16 = vpop.permute.xlu0 %1143 }
 0x30e   :  { %10372 = vmatmul.mubr.msk.bf16.vlgmr.msra.gmra.mrb[16].mxu0 %vm544_vm3, %v12419_v43  ;;  %v1149_v17 = vsel %vm1099_vm4, %v1144_v16, 0  ;;  %v12540_v16 = vrot.slane %v261_v6, %v12515_v38  ;;  %v12554_v52 = vrot.slane %v263_v39, %v12515_v38 }
 0x30f   :  { %10382 = vmatpush3.bf16.xpose.msra.mxu0 %v745_v7  ;;  %10383 = vmatprep.mubr.msk.bf16.mxu0 %vm12063_vm2, %v14939_v36  ;;  %v1095_v14 = vpop.permute.xlu1 %1094  ;;  %v231_v7 = vrot.slane %v215_v59, %v207_v28 }
 0x310   :  { %10393 = vmatprep.subr.bf16.mxu0 %v14939_v36  ;;  %v1101_v15 = vsel %vm1099_vm4, %v1095_v14, 0  ;;  %14968 = vst [vmem:[#allocation31_spill] sm:$0xff] %v12540_v16 }
 0x311   :  { %v247_v40 = vcombine.high %v231_v7, %v231_v7 }
 0x312   :  { %10378 = vmatmul.mubr.msk.bf16.vlgmr.msra.gmra.mrb[8].mxu1 %vm544_vm3, %v12427_v48 }
 0x313   :  { %10388 = vmatpush3.bf16.xpose.msra.mxu1 %v794_v9  ;;  %10389 = vmatprep.mubr.msk.bf16.mxu1 %vm12063_vm2, %v14939_v36 }
 0x314   :  { %10399 = vmatprep.subr.bf16.mxu1 %v14939_v36 }
 0x316   :  { %10384 = vmatmul.mubr.msk.bf16.vlgmr.msra.gmra.mrb[20].mxu0 %vm544_vm3, %v12435_v56 }
 0x317   :  { %10394 = vmatpush3.bf16.xpose.msra.mxu0 %v843_v12  ;;  %10395 = vmatprep.mubr.msk.bf16.mxu0 %vm12063_vm2, %v14939_v36 }
 0x318   :  { %10405 = vmatprep.subr.bf16.mxu0 %v14939_v36 }
 0x31a   :  { %10390 = vmatmul.mubr.msk.bf16.vlgmr.msra.gmra.mrb[12].mxu1 %vm544_vm3, %v12439_v60 }
 0x31b   :  { %10400 = vmatpush3.bf16.xpose.msra.mxu1 %v892_v13  ;;  %10401 = vmatprep.mubr.msk.bf16.mxu1 %vm12063_vm2, %v14939_v36 }
 0x31c   :  { %10411 = vmatprep.subr.bf16.mxu1 %v14939_v36 }
 0x31e   :  { %10396 = vmatmul.mubr.msk.bf16.vlgmr.msra.gmra.mrb[24].mxu0 %vm544_vm3, %v12437_v58 }
 0x31f   :  { %10406 = vmatpush3.bf16.msra.mxu0 %v1101_v15  ;;  %10407 = vmatprep.mubr.msk.bf16.mxu0 %vm12063_vm2, %v14939_v36 }
 0x320   :  { %10417 = vmatprep.subr.bf16.mxu0 %v14939_v36 }
 0x322   :  { %10402 = vmatmul.mubr.msk.bf16.vlgmr.msra.gmra.mrb[16].mxu1 %vm544_vm3, %v12445_v61 }
 0x323   :  { %10412 = vmatpush3.bf16.msra.mxu1 %v1149_v17  ;;  %10413 = vmatprep.mubr.msk.bf16.mxu1 %vm12063_vm2, %v14939_v36  ;;  %v262_v17 = vmul.f32 -1e+09, %v231_v7  ;;  %v265_v7 = vmul.f32 -1e+09, %v249_v57 }
 0x324   :  { %10423 = vmatprep.subr.bf16.mxu1 %v14939_v36 }
 0x325   :  { %v12548_v37 = vrot.slane %v262_v17, %v12515_v38  ;;  %v12566_v17 = vrot.slane %v265_v7, %v12515_v38 }
 0x327   :  { %14969 = vst [vmem:[#allocation32_spill] sm:$0xff] %v12548_v37 }
 0x3d9   :  { %v585_v45 = vpop.f32.mrb[12].mxu0 }
 0x3da   :  { %v934_v47 = vmul.f32 0.35355338, %v585_v45  ;;  %v10361_v50 = vpop.f32.mrb[13].mxu0 }
 0x3db   :  { %v588_v51 = vpop.f32.mrb[14].mxu0 }
 0x3dc   :  { %v10362_v53 = vpop.f32.mrb[15].mxu0  ;;  %v12521_v54 = vadd.f32 %v12518_v41, %v934_v47 }
 0x3dd   :  { %v634_v62 = vpop.f32.mrb[4].mxu1  ;;  %v264_v53 = vmul.f32 -1e+09, %v247_v40  ;;  %v12576_v40 = vpop.permute.xlu1 %1191 }
 0x3de   :  { %v935_v63 = vmul.f32 0.35355338, %v634_v62  ;;  %v10367_v0 = vpop.f32.mrb[5].mxu1  ;;  %v998_v1 = vsel %vm544_vm3, %v12521_v54, -inf }
 0x3df   :  { %v637_v2 = vpop.f32.mrb[6].mxu1  ;;  %999 = vmax.xlane.f32.xlu0 %v998_v1  ;;  %v12559_v6 = vrot.slane %v264_v53, %v12515_v38 }
 0x3e0   :  { %v10368_v4 = vpop.f32.mrb[7].mxu1  ;;  %v12532_v5 = vadd.f32 %v12524_v55, %v935_v63 }
 0x3e1   :  { %v683_v9 = vpop.f32.mrb[16].mxu0 }
 0x3e2   :  { %v936_v10 = vmul.f32 0.35355338, %v683_v9  ;;  %v10373_v11 = vpop.f32.mrb[17].mxu0  ;;  %v1001_v12 = vsel %vm544_vm3, %v12532_v5, -inf }
 0x3e3   :  { %v686_v13 = vpop.f32.mrb[18].mxu0  ;;  %1002 = vmax.xlane.f32.xlu1 %v1001_v12 }
 0x3e4   :  { %v10374_v14 = vpop.f32.mrb[19].mxu0  ;;  %v12537_v15 = vadd.f32 %v12529_v3, %v936_v10 }
 0x3e5   :  { %v732_v20 = vpop.f32.mrb[8].mxu1 }
 0x3e6   :  { %v937_v24 = vmul.f32 0.35355338, %v732_v20  ;;  %v10379_v25 = vpop.f32.mrb[9].mxu1  ;;  %v1004_v29 = vsel %vm544_vm3, %v12537_v15, -inf }
 0x3e7   :  { %v735_v32 = vpop.f32.mrb[10].mxu1  ;;  %1005 = vmax.xlane.f32.xlu0 %v1004_v29 }
 0x3e8   :  { %v10380_v34 = vpop.f32.mrb[11].mxu1  ;;  %v12545_v35 = vadd.f32 %v12540_v16, %v937_v24 }
 0x3e9   :  { %v781_v42 = vpop.f32.mrb[20].mxu0 }
 0x3ea   :  { %v938_v44 = vmul.f32 0.35355338, %v781_v42  ;;  %v10385_v28 = vpop.f32.mrb[21].mxu0  ;;  %v1007_v45 = vsel %vm544_vm3, %v12545_v35, -inf  ;;  %v12578_v42 = vpop.permute.xlu1 %1239 }
 0x3eb   :  { %v784_v47 = vpop.f32.mrb[22].mxu0  ;;  %1008 = vmax.xlane.f32.xlu0 %v1007_v45 }
 0x3ec   :  { %v10386_v50 = vpop.f32.mrb[23].mxu0  ;;  %v994_v51 = vadd.f32 %v12548_v37, %v938_v44 }
 0x3ed   :  { %v830_v59 = vpop.f32.mrb[12].mxu1 }
 0x3ee   :  { %v939_v62 = vmul.f32 0.35355338, %v830_v59  ;;  %v10391_v63 = vpop.f32.mrb[13].mxu1  ;;  %v1010_v0 = vsel %vm544_vm3, %v994_v51, -inf }
 0x3ef   :  { %v833_v1 = vpop.f32.mrb[14].mxu1  ;;  %1011 = vmax.xlane.f32.xlu1 %v1010_v0 }
 0x3f0   :  { %v10392_v2 = vpop.f32.mrb[15].mxu1  ;;  %v995_v4 = vadd.f32 %v12554_v52, %v939_v62 }
 0x3f1   :  { %v879_v8 = vpop.f32.mrb[24].mxu0 }
 0x3f2   :  { %v940_v9 = vmul.f32 0.35355338, %v879_v8  ;;  %v10397_v10 = vpop.f32.mrb[25].mxu0  ;;  %v1013_v11 = vsel %vm544_vm3, %v995_v4, -inf }
 0x3f3   :  { %v882_v12 = vpop.f32.mrb[26].mxu0  ;;  %1014 = vmax.xlane.f32.xlu0 %v1013_v11 }
 0x3f4   :  { %v10398_v13 = vpop.f32.mrb[27].mxu0  ;;  %v12563_v14 = vadd.f32 %v12559_v6, %v940_v9 }
 0x3f5   :  { %v928_v18 = vpop.f32.mrb[16].mxu1 }
 0x3f6   :  { %v941_v20 = vmul.f32 0.35355338, %v928_v18  ;;  %v10403_v24 = vpop.f32.mrb[17].mxu1  ;;  %v1016_v25 = vsel %vm544_vm3, %v12563_v14, -inf }
 0x3f7   :  { %v931_v29 = vpop.f32.mrb[18].mxu1  ;;  %1017 = vmax.xlane.f32.xlu1 %v1016_v25 }
 0x3f8   :  { %v10404_v32 = vpop.f32.mrb[19].mxu1  ;;  %v997_v34 = vadd.f32 %v12566_v17, %v941_v20 }
 0x3fa   :  { %v1019_v39 = vsel %vm544_vm3, %v997_v34, -inf }
 0x3fb   :  { %1020 = vmax.xlane.f32.xlu0 %v1019_v39 }
 0x408   :  { %1335 = vrot.lane.b32.xlu1 %v12439_v60, %s14961_s21 }
 0x411   :  { %1287 = vrot.lane.b32.xlu0 %v12435_v56, %s14961_s21 }
 0x46c   :  { %v1000_v44 = vpop.xlane.xlu0 %999 }
 0x46d   :  { %v1022_v28 = vsub.f32 %v12521_v54, %v1000_v44 }
 0x46f   :  { %v1030_v45 = vmul.f32 1.442695, %v1022_v28 }
 0x470   :  { %v1003_v47 = vpop.xlane.xlu1 %1002 }
 0x471   :  { %11455 = vpow2.f32 %v1030_v45  ;;  %v1023_v50 = vsub.f32 %v12532_v5, %v1003_v47 }
 0x473   :  { %v1032_v53 = vmul.f32 1.442695, %v1023_v50 }
 0x474   :  { %v1006_v57 = vpop.xlane.xlu0 %1005 }
 0x475   :  { %11457 = vpow2.f32 %v1032_v53  ;;  %v1024_v59 = vsub.f32 %v12537_v15, %v1006_v57 }
 0x477   :  { %v1034_v62 = vmul.f32 1.442695, %v1024_v59 }
 0x478   :  { %v1009_v63 = vpop.xlane.xlu0 %1008 }
 0x479   :  { %11459 = vpow2.f32 %v1034_v62  ;;  %v1025_v0 = vsub.f32 %v12545_v35, %v1009_v63 }
 0x47b   :  { %v12584_v1 = vpop.eup %11455  ;;  %v1036_v2 = vmul.f32 1.442695, %v1025_v0 }
 0x47c   :  { %v1012_v7 = vpop.xlane.xlu1 %1011  ;;  %v1046_v54 = vsel %vm544_vm3, %v12584_v1, 0.0 }
 0x47d   :  { %11461 = vpow2.f32 %v1036_v2  ;;  %v1026_v8 = vsub.f32 %v994_v51, %v1012_v7  ;;  %1047 = vadd.xlane.f32.xlu1 %v1046_v54 }
 0x47f   :  { %v12588_v5 = vpop.eup %11457  ;;  %v1038_v9 = vmul.f32 1.442695, %v1026_v8 }
 0x480   :  { %v1015_v10 = vpop.xlane.xlu0 %1014  ;;  %v1049_v15 = vsel %vm544_vm3, %v12588_v5, 0.0 }
 0x481   :  { %11463 = vpow2.f32 %v1038_v9  ;;  %v1027_v11 = vsub.f32 %v995_v4, %v1015_v10  ;;  %1050 = vadd.xlane.f32.xlu0 %v1049_v15  ;;  %v1197_v9 = vsel %vm1099_vm4, %v12576_v40, 0 }
 0x483   :  { %v12592_v35 = vpop.eup %11459  ;;  %v1040_v12 = vmul.f32 1.442695, %v1027_v11 }
 0x484   :  { %v1052_v13 = vsel %vm544_vm3, %v12592_v35, 0.0  ;;  %v1018_v29 = vpop.xlane.xlu1 %1017 }
 0x485   :  { %11465 = vpow2.f32 %v1040_v12  ;;  %1053 = vadd.xlane.f32.xlu1 %v1052_v13  ;;  %v1028_v32 = vsub.f32 %v12563_v14, %v1018_v29  ;;  %v1245_v12 = vsel %vm1099_vm4, %v12578_v42, 0 }
 0x487   :  { %v12596_v51 = vpop.eup %11461  ;;  %v1042_v44 = vmul.f32 1.442695, %v1028_v32 }
 0x488   :  { %v1055_v18 = vsel %vm544_vm3, %v12596_v51, 0.0  ;;  %v1021_v39 = vpop.xlane.xlu0 %1020  ;;  %v1336_v14 = vpop.permute.xlu1 %1335 }
 0x489   :  { %1056 = vadd.xlane.f32.xlu0 %v1055_v18  ;;  %v1029_v28 = vsub.f32 %v997_v34, %v1021_v39  ;;  %11467 = vpow2.f32 %v1042_v44  ;;  %v1341_v29 = vsel %vm1099_vm4, %v1336_v14, 0 }
 0x48b   :  { %v12600_v20 = vpop.eup %11463  ;;  %v1044_v45 = vmul.f32 1.442695, %v1029_v28 }
 0x48c   :  { %v1058_v4 = vsel %vm544_vm3, %v12600_v20, 0.0  ;;  %v1288_v34 = vpop.permute.xlu0 %1287 }
 0x48d   :  { %1059 = vadd.xlane.f32.xlu1 %v1058_v4  ;;  %11469 = vpow2.f32 %v1044_v45  ;;  %v1293_v4 = vsel %vm1099_vm4, %v1288_v34, 0 }
 0x48f   :  { %v12604_v24 = vpop.eup %11465 }
 0x490   :  { %v1061_v25 = vsel %vm544_vm3, %v12604_v24, 0.0 }
 0x491   :  { %1062 = vadd.xlane.f32.xlu0 %v1061_v25 }
 0x493   :  { %v12613_v47 = vpop.eup %11467 }
 0x494   :  { %v1064_v50 = vsel %vm544_vm3, %v12613_v47, 0.0 }
 0x497   :  { %v12617_v53 = vpop.eup %11469 }
 0x498   :  { %v1067_v57 = vsel %vm544_vm3, %v12617_v53, 0.0 }
 0x49e   :  { %1431 = vrot.lane.b32.xlu1 %v12445_v61, %s14961_s21 }
 0x4a7   :  { %1383 = vrot.lane.b32.xlu0 %v12437_v58, %s14961_s21 }
 0x4c2   :  { %1065 = vadd.xlane.f32.xlu1 %v1064_v50 }
 0x4c6   :  { %1068 = vadd.xlane.f32.xlu0 %v1067_v57 }
 0x4d3   :  { %1531 = vrot.lane.b32.xlu1 %v12429_v49, %s12066_s6 }
 0x4d7   :  { %1529 = vrot.lane.b32.xlu1 %v12429_v49, %s12067_s13 }
 0x4db   :  { %1631 = vrot.lane.b32.xlu1 %v12427_v48, %s12066_s6 }
 0x4dc   :  { %1481 = vrot.lane.b32.xlu0 %v12421_v46, %s12066_s6 }
 0x4df   :  { %1629 = vrot.lane.b32.xlu1 %v12427_v48, %s12067_s13 }
 0x4e0   :  { %1479 = vrot.lane.b32.xlu0 %v12421_v46, %s12067_s13 }
 0x4e3   :  { %1731 = vrot.lane.b32.xlu1 %v12439_v60, %s12066_s6 }
 0x4e4   :  { %1581 = vrot.lane.b32.xlu0 %v12419_v43, %s12066_s6 }
 0x4e7   :  { %1729 = vrot.lane.b32.xlu1 %v12439_v60, %s12067_s13 }
 0x4e8   :  { %1579 = vrot.lane.b32.xlu0 %v12419_v43, %s12067_s13 }
 0x4eb   :  { %1831 = vrot.lane.b32.xlu1 %v12445_v61, %s12066_s6 }
 0x4ec   :  { %1681 = vrot.lane.b32.xlu0 %v12435_v56, %s12066_s6 }
 0x4ef   :  { %1829 = vrot.lane.b32.xlu1 %v12445_v61, %s12067_s13 }
 0x4f0   :  { %1679 = vrot.lane.b32.xlu0 %v12435_v56, %s12067_s13 }
 0x4f3   :  { %1991 = vrot.lane.b32.xlu1 %v12421_v46, %s12068_s22 }
 0x4f4   :  { %1781 = vrot.lane.b32.xlu0 %v12437_v58, %s12066_s6 }
 0x4f7   :  { %2087 = vrot.lane.b32.xlu1 %v12419_v43, %s12068_s22 }
 0x4f8   :  { %1779 = vrot.lane.b32.xlu0 %v12437_v58, %s12067_s13 }
 0x4fb   :  { %2135 = vrot.lane.b32.xlu1 %v12427_v48, %s12068_s22 }
 0x4fc   :  { %2039 = vrot.lane.b32.xlu0 %v12429_v49, %s12068_s22 }
 0x50a   :  { %v1048_v59 = vpop.xlane.xlu1 %1047 }
 0x50b   :  { %11471 = vrcp.f32 %v1048_v59 }
 0x50e   :  { %v1051_v62 = vpop.xlane.xlu0 %1050 }
 0x50f   :  { %11473 = vrcp.f32 %v1051_v62 }
 0x512   :  { %v1054_v63 = vpop.xlane.xlu1 %1053 }
 0x513   :  { %11475 = vrcp.f32 %v1054_v63 }
 0x515   :  { %v11472_v0 = vpop.eup %11471 }
 0x516   :  { %v1057_v2 = vpop.xlane.xlu0 %1056  ;;  %v1078_v7 = vmul.f32 %v11472_v0, %v12584_v1 }
 0x517   :  { %11477 = vrcp.f32 %v1057_v2 }
 0x518   :  { %v1086_v54 = vpack.c.bf16 %v1078_v7, %v1078_v7 }
 0x519   :  { %v11474_v8 = vpop.eup %11473 }
 0x51a   :  { %10408 = vmatmul.mubr.msk.bf16.vlgmr.msra.gmra.mrb[28].mxu0 %vm544_vm3, %v1086_v54  ;;  %v1060_v10 = vpop.xlane.xlu1 %1059  ;;  %v1079_v15 = vmul.f32 %v11474_v8, %v12588_v5 }
 0x51b   :  { %10418 = vmatpush3.bf16.msra.mxu0 %v1197_v9  ;;  %11479 = vrcp.f32 %v1060_v10  ;;  %10419 = vmatprep.mubr.msk.bf16.mxu0 %vm12063_vm2, %v14939_v36 }
 0x51c   :  { %v1087_v11 = vpack.c.bf16 %v1079_v15, %v1079_v15  ;;  %10429 = vmatprep.subr.bf16.mxu0 %v14939_v36 }
 0x51d   :  { %v11476_v1 = vpop.eup %11475 }
 0x51e   :  { %10414 = vmatmul.mubr.msk.bf16.vlgmr.msra.gmra.mrb[20].mxu1 %vm544_vm3, %v1087_v11  ;;  %v1063_v40 = vpop.xlane.xlu0 %1062  ;;  %v1080_v13 = vmul.f32 %v11476_v1, %v12592_v35  ;;  %v1432_v50 = vpop.permute.xlu1 %1431 }
 0x51f   :  { %10424 = vmatpush3.bf16.msra.mxu1 %v1245_v12  ;;  %11481 = vrcp.f32 %v1063_v40  ;;  %10425 = vmatprep.mubr.msk.bf16.mxu1 %vm12063_vm2, %v14939_v36  ;;  %v1437_v57 = vsel %vm1099_vm4, %v1432_v50, 0 }
 0x520   :  { %v1088_v5 = vpack.c.bf16 %v1080_v13, %v1080_v13  ;;  %10435 = vmatprep.subr.bf16.mxu1 %v14939_v36 }
 0x521   :  { %v11478_v18 = vpop.eup %11477 }
 0x522   :  { %10420 = vmatmul.mubr.msk.bf16.vlgmr.msra.gmra.mrb[32].mxu0 %vm544_vm3, %v1088_v5  ;;  %v1081_v42 = vmul.f32 %v11478_v18, %v12596_v51  ;;  %v1384_v39 = vpop.permute.xlu0 %1383 }
 0x523   :  { %10430 = vmatpush3.bf16.msra.mxu0 %v1293_v4  ;;  %10431 = vmatprep.mubr.msk.bf16.mxu0 %vm12063_vm2, %v14939_v36  ;;  %v1389_v28 = vsel %vm1099_vm4, %v1384_v39, 0 }
 0x524   :  { %v1089_v35 = vpack.c.bf16 %v1081_v42, %v1081_v42  ;;  %10441 = vmatprep.subr.bf16.mxu0 %v14939_v36 }
 0x525   :  { %v11480_v25 = vpop.eup %11479 }
 0x526   :  { %10426 = vmatmul.mubr.msk.bf16.vlgmr.msra.gmra.mrb[24].mxu1 %vm544_vm3, %v1089_v35  ;;  %v1082_v32 = vmul.f32 %v11480_v25, %v12600_v20 }
 0x527   :  { %10436 = vmatpush3.bf16.msra.mxu1 %v1341_v29  ;;  %10437 = vmatprep.mubr.msk.bf16.mxu1 %vm12063_vm2, %v14939_v36 }
 0x528   :  { %v1090_v51 = vpack.c.bf16 %v1082_v32, %v1082_v32  ;;  %10447 = vmatprep.subr.bf16.mxu1 %v14939_v36 }
 0x529   :  { %v11482_v44 = vpop.eup %11481 }
 0x52a   :  { %10432 = vmatmul.mubr.msk.bf16.vlgmr.msra.gmra.mrb[36].mxu0 %vm544_vm3, %v1090_v51  ;;  %v1083_v45 = vmul.f32 %v11482_v44, %v12604_v24 }
 0x52b   :  { %10442 = vmatpush3.bf16.msra.mxu0 %v1389_v28  ;;  %10443 = vmatprep.mubr.msk.bf16.mxu0 %vm12063_vm2, %v14939_v36 }
 0x52c   :  { %v1091_v20 = vpack.c.bf16 %v1083_v45, %v1083_v45  ;;  %10453 = vmatprep.subr.bf16.mxu0 %v14939_v36 }
 0x52e   :  { %10438 = vmatmul.mubr.msk.bf16.vlgmr.msra.gmra.mrb[28].mxu1 %vm544_vm3, %v1091_v20 }
 0x52f   :  { %10448 = vmatpush3.bf16.msra.mxu1 %v1437_v57  ;;  %10449 = vmatprep.mubr.msk.bf16.mxu1 %vm12063_vm2, %v14939_v36 }
 0x530   :  { %10459 = vmatprep.subr.bf16.mxu1 %v14939_v36 }
 0x54f   :  { %v1066_v14 = vpop.xlane.xlu1 %1065 }
 0x550   :  { %11483 = vrcp.f32 %v1066_v14 }
 0x553   :  { %v1532_v24 = vpop.permute.xlu1 %1531  ;;  %v1069_v34 = vpop.xlane.xlu0 %1068 }
 0x554   :  { %11485 = vrcp.f32 %v1069_v34  ;;  %v1537_v12 = vsel %vm544_vm3, %v1532_v24, 0 }
 0x557   :  { %v1530_v59 = vpop.permute.xlu1 %1529  ;;  %v1482_v62 = vpop.permute.xlu0 %1481 }
 0x558   :  { %v1487_v9 = vsel %vm544_vm3, %v1482_v62, 0 }
 0x55a   :  { %v11484_v63 = vpop.eup %11483 }
 0x55b   :  { %v1632_v0 = vpop.permute.xlu1 %1631  ;;  %v1480_v2 = vpop.permute.xlu0 %1479  ;;  %v1084_v7 = vmul.f32 %v11484_v63, %v12613_v47 }
 0x55c   :  { %v1637_v18 = vsel %vm544_vm3, %v1632_v0, 0 }
 0x55d   :  { %v1092_v54 = vpack.c.bf16 %v1084_v7, %v1084_v7 }
 0x55e   :  { %v11486_v8 = vpop.eup %11485 }
 0x55f   :  { %v1630_v10 = vpop.permute.xlu1 %1629  ;;  %10444 = vmatmul.mubr.msk.bf16.vlgmr.msra.gmra.mrb[40].mxu0 %vm544_vm3, %v1092_v54  ;;  %v1582_v15 = vpop.permute.xlu0 %1581  ;;  %v1085_v11 = vmul.f32 %v11486_v8, %v12617_v53 }
 0x560   :  { %10454 = vmatpush3.bf16.xpose.msra.mxu0 %v1487_v9  ;;  %10455 = vmatprep.mubr.msk.bf16.mxu0 %vm12063_vm2, %v14939_v36  ;;  %v1587_v53 = vsel %vm544_vm3, %v1582_v15, 0 }
 0x561   :  { %v1093_v1 = vpack.c.bf16 %v1085_v11, %v1085_v11  ;;  %10465 = vmatprep.subr.bf16.mxu0 %v14939_v36 }
 0x563   :  { %10450 = vmatmul.mubr.msk.bf16.vlgmr.msra.gmra.mrb[32].mxu1 %vm544_vm3, %v1093_v1  ;;  %v1580_v47 = vpop.permute.xlu0 %1579  ;;  %v1732_v40 = vpop.permute.xlu1 %1731 }
 0x564   :  { %10460 = vmatpush3.bf16.xpose.msra.mxu1 %v1537_v12  ;;  %10461 = vmatprep.mubr.msk.bf16.mxu1 %vm12063_vm2, %v14939_v36  ;;  %v1737_v25 = vsel %vm544_vm3, %v1732_v40, 0 }
 0x565   :  { %10471 = vmatprep.subr.bf16.mxu1 %v14939_v36 }
 0x567   :  { %10456 = vmatmul.mubr.msk.bf16.vlgmr.msra.gmra.mrb[44].mxu0 %vm544_vm3, %v1480_v2  ;;  %v1682_v13 = vpop.permute.xlu0 %1681  ;;  %v1730_v5 = vpop.permute.xlu1 %1729 }
 0x568   :  { %10466 = vmatpush3.bf16.xpose.msra.mxu0 %v1587_v53  ;;  %10467 = vmatprep.mubr.msk.bf16.mxu0 %vm12063_vm2, %v14939_v36  ;;  %v1687_v42 = vsel %vm544_vm3, %v1682_v13, 0 }
 0x569   :  { %10477 = vmatprep.subr.bf16.mxu0 %v14939_v36 }
 0x56b   :  { %10462 = vmatmul.mubr.msk.bf16.vlgmr.msra.gmra.mrb[36].mxu1 %vm544_vm3, %v1530_v59  ;;  %v1680_v4 = vpop.permute.xlu0 %1679  ;;  %v1832_v35 = vpop.permute.xlu1 %1831 }
 0x56c   :  { %10472 = vmatpush3.bf16.xpose.msra.mxu1 %v1637_v18  ;;  %10473 = vmatprep.mubr.msk.bf16.mxu1 %vm12063_vm2, %v14939_v36  ;;  %v1837_v44 = vsel %vm544_vm3, %v1832_v35, 0 }
 0x56d   :  { %10483 = vmatprep.subr.bf16.mxu1 %v14939_v36 }
 0x56f   :  { %10468 = vmatmul.mubr.msk.bf16.vlgmr.msra.gmra.mrb[48].mxu0 %vm544_vm3, %v1580_v47  ;;  %v1782_v29 = vpop.permute.xlu0 %1781  ;;  %v1830_v32 = vpop.permute.xlu1 %1829 }
 0x570   :  { %10478 = vmatpush3.bf16.xpose.msra.mxu0 %v1687_v42  ;;  %10479 = vmatprep.mubr.msk.bf16.mxu0 %vm12063_vm2, %v14939_v36  ;;  %v1787_v39 = vsel %vm544_vm3, %v1782_v29, 0 }
 0x571   :  { %10489 = vmatprep.subr.bf16.mxu0 %v14939_v36 }
 0x573   :  { %10474 = vmatmul.mubr.msk.bf16.vlgmr.msra.gmra.mrb[40].mxu1 %vm544_vm3, %v1630_v10  ;;  %v1780_v51 = vpop.permute.xlu0 %1779  ;;  %v1992_v28 = vpop.permute.xlu1 %1991 }
 0x574   :  { %10484 = vmatpush3.bf16.xpose.msra.mxu1 %v1737_v25  ;;  %10485 = vmatprep.mubr.msk.bf16.mxu1 %vm12063_vm2, %v14939_v36  ;;  %v1997_v45 = vsel %vm1099_vm4, %v1992_v28, 0 }
 0x575   :  { %10495 = vmatprep.subr.bf16.mxu1 %v14939_v36 }
 0x577   :  { %10480 = vmatmul.mubr.msk.bf16.vlgmr.msra.gmra.mrb[52].mxu0 %vm544_vm3, %v1680_v4  ;;  %v2040_v50 = vpop.permute.xlu0 %2039 }
 0x578   :  { %10490 = vmatpush3.bf16.xpose.msra.mxu0 %v1787_v39  ;;  %10491 = vmatprep.mubr.msk.bf16.mxu0 %vm12063_vm2, %v14939_v36  ;;  %v2045_v20 = vsel %vm1099_vm4, %v2040_v50, 0 }
 0x579   :  { %10501 = vmatprep.subr.bf16.mxu0 %v14939_v36 }
 0x57b   :  { %10486 = vmatmul.mubr.msk.bf16.vlgmr.msra.gmra.mrb[44].mxu1 %vm544_vm3, %v1730_v5 }
 0x57c   :  { %10496 = vmatpush3.bf16.xpose.msra.mxu1 %v1837_v44  ;;  %10497 = vmatprep.mubr.msk.bf16.mxu1 %vm12063_vm2, %v14939_v36 }
 0x57d   :  { %10507 = vmatprep.subr.bf16.mxu1 %v14939_v36 }
 0x57f   :  { %10492 = vmatmul.mubr.msk.bf16.vlgmr.msra.gmra.mrb[56].mxu0 %vm544_vm3, %v1780_v51 }
 0x580   :  { %10502 = vmatpush3.bf16.msra.mxu0 %v1997_v45  ;;  %10503 = vmatprep.mubr.msk.bf16.mxu0 %vm12063_vm2, %v14939_v36 }
 0x581   :  { %10513 = vmatprep.subr.bf16.mxu0 %v14939_v36 }
 0x583   :  { %10498 = vmatmul.mubr.msk.bf16.vlgmr.msra.gmra.mrb[48].mxu1 %vm544_vm3, %v1830_v32 }
 0x584   :  { %10508 = vmatpush3.bf16.msra.mxu1 %v2045_v20  ;;  %10509 = vmatprep.mubr.msk.bf16.mxu1 %vm12063_vm2, %v14939_v36 }
 0x585   :  { %10519 = vmatprep.subr.bf16.mxu1 %v14939_v36 }
 0x5ed   :  { %v12751_v57 = vpop.f32.mrb[28].mxu0 }
 0x5ee   :  { %v10409_v14 = vpop.f32.mrb[29].mxu0 }
 0x5ef   :  { %v1140_v24 = vpop.f32.mrb[30].mxu0 }
 0x5f0   :  { %v10410_v34 = vpop.f32.mrb[31].mxu0 }
 0x5f1   :  { %v12753_v59 = vpop.f32.mrb[20].mxu1 }
 0x5f2   :  { %v10415_v62 = vpop.f32.mrb[21].mxu1 }
 0x5f3   :  { %v1188_v63 = vpop.f32.mrb[22].mxu1 }
 0x5f4   :  { %v10416_v0 = vpop.f32.mrb[23].mxu1 }
 0x5f5   :  { %v12755_v2 = vpop.f32.mrb[32].mxu0 }
 0x5f6   :  { %v10421_v7 = vpop.f32.mrb[33].mxu0 }
 0x5f7   :  { %v1236_v54 = vpop.f32.mrb[34].mxu0 }
 0x5f8   :  { %v10422_v8 = vpop.f32.mrb[35].mxu0 }
 0x5f9   :  { %v12757_v9 = vpop.f32.mrb[24].mxu1 }
 0x5fa   :  { %v10427_v10 = vpop.f32.mrb[25].mxu1 }
 0x5fb   :  { %v1284_v15 = vpop.f32.mrb[26].mxu1 }
 0x5fc   :  { %v10428_v11 = vpop.f32.mrb[27].mxu1 }
 0x5fd   :  { %v12759_v1 = vpop.f32.mrb[36].mxu0 }
 0x5fe   :  { %v10433_v12 = vpop.f32.mrb[37].mxu0 }
 0x5ff   :  { %v1332_v47 = vpop.f32.mrb[38].mxu0 }
 0x600   :  { %v10434_v40 = vpop.f32.mrb[39].mxu0 }
 0x601   :  { %v12761_v53 = vpop.f32.mrb[28].mxu1 }
 0x602   :  { %v10439_v13 = vpop.f32.mrb[29].mxu1 }
 0x603   :  { %v1380_v5 = vpop.f32.mrb[30].mxu1 }
 0x604   :  { %v10440_v18 = vpop.f32.mrb[31].mxu1 }
 0x632   :  { %v12763_v4 = vpop.f32.mrb[40].mxu0 }
 0x633   :  { %v10445_v42 = vpop.f32.mrb[41].mxu0 }
 0x634   :  { %v1428_v35 = vpop.f32.mrb[42].mxu0 }
 0x635   :  { %v10446_v25 = vpop.f32.mrb[43].mxu0 }
 0x636   :  { %v12765_v29 = vpop.f32.mrb[32].mxu1 }
 0x637   :  { %v10451_v32 = vpop.f32.mrb[33].mxu1 }
 0x638   :  { %v1476_v39 = vpop.f32.mrb[34].mxu1 }
 0x639   :  { %v10452_v51 = vpop.f32.mrb[35].mxu1 }
 0x63a   :  { %v1523_v44 = vpop.f32.mrb[44].mxu0 }
 0x63b   :  { %v1879_v28 = vmul.f32 0.35355338, %v1523_v44  ;;  %v10457_v45 = vpop.f32.mrb[45].mxu0 }
 0x63c   :  { %v1526_v50 = vpop.f32.mrb[46].mxu0 }
 0x63d   :  { %v10458_v20 = vpop.f32.mrb[47].mxu0  ;;  %v12768_v14 = vadd.f32 %v1879_v28, %v12518_v41 }
 0x63e   :  { %v1573_v24 = vpop.f32.mrb[36].mxu1 }
 0x63f   :  { %v1880_v34 = vmul.f32 0.35355338, %v1573_v24  ;;  %v10463_v62 = vpop.f32.mrb[37].mxu1  ;;  %v1895_v63 = vsel %vm544_vm3, %v12768_v14, -inf }
 0x640   :  { %v1576_v0 = vpop.f32.mrb[38].mxu1  ;;  %1896 = vmax.xlane.f32.xlu0 %v1895_v63 }
 0x641   :  { %v10464_v7 = vpop.f32.mrb[39].mxu1  ;;  %v1888_v54 = vadd.f32 %v1880_v34, %v12524_v55 }
 0x642   :  { %v1623_v8 = vpop.f32.mrb[48].mxu0 }
 0x643   :  { %v1881_v10 = vmul.f32 0.35355338, %v1623_v8  ;;  %v10469_v15 = vpop.f32.mrb[49].mxu0  ;;  %v1898_v11 = vsel %vm544_vm3, %v1888_v54, -inf }
 0x644   :  { %1899 = vmax.xlane.f32.xlu1 %v1898_v11  ;;  %v1626_v12 = vpop.f32.mrb[50].mxu0 }
 0x645   :  { %v10470_v47 = vpop.f32.mrb[51].mxu0  ;;  %v1889_v40 = vadd.f32 %v1881_v10, %v12529_v3 }
 0x646   :  { %v1673_v13 = vpop.f32.mrb[40].mxu1 }
 0x647   :  { %v1882_v5 = vmul.f32 0.35355338, %v1673_v13  ;;  %v10475_v18 = vpop.f32.mrb[41].mxu1  ;;  %v1901_v42 = vsel %vm544_vm3, %v1889_v40, -inf }
 0x648   :  { %v1676_v35 = vpop.f32.mrb[42].mxu1  ;;  %1902 = vmax.xlane.f32.xlu0 %v1901_v42 }
 0x649   :  { %v10476_v25 = vpop.f32.mrb[43].mxu1  ;;  %v1890_v32 = vadd.f32 %v1882_v5, %v12540_v16 }
 0x64a   :  { %v1723_v39 = vpop.f32.mrb[52].mxu0 }
 0x64b   :  { %v1883_v51 = vmul.f32 0.35355338, %v1723_v39  ;;  %v10481_v44 = vpop.f32.mrb[53].mxu0  ;;  %v1904_v28 = vsel %vm544_vm3, %v1890_v32, -inf }
 0x64c   :  { %1905 = vmax.xlane.f32.xlu0 %v1904_v28  ;;  %v1726_v45 = vpop.f32.mrb[54].mxu0 }
 0x64d   :  { %v10482_v50 = vpop.f32.mrb[55].mxu0  ;;  %v1891_v20 = vadd.f32 %v1883_v51, %v12548_v37  ;;  %v12790_v45 = vpop.permute.xlu1 %2087 }
 0x64e   :  { %v1773_v24 = vpop.f32.mrb[44].mxu1 }
 0x64f   :  { %v1884_v34 = vmul.f32 0.35355338, %v1773_v24  ;;  %v10487_v62 = vpop.f32.mrb[45].mxu1  ;;  %v1907_v63 = vsel %vm544_vm3, %v1891_v20, -inf }
 0x650   :  { %v1776_v0 = vpop.f32.mrb[46].mxu1  ;;  %1908 = vmax.xlane.f32.xlu1 %v1907_v63 }
 0x651   :  { %v10488_v7 = vpop.f32.mrb[47].mxu1  ;;  %v1892_v8 = vadd.f32 %v1884_v34, %v12554_v52  ;;  %v12792_v50 = vpop.permute.xlu1 %2135 }
 0x652   :  { %v1823_v10 = vpop.f32.mrb[56].mxu0 }
 0x653   :  { %v1885_v15 = vmul.f32 0.35355338, %v1823_v10  ;;  %v10493_v11 = vpop.f32.mrb[57].mxu0  ;;  %v1910_v12 = vsel %vm544_vm3, %v1892_v8, -inf }
 0x654   :  { %1911 = vmax.xlane.f32.xlu0 %v1910_v12  ;;  %v1826_v47 = vpop.f32.mrb[58].mxu0 }
 0x655   :  { %v10494_v13 = vpop.f32.mrb[59].mxu0  ;;  %v1893_v5 = vadd.f32 %v1885_v15, %v12559_v6 }
 0x656   :  { %v1873_v18 = vpop.f32.mrb[48].mxu1 }
 0x657   :  { %v1886_v42 = vmul.f32 0.35355338, %v1873_v18  ;;  %v10499_v35 = vpop.f32.mrb[49].mxu1  ;;  %v1913_v25 = vsel %vm544_vm3, %v1893_v5, -inf }
 0x658   :  { %v1876_v39 = vpop.f32.mrb[50].mxu1  ;;  %1914 = vmax.xlane.f32.xlu1 %v1913_v25 }
 0x659   :  { %v10500_v51 = vpop.f32.mrb[51].mxu1  ;;  %v1894_v44 = vadd.f32 %v1886_v42, %v12566_v17 }
 0x65b   :  { %v1916_v28 = vsel %vm544_vm3, %v1894_v44, -inf }
 0x65c   :  { %1917 = vmax.xlane.f32.xlu0 %v1916_v28 }
 0x669   :  { %2231 = vrot.lane.b32.xlu1 %v12439_v60, %s12068_s22 }
 0x672   :  { %2183 = vrot.lane.b32.xlu0 %v12435_v56, %s12068_s22 }
 0x6cd   :  { %v1897_v24 = vpop.xlane.xlu0 %1896 }
 0x6ce   :  { %v1919_v34 = vsub.f32 %v12768_v14, %v1897_v24 }
 0x6d0   :  { %v1927_v62 = vmul.f32 1.442695, %v1919_v34 }
 0x6d1   :  { %v1900_v63 = vpop.xlane.xlu1 %1899 }
 0x6d2   :  { %11487 = vpow2.f32 %v1927_v62  ;;  %v1920_v0 = vsub.f32 %v1888_v54, %v1900_v63 }
 0x6d4   :  { %v1929_v7 = vmul.f32 1.442695, %v1920_v0 }
 0x6d5   :  { %v1903_v10 = vpop.xlane.xlu0 %1902 }
 0x6d6   :  { %11489 = vpow2.f32 %v1929_v7  ;;  %v1921_v15 = vsub.f32 %v1889_v40, %v1903_v10 }
 0x6d8   :  { %v1931_v11 = vmul.f32 1.442695, %v1921_v15 }
 0x6d9   :  { %v1906_v12 = vpop.xlane.xlu0 %1905 }
 0x6da   :  { %11491 = vpow2.f32 %v1931_v11  ;;  %v1922_v47 = vsub.f32 %v1890_v32, %v1906_v12 }
 0x6dc   :  { %v12795_v13 = vpop.eup %11487  ;;  %v1933_v18 = vmul.f32 1.442695, %v1922_v47 }
 0x6dd   :  { %v1909_v42 = vpop.xlane.xlu1 %1908  ;;  %v1943_v35 = vsel %vm544_vm3, %v12795_v13, 0.0 }
 0x6de   :  { %11493 = vpow2.f32 %v1933_v18  ;;  %v1923_v14 = vsub.f32 %v1891_v20, %v1909_v42  ;;  %1944 = vadd.xlane.f32.xlu1 %v1943_v35 }
 0x6e0   :  { %v12799_v25 = vpop.eup %11489  ;;  %v1935_v54 = vmul.f32 1.442695, %v1923_v14 }
 0x6e1   :  { %v1912_v39 = vpop.xlane.xlu0 %1911  ;;  %v1946_v40 = vsel %vm544_vm3, %v12799_v25, 0.0 }
 0x6e2   :  { %11495 = vpow2.f32 %v1935_v54  ;;  %v1924_v51 = vsub.f32 %v1892_v8, %v1912_v39  ;;  %1947 = vadd.xlane.f32.xlu0 %v1946_v40 }
 0x6e4   :  { %v12803_v32 = vpop.eup %11491  ;;  %v1937_v28 = vmul.f32 1.442695, %v1924_v51 }
 0x6e5   :  { %v1949_v24 = vsel %vm544_vm3, %v12803_v32, 0.0  ;;  %v1915_v7 = vpop.xlane.xlu1 %1914 }
 0x6e6   :  { %11497 = vpow2.f32 %v1937_v28  ;;  %1950 = vadd.xlane.f32.xlu1 %v1949_v24  ;;  %v1925_v10 = vsub.f32 %v1893_v5, %v1915_v7 }
 0x6e8   :  { %v12807_v20 = vpop.eup %11493  ;;  %v1939_v11 = vmul.f32 1.442695, %v1925_v10 }
 0x6e9   :  { %v1952_v34 = vsel %vm544_vm3, %v12807_v20, 0.0  ;;  %v1918_v15 = vpop.xlane.xlu0 %1917  ;;  %v2232_v5 = vpop.permute.xlu1 %2231 }
 0x6ea   :  { %1953 = vadd.xlane.f32.xlu0 %v1952_v34  ;;  %v1926_v12 = vsub.f32 %v1894_v44, %v1918_v15  ;;  %11499 = vpow2.f32 %v1939_v11  ;;  %v2141_v11 = vsel %vm1099_vm4, %v12792_v50, 0 }
 0x6ec   :  { %v12811_v62 = vpop.eup %11495  ;;  %v1941_v47 = vmul.f32 1.442695, %v1926_v12 }
 0x6ed   :  { %v1955_v8 = vsel %vm544_vm3, %v12811_v62, 0.0  ;;  %v2184_v44 = vpop.permute.xlu0 %2183 }
 0x6ee   :  { %1956 = vadd.xlane.f32.xlu1 %v1955_v8  ;;  %11501 = vpow2.f32 %v1941_v47 }
 0x6f0   :  { %v12815_v63 = vpop.eup %11497 }
 0x6f1   :  { %v1958_v0 = vsel %vm544_vm3, %v12815_v63, 0.0 }
 0x6f2   :  { %1959 = vadd.xlane.f32.xlu0 %v1958_v0  ;;  %v2093_v0 = vsel %vm1099_vm4, %v12790_v45, 0 }
 0x6f4   :  { %v12823_v18 = vpop.eup %11499 }
 0x6f5   :  { %v1961_v42 = vsel %vm544_vm3, %v12823_v18, 0.0 }
 0x6f8   :  { %v12827_v35 = vpop.eup %11501 }
 0x6f9   :  { %v1964_v14 = vsel %vm544_vm3, %v12827_v35, 0.0 }
 0x6ff   :  { %2327 = vrot.lane.b32.xlu1 %v12445_v61, %s12068_s22 }
 0x708   :  { %2279 = vrot.lane.b32.xlu0 %v12437_v58, %s12068_s22 }
 0x723   :  { %1962 = vadd.xlane.f32.xlu1 %v1961_v42  ;;  %v2189_v42 = vsel %vm1099_vm4, %v2184_v44, 0 }
 0x727   :  { %1965 = vadd.xlane.f32.xlu0 %v1964_v14 }
 0x734   :  { %2427 = vrot.lane.b32.xlu1 %v12429_v49, %s12069_s1 }
 0x738   :  { %2425 = vrot.lane.b32.xlu1 %v12429_v49, %s12070_s10 }
 0x73c   :  { %2527 = vrot.lane.b32.xlu1 %v12427_v48, %s12069_s1 }
 0x73d   :  { %2377 = vrot.lane.b32.xlu0 %v12421_v46, %s12069_s1 }
 0x740   :  { %2525 = vrot.lane.b32.xlu1 %v12427_v48, %s12070_s10 }
 0x741   :  { %2375 = vrot.lane.b32.xlu0 %v12421_v46, %s12070_s10 }
 0x744   :  { %2627 = vrot.lane.b32.xlu1 %v12439_v60, %s12069_s1 }
 0x745   :  { %2477 = vrot.lane.b32.xlu0 %v12419_v43, %s12069_s1 }
 0x748   :  { %2625 = vrot.lane.b32.xlu1 %v12439_v60, %s12070_s10 }
 0x749   :  { %2475 = vrot.lane.b32.xlu0 %v12419_v43, %s12070_s10 }
 0x74c   :  { %2727 = vrot.lane.b32.xlu1 %v12445_v61, %s12069_s1 }
 0x74d   :  { %2577 = vrot.lane.b32.xlu0 %v12435_v56, %s12069_s1 }
 0x750   :  { %2725 = vrot.lane.b32.xlu1 %v12445_v61, %s12070_s10 }
 0x751   :  { %2575 = vrot.lane.b32.xlu0 %v12435_v56, %s12070_s10 }
 0x754   :  { %2887 = vrot.lane.b32.xlu1 %v12421_v46, %s12071_s25 }
 0x755   :  { %2677 = vrot.lane.b32.xlu0 %v12437_v58, %s12069_s1 }
 0x758   :  { %2983 = vrot.lane.b32.xlu1 %v12419_v43, %s12071_s25 }
 0x759   :  { %2675 = vrot.lane.b32.xlu0 %v12437_v58, %s12070_s10 }
 0x75c   :  { %3031 = vrot.lane.b32.xlu1 %v12427_v48, %s12071_s25 }
 0x75d   :  { %2935 = vrot.lane.b32.xlu0 %v12429_v49, %s12071_s25 }
 0x76b   :  { %v1945_v54 = vpop.xlane.xlu1 %1944 }
 0x76c   :  { %11503 = vrcp.f32 %v1945_v54  ;;  %v2237_v54 = vsel %vm1099_vm4, %v2232_v5, 0 }
 0x76f   :  { %v1948_v39 = vpop.xlane.xlu0 %1947 }
 0x770   :  { %11505 = vrcp.f32 %v1948_v39 }
 0x773   :  { %v1951_v40 = vpop.xlane.xlu1 %1950 }
 0x774   :  { %11507 = vrcp.f32 %v1951_v40 }
 0x776   :  { %v11504_v51 = vpop.eup %11503 }
 0x777   :  { %v1954_v28 = vpop.xlane.xlu0 %1953  ;;  %v1975_v24 = vmul.f32 %v11504_v51, %v12795_v13 }
 0x778   :  { %11509 = vrcp.f32 %v1954_v28 }
 0x779   :  { %v1983_v34 = vpack.c.bf16 %v1975_v24, %v1975_v24 }
 0x77a   :  { %v11506_v8 = vpop.eup %11505 }
 0x77b   :  { %10504 = vmatmul.mubr.msk.bf16.vlgmr.msra.gmra.mrb[60].mxu0 %vm544_vm3, %v1983_v34  ;;  %v1957_v7 = vpop.xlane.xlu1 %1956  ;;  %v1976_v10 = vmul.f32 %v11506_v8, %v12799_v25 }
 0x77c   :  { %10514 = vmatpush3.bf16.msra.mxu0 %v2093_v0  ;;  %11511 = vrcp.f32 %v1957_v7  ;;  %10515 = vmatprep.mubr.msk.bf16.mxu0 %vm12063_vm2, %v14939_v36 }
 0x77d   :  { %v1984_v15 = vpack.c.bf16 %v1976_v10, %v1976_v10  ;;  %10525 = vmatprep.subr.bf16.mxu0 %v14939_v36 }
 0x77e   :  { %v11508_v13 = vpop.eup %11507 }
 0x77f   :  { %10510 = vmatmul.mubr.msk.bf16.vlgmr.msra.gmra.mrb[52].mxu1 %vm544_vm3, %v1984_v15  ;;  %v1960_v45 = vpop.xlane.xlu0 %1959  ;;  %v1977_v12 = vmul.f32 %v11508_v13, %v12803_v32  ;;  %v2328_v5 = vpop.permute.xlu1 %2327 }
 0x780   :  { %10520 = vmatpush3.bf16.msra.mxu1 %v2141_v11  ;;  %11513 = vrcp.f32 %v1960_v45  ;;  %10521 = vmatprep.mubr.msk.bf16.mxu1 %vm12063_vm2, %v14939_v36  ;;  %v2333_v24 = vsel %vm1099_vm4, %v2328_v5, 0 }
 0x781   :  { %v1985_v25 = vpack.c.bf16 %v1977_v12, %v1977_v12  ;;  %10531 = vmatprep.subr.bf16.mxu1 %v14939_v36 }
 0x782   :  { %v11510_v47 = vpop.eup %11509 }
 0x783   :  { %10516 = vmatmul.mubr.msk.bf16.vlgmr.msra.gmra.mrb[64].mxu0 %vm544_vm3, %v1985_v25  ;;  %v1978_v50 = vmul.f32 %v11510_v47, %v12807_v20  ;;  %v2280_v40 = vpop.permute.xlu0 %2279 }
 0x784   :  { %10526 = vmatpush3.bf16.msra.mxu0 %v2189_v42  ;;  %10527 = vmatprep.mubr.msk.bf16.mxu0 %vm12063_vm2, %v14939_v36  ;;  %v2285_v51 = vsel %vm1099_vm4, %v2280_v40, 0 }
 0x785   :  { %v1986_v32 = vpack.c.bf16 %v1978_v50, %v1978_v50  ;;  %10537 = vmatprep.subr.bf16.mxu0 %v14939_v36 }
 0x786   :  { %v11512_v14 = vpop.eup %11511 }
 0x787   :  { %10522 = vmatmul.mubr.msk.bf16.vlgmr.msra.gmra.mrb[56].mxu1 %vm544_vm3, %v1986_v32  ;;  %v1979_v39 = vmul.f32 %v11512_v14, %v12811_v62 }
 0x788   :  { %10532 = vmatpush3.bf16.msra.mxu1 %v2237_v54  ;;  %10533 = vmatprep.mubr.msk.bf16.mxu1 %vm12063_vm2, %v14939_v36 }
 0x789   :  { %v1987_v20 = vpack.c.bf16 %v1979_v39, %v1979_v39  ;;  %10543 = vmatprep.subr.bf16.mxu1 %v14939_v36 }
 0x78a   :  { %v11514_v44 = vpop.eup %11513 }
 0x78b   :  { %10528 = vmatmul.mubr.msk.bf16.vlgmr.msra.gmra.mrb[68].mxu0 %vm544_vm3, %v1987_v20  ;;  %v1980_v28 = vmul.f32 %v11514_v44, %v12815_v63 }
 0x78c   :  { %10538 = vmatpush3.bf16.msra.mxu0 %v2285_v51  ;;  %10539 = vmatprep.mubr.msk.bf16.mxu0 %vm12063_vm2, %v14939_v36 }
 0x78d   :  { %v1988_v62 = vpack.c.bf16 %v1980_v28, %v1980_v28  ;;  %10549 = vmatprep.subr.bf16.mxu0 %v14939_v36 }
 0x78f   :  { %10534 = vmatmul.mubr.msk.bf16.vlgmr.msra.gmra.mrb[60].mxu1 %vm544_vm3, %v1988_v62 }
 0x790   :  { %10544 = vmatpush3.bf16.msra.mxu1 %v2333_v24  ;;  %10545 = vmatprep.mubr.msk.bf16.mxu1 %vm12063_vm2, %v14939_v36 }
 0x791   :  { %10555 = vmatprep.subr.bf16.mxu1 %v14939_v36 }
 0x7b0   :  { %v1963_v34 = vpop.xlane.xlu1 %1962 }
 0x7b1   :  { %11515 = vrcp.f32 %v1963_v34 }
 0x7b4   :  { %v2428_v63 = vpop.permute.xlu1 %2427  ;;  %v1966_v8 = vpop.xlane.xlu0 %1965 }
 0x7b5   :  { %11517 = vrcp.f32 %v1966_v8  ;;  %v2433_v14 = vsel %vm544_vm3, %v2428_v63, 0 }
 0x7b8   :  { %v2426_v0 = vpop.permute.xlu1 %2425  ;;  %v2378_v7 = vpop.permute.xlu0 %2377 }
 0x7b9   :  { %v2383_v25 = vsel %vm544_vm3, %v2378_v7, 0 }
 0x7bb   :  { %v11516_v10 = vpop.eup %11515 }
 0x7bc   :  { %v2528_v15 = vpop.permute.xlu1 %2527  ;;  %v2376_v13 = vpop.permute.xlu0 %2375  ;;  %v1981_v11 = vmul.f32 %v11516_v10, %v12823_v18 }
 0x7bd   :  { %v2533_v20 = vsel %vm544_vm3, %v2528_v15, 0 }
 0x7be   :  { %v1989_v45 = vpack.c.bf16 %v1981_v11, %v1981_v11 }
 0x7bf   :  { %v11518_v12 = vpop.eup %11517 }
 0x7c0   :  { %v2526_v47 = vpop.permute.xlu1 %2525  ;;  %10540 = vmatmul.mubr.msk.bf16.vlgmr.msra.gmra.mrb[72].mxu0 %vm544_vm3, %v1989_v45  ;;  %v2478_v42 = vpop.permute.xlu0 %2477  ;;  %v1982_v50 = vmul.f32 %v11518_v12, %v12827_v35 }
 0x7c1   :  { %10550 = vmatpush3.bf16.xpose.msra.mxu0 %v2383_v25  ;;  %10551 = vmatprep.mubr.msk.bf16.mxu0 %vm12063_vm2, %v14939_v36  ;;  %v2483_v35 = vsel %vm544_vm3, %v2478_v42, 0 }
 0x7c2   :  { %v1990_v32 = vpack.c.bf16 %v1982_v50, %v1982_v50  ;;  %10561 = vmatprep.subr.bf16.mxu0 %v14939_v36 }
 0x7c4   :  { %10546 = vmatmul.mubr.msk.bf16.vlgmr.msra.gmra.mrb[64].mxu1 %vm544_vm3, %v1990_v32  ;;  %v2476_v18 = vpop.permute.xlu0 %2475  ;;  %v2628_v54 = vpop.permute.xlu1 %2627 }
 0x7c5   :  { %10556 = vmatpush3.bf16.xpose.msra.mxu1 %v2433_v14  ;;  %10557 = vmatprep.mubr.msk.bf16.mxu1 %vm12063_vm2, %v14939_v36  ;;  %v2633_v5 = vsel %vm544_vm3, %v2628_v54, 0 }
 0x7c6   :  { %10567 = vmatprep.subr.bf16.mxu1 %v14939_v36 }
 0x7c8   :  { %10552 = vmatmul.mubr.msk.bf16.vlgmr.msra.gmra.mrb[76].mxu0 %vm544_vm3, %v2376_v13  ;;  %v2578_v39 = vpop.permute.xlu0 %2577  ;;  %v2626_v40 = vpop.permute.xlu1 %2625 }
 0x7c9   :  { %10562 = vmatpush3.bf16.xpose.msra.mxu0 %v2483_v35  ;;  %10563 = vmatprep.mubr.msk.bf16.mxu0 %vm12063_vm2, %v14939_v36  ;;  %v2583_v51 = vsel %vm544_vm3, %v2578_v39, 0 }
 0x7ca   :  { %10573 = vmatprep.subr.bf16.mxu0 %v14939_v36 }
 0x7cc   :  { %10558 = vmatmul.mubr.msk.bf16.vlgmr.msra.gmra.mrb[68].mxu1 %vm544_vm3, %v2426_v0  ;;  %v2576_v44 = vpop.permute.xlu0 %2575  ;;  %v2728_v28 = vpop.permute.xlu1 %2727 }
 0x7cd   :  { %10568 = vmatpush3.bf16.xpose.msra.mxu1 %v2533_v20  ;;  %10569 = vmatprep.mubr.msk.bf16.mxu1 %vm12063_vm2, %v14939_v36  ;;  %v2733_v8 = vsel %vm544_vm3, %v2728_v28, 0 }
 0x7ce   :  { %10579 = vmatprep.subr.bf16.mxu1 %v14939_v36 }
 0x7d0   :  { %10564 = vmatmul.mubr.msk.bf16.vlgmr.msra.gmra.mrb[80].mxu0 %vm544_vm3, %v2476_v18  ;;  %v2678_v62 = vpop.permute.xlu0 %2677  ;;  %v2726_v24 = vpop.permute.xlu1 %2725 }
 0x7d1   :  { %10574 = vmatpush3.bf16.xpose.msra.mxu0 %v2583_v51  ;;  %10575 = vmatprep.mubr.msk.bf16.mxu0 %vm12063_vm2, %v14939_v36  ;;  %v2683_v34 = vsel %vm544_vm3, %v2678_v62, 0 }
 0x7d2   :  { %10585 = vmatprep.subr.bf16.mxu0 %v14939_v36 }
 0x7d4   :  { %10570 = vmatmul.mubr.msk.bf16.vlgmr.msra.gmra.mrb[72].mxu1 %vm544_vm3, %v2526_v47  ;;  %v2676_v63 = vpop.permute.xlu0 %2675  ;;  %v2888_v0 = vpop.permute.xlu1 %2887 }
 0x7d5   :  { %10580 = vmatpush3.bf16.xpose.msra.mxu1 %v2633_v5  ;;  %10581 = vmatprep.mubr.msk.bf16.mxu1 %vm12063_vm2, %v14939_v36  ;;  %v2893_v7 = vsel %vm1099_vm4, %v2888_v0, 0 }
 0x7d6   :  { %10591 = vmatprep.subr.bf16.mxu1 %v14939_v36 }
 0x7d8   :  { %10576 = vmatmul.mubr.msk.bf16.vlgmr.msra.gmra.mrb[84].mxu0 %vm544_vm3, %v2576_v44  ;;  %v2936_v10 = vpop.permute.xlu0 %2935 }
 0x7d9   :  { %10586 = vmatpush3.bf16.xpose.msra.mxu0 %v2683_v34  ;;  %10587 = vmatprep.mubr.msk.bf16.mxu0 %vm12063_vm2, %v14939_v36  ;;  %v2941_v15 = vsel %vm1099_vm4, %v2936_v10, 0 }
 0x7da   :  { %10597 = vmatprep.subr.bf16.mxu0 %v14939_v36 }
 0x7dc   :  { %10582 = vmatmul.mubr.msk.bf16.vlgmr.msra.gmra.mrb[76].mxu1 %vm544_vm3, %v2626_v40 }
 0x7dd   :  { %10592 = vmatpush3.bf16.xpose.msra.mxu1 %v2733_v8  ;;  %10593 = vmatprep.mubr.msk.bf16.mxu1 %vm12063_vm2, %v14939_v36 }
 0x7de   :  { %10603 = vmatprep.subr.bf16.mxu1 %v14939_v36 }
 0x7e0   :  { %10588 = vmatmul.mubr.msk.bf16.vlgmr.msra.gmra.mrb[88].mxu0 %vm544_vm3, %v2676_v63 }
 0x7e1   :  { %10598 = vmatpush3.bf16.msra.mxu0 %v2893_v7  ;;  %10599 = vmatprep.mubr.msk.bf16.mxu0 %vm12063_vm2, %v14939_v36 }
 0x7e2   :  { %10609 = vmatprep.subr.bf16.mxu0 %v14939_v36 }
 0x7e4   :  { %10594 = vmatmul.mubr.msk.bf16.vlgmr.msra.gmra.mrb[80].mxu1 %vm544_vm3, %v2726_v24 }
 0x7e5   :  { %10604 = vmatpush3.bf16.msra.mxu1 %v2941_v15  ;;  %10605 = vmatprep.mubr.msk.bf16.mxu1 %vm12063_vm2, %v14939_v36 }
 0x7e6   :  { %10615 = vmatprep.subr.bf16.mxu1 %v14939_v36 }
 0x84e   :  { %v12961_v13 = vpop.f32.mrb[60].mxu0 }
 0x84f   :  { %v10505_v11 = vpop.f32.mrb[61].mxu0 }
 0x850   :  { %v2036_v45 = vpop.f32.mrb[62].mxu0 }
 0x851   :  { %v10506_v12 = vpop.f32.mrb[63].mxu0 }
 0x852   :  { %v12963_v25 = vpop.f32.mrb[52].mxu1 }
 0x853   :  { %v10511_v42 = vpop.f32.mrb[53].mxu1 }
 0x854   :  { %v2084_v50 = vpop.f32.mrb[54].mxu1 }
 0x855   :  { %v10512_v32 = vpop.f32.mrb[55].mxu1 }
 0x856   :  { %v12967_v14 = vpop.f32.mrb[64].mxu0 }
 0x857   :  { %v10517_v18 = vpop.f32.mrb[65].mxu0 }
 0x858   :  { %v2132_v54 = vpop.f32.mrb[66].mxu0 }
 0x859   :  { %v10518_v35 = vpop.f32.mrb[67].mxu0 }
 0x85a   :  { %v12969_v39 = vpop.f32.mrb[56].mxu1 }
 0x85b   :  { %v10523_v20 = vpop.f32.mrb[57].mxu1 }
 0x85c   :  { %v2180_v44 = vpop.f32.mrb[58].mxu1 }
 0x85d   :  { %v10524_v51 = vpop.f32.mrb[59].mxu1 }
 0x85e   :  { %v12973_v28 = vpop.f32.mrb[68].mxu0 }
 0x85f   :  { %v10529_v5 = vpop.f32.mrb[69].mxu0 }
 0x860   :  { %v2228_v62 = vpop.f32.mrb[70].mxu0 }
 0x861   :  { %v10530_v24 = vpop.f32.mrb[71].mxu0 }
 0x862   :  { %v12975_v34 = vpop.f32.mrb[60].mxu1 }
 0x863   :  { %v10535_v8 = vpop.f32.mrb[61].mxu1 }
 0x864   :  { %v2276_v0 = vpop.f32.mrb[62].mxu1 }
 0x865   :  { %v10536_v7 = vpop.f32.mrb[63].mxu1 }
 0x893   :  { %v12979_v10 = vpop.f32.mrb[72].mxu0 }
 0x894   :  { %v10541_v15 = vpop.f32.mrb[73].mxu0 }
 0x895   :  { %v2324_v11 = vpop.f32.mrb[74].mxu0 }
 0x896   :  { %v10542_v45 = vpop.f32.mrb[75].mxu0 }
 0x897   :  { %v12981_v12 = vpop.f32.mrb[64].mxu1 }
 0x898   :  { %v10547_v50 = vpop.f32.mrb[65].mxu1 }
 0x899   :  { %v2372_v32 = vpop.f32.mrb[66].mxu1 }
 0x89a   :  { %v10548_v18 = vpop.f32.mrb[67].mxu1 }
 0x89b   :  { %v2419_v54 = vpop.f32.mrb[76].mxu0 }
 0x89c   :  { %v2775_v35 = vmul.f32 0.35355338, %v2419_v54  ;;  %v10553_v20 = vpop.f32.mrb[77].mxu0 }
 0x89d   :  { %v2422_v44 = vpop.f32.mrb[78].mxu0 }
 0x89e   :  { %v10554_v51 = vpop.f32.mrb[79].mxu0  ;;  %v12986_v5 = vadd.f32 %v2775_v35, %v12518_v41 }
 0x89f   :  { %v2469_v62 = vpop.f32.mrb[68].mxu1 }
 0x8a0   :  { %v2776_v24 = vmul.f32 0.35355338, %v2469_v62  ;;  %v10559_v8 = vpop.f32.mrb[69].mxu1  ;;  %v2791_v0 = vsel %vm544_vm3, %v12986_v5, -inf }
 0x8a1   :  { %v2472_v7 = vpop.f32.mrb[70].mxu1  ;;  %2792 = vmax.xlane.f32.xlu0 %v2791_v0 }
 0x8a2   :  { %v10560_v15 = vpop.f32.mrb[71].mxu1  ;;  %v2784_v11 = vadd.f32 %v2776_v24, %v12524_v55 }
 0x8a3   :  { %v2519_v45 = vpop.f32.mrb[80].mxu0 }
 0x8a4   :  { %v2777_v50 = vmul.f32 0.35355338, %v2519_v45  ;;  %v10565_v32 = vpop.f32.mrb[81].mxu0  ;;  %v2794_v18 = vsel %vm544_vm3, %v2784_v11, -inf }
 0x8a5   :  { %2795 = vmax.xlane.f32.xlu1 %v2794_v18  ;;  %v2522_v54 = vpop.f32.mrb[82].mxu0 }
 0x8a6   :  { %v10566_v35 = vpop.f32.mrb[83].mxu0  ;;  %v2785_v20 = vadd.f32 %v2777_v50, %v12529_v3 }
 0x8a7   :  { %v2569_v44 = vpop.f32.mrb[72].mxu1 }
 0x8a8   :  { %v2778_v51 = vmul.f32 0.35355338, %v2569_v44  ;;  %v10571_v62 = vpop.f32.mrb[73].mxu1  ;;  %v2797_v8 = vsel %vm544_vm3, %v2785_v20, -inf }
 0x8a9   :  { %v2572_v7 = vpop.f32.mrb[74].mxu1  ;;  %2798 = vmax.xlane.f32.xlu0 %v2797_v8 }
 0x8aa   :  { %v10572_v0 = vpop.f32.mrb[75].mxu1  ;;  %v2786_v24 = vadd.f32 %v2778_v51, %v12540_v16 }
 0x8ab   :  { %v2619_v15 = vpop.f32.mrb[84].mxu0 }
 0x8ac   :  { %v2779_v45 = vmul.f32 0.35355338, %v2619_v15  ;;  %v10577_v32 = vpop.f32.mrb[85].mxu0  ;;  %v2800_v42 = vsel %vm544_vm3, %v2786_v24, -inf }
 0x8ad   :  { %2801 = vmax.xlane.f32.xlu0 %v2800_v42  ;;  %v2622_v18 = vpop.f32.mrb[86].mxu0 }
 0x8ae   :  { %v10578_v54 = vpop.f32.mrb[87].mxu0  ;;  %v2787_v50 = vadd.f32 %v2779_v45, %v12548_v37 }
 0x8af   :  { %v2669_v35 = vpop.f32.mrb[76].mxu1 }
 0x8b0   :  { %v2780_v44 = vmul.f32 0.35355338, %v2669_v35  ;;  %v10583_v62 = vpop.f32.mrb[77].mxu1  ;;  %v2803_v63 = vsel %vm544_vm3, %v2787_v50, -inf }
 0x8b1   :  { %v2672_v7 = vpop.f32.mrb[78].mxu1  ;;  %2804 = vmax.xlane.f32.xlu1 %v2803_v63 }
 0x8b2   :  { %v10584_v8 = vpop.f32.mrb[79].mxu1  ;;  %v2788_v51 = vadd.f32 %v2780_v44, %v12554_v52 }
 0x8b3   :  { %v2719_v0 = vpop.f32.mrb[88].mxu0 }
 0x8b4   :  { %v2781_v15 = vmul.f32 0.35355338, %v2719_v0  ;;  %v10589_v32 = vpop.f32.mrb[89].mxu0  ;;  %v2806_v47 = vsel %vm544_vm3, %v2788_v51, -inf }
 0x8b5   :  { %2807 = vmax.xlane.f32.xlu0 %v2806_v47  ;;  %v2722_v42 = vpop.f32.mrb[90].mxu0  ;;  %v13011_v47 = vpop.permute.xlu1 %2983 }
 0x8b6   :  { %v13001_v18 = vadd.f32 %v2781_v15, %v12559_v6  ;;  %v10590_v45 = vpop.f32.mrb[91].mxu0 }
 0x8b7   :  { %v2769_v54 = vpop.f32.mrb[80].mxu1 }
 0x8b8   :  { %v2782_v35 = vmul.f32 0.35355338, %v2769_v54  ;;  %v10595_v62 = vpop.f32.mrb[81].mxu1  ;;  %v2809_v63 = vsel %vm544_vm3, %v13001_v18, -inf }
 0x8b9   :  { %v2772_v7 = vpop.f32.mrb[82].mxu1  ;;  %2810 = vmax.xlane.f32.xlu1 %v2809_v63  ;;  %v13013_v15 = vpop.permute.xlu1 %3031 }
 0x8ba   :  { %v2790_v44 = vadd.f32 %v2782_v35, %v12566_v17  ;;  %v10596_v8 = vpop.f32.mrb[83].mxu1 }
 0x8bc   :  { %v2812_v0 = vsel %vm544_vm3, %v2790_v44, -inf }
 0x8bd   :  { %2813 = vmax.xlane.f32.xlu0 %v2812_v0 }
 0x8ca   :  { %3127 = vrot.lane.b32.xlu1 %v12439_v60, %s12071_s25 }
 0x8d3   :  { %3079 = vrot.lane.b32.xlu0 %v12435_v56, %s12071_s25 }
 0x92e   :  { %v2793_v32 = vpop.xlane.xlu0 %2792 }
 0x92f   :  { %v2815_v42 = vsub.f32 %v12986_v5, %v2793_v32 }
 0x931   :  { %v2823_v45 = vmul.f32 1.442695, %v2815_v42 }
 0x932   :  { %v2796_v54 = vpop.xlane.xlu1 %2795 }
 0x933   :  { %11519 = vpow2.f32 %v2823_v45  ;;  %v2816_v35 = vsub.f32 %v2784_v11, %v2796_v54 }
 0x935   :  { %v2825_v62 = vmul.f32 1.442695, %v2816_v35 }
 0x936   :  { %v2799_v63 = vpop.xlane.xlu0 %2798 }
 0x937   :  { %11521 = vpow2.f32 %v2825_v62  ;;  %v2817_v7 = vsub.f32 %v2785_v20, %v2799_v63 }
 0x939   :  { %v2827_v8 = vmul.f32 1.442695, %v2817_v7 }
 0x93a   :  { %v2802_v0 = vpop.xlane.xlu0 %2801 }
 0x93b   :  { %11523 = vpow2.f32 %v2827_v8  ;;  %v2818_v40 = vsub.f32 %v2786_v24, %v2802_v0 }
 0x93d   :  { %v13016_v36 = vpop.eup %11519  ;;  %v2829_v26 = vmul.f32 1.442695, %v2818_v40 }
 0x93e   :  { %v2805_v38 = vpop.xlane.xlu1 %2804  ;;  %v2839_v31 = vsel %vm544_vm3, %v13016_v36, 0.0 }
 0x93f   :  { %11525 = vpow2.f32 %v2829_v26  ;;  %v2819_v5 = vsub.f32 %v2787_v50, %v2805_v38  ;;  %2840 = vadd.xlane.f32.xlu1 %v2839_v31 }
 0x941   :  { %v13020_v32 = vpop.eup %11521  ;;  %v2831_v11 = vmul.f32 1.442695, %v2819_v5 }
 0x942   :  { %v2808_v42 = vpop.xlane.xlu0 %2807  ;;  %v2842_v20 = vsel %vm544_vm3, %v13020_v32, 0.0 }
 0x943   :  { %11527 = vpow2.f32 %v2831_v11  ;;  %v2820_v45 = vsub.f32 %v2788_v51, %v2808_v42  ;;  %2843 = vadd.xlane.f32.xlu0 %v2842_v20 }
 0x945   :  { %v13024_v24 = vpop.eup %11523  ;;  %v2833_v40 = vmul.f32 1.442695, %v2820_v45 }
 0x946   :  { %v2845_v54 = vsel %vm544_vm3, %v13024_v24, 0.0  ;;  %v2811_v62 = vpop.xlane.xlu1 %2810 }
 0x947   :  { %11529 = vpow2.f32 %v2833_v40  ;;  %2846 = vadd.xlane.f32.xlu1 %v2845_v54  ;;  %v2821_v63 = vsub.f32 %v13001_v18, %v2811_v62 }
 0x949   :  { %v13028_v26 = vpop.eup %11525  ;;  %v2835_v8 = vmul.f32 1.442695, %v2821_v63 }
 0x94a   :  { %v2848_v31 = vsel %vm544_vm3, %v13028_v26, 0.0  ;;  %v2814_v7 = vpop.xlane.xlu0 %2813  ;;  %v3128_v18 = vpop.permute.xlu1 %3127 }
 0x94b   :  { %2849 = vadd.xlane.f32.xlu0 %v2848_v31  ;;  %v2822_v0 = vsub.f32 %v2790_v44, %v2814_v7  ;;  %11531 = vpow2.f32 %v2835_v8  ;;  %v2989_v7 = vsel %vm1099_vm4, %v13011_v47, 0 }
 0x94d   :  { %v13032_v38 = vpop.eup %11527  ;;  %v2837_v5 = vmul.f32 1.442695, %v2822_v0 }
 0x94e   :  { %v2851_v50 = vsel %vm544_vm3, %v13032_v38, 0.0  ;;  %v3080_v44 = vpop.permute.xlu0 %3079 }
 0x94f   :  { %2852 = vadd.xlane.f32.xlu1 %v2851_v50  ;;  %11533 = vpow2.f32 %v2837_v5  ;;  %v14970_v5 = vmov 0.0  }
 0x951   :  { %v13036_v51 = vpop.eup %11529 }
 0x952   :  { %v2854_v35 = vsel %vm544_vm3, %v13036_v51, 0.0 }
 0x953   :  { %2855 = vadd.xlane.f32.xlu0 %v2854_v35 }
 0x955   :  { %v13045_v11 = vpop.eup %11531 }
 0x956   :  { %v2857_v42 = vsel %vm544_vm3, %v13045_v11, 0.0 }
 0x959   :  { %v13049_v20 = vpop.eup %11533 }
 0x95a   :  { %v2860_v45 = vsel %vm544_vm3, %v13049_v20, 0.0 }
 0x960   :  { %3223 = vrot.lane.b32.xlu1 %v12445_v61, %s12071_s25 }
 0x969   :  { %3175 = vrot.lane.b32.xlu0 %v12437_v58, %s12071_s25 }
 0x984   :  { %2858 = vadd.xlane.f32.xlu1 %v2857_v42 }
 0x988   :  { %2861 = vadd.xlane.f32.xlu0 %v2860_v45  ;;  %v3037_v45 = vsel %vm1099_vm4, %v13013_v15, 0 }
 0x995   :  { %3323 = vrot.lane.b32.xlu1 %v12429_v49, %s12072_s3 }
 0x999   :  { %3321 = vrot.lane.b32.xlu1 %v12429_v49, %s12073_s29 }
 0x99d   :  { %3423 = vrot.lane.b32.xlu1 %v12427_v48, %s12072_s3 }
 0x99e   :  { %3273 = vrot.lane.b32.xlu0 %v12421_v46, %s12072_s3 }
 0x9a1   :  { %3421 = vrot.lane.b32.xlu1 %v12427_v48, %s12073_s29 }
 0x9a2   :  { %3271 = vrot.lane.b32.xlu0 %v12421_v46, %s12073_s29 }
 0x9a5   :  { %3523 = vrot.lane.b32.xlu1 %v12439_v60, %s12072_s3 }
 0x9a6   :  { %3373 = vrot.lane.b32.xlu0 %v12419_v43, %s12072_s3 }
 0x9a9   :  { %3521 = vrot.lane.b32.xlu1 %v12439_v60, %s12073_s29 }
 0x9aa   :  { %3371 = vrot.lane.b32.xlu0 %v12419_v43, %s12073_s29 }
 0x9ad   :  { %3623 = vrot.lane.b32.xlu1 %v12445_v61, %s12072_s3 }
 0x9ae   :  { %3473 = vrot.lane.b32.xlu0 %v12435_v56, %s12072_s3 }
 0x9b1   :  { %3621 = vrot.lane.b32.xlu1 %v12445_v61, %s12073_s29 }
 0x9b2   :  { %3471 = vrot.lane.b32.xlu0 %v12435_v56, %s12073_s29 }
 0x9b5   :  { %3783 = vrot.lane.b32.xlu1 %v12421_v46, %s12074_s8 }
 0x9b6   :  { %3573 = vrot.lane.b32.xlu0 %v12437_v58, %s12072_s3 }
 0x9ba   :  { %3571 = vrot.lane.b32.xlu0 %v12437_v58, %s12073_s29 }
 0x9cc   :  { %v2841_v40 = vpop.xlane.xlu1 %2840 }
 0x9cd   :  { %11535 = vrcp.f32 %v2841_v40 }
 0x9d0   :  { %v2844_v54 = vpop.xlane.xlu0 %2843 }
 0x9d1   :  { %11537 = vrcp.f32 %v2844_v54 }
 0x9d4   :  { %v2847_v31 = vpop.xlane.xlu1 %2846 }
 0x9d5   :  { %11539 = vrcp.f32 %v2847_v31  ;;  %v3085_v31 = vsel %vm1099_vm4, %v3080_v44, 0 }
 0x9d7   :  { %v11536_v50 = vpop.eup %11535 }
 0x9d8   :  { %v2850_v35 = vpop.xlane.xlu0 %2849  ;;  %v2871_v62 = vmul.f32 %v11536_v50, %v13016_v36 }
 0x9d9   :  { %11541 = vrcp.f32 %v2850_v35  ;;  %v3133_v35 = vsel %vm1099_vm4, %v3128_v18, 0 }
 0x9da   :  { %v2879_v46 = vpack.c.bf16 %v2871_v62, %v2871_v62 }
 0x9db   :  { %v11538_v63 = vpop.eup %11537 }
 0x9dc   :  { %10600 = vmatmul.mubr.msk.bf16.vlgmr.msra.gmra.mrb[92].mxu0 %vm544_vm3, %v2879_v46  ;;  %v2853_v8 = vpop.xlane.xlu1 %2852  ;;  %v2872_v0 = vmul.f32 %v11538_v63, %v13020_v32 }
 0x9dd   :  { %10610 = vmatpush3.bf16.msra.mxu0 %v2989_v7  ;;  %11543 = vrcp.f32 %v2853_v8  ;;  %10611 = vmatprep.mubr.msk.bf16.mxu0 %vm12063_vm2, %v14970_v5 }
 0x9de   :  { %v2880_v42 = vpack.c.bf16 %v2872_v0, %v2872_v0  ;;  %10621 = vmatprep.subr.bf16.mxu0 %v14970_v5 }
 0x9df   :  { %v11540_v36 = vpop.eup %11539 }
 0x9e0   :  { %10606 = vmatmul.mubr.msk.bf16.vlgmr.msra.gmra.mrb[84].mxu1 %vm544_vm3, %v2880_v42  ;;  %v2856_v47 = vpop.xlane.xlu0 %2855  ;;  %v2873_v40 = vmul.f32 %v11540_v36, %v13024_v24  ;;  %v3224_v18 = vpop.permute.xlu1 %3223 }
 0x9e1   :  { %10616 = vmatpush3.bf16.msra.mxu1 %v3037_v45  ;;  %11545 = vrcp.f32 %v2856_v47  ;;  %10617 = vmatprep.mubr.msk.bf16.mxu1 %vm12063_vm2, %v14970_v5  ;;  %v3229_v8 = vsel %vm1099_vm4, %v3224_v18, 0 }
 0x9e2   :  { %v2881_v32 = vpack.c.bf16 %v2873_v40, %v2873_v40  ;;  %10627 = vmatprep.subr.bf16.mxu1 %v14970_v5 }
 0x9e3   :  { %v11542_v54 = vpop.eup %11541 }
 0x9e4   :  { %10612 = vmatmul.mubr.msk.bf16.vlgmr.msra.gmra.mrb[96].mxu0 %vm544_vm3, %v2881_v32  ;;  %v2874_v15 = vmul.f32 %v11542_v54, %v13028_v26  ;;  %v3176_v46 = vpop.permute.xlu0 %3175 }
 0x9e5   :  { %10622 = vmatpush3.bf16.msra.mxu0 %v3085_v31  ;;  %10623 = vmatprep.mubr.msk.bf16.mxu0 %vm12063_vm2, %v14970_v5  ;;  %v3181_v63 = vsel %vm1099_vm4, %v3176_v46, 0 }
 0x9e6   :  { %v2882_v24 = vpack.c.bf16 %v2874_v15, %v2874_v15  ;;  %10633 = vmatprep.subr.bf16.mxu0 %v14970_v5 }
 0x9e7   :  { %v11544_v50 = vpop.eup %11543 }
 0x9e8   :  { %10618 = vmatmul.mubr.msk.bf16.vlgmr.msra.gmra.mrb[88].mxu1 %vm544_vm3, %v2882_v24  ;;  %v2875_v62 = vmul.f32 %v11544_v50, %v13032_v38 }
 0x9e9   :  { %10628 = vmatpush3.bf16.msra.mxu1 %v3133_v35  ;;  %10629 = vmatprep.mubr.msk.bf16.mxu1 %vm12063_vm2, %v14970_v5 }
 0x9ea   :  { %v2883_v26 = vpack.c.bf16 %v2875_v62, %v2875_v62  ;;  %10639 = vmatprep.subr.bf16.mxu1 %v14970_v5 }
 0x9eb   :  { %v11546_v44 = vpop.eup %11545 }
 0x9ec   :  { %10624 = vmatmul.mubr.msk.bf16.vlgmr.msra.gmra.mrb[100].mxu0 %vm544_vm3, %v2883_v26  ;;  %v2876_v7 = vmul.f32 %v11546_v44, %v13036_v51 }
 0x9ed   :  { %10634 = vmatpush3.bf16.msra.mxu0 %v3181_v63  ;;  %10635 = vmatprep.mubr.msk.bf16.mxu0 %vm12063_vm2, %v14970_v5 }
 0x9ee   :  { %v2884_v38 = vpack.c.bf16 %v2876_v7, %v2876_v7  ;;  %10645 = vmatprep.subr.bf16.mxu0 %v14970_v5 }
 0x9f0   :  { %10630 = vmatmul.mubr.msk.bf16.vlgmr.msra.gmra.mrb[92].mxu1 %vm544_vm3, %v2884_v38 }
 0x9f1   :  { %10640 = vmatpush3.bf16.msra.mxu1 %v3229_v8  ;;  %10641 = vmatprep.mubr.msk.bf16.mxu1 %vm12063_vm2, %v14970_v5 }
 0x9f2   :  { %10651 = vmatprep.subr.bf16.mxu1 %v14970_v5 }
 0xa11   :  { %v2859_v0 = vpop.xlane.xlu1 %2858 }
 0xa12   :  { %11547 = vrcp.f32 %v2859_v0 }
 0xa15   :  { %v3324_v51 = vpop.permute.xlu1 %3323  ;;  %v2862_v42 = vpop.xlane.xlu0 %2861 }
 0xa16   :  { %11549 = vrcp.f32 %v2862_v42  ;;  %v3329_v26 = vsel %vm544_vm3, %v3324_v51, 0 }
 0xa19   :  { %v3322_v36 = vpop.permute.xlu1 %3321  ;;  %v3274_v45 = vpop.permute.xlu0 %3273 }
 0xa1a   :  { %v3279_v24 = vsel %vm544_vm3, %v3274_v45, 0 }
 0xa1c   :  { %v11548_v47 = vpop.eup %11547 }
 0xa1d   :  { %v3424_v40 = vpop.permute.xlu1 %3423  ;;  %v3272_v32 = vpop.permute.xlu0 %3271  ;;  %v2877_v54 = vmul.f32 %v11548_v47, %v13045_v11 }
 0xa1e   :  { %v3429_v18 = vsel %vm544_vm3, %v3424_v40, 0 }
 0xa1f   :  { %v2885_v31 = vpack.c.bf16 %v2877_v54, %v2877_v54 }
 0xa20   :  { %v11550_v15 = vpop.eup %11549 }
 0xa21   :  { %v3422_v50 = vpop.permute.xlu1 %3421  ;;  %10636 = vmatmul.mubr.msk.bf16.vlgmr.msra.gmra.mrb[104].mxu0 %vm544_vm3, %v2885_v31  ;;  %v3374_v35 = vpop.permute.xlu0 %3373  ;;  %v2878_v62 = vmul.f32 %v11550_v15, %v13049_v20 }
 0xa22   :  { %10646 = vmatpush3.bf16.xpose.msra.mxu0 %v3279_v24  ;;  %10647 = vmatprep.mubr.msk.bf16.mxu0 %vm12063_vm2, %v14970_v5  ;;  %v3379_v20 = vsel %vm544_vm3, %v3374_v35, 0 }
 0xa23   :  { %v2886_v46 = vpack.c.bf16 %v2878_v62, %v2878_v62  ;;  %10657 = vmatprep.subr.bf16.mxu0 %v14970_v5 }
 0xa25   :  { %10642 = vmatmul.mubr.msk.bf16.vlgmr.msra.gmra.mrb[96].mxu1 %vm544_vm3, %v2886_v46  ;;  %v3372_v11 = vpop.permute.xlu0 %3371  ;;  %v3524_v44 = vpop.permute.xlu1 %3523 }
 0xa26   :  { %10652 = vmatpush3.bf16.xpose.msra.mxu1 %v3329_v26  ;;  %10653 = vmatprep.mubr.msk.bf16.mxu1 %vm12063_vm2, %v14970_v5  ;;  %v3529_v51 = vsel %vm544_vm3, %v3524_v44, 0 }
 0xa27   :  { %10663 = vmatprep.subr.bf16.mxu1 %v14970_v5 }
 0xa29   :  { %10648 = vmatmul.mubr.msk.bf16.vlgmr.msra.gmra.mrb[108].mxu0 %vm544_vm3, %v3272_v32  ;;  %v3474_v63 = vpop.permute.xlu0 %3473  ;;  %v3522_v7 = vpop.permute.xlu1 %3521 }
 0xa2a   :  { %10658 = vmatpush3.bf16.xpose.msra.mxu0 %v3379_v20  ;;  %10659 = vmatprep.mubr.msk.bf16.mxu0 %vm12063_vm2, %v14970_v5  ;;  %v3479_v8 = vsel %vm544_vm3, %v3474_v63, 0 }
 0xa2b   :  { %10669 = vmatprep.subr.bf16.mxu0 %v14970_v5 }
 0xa2d   :  { %10654 = vmatmul.mubr.msk.bf16.vlgmr.msra.gmra.mrb[100].mxu1 %vm544_vm3, %v3322_v36  ;;  %v3472_v38 = vpop.permute.xlu0 %3471  ;;  %v3624_v0 = vpop.permute.xlu1 %3623 }
 0xa2e   :  { %10664 = vmatpush3.bf16.xpose.msra.mxu1 %v3429_v18  ;;  %10665 = vmatprep.mubr.msk.bf16.mxu1 %vm12063_vm2, %v14970_v5  ;;  %v3629_v47 = vsel %vm544_vm3, %v3624_v0, 0 }
 0xa2f   :  { %10675 = vmatprep.subr.bf16.mxu1 %v14970_v5 }
 0xa31   :  { %10660 = vmatmul.mubr.msk.bf16.vlgmr.msra.gmra.mrb[112].mxu0 %vm544_vm3, %v3372_v11  ;;  %v3574_v42 = vpop.permute.xlu0 %3573  ;;  %v3622_v36 = vpop.permute.xlu1 %3621 }
 0xa32   :  { %10670 = vmatpush3.bf16.xpose.msra.mxu0 %v3479_v8  ;;  %10671 = vmatprep.mubr.msk.bf16.mxu0 %vm12063_vm2, %v14970_v5  ;;  %v3579_v45 = vsel %vm544_vm3, %v3574_v42, 0 }
 0xa33   :  { %10681 = vmatprep.subr.bf16.mxu0 %v14970_v5 }
 0xa35   :  { %10666 = vmatmul.mubr.msk.bf16.vlgmr.msra.gmra.mrb[104].mxu1 %vm544_vm3, %v3422_v50  ;;  %v3784_v40 = vpop.permute.xlu1 %3783  ;;  %v3572_v32 = vpop.permute.xlu0 %3571 }
 0xa36   :  { %10676 = vmatpush3.bf16.xpose.msra.mxu1 %v3529_v51  ;;  %10677 = vmatprep.mubr.msk.bf16.mxu1 %vm12063_vm2, %v14970_v5  ;;  %v3789_v54 = vsel %vm1099_vm4, %v3784_v40, 0 }
 0xa37   :  { %10687 = vmatprep.subr.bf16.mxu1 %v14970_v5 }
 0xa39   :  { %10672 = vmatmul.mubr.msk.bf16.vlgmr.msra.gmra.mrb[116].mxu0 %vm544_vm3, %v3472_v38 }
 0xa3a   :  { %10682 = vmatpush3.bf16.xpose.msra.mxu0 %v3579_v45  ;;  %10683 = vmatprep.mubr.msk.bf16.mxu0 %vm12063_vm2, %v14970_v5 }
 0xa3b   :  { %10693 = vmatprep.subr.bf16.mxu0 %v14970_v5 }
 0xa3d   :  { %10678 = vmatmul.mubr.msk.bf16.vlgmr.msra.gmra.mrb[108].mxu1 %vm544_vm3, %v3522_v7 }
 0xa3e   :  { %10688 = vmatpush3.bf16.xpose.msra.mxu1 %v3629_v47  ;;  %10689 = vmatprep.mubr.msk.bf16.mxu1 %vm12063_vm2, %v14970_v5 }
 0xa3f   :  { %10699 = vmatprep.subr.bf16.mxu1 %v14970_v5 }
 0xa41   :  { %10684 = vmatmul.mubr.msk.bf16.vlgmr.msra.gmra.mrb[120].mxu0 %vm544_vm3, %v3572_v32 }
 0xa42   :  { %10694 = vmatpush3.bf16.msra.mxu0 %v3789_v54  ;;  %10695 = vmatprep.mubr.msk.bf16.mxu0 %vm12063_vm2, %v14970_v5 }
 0xa43   :  { %10705 = vmatprep.subr.bf16.mxu0 %v14970_v5 }
 0xa45   :  { %10690 = vmatmul.mubr.msk.bf16.vlgmr.msra.gmra.mrb[112].mxu1 %vm544_vm3, %v3622_v36 }
 0xa46   :  { %10701 = vmatprep.mubr.msk.bf16.mxu1 %vm12063_vm2, %v14970_v5 }
 0xaaf   :  { %v13175_v31 = vpop.f32.mrb[92].mxu0 }
 0xab0   :  { %v10601_v15 = vpop.f32.mrb[93].mxu0 }
 0xab1   :  { %v2932_v24 = vpop.f32.mrb[94].mxu0 }
 0xab2   :  { %v10602_v50 = vpop.f32.mrb[95].mxu0 }
 0xab3   :  { %v13177_v35 = vpop.f32.mrb[84].mxu1 }
 0xab4   :  { %v10607_v46 = vpop.f32.mrb[85].mxu1 }
 0xab5   :  { %v2980_v26 = vpop.f32.mrb[86].mxu1 }
 0xab6   :  { %v10608_v11 = vpop.f32.mrb[87].mxu1 }
 0xab7   :  { %v13181_v44 = vpop.f32.mrb[96].mxu0 }
 0xab8   :  { %v10613_v20 = vpop.f32.mrb[97].mxu0 }
 0xab9   :  { %v3028_v63 = vpop.f32.mrb[98].mxu0 }
 0xaba   :  { %v10614_v7 = vpop.f32.mrb[99].mxu0 }
 0xabb   :  { %v13183_v18 = vpop.f32.mrb[88].mxu1 }
 0xabc   :  { %v10619_v8 = vpop.f32.mrb[89].mxu1 }
 0xabd   :  { %v3076_v0 = vpop.f32.mrb[90].mxu1 }
 0xabe   :  { %v10620_v51 = vpop.f32.mrb[91].mxu1 }
 0xabf   :  { %v13187_v42 = vpop.f32.mrb[100].mxu0 }
 0xac0   :  { %v10625_v36 = vpop.f32.mrb[101].mxu0 }
 0xac1   :  { %v3124_v45 = vpop.f32.mrb[102].mxu0 }
 0xac2   :  { %v10626_v47 = vpop.f32.mrb[103].mxu0 }
 0xac3   :  { %v13189_v40 = vpop.f32.mrb[92].mxu1 }
 0xac4   :  { %v10631_v54 = vpop.f32.mrb[93].mxu1 }
 0xac5   :  { %v3172_v15 = vpop.f32.mrb[94].mxu1 }
 0xac6   :  { %v10632_v24 = vpop.f32.mrb[95].mxu1 }
 0xaf4   :  { %v13193_v50 = vpop.f32.mrb[104].mxu0 }
 0xaf5   :  { %v10637_v46 = vpop.f32.mrb[105].mxu0 }
 0xaf6   :  { %v3220_v26 = vpop.f32.mrb[106].mxu0 }
 0xaf7   :  { %v10638_v11 = vpop.f32.mrb[107].mxu0 }
 0xaf8   :  { %v13195_v20 = vpop.f32.mrb[96].mxu1 }
 0xaf9   :  { %v10643_v7 = vpop.f32.mrb[97].mxu1 }
 0xafa   :  { %v3268_v8 = vpop.f32.mrb[98].mxu1 }
 0xafb   :  { %v10644_v0 = vpop.f32.mrb[99].mxu1 }
 0xafc   :  { %v3315_v51 = vpop.f32.mrb[108].mxu0 }
 0xafd   :  { %v3671_v36 = vmul.f32 0.35355338, %v3315_v51  ;;  %v10649_v45 = vpop.f32.mrb[109].mxu0 }
 0xafe   :  { %v3318_v47 = vpop.f32.mrb[110].mxu0 }
 0xaff   :  { %v13200_v54 = vadd.f32 %v3671_v36, %v12518_v41  ;;  %v10650_v15 = vpop.f32.mrb[111].mxu0 }
 0xb00   :  { %v3365_v24 = vpop.f32.mrb[100].mxu1 }
 0xb01   :  { %v3672_v46 = vmul.f32 0.35355338, %v3365_v24  ;;  %v10655_v26 = vpop.f32.mrb[101].mxu1  ;;  %v3687_v11 = vsel %vm544_vm3, %v13200_v54, -inf }
 0xb02   :  { %v3368_v32 = vpop.f32.mrb[102].mxu1  ;;  %3688 = vmax.xlane.f32.xlu0 %v3687_v11 }
 0xb03   :  { %v3680_v7 = vadd.f32 %v3672_v46, %v12524_v55  ;;  %v10656_v8 = vpop.f32.mrb[103].mxu1 }
 0xb04   :  { %v3415_v0 = vpop.f32.mrb[112].mxu0 }
 0xb05   :  { %v3673_v63 = vmul.f32 0.35355338, %v3415_v0  ;;  %v10661_v51 = vpop.f32.mrb[113].mxu0  ;;  %v3690_v45 = vsel %vm544_vm3, %v3680_v7, -inf }
 0xb06   :  { %3691 = vmax.xlane.f32.xlu1 %v3690_v45  ;;  %v3418_v36 = vpop.f32.mrb[114].mxu0 }
 0xb07   :  { %v3681_v47 = vadd.f32 %v3673_v63, %v12529_v3  ;;  %v10662_v15 = vpop.f32.mrb[115].mxu0 }
 0xb08   :  { %v3465_v24 = vpop.f32.mrb[104].mxu1 }
 0xb09   :  { %v3674_v26 = vmul.f32 0.35355338, %v3465_v24  ;;  %v10667_v62 = vpop.f32.mrb[105].mxu1  ;;  %v3693_v38 = vsel %vm544_vm3, %v3681_v47, -inf }
 0xb0a   :  { %v3468_v32 = vpop.f32.mrb[106].mxu1  ;;  %3694 = vmax.xlane.f32.xlu0 %v3693_v38 }
 0xb0b   :  { %v3682_v46 = vadd.f32 %v3674_v26, %v12540_v16  ;;  %v10668_v11 = vpop.f32.mrb[107].mxu1 }
 0xb0c   :  { %v3515_v8 = vpop.f32.mrb[116].mxu0 }
 0xb0d   :  { %v3675_v0 = vmul.f32 0.35355338, %v3515_v8  ;;  %v10673_v51 = vpop.f32.mrb[117].mxu0  ;;  %v3696_v55 = vsel %vm544_vm3, %v3682_v46, -inf }
 0xb0e   :  { %3697 = vmax.xlane.f32.xlu0 %v3696_v55  ;;  %v3518_v45 = vpop.f32.mrb[118].mxu0 }
 0xb0f   :  { %v13211_v63 = vadd.f32 %v3675_v0, %v12548_v37  ;;  %v10674_v36 = vpop.f32.mrb[119].mxu0 }
 0xb10   :  { %v3565_v15 = vpop.f32.mrb[108].mxu1 }
 0xb11   :  { %v3676_v62 = vmul.f32 0.35355338, %v3565_v15  ;;  %v10679_v24 = vpop.f32.mrb[109].mxu1  ;;  %v3699_v38 = vsel %vm544_vm3, %v13211_v63, -inf }
 0xb12   :  { %v3568_v32 = vpop.f32.mrb[110].mxu1  ;;  %3700 = vmax.xlane.f32.xlu1 %v3699_v38 }
 0xb13   :  { %v13216_v26 = vadd.f32 %v3676_v62, %v12554_v52  ;;  %v10680_v11 = vpop.f32.mrb[111].mxu1 }
 0xb14   :  { %v3615_v8 = vpop.f32.mrb[120].mxu0 }
 0xb15   :  { %v3677_v51 = vmul.f32 0.35355338, %v3615_v8  ;;  %v10685_v55 = vpop.f32.mrb[121].mxu0  ;;  %v3702_v0 = vsel %vm544_vm3, %v13216_v26, -inf }
 0xb16   :  { %3703 = vmax.xlane.f32.xlu0 %v3702_v0  ;;  %v3618_v45 = vpop.f32.mrb[122].mxu0 }
 0xb17   :  { %v3685_v36 = vadd.f32 %v3677_v51, %v12559_v6  ;;  %v10686_v15 = vpop.f32.mrb[123].mxu0 }
 0xb18   :  { %v3665_v24 = vpop.f32.mrb[112].mxu1 }
 0xb19   :  { %v3678_v37 = vmul.f32 0.35355338, %v3665_v24  ;;  %v10691_v16 = vpop.f32.mrb[113].mxu1  ;;  %v3705_v38 = vsel %vm544_vm3, %v3685_v36, -inf }
 0xb1a   :  { %v3668_v32 = vpop.f32.mrb[114].mxu1  ;;  %3706 = vmax.xlane.f32.xlu1 %v3705_v38 }
 0xb1b   :  { %v3686_v62 = vadd.f32 %v3678_v37, %v12566_v17  ;;  %v10692_v11 = vpop.f32.mrb[115].mxu1 }
 0xb1d   :  { %v3708_v8 = vsel %vm544_vm3, %v3686_v62, -inf }
 0xb1e   :  { %3709 = vmax.xlane.f32.xlu0 %v3708_v8 }
 0xb2b   :  { %3879 = vrot.lane.b32.xlu1 %v12419_v43, %s12074_s8 }
 0xb34   :  { %3831 = vrot.lane.b32.xlu0 %v12429_v49, %s12074_s8 }
 0xb8f   :  { %v3689_v51 = vpop.xlane.xlu0 %3688 }
 0xb90   :  { %v3711_v55 = vsub.f32 %v13200_v54, %v3689_v51 }
 0xb92   :  { %v3719_v16 = vmul.f32 1.442695, %v3711_v55 }
 0xb93   :  { %v3692_v0 = vpop.xlane.xlu1 %3691 }
 0xb94   :  { %11551 = vpow2.f32 %v3719_v16  ;;  %v3712_v45 = vsub.f32 %v3680_v7, %v3692_v0 }
 0xb96   :  { %v3721_v15 = vmul.f32 1.442695, %v3712_v45 }
 0xb97   :  { %v3695_v24 = vpop.xlane.xlu0 %3694 }
 0xb98   :  { %11553 = vpow2.f32 %v3721_v15  ;;  %v3713_v37 = vsub.f32 %v3681_v47, %v3695_v24 }
 0xb9a   :  { %v3723_v38 = vmul.f32 1.442695, %v3713_v37 }
 0xb9b   :  { %v3698_v32 = vpop.xlane.xlu0 %3697 }
 0xb9c   :  { %11555 = vpow2.f32 %v3723_v38  ;;  %v3714_v11 = vsub.f32 %v3682_v46, %v3698_v32 }
 0xb9e   :  { %v13229_v8 = vpop.eup %11551  ;;  %v3725_v43 = vmul.f32 1.442695, %v3714_v11 }
 0xb9f   :  { %v3735_v49 = vsel %vm544_vm3, %v13229_v8, 0.0  ;;  %v3701_v24 = vpop.xlane.xlu1 %3700 }
 0xba0   :  { %11557 = vpow2.f32 %v3725_v43  ;;  %3736 = vadd.xlane.f32.xlu1 %v3735_v49  ;;  %v3715_v37 = vsub.f32 %v13211_v63, %v3701_v24 }
 0xba2   :  { %v13233_v54 = vpop.eup %11553  ;;  %v3727_v11 = vmul.f32 1.442695, %v3715_v37 }
 0xba3   :  { %v3738_v7 = vsel %vm544_vm3, %v13233_v54, 0.0  ;;  %v3704_v47 = vpop.xlane.xlu0 %3703 }
 0xba4   :  { %3739 = vadd.xlane.f32.xlu0 %v3738_v7  ;;  %v3716_v38 = vsub.f32 %v13216_v26, %v3704_v47  ;;  %11559 = vpow2.f32 %v3727_v11 }
 0xba6   :  { %v13237_v51 = vpop.eup %11555  ;;  %v3729_v49 = vmul.f32 1.442695, %v3716_v38 }
 0xba7   :  { %v3741_v46 = vsel %vm544_vm3, %v13237_v51, 0.0  ;;  %v3707_v32 = vpop.xlane.xlu1 %3706 }
 0xba8   :  { %3742 = vadd.xlane.f32.xlu1 %v3741_v46  ;;  %v3717_v43 = vsub.f32 %v3685_v36, %v3707_v32  ;;  %11561 = vpow2.f32 %v3729_v49 }
 0xbaa   :  { %v13241_v55 = vpop.eup %11557  ;;  %v3731_v46 = vmul.f32 1.442695, %v3717_v43 }
 0xbab   :  { %v3710_v16 = vpop.xlane.xlu0 %3709  ;;  %v3744_v0 = vsel %vm544_vm3, %v13241_v55, 0.0 }
 0xbac   :  { %3745 = vadd.xlane.f32.xlu0 %v3744_v0  ;;  %v3718_v7 = vsub.f32 %v3686_v62, %v3710_v16  ;;  %11563 = vpow2.f32 %v3731_v46  ;;  %v14971_v16 = vpack.i.bf16 %v12969_v39, %v12967_v14  ;;  %v3880_v14 = vpop.permute.xlu1 %3879 }
 0xbaf   :  { %v3832_v45 = vpop.permute.xlu0 %3831 }
 0xbb0   :  { %v3837_v15 = vsel %vm1099_vm4, %v3832_v45, 0  ;;  %v14972_v45 = vpack.i.bf16 %v13183_v18, %v13181_v44 }
 0xbb1   :  { %10700 = vmatpush3.bf16.msra.mxu1 %v3837_v15  ;;  %v14973_v15 = vpack.i.bf16 %v12963_v25, %v12961_v13  ;;  %v3885_v25 = vsel %vm1099_vm4, %v3880_v14, 0 }
 0xbb2   :  { %10711 = vmatprep.subr.bf16.mxu1 %v14970_v5 }
 0xbb9   :  { %3975 = vrot.lane.b32.xlu1 %v12435_v56, %s12074_s8  ;;  %v3733_v56 = vmul.f32 1.442695, %v3718_v7 }
 0xbbb   :  { %11565 = vpow2.f32 %v3733_v56 }
 0xbbd   :  { %4023 = vrot.lane.b32.xlu1 %v12439_v60, %s12074_s8  ;;  %v13255_v60 = vpop.eup %11559 }
 0xbbe   :  { %v13257_v0 = vpop.eup %11561  ;;  %v3747_v63 = vsel %vm544_vm3, %v13255_v60, 0.0 }
 0xbbf   :  { %v3750_v26 = vsel %vm544_vm3, %v13257_v0, 0.0 }
 0xbc2   :  { %3927 = vrot.lane.b32.xlu0 %v12427_v48, %s12074_s8  ;;  %v13259_v48 = vpop.eup %11563 }
 0xbc3   :  { %v3753_v62 = vsel %vm544_vm3, %v13259_v48, 0.0 }
 0xbc5   :  { %v13265_v36 = vpop.eup %11565 }
 0xbc6   :  { %v3756_v47 = vsel %vm544_vm3, %v13265_v36, 0.0 }
 0xbe1   :  { %3748 = vadd.xlane.f32.xlu1 %v3747_v63  ;;  %3751 = vadd.xlane.f32.xlu0 %v3750_v26 }
 0xbe5   :  { %3754 = vadd.xlane.f32.xlu1 %v3753_v62  ;;  %3757 = vadd.xlane.f32.xlu0 %v3756_v47 }
 0xbf6   :  { %4119 = vrot.lane.b32.xlu1 %v12445_v61, %s12074_s8  ;;  %v14974_v61 = vpack.i.bf16 %v13177_v35, %v13175_v31 }
 0xbfa   :  { %11301 = vrot.lane.b32.xlu1 %v14971_v16, %s12075_s24 }
 0xbfb   :  { %4071 = vrot.lane.b32.xlu0 %v12437_v58, %s12074_s8 }
 0xbfe   :  { %11311 = vrot.lane.b32.xlu1 %v14972_v45, %s12054_s23 }
 0xbff   :  { %11296 = vrot.lane.b32.xlu0 %v14973_v15, %s12075_s24 }
 0xc03   :  { %11306 = vrot.lane.b32.xlu0 %v14974_v61, %s12054_s23 }
 0xc2d   :  { %v3737_v39 = vpop.xlane.xlu1 %3736 }
 0xc2e   :  { %11567 = vrcp.f32 %v3737_v39 }
 0xc31   :  { %v3740_v24 = vpop.xlane.xlu0 %3739 }
 0xc32   :  { %11569 = vrcp.f32 %v3740_v24 }
 0xc35   :  { %v3743_v58 = vpop.xlane.xlu1 %3742 }
 0xc36   :  { %11571 = vrcp.f32 %v3743_v58 }
 0xc38   :  { %v11568_v37 = vpop.eup %11567 }
 0xc39   :  { %v3746_v44 = vpop.xlane.xlu0 %3745  ;;  %v3767_v18 = vmul.f32 %v11568_v37, %v13229_v8  ;;  %v3976_v43 = vpop.permute.xlu1 %3975 }
 0xc3a   :  { %11573 = vrcp.f32 %v3746_v44  ;;  %v3981_v46 = vsel %vm1099_vm4, %v3976_v43, 0 }
 0xc3b   :  { %v3775_v38 = vpack.c.bf16 %v3767_v18, %v3767_v18 }
 0xc3c   :  { %v11570_v13 = vpop.eup %11569 }
 0xc3d   :  { %10696 = vmatmul.mubr.msk.bf16.vlgmr.msra.gmra.mrb[124].mxu0 %vm544_vm3, %v3775_v38  ;;  %v3768_v31 = vmul.f32 %v11570_v13, %v13233_v54  ;;  %v3928_v35 = vpop.permute.xlu0 %3927  ;;  %v4024_v63 = vpop.permute.xlu1 %4023 }
 0xc3e   :  { %10706 = vmatpush3.bf16.msra.mxu0 %v3885_v25  ;;  %10707 = vmatprep.mubr.msk.bf16.mxu0 %vm12063_vm2, %v14970_v5  ;;  %v3933_v8 = vsel %vm1099_vm4, %v3928_v35, 0  ;;  %v4029_v26 = vsel %vm1099_vm4, %v4024_v63, 0 }
 0xc3f   :  { %v3776_v32 = vpack.c.bf16 %v3768_v31, %v3768_v31  ;;  %10717 = vmatprep.subr.bf16.mxu0 %v14970_v5 }
 0xc40   :  { %v11572_v11 = vpop.eup %11571 }
 0xc41   :  { %10702 = vmatmul.mubr.msk.bf16.vlgmr.msra.gmra.mrb[116].mxu1 %vm544_vm3, %v3776_v32  ;;  %v3769_v49 = vmul.f32 %v11572_v11, %v13237_v51  ;;  %v11419_v32 = vld [vmem:[#allocation8] sm:$0xff]  }
 0xc42   :  { %10712 = vmatpush3.bf16.msra.mxu1 %v3933_v8  ;;  %10713 = vmatprep.mubr.msk.bf16.mxu1 %vm12063_vm2, %v14970_v5 }
 0xc43   :  { %v3777_v54 = vpack.c.bf16 %v3769_v49, %v3769_v49  ;;  %10723 = vmatprep.subr.bf16.mxu1 %v14970_v5  ;;  %v11420_v49 = vld [vmem:[#allocation8 + $0x8] sm:$0xff]  }
 0xc44   :  { %v11574_v7 = vpop.eup %11573 }
 0xc45   :  { %10708 = vmatmul.mubr.msk.bf16.vlgmr.msra.gmra.mrb[128].mxu0 %vm544_vm3, %v3777_v54  ;;  %v3770_v56 = vmul.f32 %v11574_v7, %v13241_v55 }
 0xc46   :  { %10718 = vmatpush3.bf16.msra.mxu0 %v3981_v46  ;;  %10719 = vmatprep.mubr.msk.bf16.mxu0 %vm12063_vm2, %v14970_v5 }
 0xc47   :  { %v3778_v51 = vpack.c.bf16 %v3770_v56, %v3770_v56  ;;  %10729 = vmatprep.subr.bf16.mxu0 %v14970_v5 }
 0xc49   :  { %10714 = vmatmul.mubr.msk.bf16.vlgmr.msra.gmra.mrb[120].mxu1 %vm544_vm3, %v3778_v51 }
 0xc4a   :  { %10724 = vmatpush3.bf16.msra.mxu1 %v4029_v26  ;;  %10725 = vmatprep.mubr.msk.bf16.mxu1 %vm12063_vm2, %v14970_v5 }
 0xc4b   :  { %10735 = vmatprep.subr.bf16.mxu1 %v14970_v5 }
 0xc6e   :  { %v3749_v62 = vpop.xlane.xlu1 %3748  ;;  %v3752_v55 = vpop.xlane.xlu0 %3751 }
 0xc6f   :  { %11575 = vrcp.f32 %v3749_v62  ;;  %v14975_v62 = vpack.i.bf16 %v12975_v34, %v12973_v28  ;;  %v14978_v28 = vpack.i.bf16 %v13195_v20, %v13193_v50 }
 0xc70   :  { %11577 = vrcp.f32 %v3752_v55 }
 0xc72   :  { %v3755_v47 = vpop.xlane.xlu1 %3754  ;;  %v3758_v16 = vpop.xlane.xlu0 %3757 }
 0xc73   :  { %11579 = vrcp.f32 %v3755_v47 }
 0xc74   :  { %11581 = vrcp.f32 %v3758_v16 }
 0xc76   :  { %v4072_v14 = vpop.permute.xlu0 %4071  ;;  %v4120_v37 = vpop.permute.xlu1 %4119 }
 0xc77   :  { %v4077_v44 = vsel %vm1099_vm4, %v4072_v14, 0  ;;  %v4125_v13 = vsel %vm1099_vm4, %v4120_v37, 0  ;;  %v14977_v14 = vpack.i.bf16 %v12981_v12, %v12979_v10 }
 0xc79   :  { %v11576_v45 = vpop.eup %11575 }
 0xc7a   :  { %v11578_v15 = vpop.eup %11577  ;;  %v3771_v61 = vmul.f32 %v11576_v45, %v13255_v60 }
 0xc7b   :  { %v3772_v24 = vmul.f32 %v11578_v15, %v13257_v0  ;;  %v14976_v15 = vpack.i.bf16 %v13189_v40, %v13187_v42 }
 0xc7c   :  { %v3779_v39 = vpack.c.bf16 %v3771_v61, %v3771_v61 }
 0xc7d   :  { %v11580_v58 = vpop.eup %11579  ;;  %v3780_v18 = vpack.c.bf16 %v3772_v24, %v3772_v24 }
 0xc7e   :  { %10720 = vmatmul.mubr.msk.bf16.vlgmr.msra.gmra.mrb[132].mxu0 %vm544_vm3, %v3779_v39  ;;  %v11582_v38 = vpop.eup %11581  ;;  %v3773_v60 = vmul.f32 %v11580_v58, %v13259_v48 }
 0xc7f   :  { %10730 = vmatpush3.bf16.msra.mxu0 %v4077_v44  ;;  %10731 = vmatprep.mubr.msk.bf16.mxu0 %vm12063_vm2, %v14970_v5  ;;  %v3774_v0 = vmul.f32 %v11582_v38, %v13265_v36 }
 0xc80   :  { %10726 = vmatmul.mubr.msk.bf16.vlgmr.msra.gmra.mrb[124].mxu1 %vm544_vm3, %v3780_v18  ;;  %v3781_v25 = vpack.c.bf16 %v3773_v60, %v3773_v60  ;;  %10741 = vmatprep.subr.bf16.mxu0 %v11419_v32 }
 0xc81   :  { %10736 = vmatpush3.bf16.msra.mxu1 %v4125_v13  ;;  %10737 = vmatprep.mubr.msk.bf16.mxu1 %vm12063_vm2, %v14970_v5  ;;  %v3782_v31 = vpack.c.bf16 %v3774_v0, %v3774_v0 }
 0xc86   :  { %10732 = vmatmul.mubr.msk.bf16.vlgmr.msra.gmra.mrb[136].mxu0 %vm544_vm3, %v3781_v25 }
 0xc87   :  { %10742 = vmatpush3.bf16.msra.mxu0 %v11419_v32  ;;  %v11302_v32 = vpop.permute.xlu1 %11301 }
 0xc88   :  { %10738 = vmatmul.mubr.msk.bf16.vlgmr.msra.gmra.mrb[128].mxu1 %vm544_vm3, %v3782_v31  ;;  %10743 = vmatprep.subr.bf16.mxu0 %v11420_v49  ;;  %v11297_v31 = vpop.permute.xlu0 %11296 }
 0xc8b   :  { %10744 = vmatpush3.bf16.msra.mxu0 %v11420_v49 }
 0xd10   :  { %v3825_v35 = vpop.f32.mrb[124].mxu0 }
 0xd11   :  { %v10697_v11 = vpop.f32.mrb[125].mxu0 }
 0xd12   :  { %v3828_v43 = vpop.f32.mrb[126].mxu0  ;;  %v11299_v11 = vunpack.i.h.bf16 %v11297_v31 }
 0xd13   :  { %v10698_v8 = vpop.f32.mrb[127].mxu0  ;;  %v11298_v43 = vunpack.i.l.bf16 %v11297_v31 }
 0xd14   :  { %v3873_v48 = vpop.f32.mrb[116].mxu1 }
 0xd15   :  { %v11315_v54 = vpack.i.bf16 %v3873_v48, %v3825_v35  ;;  %v10703_v7 = vpop.f32.mrb[117].mxu1  ;;  %v11307_v35 = vpop.permute.xlu0 %11306 }
 0xd16   :  { %v3876_v46 = vpop.f32.mrb[118].mxu1  ;;  %v11309_v8 = vunpack.i.h.bf16 %v11307_v35  ;;  %v11308_v48 = vunpack.i.l.bf16 %v11307_v35  ;;  %v4263_v7 = vsel %vm544_vm3, %v12751_v57, %v11298_v43 }
 0xd17   :  { %11316 = vrot.lane.b32.xlu0 %v11315_v54, %s12076_s26  ;;  %v10704_v36 = vpop.f32.mrb[119].mxu1  ;;  %v4264_v54 = vsel %vm544_vm3, %v12753_v59, %v11299_v11 }
 0xd18   :  { %v3921_v56 = vpop.f32.mrb[128].mxu0 }
 0xd19   :  { %v10709_v63 = vpop.f32.mrb[129].mxu0 }
 0xd1a   :  { %v3924_v51 = vpop.f32.mrb[130].mxu0  ;;  %v4272_v63 = vsel %vm350_vm0, %v4264_v54, %v11309_v8 }
 0xd1b   :  { %v10710_v26 = vpop.f32.mrb[131].mxu0  ;;  %11326 = vrot.lane.b32.xlu0 %v14975_v62, %s12075_s24  ;;  %v11312_v51 = vpop.permute.xlu1 %11311 }
 0xd1c   :  { %v3969_v55 = vpop.f32.mrb[120].mxu1 }
 0xd1d   :  { %v11320_v47 = vpack.i.bf16 %v3969_v55, %v3921_v56  ;;  %v10715_v16 = vpop.f32.mrb[121].mxu1  ;;  %v4271_v56 = vsel %vm350_vm0, %v4263_v7, %v11308_v48 }
 0xd1e   :  { %v3972_v45 = vpop.f32.mrb[122].mxu1  ;;  %v11303_v16 = vunpack.i.l.bf16 %v11302_v32 }
 0xd1f   :  { %11336 = vrot.lane.b32.xlu0 %v14976_v15, %s12054_s23  ;;  %11321 = vrot.lane.b32.xlu1 %v11320_v47, %s12076_s26  ;;  %v10716_v61 = vpop.f32.mrb[123].mxu1  ;;  %v11304_v47 = vunpack.i.h.bf16 %v11302_v32  ;;  %v11314_v45 = vunpack.i.h.bf16 %v11312_v51  ;;  %v11313_v15 = vunpack.i.l.bf16 %v11312_v51 }
 0xd20   :  { %v4265_v61 = vsel %vm544_vm3, %v12755_v2, %v11303_v16 }
 0xd21   :  { %v4266_v57 = vsel %vm544_vm3, %v12757_v9, %v11304_v47 }
 0xd23   :  { %11331 = vrot.lane.b32.xlu1 %v14977_v14, %s12075_s24 }
 0xd27   :  { %11341 = vrot.lane.b32.xlu1 %v14978_v28, %s12054_s23 }
 0xd51   :  { %v4017_v34 = vpop.f32.mrb[132].mxu0 }
 0xd52   :  { %v10721_v39 = vpop.f32.mrb[133].mxu0 }
 0xd53   :  { %v4065_v24 = vpop.f32.mrb[124].mxu1  ;;  %v4020_v58 = vpop.f32.mrb[134].mxu0  ;;  %v4274_v39 = vsel %vm350_vm0, %v4266_v57, %v11314_v45 }
 0xd54   :  { %v11345_v37 = vpack.i.bf16 %v4065_v24, %v4017_v34  ;;  %v10727_v42 = vpop.f32.mrb[125].mxu1  ;;  %v10722_v40 = vpop.f32.mrb[135].mxu0  ;;  %v4273_v34 = vsel %vm350_vm0, %v4265_v61, %v11313_v15 }
 0xd55   :  { %v4068_v44 = vpop.f32.mrb[126].mxu1 }
 0xd56   :  { %11346 = vrot.lane.b32.xlu0 %v11345_v37, %s12076_s26  ;;  %v10728_v18 = vpop.f32.mrb[127].mxu1 }
 0xd59   :  { %v4113_v38 = vpop.f32.mrb[136].mxu0 }
 0xd5a   :  { %v10733_v13 = vpop.f32.mrb[137].mxu0 }
 0xd5b   :  { %v4161_v10 = vpop.f32.mrb[128].mxu1  ;;  %v4116_v12 = vpop.f32.mrb[138].mxu0 }
 0xd5c   :  { %v11350_v60 = vpack.i.bf16 %v4161_v10, %v4113_v38  ;;  %v10739_v0 = vpop.f32.mrb[129].mxu1  ;;  %v10734_v25 = vpop.f32.mrb[139].mxu0 }
 0xd5d   :  { %v4164_v50 = vpop.f32.mrb[130].mxu1 }
 0xd5e   :  { %v10740_v20 = vpop.f32.mrb[131].mxu1  ;;  %11351 = vrot.lane.b32.xlu1 %v11350_v60, %s12076_s26 }
 0xd89   :  { %v11317_v49 = vpop.permute.xlu0 %11316 }
 0xd8a   :  { %v11319_v46 = vunpack.i.h.bf16 %v11317_v49  ;;  %v11318_v36 = vunpack.i.l.bf16 %v11317_v49 }
 0xd8c   :  { %v4280_v26 = vsel %vm4279_vm5, %v4271_v56, %v11318_v36  ;;  %v4281_v62 = vsel %vm4279_vm5, %v4272_v63, %v11319_v46 }
 0xd8d   :  { %v4288_v55 = vpack.c.bf16 %v4281_v62, %v4280_v26  ;;  %v11327_v42 = vpop.permute.xlu0 %11326 }
 0xd8e   :  { %v11329_v44 = vunpack.i.h.bf16 %v11327_v42  ;;  %v11328_v9 = vunpack.i.l.bf16 %v11327_v42 }
 0xd8f   :  { %10745 = vmatprep.mubr.msk.bf16.mxu0 %vm455_vm1, %v4288_v55 }
 0xd90   :  { %v4268_v10 = vsel %vm544_vm3, %v12761_v53, %v11329_v44  ;;  %v4267_v12 = vsel %vm544_vm3, %v12759_v1, %v11328_v9 }
 0xd91   :  { %v11322_v59 = vpop.permute.xlu1 %11321  ;;  %v11337_v40 = vpop.permute.xlu0 %11336 }
 0xd92   :  { %v11324_v14 = vunpack.i.h.bf16 %v11322_v59  ;;  %v11323_v28 = vunpack.i.l.bf16 %v11322_v59  ;;  %v11339_v38 = vunpack.i.h.bf16 %v11337_v40  ;;  %v11338_v2 = vunpack.i.l.bf16 %v11337_v40 }
 0xd94   :  { %v4283_v24 = vsel %vm4279_vm5, %v4274_v39, %v11324_v14  ;;  %v4282_v58 = vsel %vm4279_vm5, %v4273_v34, %v11323_v28  ;;  %v4275_v25 = vsel %vm350_vm0, %v4267_v12, %v11338_v2  ;;  %v4276_v50 = vsel %vm350_vm0, %v4268_v10, %v11339_v38  ;;  %v14979_v2 = vld [vmem:[#allocation27_spill] sm:$0xff] }
 0xd95   :  { %v4289_v37 = vpack.c.bf16 %v4283_v24, %v4282_v58  ;;  %v11332_v18 = vpop.permute.xlu1 %11331 }
 0xd96   :  { %v11334_v11 = vunpack.i.h.bf16 %v11332_v18  ;;  %v11333_v43 = vunpack.i.l.bf16 %v11332_v18 }
 0xd97   :  { %10746 = vmatmul.mubr.msk.bf16.vlgmr.msra.gmra.mrb[140].mxu0 %vm455_vm1, %v4289_v37 }
 0xd98   :  { %v4270_v1 = vsel %vm544_vm3, %v12765_v29, %v11334_v11  ;;  %v4269_v49 = vsel %vm544_vm3, %v12763_v4, %v11333_v43  ;;  %v9841_v29 = vld [vmem:[%s14917_s7] ss:$0 sm:$0xff] }
 0xd99   :  { %v11342_v20 = vpop.permute.xlu1 %11341 }
 0xd9a   :  { %v11344_v8 = vunpack.i.h.bf16 %v11342_v20  ;;  %v11343_v48 = vunpack.i.l.bf16 %v11342_v20 }
 0xd9c   :  { %v4277_v46 = vsel %vm350_vm0, %v4269_v49, %v11343_v48  ;;  %v4278_v36 = vsel %vm350_vm0, %v4270_v1, %v11344_v8 }
 0xdc8   :  { %v11347_v13 = vpop.permute.xlu0 %11346 }
 0xdc9   :  { %v11349_v60 = vunpack.i.h.bf16 %v11347_v13  ;;  %v11348_v0 = vunpack.i.l.bf16 %v11347_v13 }
 0xdcb   :  { %v4284_v31 = vsel %vm4279_vm5, %v4275_v25, %v11348_v0  ;;  %v4285_v35 = vsel %vm4279_vm5, %v4276_v50, %v11349_v60 }
 0xdcc   :  { %v4290_v32 = vpack.c.bf16 %v4285_v35, %v4284_v31 }
 0xdce   :  { %10749 = vmatprep.mubr.msk.bf16.mxu0 %vm455_vm1, %v4290_v32 }
 0xdd0   :  { %v11352_v53 = vpop.permute.xlu1 %11351 }
 0xdd1   :  { %v11354_v54 = vunpack.i.h.bf16 %v11352_v53  ;;  %v11353_v7 = vunpack.i.l.bf16 %v11352_v53 }
 0xdd3   :  { %v4287_v56 = vsel %vm4279_vm5, %v4278_v36, %v11354_v54  ;;  %v4286_v63 = vsel %vm4279_vm5, %v4277_v46, %v11353_v7  ;;  %v11421_v36 = vld [vmem:[#allocation16] sm:$0xff]  }
 0xdd4   :  { %v4291_v51 = vpack.c.bf16 %v4287_v56, %v4286_v63  ;;  %v11422_v56 = vld [vmem:[#allocation16 + $0x8] sm:$0xff]   ;;  %10753 = vmatprep.subr.bf16.mxu1 %v11421_v36 }
 0xdd5   :  { %10754 = vmatpush3.bf16.msra.mxu1 %v11421_v36 }
 0xdd6   :  { %10750 = vmatmul.mubr.msk.bf16.gmra.mrb[144].mxu0 %vm455_vm1, %v4291_v51  ;;  %10755 = vmatprep.subr.bf16.mxu1 %v11422_v56 }
 0xdd9   :  { %10756 = vmatpush3.bf16.msra.mxu1 %v11422_v56 }
 0xe6a   :  { %v10747_v26 = vpop.f32.mrb[140].mxu0 }
 0xe6b   :  { %v4361_v62 = vpop.f32.mrb[141].mxu0  ;;  %v4370_v4 = vadd.f32 %v10747_v26, %v9841_v29 }
 0xe6c   :  { %v4362_v55 = vadd.f32 %v9841_v29, %v4361_v62  ;;  %v10748_v47 = vpop.f32.mrb[142].mxu0 }
 0xe6d   :  { %v4364_v16 = vpop.f32.mrb[143].mxu0  ;;  %v4394_v59 = vadd.f32 %v4370_v4, %v12388_v23  ;;  %v4373_v57 = vadd.f32 %v10748_v47, %v9841_v29 }
 0xe6e   :  { %v4392_v45 = vadd.f32 %v4362_v55, %v12384_v21  ;;  %v4365_v15 = vadd.f32 %v9841_v29, %v4364_v16 }
 0xe6f   :  { %v4395_v34 = vadd.f32 %v4373_v57, %v12382_v19  ;;  %v4408_v39 = vsel %vm455_vm1, %v4394_v59, 0.0 }
 0xe70   :  { %v4393_v61 = vadd.f32 %v4365_v15, %v12386_v22  ;;  %v4402_v14 = vsel %vm455_vm1, %v4392_v45, 0.0 }
 0xe71   :  { %4403 = vadd.xlane.f32.xlu0 %v4402_v14  ;;  %v4411_v24 = vsel %vm455_vm1, %v4395_v34, 0.0 }
 0xe72   :  { %v4405_v28 = vsel %vm455_vm1, %v4393_v61, 0.0 }
 0xe73   :  { %4406 = vadd.xlane.f32.xlu1 %v4405_v28 }
 0xe75   :  { %4409 = vadd.xlane.f32.xlu0 %v4408_v39 }
 0xe79   :  { %4412 = vadd.xlane.f32.xlu0 %v4411_v24 }
 0xea9   :  { %v10751_v21 = vpop.f32.mrb[144].mxu0 }
 0xeaa   :  { %v4377_v58 = vpop.f32.mrb[145].mxu0  ;;  %v4386_v23 = vadd.f32 %v10751_v21, %v9841_v29 }
 0xeab   :  { %v4378_v37 = vadd.f32 %v9841_v29, %v4377_v58  ;;  %v10752_v42 = vpop.f32.mrb[146].mxu0  ;;  %v11423_v58 = vld [vmem:[%s14924_s14] sm:$0xff]  }
 0xeac   :  { %v4380_v22 = vpop.f32.mrb[147].mxu0  ;;  %v4389_v44 = vadd.f32 %v10752_v42, %v9841_v29  ;;  %v4398_v18 = vadd.f32 %v4386_v23, %v12395_v27  ;;  %v11424_v23 = vld [vmem:[%s14924_s14 + $0x8] sm:$0xff]   ;;  %10765 = vmatprep.subr.bf16.mxu0 %v11423_v58  ;;  %v11426_v42 = vld [vmem:[%s14924_s14 + $0x18] sm:$0xff]  }
 0xead   :  { %v4396_v40 = vadd.f32 %v4378_v37, %v12398_v30  ;;  %v4381_v9 = vadd.f32 %v9841_v29, %v4380_v22  ;;  %10766 = vmatpush3.bf16.msra.mxu0 %v11423_v58  ;;  %v11425_v37 = vld [vmem:[%s14924_s14 + $0x10] sm:$0xff]   ;;  %v11427_v22 = vld [vmem:[%s14924_s14 + $0x20] sm:$0xff]  }
 0xeae   :  { %v4399_v13 = vadd.f32 %v4389_v44, %v14979_v2  ;;  %v4420_v12 = vsel %vm455_vm1, %v4398_v18, 0.0  ;;  %10767 = vmatprep.subr.bf16.mxu0 %v11424_v23 }
 0xeaf   :  { %v4397_v19 = vadd.f32 %v4381_v9, %v12402_v33  ;;  %v4414_v38 = vsel %vm455_vm1, %v4396_v40, 0.0 }
 0xeb0   :  { %4415 = vadd.xlane.f32.xlu1 %v4414_v38  ;;  %v4423_v60 = vsel %vm455_vm1, %v4399_v13, 0.0 }
 0xeb1   :  { %v4417_v10 = vsel %vm455_vm1, %v4397_v19, 0.0  ;;  %10768 = vmatpush3.bf16.msra.mxu0 %v11424_v23 }
 0xeb2   :  { %4418 = vadd.xlane.f32.xlu0 %v4417_v10  ;;  %10769 = vmatprep.subr.bf16.mxu0 %v11425_v37 }
 0xeb4   :  { %4421 = vadd.xlane.f32.xlu1 %v4420_v12 }
 0xeb5   :  { %10770 = vmatpush3.bf16.msra.mxu0 %v11425_v37 }
 0xeb6   :  { %4424 = vadd.xlane.f32.xlu0 %v4423_v60  ;;  %10771 = vmatprep.subr.bf16.mxu0 %v11426_v42 }
 0xeb9   :  { %10772 = vmatpush3.bf16.msra.mxu0 %v11426_v42 }
 0xeba   :  { %10773 = vmatprep.subr.bf16.mxu0 %v11427_v22 }
 0xebd   :  { %10774 = vmatpush3.bf16.msra.mxu0 %v11427_v22 }
 0xefe   :  { %v4404_v30 = vpop.xlane.xlu0 %4403 }
 0xeff   :  { %v4427_v0 = vmul.f32 0.03125, %v4404_v30 }
 0xf00   :  { %v4407_v25 = vpop.xlane.xlu1 %4406 }
 0xf01   :  { %v13404_v27 = vsub.f32 %v4392_v45, %v4427_v0  ;;  %v4428_v33 = vmul.f32 0.03125, %v4407_v25 }
 0xf02   :  { %v4410_v50 = vpop.xlane.xlu0 %4409 }
 0xf03   :  { %v13406_v20 = vsub.f32 %v4393_v61, %v4428_v33  ;;  %v4429_v31 = vmul.f32 0.03125, %v4410_v50  ;;  %v4443_v35 = vmul.f32 %v13404_v27, %v13404_v27  ;;  %v9848_v33 = vld [vmem:[#allocation10] ss:$0 sm:$0xff] }
 0xf05   :  { %v13410_v32 = vsub.f32 %v4394_v59, %v4429_v31  ;;  %v4451_v11 = vsel %vm455_vm1, %v4443_v35, 0.0  ;;  %v4444_v43 = vmul.f32 %v13406_v20, %v13406_v20 }
 0xf06   :  { %4452 = vadd.xlane.f32.xlu1 %v4451_v11  ;;  %v4413_v8 = vpop.xlane.xlu0 %4412 }
 0xf07   :  { %v4430_v48 = vmul.f32 0.03125, %v4413_v8  ;;  %v4454_v53 = vsel %vm455_vm1, %v4444_v43, 0.0  ;;  %v4445_v1 = vmul.f32 %v13410_v32, %v13410_v32  ;;  %v9849_v8 = vld [vmem:[#allocation11] ss:$0 sm:$0xff] }
 0xf08   :  { %4455 = vadd.xlane.f32.xlu0 %v4454_v53 }
 0xf09   :  { %v13418_v49 = vsub.f32 %v4395_v34, %v4430_v48  ;;  %v4457_v54 = vsel %vm455_vm1, %v4445_v1, 0.0 }
 0xf0a   :  { %4458 = vadd.xlane.f32.xlu1 %v4457_v54 }
 0xf0b   :  { %v4446_v7 = vmul.f32 %v13418_v49, %v13418_v49 }
 0xf0d   :  { %v4460_v46 = vsel %vm455_vm1, %v4446_v7, 0.0 }
 0xf0e   :  { %4461 = vadd.xlane.f32.xlu0 %v4460_v46 }
 0xf3d   :  { %v4416_v63 = vpop.xlane.xlu1 %4415 }
 0xf3e   :  { %v4431_v51 = vmul.f32 0.03125, %v4416_v63 }
 0xf3f   :  { %v4419_v29 = vpop.xlane.xlu0 %4418 }
 0xf40   :  { %v13424_v26 = vsub.f32 %v4396_v40, %v4431_v51  ;;  %v4432_v62 = vmul.f32 0.03125, %v4419_v29  ;;  %v11428_v40 = vld [vmem:[%s14924_s14 + $0x28] sm:$0xff]  }
 0xf41   :  { %v4422_v4 = vpop.xlane.xlu1 %4421  ;;  %10775 = vmatprep.subr.bf16.mxu0 %v11428_v40 }
 0xf42   :  { %v13426_v55 = vsub.f32 %v4397_v19, %v4432_v62  ;;  %v4433_v47 = vmul.f32 0.03125, %v4422_v4  ;;  %v4447_v16 = vmul.f32 %v13424_v26, %v13424_v26  ;;  %10776 = vmatpush3.bf16.msra.mxu0 %v11428_v40 }
 0xf43   :  { %v4425_v45 = vpop.xlane.xlu0 %4424 }
 0xf44   :  { %v13430_v15 = vsub.f32 %v4398_v18, %v4433_v47  ;;  %v4434_v59 = vmul.f32 0.03125, %v4425_v45  ;;  %v4463_v57 = vsel %vm455_vm1, %v4447_v16, 0.0  ;;  %v4448_v61 = vmul.f32 %v13426_v55, %v13426_v55 }
 0xf45   :  { %4464 = vadd.xlane.f32.xlu1 %v4463_v57 }
 0xf46   :  { %v13435_v14 = vsub.f32 %v4399_v13, %v4434_v59  ;;  %v4466_v28 = vsel %vm455_vm1, %v4448_v61, 0.0  ;;  %v4449_v34 = vmul.f32 %v13430_v15, %v13430_v15 }
 0xf47   :  { %4467 = vadd.xlane.f32.xlu0 %v4466_v28 }
 0xf48   :  { %v4469_v39 = vsel %vm455_vm1, %v4449_v34, 0.0  ;;  %v4450_v24 = vmul.f32 %v13435_v14, %v13435_v14 }
 0xf49   :  { %4470 = vadd.xlane.f32.xlu1 %v4469_v39 }
 0xf4a   :  { %v4472_v21 = vsel %vm455_vm1, %v4450_v24, 0.0 }
 0xf4b   :  { %4473 = vadd.xlane.f32.xlu0 %v4472_v21 }
 0xf93   :  { %v4453_v44 = vpop.xlane.xlu1 %4452 }
 0xf94   :  { %v4475_v9 = vmul.f32 0.03125, %v4453_v44 }
 0xf95   :  { %v4456_v18 = vpop.xlane.xlu0 %4455 }
 0xf96   :  { %v4483_v19 = vadd.f32 1e-05, %v4475_v9  ;;  %v4476_v38 = vmul.f32 0.03125, %v4456_v18 }
 0xf97   :  { %v4459_v2 = vpop.xlane.xlu1 %4458 }
 0xf98   :  { %11583 = vrsqrt.f32 %v4483_v19  ;;  %v4484_v13 = vadd.f32 1e-05, %v4476_v38  ;;  %v4477_v10 = vmul.f32 0.03125, %v4459_v2  ;;  %v11430_v2 = vld [vmem:[%s14924_s14 + $0x38] sm:$0xff]  }
 0xf9a   :  { %11585 = vrsqrt.f32 %v4484_v13  ;;  %v4485_v12 = vadd.f32 1e-05, %v4477_v10  ;;  %v9850_v13 = vld [vmem:[#allocation17] ss:$0 sm:$0xff] }
 0xf9b   :  { %v4462_v60 = vpop.xlane.xlu0 %4461 }
 0xf9c   :  { %11587 = vrsqrt.f32 %v4485_v12  ;;  %v4478_v30 = vmul.f32 0.03125, %v4462_v60 }
 0xf9e   :  { %v4486_v0 = vadd.f32 1e-05, %v4478_v30 }
 0xfa0   :  { %11589 = vrsqrt.f32 %v4486_v0 }
 0xfa2   :  { %v11584_v25 = vpop.eup %11583 }
 0xfa3   :  { %v4499_v50 = vmul.f32 %v11584_v25, %v13404_v27 }
 0xfa4   :  { %v11586_v31 = vpop.eup %11585 }
 0xfa5   :  { %v4500_v35 = vmul.f32 %v11586_v31, %v13406_v20  ;;  %v4513_v11 = vmul.f32 %v9848_v33, %v4499_v50 }
 0xfa6   :  { %v11588_v43 = vpop.eup %11587 }
 0xfa7   :  { %v4501_v48 = vmul.f32 %v11588_v43, %v13410_v32  ;;  %v4514_v53 = vmul.f32 %v9848_v33, %v4500_v35  ;;  %v13465_v1 = vadd.f32 %v9849_v8, %v4513_v11 }
 0xfa9   :  { %v13467_v54 = vadd.f32 %v9849_v8, %v4514_v53  ;;  %v4515_v46 = vmul.f32 %v9848_v33, %v4501_v48 }
 0xfaa   :  { %v11590_v7 = vpop.eup %11589 }
 0xfab   :  { %v4502_v36 = vmul.f32 %v11590_v7, %v13418_v49  ;;  %v4535_v27 = vpack.c.bf16 %v13467_v54, %v13465_v1  ;;  %v13473_v20 = vadd.f32 %v9849_v8, %v4515_v46 }
 0xfad   :  { %v4516_v56 = vmul.f32 %v9848_v33, %v4502_v36  ;;  %10757 = vmatprep.mubr.msk.bf16.mxu1 %vm455_vm1, %v4535_v27 }
 0xfaf   :  { %v13475_v63 = vadd.f32 %v9849_v8, %v4516_v56 }
 0xfb1   :  { %v4536_v32 = vpack.c.bf16 %v13475_v63, %v13473_v20 }
 0xfb3   :  { %10758 = vmatmul.mubr.msk.bf16.vlgmr.msra.gmra.mrb[132].mxu1 %vm455_vm1, %v4536_v32 }
 0xfd2   :  { %v4465_v51 = vpop.xlane.xlu1 %4464 }
 0xfd3   :  { %v4479_v29 = vmul.f32 0.03125, %v4465_v51 }
 0xfd4   :  { %v4468_v62 = vpop.xlane.xlu0 %4467 }
 0xfd5   :  { %v4487_v4 = vadd.f32 1e-05, %v4479_v29  ;;  %v4480_v49 = vmul.f32 0.03125, %v4468_v62 }
 0xfd6   :  { %v4471_v47 = vpop.xlane.xlu1 %4470 }
 0xfd7   :  { %11591 = vrsqrt.f32 %v4487_v4  ;;  %v4488_v16 = vadd.f32 1e-05, %v4480_v49  ;;  %v4481_v45 = vmul.f32 0.03125, %v4471_v47 }
 0xfd8   :  { %v4474_v59 = vpop.xlane.xlu0 %4473 }
 0xfd9   :  { %11593 = vrsqrt.f32 %v4488_v16  ;;  %v4489_v57 = vadd.f32 1e-05, %v4481_v45  ;;  %v4482_v61 = vmul.f32 0.03125, %v4474_v59  ;;  %v9857_v45 = vld [vmem:[%s14925_s15] ss:$0 sm:$0xff] }
 0xfdb   :  { %11595 = vrsqrt.f32 %v4489_v57  ;;  %v4490_v28 = vadd.f32 1e-05, %v4482_v61 }
 0xfdd   :  { %11597 = vrsqrt.f32 %v4490_v28 }
 0xfe1   :  { %v11592_v34 = vpop.eup %11591 }
 0xfe2   :  { %v4503_v39 = vmul.f32 %v11592_v34, %v13424_v26 }
 0xfe3   :  { %v11594_v24 = vpop.eup %11593 }
 0xfe4   :  { %v4504_v21 = vmul.f32 %v11594_v24, %v13426_v55  ;;  %v4517_v58 = vmul.f32 %v9848_v33, %v4503_v39 }
 0xfe5   :  { %v11596_v23 = vpop.eup %11595 }
 0xfe6   :  { %v4518_v37 = vmul.f32 %v9848_v33, %v4504_v21  ;;  %v4505_v42 = vmul.f32 %v11596_v23, %v13430_v15  ;;  %v13483_v40 = vadd.f32 %v9849_v8, %v4517_v58 }
 0xfe7   :  { %v11598_v22 = vpop.eup %11597 }
 0xfe8   :  { %v13485_v44 = vadd.f32 %v9849_v8, %v4518_v37  ;;  %v4506_v9 = vmul.f32 %v11598_v22, %v13435_v14  ;;  %v4519_v18 = vmul.f32 %v9848_v33, %v4505_v42  ;;  %v11429_v14 = vld [vmem:[%s14924_s14 + $0x30] sm:$0xff]  }
 0xfe9   :  { %10777 = vmatprep.subr.bf16.mxu0 %v11429_v14 }
 0xfea   :  { %v4537_v19 = vpack.c.bf16 %v13485_v44, %v13483_v40  ;;  %v4520_v26 = vmul.f32 %v9848_v33, %v4506_v9  ;;  %v13491_v55 = vadd.f32 %v9849_v8, %v4519_v18  ;;  %10778 = vmatpush3.bf16.msra.mxu0 %v11429_v14 }
 0xfeb   :  { %10779 = vmatprep.subr.bf16.mxu0 %v11430_v2 }
 0xfec   :  { %10761 = vmatprep.mubr.msk.bf16.mxu1 %vm455_vm1, %v4537_v19  ;;  %v13493_v38 = vadd.f32 %v9849_v8, %v4520_v26 }
 0xfee   :  { %v4538_v15 = vpack.c.bf16 %v13493_v38, %v13491_v55  ;;  %10780 = vmatpush3.bf16.msra.mxu0 %v11430_v2 }
 0xfef   :  { %10813 = vmatprep.subr.bf16.mxu0 %v14970_v5 }
 0xff0   :  { %10762 = vmatmul.mubr.msk.bf16.gmra.mrb[136].mxu1 %vm455_vm1, %v4538_v15 }
0x1086   :  { %v10759_v10 = vpop.f32.mrb[132].mxu1 }
0x1087   :  { %v4617_v12 = vadd.f32 %v10759_v10, %v9850_v13  ;;  %v4608_v60 = vpop.f32.mrb[133].mxu1 }
0x1088   :  { %v4609_v30 = vadd.f32 %v9850_v13, %v4608_v60  ;;  %v10760_v0 = vpop.f32.mrb[134].mxu1 }
0x1089   :  { %v4620_v25 = vadd.f32 %v10760_v0, %v9850_v13  ;;  %v4611_v33 = vpop.f32.mrb[135].mxu1  ;;  %v4641_v31 = vmax.f32 %v4617_v12, 0.0 }
0x108a   :  { %v4612_v50 = vadd.f32 %v9850_v13, %v4611_v33  ;;  %v4639_v11 = vmax.f32 %v4609_v30, 0.0 }
0x108b   :  { %v4642_v35 = vmax.f32 %v4620_v25, 0.0 }
0x108c   :  { %v4640_v43 = vmax.f32 %v4612_v50, 0.0 }
0x108d   :  { %v4648_v8 = vpack.c.bf16 %v4642_v35, %v4641_v31 }
0x108e   :  { %v4647_v48 = vpack.c.bf16 %v4640_v43, %v4639_v11 }
0x1090   :  { %10781 = vmatprep.mubr.bf16.mxu0 %v4647_v48 }
0x1091   :  { %10782 = vmatmul.mubr.bf16.vlgmr.msra.gmra.mrb[148].mxu0 %v4648_v8 }
0x10c3   :  { %v10763_v53 = vpop.f32.mrb[136].mxu1 }
0x10c4   :  { %v4633_v7 = vadd.f32 %v10763_v53, %v9850_v13  ;;  %v4624_v46 = vpop.f32.mrb[137].mxu1 }
0x10c5   :  { %v4625_v36 = vadd.f32 %v9850_v13, %v4624_v46  ;;  %v10764_v27 = vpop.f32.mrb[138].mxu1 }
0x10c6   :  { %v4636_v56 = vadd.f32 %v10764_v27, %v9850_v13  ;;  %v4627_v32 = vpop.f32.mrb[139].mxu1  ;;  %v4645_v29 = vmax.f32 %v4633_v7, 0.0 }
0x10c7   :  { %v4628_v51 = vadd.f32 %v9850_v13, %v4627_v32  ;;  %v4643_v4 = vmax.f32 %v4625_v36, 0.0 }
0x10c8   :  { %v4646_v62 = vmax.f32 %v4636_v56, 0.0 }
0x10c9   :  { %v4644_v49 = vmax.f32 %v4628_v51, 0.0 }
0x10ca   :  { %v4650_v47 = vpack.c.bf16 %v4646_v62, %v4645_v29  ;;  %v11431_v62 = vld [vmem:[%s14963_s28 + $0x10] sm:$0xff]  }
0x10cb   :  { %v4649_v16 = vpack.c.bf16 %v4644_v49, %v4643_v4  ;;  %10789 = vmatprep.subr.bf16.mxu1 %v11431_v62  ;;  %v11432_v4 = vld [vmem:[%s14963_s28 + $0x18] sm:$0xff]  }
0x10cc   :  { %10790 = vmatpush3.bf16.msra.mxu1 %v11431_v62 }
0x10cd   :  { %10785 = vmatprep.mubr.bf16.mxu0 %v4649_v16  ;;  %10791 = vmatprep.subr.bf16.mxu1 %v11432_v4 }
0x10ce   :  { %10786 = vmatmul.mubr.bf16.gmra.mrb[152].mxu0 %v4650_v47 }
0x10cf   :  { %10815 = vmatprep.mubr.msk.bf16.mxu0 %vm12063_vm2, %v14970_v5 }
0x10d0   :  { %10792 = vmatpush3.bf16.msra.mxu1 %v11432_v4 }
0x10d1   :  { %10801 = vmatprep.subr.bf16.mxu1 %v14970_v5 }
0x1164   :  { %v10783_v59 = vpop.f32.mrb[148].mxu0 }
0x1165   :  { %v4756_v57 = vpop.f32.mrb[149].mxu0  ;;  %v4765_v61 = vadd.f32 %v10783_v59, %v9857_v45 }
0x1166   :  { %v4757_v28 = vadd.f32 %v9857_v45, %v4756_v57  ;;  %v10784_v34 = vpop.f32.mrb[150].mxu0 }
0x1167   :  { %v4759_v39 = vpop.f32.mrb[151].mxu0  ;;  %v4768_v21 = vadd.f32 %v10784_v34, %v9857_v45  ;;  %v4789_v23 = vadd.f32 %v4765_v61, %v13473_v20 }
0x1168   :  { %v4787_v24 = vadd.f32 %v4757_v28, %v13465_v1  ;;  %v4760_v58 = vadd.f32 %v9857_v45, %v4759_v39 }
0x1169   :  { %v4790_v22 = vadd.f32 %v4768_v21, %v13475_v63  ;;  %v4803_v18 = vsel %vm455_vm1, %v4789_v23, 0.0 }
0x116a   :  { %v4788_v37 = vadd.f32 %v4760_v58, %v13467_v54  ;;  %v4797_v42 = vsel %vm455_vm1, %v4787_v24, 0.0 }
0x116b   :  { %4798 = vadd.xlane.f32.xlu1 %v4797_v42  ;;  %v4806_v19 = vsel %vm455_vm1, %v4790_v22, 0.0 }
0x116c   :  { %v4800_v9 = vsel %vm455_vm1, %v4788_v37, 0.0 }
0x116d   :  { %4801 = vadd.xlane.f32.xlu0 %v4800_v9 }
0x116f   :  { %4804 = vadd.xlane.f32.xlu1 %v4803_v18 }
0x1171   :  { %4807 = vadd.xlane.f32.xlu0 %v4806_v19 }
0x11a1   :  { %v10787_v1 = vpop.f32.mrb[152].mxu0 }
0x11a2   :  { %v4781_v26 = vadd.f32 %v10787_v1, %v9857_v45  ;;  %v4772_v15 = vpop.f32.mrb[153].mxu0 }
0x11a3   :  { %v4773_v20 = vadd.f32 %v9857_v45, %v4772_v15  ;;  %v10788_v14 = vpop.f32.mrb[154].mxu0 }
0x11a4   :  { %v4784_v54 = vadd.f32 %v10788_v14, %v9857_v45  ;;  %v4775_v2 = vpop.f32.mrb[155].mxu0  ;;  %v4793_v63 = vadd.f32 %v4781_v26, %v13491_v55 }
0x11a5   :  { %v4791_v13 = vadd.f32 %v4773_v20, %v13483_v40  ;;  %v4776_v10 = vadd.f32 %v9857_v45, %v4775_v2 }
0x11a6   :  { %v4794_v30 = vadd.f32 %v4784_v54, %v13493_v38  ;;  %v4815_v25 = vsel %vm455_vm1, %v4793_v63, 0.0 }
0x11a7   :  { %v4792_v12 = vadd.f32 %v4776_v10, %v13485_v44  ;;  %v4809_v60 = vsel %vm455_vm1, %v4791_v13, 0.0 }
0x11a8   :  { %4810 = vadd.xlane.f32.xlu1 %v4809_v60  ;;  %v4818_v33 = vsel %vm455_vm1, %v4794_v30, 0.0 }
0x11a9   :  { %v4812_v0 = vsel %vm455_vm1, %v4792_v12, 0.0 }
0x11aa   :  { %4813 = vadd.xlane.f32.xlu0 %v4812_v0  ;;  %v9866_v0 = vld [vmem:[#allocation13] ss:$0 sm:$0xff] }
0x11ac   :  { %4816 = vadd.xlane.f32.xlu1 %v4815_v25 }
0x11ae   :  { %4819 = vadd.xlane.f32.xlu0 %v4818_v33 }
0x11f8   :  { %v4799_v40 = vpop.xlane.xlu1 %4798 }
0x11f9   :  { %v4821_v50 = vmul.f32 0.03125, %v4799_v40 }
0x11fa   :  { %v4802_v31 = vpop.xlane.xlu0 %4801 }
0x11fb   :  { %v13526_v55 = vsub.f32 %v4787_v24, %v4821_v50  ;;  %v4822_v44 = vmul.f32 0.03125, %v4802_v31 }
0x11fc   :  { %v4805_v35 = vpop.xlane.xlu1 %4804 }
0x11fd   :  { %v13528_v11 = vsub.f32 %v4788_v37, %v4822_v44  ;;  %v4823_v43 = vmul.f32 0.03125, %v4805_v35  ;;  %v4837_v38 = vmul.f32 %v13526_v55, %v13526_v55  ;;  %v9867_v44 = vld [vmem:[#allocation14] ss:$0 sm:$0xff] }
0x11fe   :  { %v4808_v8 = vpop.xlane.xlu0 %4807 }
0x11ff   :  { %v13532_v48 = vsub.f32 %v4789_v23, %v4823_v43  ;;  %v4824_v53 = vmul.f32 0.03125, %v4808_v8  ;;  %v4845_v7 = vsel %vm455_vm1, %v4837_v38, 0.0  ;;  %v4838_v46 = vmul.f32 %v13528_v11, %v13528_v11 }
0x1200   :  { %4846 = vadd.xlane.f32.xlu1 %v4845_v7 }
0x1201   :  { %v13537_v36 = vsub.f32 %v4790_v22, %v4824_v53  ;;  %v4848_v27 = vsel %vm455_vm1, %v4838_v46, 0.0  ;;  %v4839_v56 = vmul.f32 %v13532_v48, %v13532_v48 }
0x1202   :  { %4849 = vadd.xlane.f32.xlu0 %v4848_v27 }
0x1203   :  { %v4851_v32 = vsel %vm455_vm1, %v4839_v56, 0.0  ;;  %v4840_v51 = vmul.f32 %v13537_v36, %v13537_v36 }
0x1204   :  { %4852 = vadd.xlane.f32.xlu1 %v4851_v32 }
0x1205   :  { %v4854_v29 = vsel %vm455_vm1, %v4840_v51, 0.0 }
0x1206   :  { %4855 = vadd.xlane.f32.xlu0 %v4854_v29 }
0x1235   :  { %v4811_v49 = vpop.xlane.xlu1 %4810 }
0x1236   :  { %v4825_v47 = vmul.f32 0.03125, %v4811_v49 }
0x1237   :  { %v4814_v16 = vpop.xlane.xlu0 %4813 }
0x1238   :  { %v13553_v45 = vsub.f32 %v4791_v13, %v4825_v47  ;;  %v4826_v59 = vmul.f32 0.03125, %v4814_v16 }
0x1239   :  { %v4817_v57 = vpop.xlane.xlu1 %4816 }
0x123a   :  { %v13555_v61 = vsub.f32 %v4792_v12, %v4826_v59  ;;  %v4827_v28 = vmul.f32 0.03125, %v4817_v57  ;;  %v4841_v34 = vmul.f32 %v13553_v45, %v13553_v45 }
0x123b   :  { %v4820_v39 = vpop.xlane.xlu0 %4819 }
0x123c   :  { %v13559_v24 = vsub.f32 %v4793_v63, %v4827_v28  ;;  %v4828_v21 = vmul.f32 0.03125, %v4820_v39  ;;  %v4857_v58 = vsel %vm455_vm1, %v4841_v34, 0.0  ;;  %v4842_v23 = vmul.f32 %v13555_v61, %v13555_v61 }
0x123d   :  { %4858 = vadd.xlane.f32.xlu1 %v4857_v58 }
0x123e   :  { %v13564_v37 = vsub.f32 %v4794_v30, %v4828_v21  ;;  %v4860_v42 = vsel %vm455_vm1, %v4842_v23, 0.0  ;;  %v4843_v22 = vmul.f32 %v13559_v24, %v13559_v24 }
0x123f   :  { %4861 = vadd.xlane.f32.xlu0 %v4860_v42 }
0x1240   :  { %v4863_v9 = vsel %vm455_vm1, %v4843_v22, 0.0  ;;  %v4844_v18 = vmul.f32 %v13564_v37, %v13564_v37 }
0x1241   :  { %4864 = vadd.xlane.f32.xlu1 %v4863_v9 }
0x1242   :  { %v4866_v19 = vsel %vm455_vm1, %v4844_v18, 0.0 }
0x1243   :  { %4867 = vadd.xlane.f32.xlu0 %v4866_v19 }
0x128d   :  { %v4847_v1 = vpop.xlane.xlu1 %4846 }
0x128e   :  { %v4869_v26 = vmul.f32 0.03125, %v4847_v1 }
0x128f   :  { %v4850_v15 = vpop.xlane.xlu0 %4849 }
0x1290   :  { %v4877_v20 = vadd.f32 1e-05, %v4869_v26  ;;  %v4870_v14 = vmul.f32 0.03125, %v4850_v15 }
0x1291   :  { %v4853_v54 = vpop.xlane.xlu1 %4852 }
0x1292   :  { %11599 = vrsqrt.f32 %v4877_v20  ;;  %v4878_v2 = vadd.f32 1e-05, %v4870_v14  ;;  %v4871_v13 = vmul.f32 0.03125, %v4853_v54 }
0x1293   :  { %v4856_v10 = vpop.xlane.xlu0 %4855 }
0x1294   :  { %11601 = vrsqrt.f32 %v4878_v2  ;;  %v4879_v63 = vadd.f32 1e-05, %v4871_v13  ;;  %v4872_v12 = vmul.f32 0.03125, %v4856_v10 }
0x1296   :  { %11603 = vrsqrt.f32 %v4879_v63  ;;  %v4880_v60 = vadd.f32 1e-05, %v4872_v12 }
0x1298   :  { %11605 = vrsqrt.f32 %v4880_v60 }
0x129c   :  { %v11600_v30 = vpop.eup %11599 }
0x129d   :  { %v4893_v25 = vmul.f32 %v11600_v30, %v13526_v55 }
0x129e   :  { %v11602_v33 = vpop.eup %11601 }
0x129f   :  { %v4894_v40 = vmul.f32 %v11602_v33, %v13528_v11  ;;  %v4907_v50 = vmul.f32 %v9866_v0, %v4893_v25 }
0x12a0   :  { %v11604_v31 = vpop.eup %11603 }
0x12a1   :  { %v4895_v35 = vmul.f32 %v11604_v31, %v13532_v48  ;;  %v4908_v43 = vmul.f32 %v9866_v0, %v4894_v40  ;;  %v13577_v7 = vadd.f32 %v9867_v44, %v4907_v50 }
0x12a2   :  { %v11606_v38 = vpop.eup %11605 }
0x12a3   :  { %v4909_v8 = vmul.f32 %v9866_v0, %v4895_v35  ;;  %v4896_v53 = vmul.f32 %v11606_v38, %v13537_v36  ;;  %v13579_v46 = vadd.f32 %v9867_v44, %v4908_v43 }
0x12a5   :  { %v4910_v27 = vmul.f32 %v9866_v0, %v4896_v53  ;;  %v4929_v55 = vpack.c.bf16 %v13579_v46, %v13577_v7  ;;  %v13583_v56 = vadd.f32 %v9867_v44, %v4909_v8 }
0x12a7   :  { %v13585_v11 = vadd.f32 %v9867_v44, %v4910_v27  ;;  %10793 = vmatprep.mubr.msk.bf16.mxu1 %vm455_vm1, %v4929_v55 }
0x12a9   :  { %v4930_v48 = vpack.c.bf16 %v13585_v11, %v13583_v56 }
0x12ab   :  { %10794 = vmatmul.mubr.msk.bf16.vlgmr.msra.gmra.mrb[140].mxu1 %vm455_vm1, %v4930_v48 }
0x12ca   :  { %v4859_v36 = vpop.xlane.xlu1 %4858 }
0x12cb   :  { %v4873_v32 = vmul.f32 0.03125, %v4859_v36 }
0x12cc   :  { %v4862_v51 = vpop.xlane.xlu0 %4861 }
0x12cd   :  { %v4881_v29 = vadd.f32 1e-05, %v4873_v32  ;;  %v4874_v62 = vmul.f32 0.03125, %v4862_v51 }
0x12ce   :  { %v4865_v4 = vpop.xlane.xlu1 %4864 }
0x12cf   :  { %11607 = vrsqrt.f32 %v4881_v29  ;;  %v4882_v49 = vadd.f32 1e-05, %v4874_v62  ;;  %v4875_v47 = vmul.f32 0.03125, %v4865_v4 }
0x12d0   :  { %v4868_v16 = vpop.xlane.xlu0 %4867 }
0x12d1   :  { %11609 = vrsqrt.f32 %v4882_v49  ;;  %v4883_v59 = vadd.f32 1e-05, %v4875_v47  ;;  %v4876_v57 = vmul.f32 0.03125, %v4868_v16 }
0x12d3   :  { %11611 = vrsqrt.f32 %v4883_v59  ;;  %v4884_v28 = vadd.f32 1e-05, %v4876_v57 }
0x12d5   :  { %11613 = vrsqrt.f32 %v4884_v28 }
0x12d9   :  { %v11608_v34 = vpop.eup %11607 }
0x12da   :  { %v4897_v39 = vmul.f32 %v11608_v34, %v13553_v45 }
0x12db   :  { %v11610_v21 = vpop.eup %11609 }
0x12dc   :  { %v4898_v58 = vmul.f32 %v11610_v21, %v13555_v61  ;;  %v4911_v23 = vmul.f32 %v9866_v0, %v4897_v39 }
0x12dd   :  { %v11612_v42 = vpop.eup %11611 }
0x12de   :  { %v4912_v22 = vmul.f32 %v9866_v0, %v4898_v58  ;;  %v4899_v9 = vmul.f32 %v11612_v42, %v13559_v24  ;;  %v13594_v19 = vadd.f32 %v9867_v44, %v4911_v23 }
0x12df   :  { %v11614_v18 = vpop.eup %11613 }
0x12e0   :  { %v13596_v1 = vadd.f32 %v9867_v44, %v4912_v22  ;;  %v4900_v26 = vmul.f32 %v11614_v18, %v13564_v37  ;;  %v4913_v15 = vmul.f32 %v9866_v0, %v4899_v9  ;;  %v9873_v37 = vld [vmem:[%s14915_s5 + $0x1] ss:$0 sm:$0xff] }
0x12e2   :  { %v4931_v20 = vpack.c.bf16 %v13596_v1, %v13594_v19  ;;  %v4914_v45 = vmul.f32 %v9866_v0, %v4900_v26  ;;  %v13602_v61 = vadd.f32 %v9867_v44, %v4913_v15 }
0x12e4   :  { %10797 = vmatprep.mubr.msk.bf16.mxu1 %vm455_vm1, %v4931_v20  ;;  %v13604_v14 = vadd.f32 %v9867_v44, %v4914_v45 }
0x12e6   :  { %14980 = vst [vmem:[#allocation27_spill] sm:$0xff] %v13604_v14  ;;  %v4932_v24 = vpack.c.bf16 %v13604_v14, %v13602_v61 }
0x12e8   :  { %10798 = vmatmul.mubr.msk.bf16.gmra.mrb[144].mxu1 %vm455_vm1, %v4932_v24 }
0x12e9   :  { %10803 = vmatprep.mubr.msk.bf16.mxu1 %vm12063_vm2, %v14970_v5 }
0x137e   :  { %v10795_v54 = vpop.f32.mrb[140].mxu1 }
0x137f   :  { %v5004_v2 = vpop.f32.mrb[141].mxu1  ;;  %v5013_v12 = vadd.f32 %v10795_v54, %v9873_v37 }
0x1380   :  { %v5005_v13 = vadd.f32 %v9873_v37, %v5004_v2  ;;  %v10796_v10 = vpop.f32.mrb[142].mxu1 }
0x1381   :  { %v5007_v63 = vpop.f32.mrb[143].mxu1  ;;  %v13620_v25 = vpack.c.bf16 %v5013_v12, %v5013_v12  ;;  %v5016_v33 = vadd.f32 %v10796_v10, %v9873_v37 }
0x1382   :  { %v13614_v60 = vpack.c.bf16 %v5005_v13, %v5005_v13  ;;  %v5008_v30 = vadd.f32 %v9873_v37, %v5007_v63 }
0x1383   :  { %v13626_v40 = vpack.c.bf16 %v5016_v33, %v5016_v33 }
0x1384   :  { %v13616_v0 = vpack.c.bf16 %v5008_v30, %v5008_v30  ;;  %5044 = vrot.lane.b32.xlu1 %v13614_v60, %s12064_s9 }
0x1386   :  { %5093 = vrot.lane.b32.xlu0 %v13616_v0, %s12064_s9 }
0x1388   :  { %5142 = vrot.lane.b32.xlu1 %v13620_v25, %s12064_s9 }
0x138c   :  { %5191 = vrot.lane.b32.xlu1 %v13626_v40, %s12064_s9 }
0x13bb   :  { %v10799_v50 = vpop.f32.mrb[144].mxu1 }
0x13bc   :  { %v5029_v31 = vadd.f32 %v10799_v50, %v9873_v37  ;;  %v5020_v44 = vpop.f32.mrb[145].mxu1 }
0x13bd   :  { %v5021_v35 = vadd.f32 %v9873_v37, %v5020_v44  ;;  %v10800_v43 = vpop.f32.mrb[146].mxu1 }
0x13be   :  { %v5032_v38 = vadd.f32 %v10800_v43, %v9873_v37  ;;  %v5023_v8 = vpop.f32.mrb[147].mxu1  ;;  %v13636_v48 = vpack.c.bf16 %v5029_v31, %v5029_v31 }
0x13bf   :  { %v13630_v53 = vpack.c.bf16 %v5021_v35, %v5021_v35  ;;  %v5024_v27 = vadd.f32 %v9873_v37, %v5023_v8  ;;  %v14981_v35 = vld [vmem:[#allocation30_spill] sm:$0xff] }
0x13c0   :  { %v13640_v36 = vpack.c.bf16 %v5032_v38, %v5032_v38 }
0x13c1   :  { %v13632_v55 = vpack.c.bf16 %v5024_v27, %v5024_v27  ;;  %5240 = vrot.lane.b32.xlu0 %v13630_v53, %s12064_s9 }
0x13c3   :  { %5289 = vrot.lane.b32.xlu1 %v13632_v55, %s12064_s9 }
0x13c5   :  { %5338 = vrot.lane.b32.xlu0 %v13636_v48, %s12064_s9 }
0x13c7   :  { %5387 = vrot.lane.b32.xlu1 %v13640_v36, %s12064_s9 }
0x13c9   :  { %5595 = vrot.lane.b32.xlu0 %v13616_v0, %s14961_s21 }
0x13cb   :  { %5547 = vrot.lane.b32.xlu1 %v13614_v60, %s14961_s21 }
0x13cf   :  { %5643 = vrot.lane.b32.xlu1 %v13620_v25, %s14961_s21 }
0x13d3   :  { %5691 = vrot.lane.b32.xlu1 %v13626_v40, %s14961_s21 }
0x13f6   :  { %v5045_v32 = vpop.permute.xlu1 %5044 }
0x13f7   :  { %v5050_v51 = vsel %vm544_vm3, %v5045_v32, 0 }
0x13f8   :  { %10802 = vmatpush3.bf16.xpose.msra.mxu1 %v5050_v51  ;;  %v5094_v4 = vpop.permute.xlu0 %5093 }
0x13f9   :  { %10807 = vmatprep.subr.bf16.mxu1 %v14970_v5  ;;  %v5099_v49 = vsel %vm544_vm3, %v5094_v4, 0  ;;  %v14982_v4 = vld [vmem:[#allocation31_spill] sm:$0xff] }
0x13fa   :  { %v5143_v29 = vpop.permute.xlu1 %5142 }
0x13fb   :  { %v5148_v62 = vsel %vm544_vm3, %v5143_v29, 0 }
0x13fc   :  { %10814 = vmatpush3.bf16.xpose.msra.mxu0 %v5148_v62 }
0x13fd   :  { %10825 = vmatprep.subr.bf16.mxu0 %v14970_v5 }
0x13fe   :  { %v5192_v47 = vpop.permute.xlu1 %5191 }
0x13ff   :  { %10804 = vmatmul.mubr.msk.bf16.vlgmr.msra.gmra.mrb[148].mxu1 %vm544_vm3, %v13614_v60  ;;  %v5197_v16 = vsel %vm544_vm3, %v5192_v47, 0 }
0x1400   :  { %10808 = vmatpush3.bf16.xpose.msra.mxu1 %v5099_v49  ;;  %10809 = vmatprep.mubr.msk.bf16.mxu1 %vm12063_vm2, %v14970_v5 }
0x1401   :  { %10819 = vmatprep.subr.bf16.mxu1 %v14970_v5 }
0x1403   :  { %10816 = vmatmul.mubr.msk.bf16.vlgmr.msra.gmra.mrb[156].mxu0 %vm544_vm3, %v13620_v25 }
0x1404   :  { %10827 = vmatprep.mubr.msk.bf16.mxu0 %vm12063_vm2, %v14970_v5 }
0x1407   :  { %10810 = vmatmul.mubr.msk.bf16.vlgmr.msra.gmra.mrb[152].mxu1 %vm544_vm3, %v13616_v0 }
0x1408   :  { %10820 = vmatpush3.bf16.xpose.msra.mxu1 %v5197_v16  ;;  %10821 = vmatprep.mubr.msk.bf16.mxu1 %vm12063_vm2, %v14970_v5 }
0x1409   :  { %10831 = vmatprep.subr.bf16.mxu1 %v14970_v5 }
0x140f   :  { %10822 = vmatmul.mubr.msk.bf16.vlgmr.msra.gmra.mrb[156].mxu1 %vm544_vm3, %v13626_v40 }
0x1410   :  { %10833 = vmatprep.mubr.msk.bf16.mxu1 %vm12063_vm2, %v14970_v5 }
0x1433   :  { %v5241_v59 = vpop.permute.xlu0 %5240 }
0x1434   :  { %v5246_v57 = vsel %vm544_vm3, %v5241_v59, 0 }
0x1435   :  { %v5290_v28 = vpop.permute.xlu1 %5289  ;;  %10826 = vmatpush3.bf16.xpose.msra.mxu0 %v5246_v57 }
0x1436   :  { %v5295_v34 = vsel %vm544_vm3, %v5290_v28, 0  ;;  %10837 = vmatprep.subr.bf16.mxu0 %v14970_v5 }
0x1437   :  { %10832 = vmatpush3.bf16.xpose.msra.mxu1 %v5295_v34  ;;  %v5339_v39 = vpop.permute.xlu0 %5338 }
0x1438   :  { %10843 = vmatprep.subr.bf16.mxu1 %v14970_v5  ;;  %v5344_v58 = vsel %vm544_vm3, %v5339_v39, 0 }
0x1439   :  { %v5388_v21 = vpop.permute.xlu1 %5387 }
0x143a   :  { %v5393_v23 = vsel %vm544_vm3, %v5388_v21, 0  ;;  %v14983_v21 = vld [vmem:[#allocation32_spill] sm:$0xff] }
0x143b   :  { %v5596_v22 = vpop.permute.xlu0 %5595 }
0x143c   :  { %10828 = vmatmul.mubr.msk.bf16.vlgmr.msra.gmra.mrb[160].mxu0 %vm544_vm3, %v13630_v53  ;;  %v5601_v18 = vsel %vm1099_vm4, %v5596_v22, 0 }
0x143d   :  { %10838 = vmatpush3.bf16.xpose.msra.mxu0 %v5344_v58  ;;  %10839 = vmatprep.mubr.msk.bf16.mxu0 %vm12063_vm2, %v14970_v5  ;;  %v5548_v42 = vpop.permute.xlu1 %5547 }
0x143e   :  { %10834 = vmatmul.mubr.msk.bf16.vlgmr.msra.gmra.mrb[160].mxu1 %vm544_vm3, %v13632_v55  ;;  %10849 = vmatprep.subr.bf16.mxu0 %v14970_v5  ;;  %v5553_v9 = vsel %vm1099_vm4, %v5548_v42, 0 }
0x143f   :  { %10844 = vmatpush3.bf16.xpose.msra.mxu1 %v5393_v23  ;;  %10845 = vmatprep.mubr.msk.bf16.mxu1 %vm12063_vm2, %v14970_v5 }
0x1440   :  { %10855 = vmatprep.subr.bf16.mxu1 %v14970_v5 }
0x1444   :  { %10840 = vmatmul.mubr.msk.bf16.vlgmr.msra.gmra.mrb[164].mxu0 %vm544_vm3, %v13636_v48 }
0x1445   :  { %10850 = vmatpush3.bf16.msra.mxu0 %v5553_v9  ;;  %10851 = vmatprep.mubr.msk.bf16.mxu0 %vm12063_vm2, %v14970_v5 }
0x1446   :  { %10846 = vmatmul.mubr.msk.bf16.vlgmr.msra.gmra.mrb[164].mxu1 %vm544_vm3, %v13640_v36  ;;  %10861 = vmatprep.subr.bf16.mxu0 %v14970_v5 }
0x1447   :  { %10856 = vmatpush3.bf16.msra.mxu1 %v5601_v18  ;;  %10857 = vmatprep.mubr.msk.bf16.mxu1 %vm12063_vm2, %v14970_v5 }
0x1448   :  { %10867 = vmatprep.subr.bf16.mxu1 %v14970_v5 }
0x14d2   :  { %v5086_v26 = vpop.f32.mrb[148].mxu1 }
0x14d3   :  { %v10805_v15 = vpop.f32.mrb[149].mxu1  ;;  %v5435_v37 = vmul.f32 0.35355338, %v5086_v26 }
0x14d4   :  { %v5089_v20 = vpop.f32.mrb[150].mxu1 }
0x14d5   :  { %v10806_v45 = vpop.f32.mrb[151].mxu1  ;;  %v13708_v30 = vadd.f32 %v5435_v37, %v12518_v41 }
0x14d6   :  { %v5184_v24 = vpop.f32.mrb[156].mxu0 }
0x14d7   :  { %v5437_v54 = vmul.f32 0.35355338, %v5184_v24  ;;  %v10817_v2 = vpop.f32.mrb[157].mxu0  ;;  %v5451_v8 = vsel %vm544_vm3, %v13708_v30, -inf }
0x14d8   :  { %v5187_v13 = vpop.f32.mrb[158].mxu0 }
0x14d9   :  { %v5445_v10 = vadd.f32 %v5437_v54, %v12529_v3  ;;  %v10818_v63 = vpop.f32.mrb[159].mxu0 }
0x14da   :  { %v5135_v12 = vpop.f32.mrb[152].mxu1 }
0x14db   :  { %v5436_v33 = vmul.f32 0.35355338, %v5135_v12  ;;  %v10811_v50 = vpop.f32.mrb[153].mxu1  ;;  %v5457_v31 = vsel %vm544_vm3, %v5445_v10, -inf }
0x14dc   :  { %5458 = vmax.xlane.f32.xlu0 %v5457_v31  ;;  %v5138_v44 = vpop.f32.mrb[154].mxu1 }
0x14dd   :  { %v5444_v43 = vadd.f32 %v5436_v33, %v14981_v35  ;;  %v10812_v38 = vpop.f32.mrb[155].mxu1 }
0x14df   :  { %v5454_v27 = vsel %vm544_vm3, %v5444_v43, -inf }
0x14e0   :  { %5452 = vmax.xlane.f32.xlu0 %v5451_v8  ;;  %5455 = vmax.xlane.f32.xlu1 %v5454_v27  ;;  %v13732_v27 = vpop.permute.xlu1 %5643 }
0x14e2   :  { %v5233_v32 = vpop.f32.mrb[156].mxu1 }
0x14e3   :  { %v5438_v51 = vmul.f32 0.35355338, %v5233_v32  ;;  %v10823_v29 = vpop.f32.mrb[157].mxu1 }
0x14e4   :  { %v5236_v62 = vpop.f32.mrb[158].mxu1  ;;  %v13734_v32 = vpop.permute.xlu1 %5691 }
0x14e5   :  { %v5446_v49 = vadd.f32 %v5438_v51, %v14982_v4  ;;  %v10824_v47 = vpop.f32.mrb[159].mxu1 }
0x14e7   :  { %v5460_v16 = vsel %vm544_vm3, %v5446_v49, -inf }
0x14e8   :  { %5461 = vmax.xlane.f32.xlu0 %v5460_v16 }
0x150f   :  { %v5282_v59 = vpop.f32.mrb[160].mxu0 }
0x1510   :  { %v5439_v57 = vmul.f32 0.35355338, %v5282_v59  ;;  %v10829_v28 = vpop.f32.mrb[161].mxu0 }
0x1511   :  { %v5285_v34 = vpop.f32.mrb[162].mxu0  ;;  %v5331_v39 = vpop.f32.mrb[160].mxu1 }
0x1512   :  { %v5447_v58 = vadd.f32 %v5439_v57, %v14983_v21  ;;  %v5440_v23 = vmul.f32 0.35355338, %v5331_v39  ;;  %v10830_v42 = vpop.f32.mrb[163].mxu0  ;;  %v10835_v22 = vpop.f32.mrb[161].mxu1 }
0x1513   :  { %v5334_v9 = vpop.f32.mrb[162].mxu1 }
0x1514   :  { %v5448_v18 = vadd.f32 %v5440_v23, %v12554_v52  ;;  %v10836_v26 = vpop.f32.mrb[163].mxu1  ;;  %v5463_v15 = vsel %vm544_vm3, %v5447_v58, -inf }
0x1515   :  { %5464 = vmax.xlane.f32.xlu1 %v5463_v15 }
0x1516   :  { %v5466_v20 = vsel %vm544_vm3, %v5448_v18, -inf }
0x1517   :  { %5467 = vmax.xlane.f32.xlu0 %v5466_v20  ;;  %v5380_v45 = vpop.f32.mrb[164].mxu0 }
0x1518   :  { %v5441_v24 = vmul.f32 0.35355338, %v5380_v45  ;;  %v10841_v37 = vpop.f32.mrb[165].mxu0 }
0x1519   :  { %v5383_v54 = vpop.f32.mrb[166].mxu0  ;;  %v5429_v2 = vpop.f32.mrb[164].mxu1 }
0x151a   :  { %v13722_v13 = vadd.f32 %v5441_v24, %v12559_v6  ;;  %v5442_v63 = vmul.f32 0.35355338, %v5429_v2  ;;  %v10842_v12 = vpop.f32.mrb[167].mxu0  ;;  %v10847_v33 = vpop.f32.mrb[165].mxu1 }
0x151b   :  { %v5432_v50 = vpop.f32.mrb[166].mxu1 }
0x151c   :  { %v5450_v31 = vadd.f32 %v5442_v63, %v12566_v17  ;;  %v10848_v44 = vpop.f32.mrb[167].mxu1  ;;  %v5469_v38 = vsel %vm544_vm3, %v13722_v13, -inf }
0x151d   :  { %5470 = vmax.xlane.f32.xlu1 %v5469_v38 }
0x151e   :  { %v5472_v8 = vsel %vm544_vm3, %v5450_v31, -inf }
0x151f   :  { %5473 = vmax.xlane.f32.xlu0 %v5472_v8 }
0x152e   :  { %5787 = vrot.lane.b32.xlu1 %v13632_v55, %s14961_s21 }
0x1535   :  { %5739 = vrot.lane.b32.xlu0 %v13630_v53, %s14961_s21 }
0x1569   :  { %v5459_v51 = vpop.xlane.xlu0 %5458 }
0x156a   :  { %v5477_v29 = vsub.f32 %v5445_v10, %v5459_v51 }
0x156c   :  { %v5487_v62 = vmul.f32 1.442695, %v5477_v29 }
0x156d   :  { %v5456_v47 = vpop.xlane.xlu1 %5455  ;;  %v5453_v16 = vpop.xlane.xlu0 %5452 }
0x156e   :  { %11615 = vpow2.f32 %v5487_v62  ;;  %v5476_v59 = vsub.f32 %v5444_v43, %v5456_v47  ;;  %v5475_v57 = vsub.f32 %v13708_v30, %v5453_v16 }
0x1570   :  { %v5485_v28 = vmul.f32 1.442695, %v5476_v59  ;;  %v5483_v34 = vmul.f32 1.442695, %v5475_v57 }
0x1572   :  { %11617 = vpow2.f32 %v5485_v28 }
0x1573   :  { %11619 = vpow2.f32 %v5483_v34 }
0x1575   :  { %v5462_v39 = vpop.xlane.xlu0 %5461 }
0x1576   :  { %v5478_v23 = vsub.f32 %v5446_v49, %v5462_v39 }
0x1578   :  { %v13737_v42 = vpop.eup %11615  ;;  %v5489_v22 = vmul.f32 1.442695, %v5478_v23 }
0x1579   :  { %v5505_v9 = vsel %vm544_vm3, %v13737_v42, 0.0 }
0x157a   :  { %11621 = vpow2.f32 %v5489_v22  ;;  %5506 = vadd.xlane.f32.xlu1 %v5505_v9 }
0x157c   :  { %v13741_v10 = vpop.eup %11617 }
0x157d   :  { %v13743_v26 = vpop.eup %11619  ;;  %v5502_v30 = vsel %vm544_vm3, %v13741_v10, 0.0 }
0x157e   :  { %5503 = vadd.xlane.f32.xlu0 %v5502_v30  ;;  %v5499_v43 = vsel %vm544_vm3, %v13743_v26, 0.0 }
0x157f   :  { %5500 = vadd.xlane.f32.xlu1 %v5499_v43 }
0x1584   :  { %v13749_v49 = vpop.eup %11621 }
0x1585   :  { %v5508_v15 = vsel %vm544_vm3, %v13749_v49, 0.0 }
0x1586   :  { %5509 = vadd.xlane.f32.xlu0 %v5508_v15 }
0x15a2   :  { %v5465_v20 = vpop.xlane.xlu1 %5464 }
0x15a3   :  { %v5479_v45 = vsub.f32 %v5447_v58, %v5465_v20  ;;  %v5649_v20 = vsel %vm1099_vm4, %v13732_v27, 0 }
0x15a4   :  { %v5468_v24 = vpop.xlane.xlu0 %5467 }
0x15a5   :  { %v5491_v37 = vmul.f32 1.442695, %v5479_v45  ;;  %v5480_v54 = vsub.f32 %v5448_v18, %v5468_v24 }
0x15a7   :  { %11623 = vpow2.f32 %v5491_v37  ;;  %v5493_v2 = vmul.f32 1.442695, %v5480_v54 }
0x15a9   :  { %11625 = vpow2.f32 %v5493_v2 }
0x15aa   :  { %v5471_v58 = vpop.xlane.xlu1 %5470 }
0x15ab   :  { %v5481_v44 = vsub.f32 %v13722_v13, %v5471_v58 }
0x15ac   :  { %v5474_v18 = vpop.xlane.xlu0 %5473 }
0x15ad   :  { %v5482_v38 = vsub.f32 %v5450_v31, %v5474_v18  ;;  %v5495_v8 = vmul.f32 1.442695, %v5481_v44 }
0x15ae   :  { %v5788_v13 = vpop.permute.xlu1 %5787 }
0x15af   :  { %v5497_v51 = vmul.f32 1.442695, %v5482_v38  ;;  %11627 = vpow2.f32 %v5495_v8  ;;  %v5793_v37 = vsel %vm1099_vm4, %v5788_v13, 0 }
0x15b0   :  { %v5740_v31 = vpop.permute.xlu0 %5739 }
0x15b1   :  { %v13753_v63 = vpop.eup %11623  ;;  %11629 = vpow2.f32 %v5497_v51 }
0x15b2   :  { %v5511_v12 = vsel %vm544_vm3, %v13753_v63, 0.0 }
0x15b3   :  { %v13757_v33 = vpop.eup %11625  ;;  %5512 = vadd.xlane.f32.xlu1 %v5511_v12 }
0x15b4   :  { %v5514_v50 = vsel %vm544_vm3, %v13757_v33, 0.0 }
0x15b5   :  { %5515 = vadd.xlane.f32.xlu0 %v5514_v50 }
0x15b9   :  { %v13766_v29 = vpop.eup %11627 }
0x15ba   :  { %v5517_v47 = vsel %vm544_vm3, %v13766_v29, 0.0 }
0x15bb   :  { %v13768_v62 = vpop.eup %11629 }
0x15bc   :  { %v5520_v16 = vsel %vm544_vm3, %v13768_v62, 0.0 }
0x15c4   :  { %5883 = vrot.lane.b32.xlu1 %v13640_v36, %s14961_s21 }
0x15cb   :  { %5835 = vrot.lane.b32.xlu0 %v13636_v48, %s14961_s21 }
0x15e8   :  { %5518 = vadd.xlane.f32.xlu1 %v5517_v47 }
0x15ea   :  { %5521 = vadd.xlane.f32.xlu0 %v5520_v16 }
0x15f9   :  { %5983 = vrot.lane.b32.xlu1 %v13616_v0, %s12066_s6 }
0x15fd   :  { %5981 = vrot.lane.b32.xlu1 %v13616_v0, %s12067_s13 }
0x1600   :  { %5933 = vrot.lane.b32.xlu0 %v13614_v60, %s12066_s6 }
0x1601   :  { %6083 = vrot.lane.b32.xlu1 %v13626_v40, %s12066_s6 }
0x1604   :  { %5931 = vrot.lane.b32.xlu0 %v13614_v60, %s12067_s13 }
0x1605   :  { %6081 = vrot.lane.b32.xlu1 %v13626_v40, %s12067_s13 }
0x1607   :  { %v5507_v59 = vpop.xlane.xlu1 %5506 }
0x1608   :  { %6033 = vrot.lane.b32.xlu0 %v13620_v25, %s12066_s6 }
0x1609   :  { %6183 = vrot.lane.b32.xlu1 %v13632_v55, %s12066_s6 }
0x160b   :  { %v5504_v57 = vpop.xlane.xlu0 %5503 }
0x160c   :  { %6031 = vrot.lane.b32.xlu0 %v13620_v25, %s12067_s13  ;;  %v5501_v28 = vpop.xlane.xlu1 %5500  ;;  %11631 = vrcp.f32 %v5504_v57 }
0x160d   :  { %6181 = vrot.lane.b32.xlu1 %v13632_v55, %s12067_s13  ;;  %11633 = vrcp.f32 %v5501_v28 }
0x160e   :  { %11635 = vrcp.f32 %v5507_v59 }
0x1610   :  { %6133 = vrot.lane.b32.xlu0 %v13630_v53, %s12066_s6 }
0x1611   :  { %6283 = vrot.lane.b32.xlu1 %v13640_v36, %s12066_s6 }
0x1613   :  { %v5510_v34 = vpop.xlane.xlu0 %5509 }
0x1614   :  { %6131 = vrot.lane.b32.xlu0 %v13630_v53, %s12067_s13  ;;  %11637 = vrcp.f32 %v5510_v34 }
0x1615   :  { %6281 = vrot.lane.b32.xlu1 %v13640_v36, %s12067_s13 }
0x1616   :  { %v11632_v39 = vpop.eup %11631 }
0x1617   :  { %v11634_v23 = vpop.eup %11633  ;;  %v5532_v22 = vmul.f32 %v11632_v39, %v13741_v10  ;;  %v5697_v10 = vsel %vm1099_vm4, %v13734_v32, 0 }
0x1618   :  { %6233 = vrot.lane.b32.xlu0 %v13636_v48, %s12066_s6  ;;  %v5531_v9 = vmul.f32 %v11634_v23, %v13743_v26  ;;  %v11636_v15 = vpop.eup %11635 }
0x1619   :  { %6443 = vrot.lane.b32.xlu1 %v13614_v60, %s12068_s22  ;;  %v5540_v30 = vpack.c.bf16 %v5532_v22, %v5532_v22  ;;  %v5533_v45 = vmul.f32 %v11636_v15, %v13737_v42  ;;  %v5745_v42 = vsel %vm1099_vm4, %v5740_v31, 0 }
0x161a   :  { %v5539_v43 = vpack.c.bf16 %v5531_v9, %v5531_v9 }
0x161b   :  { %10858 = vmatmul.mubr.msk.bf16.vlgmr.msra.gmra.mrb[168].mxu1 %vm544_vm3, %v5540_v30  ;;  %v5541_v24 = vpack.c.bf16 %v5533_v45, %v5533_v45 }
0x161c   :  { %6231 = vrot.lane.b32.xlu0 %v13636_v48, %s12067_s13  ;;  %10852 = vmatmul.mubr.msk.bf16.vlgmr.msra.gmra.mrb[168].mxu0 %vm544_vm3, %v5539_v43 }
0x161d   :  { %6539 = vrot.lane.b32.xlu1 %v13620_v25, %s12068_s22  ;;  %10862 = vmatpush3.bf16.msra.mxu0 %v5649_v20 }
0x161e   :  { %v11638_v26 = vpop.eup %11637  ;;  %10868 = vmatpush3.bf16.msra.mxu1 %v5697_v10  ;;  %10863 = vmatprep.mubr.msk.bf16.mxu0 %vm12063_vm2, %v14970_v5 }
0x161f   :  { %10869 = vmatprep.mubr.msk.bf16.mxu1 %vm12063_vm2, %v14970_v5  ;;  %10873 = vmatprep.subr.bf16.mxu0 %v14970_v5  ;;  %v5534_v27 = vmul.f32 %v11638_v26, %v13749_v49 }
0x1620   :  { %6491 = vrot.lane.b32.xlu0 %v13616_v0, %s12068_s22  ;;  %10879 = vmatprep.subr.bf16.mxu1 %v14970_v5 }
0x1621   :  { %6587 = vrot.lane.b32.xlu1 %v13626_v40, %s12068_s22  ;;  %v5542_v32 = vpack.c.bf16 %v5534_v27, %v5534_v27 }
0x1623   :  { %10870 = vmatmul.mubr.msk.bf16.vlgmr.msra.gmra.mrb[172].mxu1 %vm544_vm3, %v5542_v32 }
0x1624   :  { %10864 = vmatmul.mubr.msk.bf16.vlgmr.msra.gmra.mrb[172].mxu0 %vm544_vm3, %v5541_v24  ;;  %10880 = vmatpush3.bf16.msra.mxu1 %v5793_v37 }
0x1625   :  { %10874 = vmatpush3.bf16.msra.mxu0 %v5745_v42  ;;  %10875 = vmatprep.mubr.msk.bf16.mxu0 %vm12063_vm2, %v14970_v5 }
0x1626   :  { %10885 = vmatprep.subr.bf16.mxu0 %v14970_v5  ;;  %10881 = vmatprep.mubr.msk.bf16.mxu1 %vm12063_vm2, %v14970_v5 }
0x1627   :  { %10891 = vmatprep.subr.bf16.mxu1 %v14970_v5 }
0x1640   :  { %v5513_v49 = vpop.xlane.xlu1 %5512 }
0x1641   :  { %11639 = vrcp.f32 %v5513_v49 }
0x1642   :  { %v5516_v54 = vpop.xlane.xlu0 %5515 }
0x1643   :  { %11641 = vrcp.f32 %v5516_v54 }
0x1644   :  { %v5884_v38 = vpop.permute.xlu1 %5883 }
0x1645   :  { %v5889_v47 = vsel %vm1099_vm4, %v5884_v38, 0 }
0x1646   :  { %v5836_v58 = vpop.permute.xlu0 %5835 }
0x1647   :  { %v5841_v8 = vsel %vm1099_vm4, %v5836_v58, 0 }
0x164b   :  { %v11640_v2 = vpop.eup %11639 }
0x164c   :  { %v5535_v12 = vmul.f32 %v11640_v2, %v13753_v63 }
0x164d   :  { %v11642_v50 = vpop.eup %11641 }
0x164e   :  { %v5543_v18 = vpack.c.bf16 %v5535_v12, %v5535_v12  ;;  %v5536_v44 = vmul.f32 %v11642_v50, %v13757_v33 }
0x1650   :  { %10876 = vmatmul.mubr.msk.bf16.vlgmr.msra.gmra.mrb[176].mxu0 %vm544_vm3, %v5543_v18  ;;  %v5544_v51 = vpack.c.bf16 %v5536_v44, %v5536_v44 }
0x1651   :  { %10886 = vmatpush3.bf16.msra.mxu0 %v5841_v8  ;;  %10887 = vmatprep.mubr.msk.bf16.mxu0 %vm12063_vm2, %v14970_v5 }
0x1652   :  { %10882 = vmatmul.mubr.msk.bf16.vlgmr.msra.gmra.mrb[176].mxu1 %vm544_vm3, %v5544_v51  ;;  %10897 = vmatprep.subr.bf16.mxu0 %v14970_v5 }
0x1653   :  { %10892 = vmatpush3.bf16.msra.mxu1 %v5889_v47  ;;  %10893 = vmatprep.mubr.msk.bf16.mxu1 %vm12063_vm2, %v14970_v5 }
0x1654   :  { %10903 = vmatprep.subr.bf16.mxu1 %v14970_v5 }
0x1675   :  { %v5519_v63 = vpop.xlane.xlu1 %5518 }
0x1676   :  { %11643 = vrcp.f32 %v5519_v63 }
0x1677   :  { %v5522_v33 = vpop.xlane.xlu0 %5521 }
0x1678   :  { %11645 = vrcp.f32 %v5522_v33 }
0x1679   :  { %v5984_v16 = vpop.permute.xlu1 %5983 }
0x167a   :  { %v5989_v20 = vsel %vm544_vm3, %v5984_v16, 0 }
0x167b   :  { %v5934_v13 = vpop.permute.xlu0 %5933 }
0x167c   :  { %v5939_v30 = vsel %vm544_vm3, %v5934_v13, 0 }
0x167d   :  { %v5982_v31 = vpop.permute.xlu1 %5981 }
0x167f   :  { %v5932_v59 = vpop.permute.xlu0 %5931 }
0x1680   :  { %v11644_v57 = vpop.eup %11643 }
0x1681   :  { %v6084_v28 = vpop.permute.xlu1 %6083  ;;  %v5537_v34 = vmul.f32 %v11644_v57, %v13766_v29 }
0x1682   :  { %v11646_v39 = vpop.eup %11645  ;;  %v6089_v45 = vsel %vm544_vm3, %v6084_v28, 0 }
0x1683   :  { %v6034_v23 = vpop.permute.xlu0 %6033  ;;  %v5545_v22 = vpack.c.bf16 %v5537_v34, %v5537_v34  ;;  %v5538_v9 = vmul.f32 %v11646_v39, %v13768_v62 }
0x1684   :  { %v6039_v26 = vsel %vm544_vm3, %v6034_v23, 0 }
0x1685   :  { %v6082_v43 = vpop.permute.xlu1 %6081  ;;  %10888 = vmatmul.mubr.msk.bf16.vlgmr.msra.gmra.mrb[180].mxu0 %vm544_vm3, %v5545_v22  ;;  %v5546_v15 = vpack.c.bf16 %v5538_v9, %v5538_v9 }
0x1686   :  { %10898 = vmatpush3.bf16.xpose.msra.mxu0 %v5939_v30  ;;  %10899 = vmatprep.mubr.msk.bf16.mxu0 %vm12063_vm2, %v14970_v5 }
0x1687   :  { %10894 = vmatmul.mubr.msk.bf16.vlgmr.msra.gmra.mrb[180].mxu1 %vm544_vm3, %v5546_v15  ;;  %v6032_v29 = vpop.permute.xlu0 %6031  ;;  %10909 = vmatprep.subr.bf16.mxu0 %v14970_v5 }
0x1688   :  { %10904 = vmatpush3.bf16.xpose.msra.mxu1 %v5989_v20  ;;  %10905 = vmatprep.mubr.msk.bf16.mxu1 %vm12063_vm2, %v14970_v5 }
0x1689   :  { %10915 = vmatprep.subr.bf16.mxu1 %v14970_v5  ;;  %v6184_v62 = vpop.permute.xlu1 %6183 }
0x168a   :  { %v6189_v42 = vsel %vm544_vm3, %v6184_v62, 0 }
0x168b   :  { %v6134_v10 = vpop.permute.xlu0 %6133 }
0x168c   :  { %v6139_v24 = vsel %vm544_vm3, %v6134_v10, 0 }
0x168d   :  { %10900 = vmatmul.mubr.msk.bf16.vlgmr.msra.gmra.mrb[184].mxu0 %vm544_vm3, %v5932_v59  ;;  %v6182_v27 = vpop.permute.xlu1 %6181 }
0x168e   :  { %10910 = vmatpush3.bf16.xpose.msra.mxu0 %v6039_v26  ;;  %10911 = vmatprep.mubr.msk.bf16.mxu0 %vm12063_vm2, %v14970_v5 }
0x168f   :  { %10906 = vmatmul.mubr.msk.bf16.vlgmr.msra.gmra.mrb[184].mxu1 %vm544_vm3, %v5982_v31  ;;  %10921 = vmatprep.subr.bf16.mxu0 %v14970_v5  ;;  %v6132_v32 = vpop.permute.xlu0 %6131 }
0x1690   :  { %10916 = vmatpush3.bf16.xpose.msra.mxu1 %v6089_v45  ;;  %10917 = vmatprep.mubr.msk.bf16.mxu1 %vm12063_vm2, %v14970_v5 }
0x1691   :  { %10927 = vmatprep.subr.bf16.mxu1 %v14970_v5  ;;  %v6284_v37 = vpop.permute.xlu1 %6283 }
0x1692   :  { %v6289_v50 = vsel %vm544_vm3, %v6284_v37, 0 }
0x1693   :  { %v6234_v49 = vpop.permute.xlu0 %6233 }
0x1694   :  { %v6239_v2 = vsel %vm544_vm3, %v6234_v49, 0 }
0x1695   :  { %10912 = vmatmul.mubr.msk.bf16.vlgmr.msra.gmra.mrb[188].mxu0 %vm544_vm3, %v6032_v29  ;;  %v6282_v54 = vpop.permute.xlu1 %6281 }
0x1696   :  { %10922 = vmatpush3.bf16.xpose.msra.mxu0 %v6139_v24  ;;  %10923 = vmatprep.mubr.msk.bf16.mxu0 %vm12063_vm2, %v14970_v5 }
0x1697   :  { %10918 = vmatmul.mubr.msk.bf16.vlgmr.msra.gmra.mrb[188].mxu1 %vm544_vm3, %v6082_v43  ;;  %10933 = vmatprep.subr.bf16.mxu0 %v14970_v5  ;;  %v6232_v12 = vpop.permute.xlu0 %6231 }
0x1698   :  { %10928 = vmatpush3.bf16.xpose.msra.mxu1 %v6189_v42  ;;  %10929 = vmatprep.mubr.msk.bf16.mxu1 %vm12063_vm2, %v14970_v5 }
0x1699   :  { %10939 = vmatprep.subr.bf16.mxu1 %v14970_v5  ;;  %v6444_v58 = vpop.permute.xlu1 %6443 }
0x169a   :  { %v6449_v44 = vsel %vm1099_vm4, %v6444_v58, 0 }
0x169b   :  { %v6492_v18 = vpop.permute.xlu0 %6491 }
0x169c   :  { %v6497_v38 = vsel %vm1099_vm4, %v6492_v18, 0 }
0x169d   :  { %10924 = vmatmul.mubr.msk.bf16.vlgmr.msra.gmra.mrb[192].mxu0 %vm544_vm3, %v6132_v32 }
0x169e   :  { %10934 = vmatpush3.bf16.xpose.msra.mxu0 %v6239_v2  ;;  %10935 = vmatprep.mubr.msk.bf16.mxu0 %vm12063_vm2, %v14970_v5 }
0x169f   :  { %10930 = vmatmul.mubr.msk.bf16.vlgmr.msra.gmra.mrb[192].mxu1 %vm544_vm3, %v6182_v27  ;;  %10945 = vmatprep.subr.bf16.mxu0 %v14970_v5 }
0x16a0   :  { %10940 = vmatpush3.bf16.xpose.msra.mxu1 %v6289_v50  ;;  %10941 = vmatprep.mubr.msk.bf16.mxu1 %vm12063_vm2, %v14970_v5 }
0x16a1   :  { %10951 = vmatprep.subr.bf16.mxu1 %v14970_v5 }
0x16a5   :  { %10936 = vmatmul.mubr.msk.bf16.vlgmr.msra.gmra.mrb[196].mxu0 %vm544_vm3, %v6232_v12 }
0x16a6   :  { %10946 = vmatpush3.bf16.msra.mxu0 %v6449_v44  ;;  %10947 = vmatprep.mubr.msk.bf16.mxu0 %vm12063_vm2, %v14970_v5 }
0x16a7   :  { %10942 = vmatmul.mubr.msk.bf16.vlgmr.msra.gmra.mrb[196].mxu1 %vm544_vm3, %v6282_v54  ;;  %10957 = vmatprep.subr.bf16.mxu0 %v14970_v5 }
0x16a8   :  { %10952 = vmatpush3.bf16.msra.mxu1 %v6497_v38  ;;  %10953 = vmatprep.mubr.msk.bf16.mxu1 %vm12063_vm2, %v14970_v5 }
0x16a9   :  { %10963 = vmatprep.subr.bf16.mxu1 %v14970_v5 }
0x16ee   :  { %v13904_v8 = vpop.f32.mrb[168].mxu1 }
0x16ef   :  { %v13906_v51 = vpop.f32.mrb[168].mxu0  ;;  %v10859_v47 = vpop.f32.mrb[169].mxu1 }
0x16f0   :  { %v10853_v63 = vpop.f32.mrb[169].mxu0  ;;  %v5640_v33 = vpop.f32.mrb[170].mxu1 }
0x16f1   :  { %v5592_v16 = vpop.f32.mrb[170].mxu0  ;;  %v10860_v13 = vpop.f32.mrb[171].mxu1 }
0x16f2   :  { %v10854_v31 = vpop.f32.mrb[171].mxu0 }
0x16f6   :  { %v13908_v59 = vpop.f32.mrb[172].mxu1 }
0x16f7   :  { %v13910_v57 = vpop.f32.mrb[172].mxu0  ;;  %v10871_v28 = vpop.f32.mrb[173].mxu1 }
0x16f8   :  { %v10865_v34 = vpop.f32.mrb[173].mxu0  ;;  %v5736_v39 = vpop.f32.mrb[174].mxu1 }
0x16f9   :  { %v5688_v23 = vpop.f32.mrb[174].mxu0  ;;  %v10872_v22 = vpop.f32.mrb[175].mxu1 }
0x16fa   :  { %v10866_v9 = vpop.f32.mrb[175].mxu0 }
0x1723   :  { %v13912_v30 = vpop.f32.mrb[176].mxu0 }
0x1724   :  { %v10877_v43 = vpop.f32.mrb[177].mxu0 }
0x1725   :  { %v5784_v15 = vpop.f32.mrb[178].mxu0  ;;  %v13914_v20 = vpop.f32.mrb[176].mxu1 }
0x1726   :  { %v10878_v29 = vpop.f32.mrb[179].mxu0  ;;  %v10883_v62 = vpop.f32.mrb[177].mxu1 }
0x1727   :  { %v5832_v10 = vpop.f32.mrb[178].mxu1 }
0x1728   :  { %v10884_v26 = vpop.f32.mrb[179].mxu1 }
0x1758   :  { %v13916_v45 = vpop.f32.mrb[180].mxu0 }
0x1759   :  { %v10889_v27 = vpop.f32.mrb[181].mxu0 }
0x175a   :  { %v5880_v32 = vpop.f32.mrb[182].mxu0  ;;  %v13918_v24 = vpop.f32.mrb[180].mxu1 }
0x175b   :  { %v10890_v37 = vpop.f32.mrb[183].mxu0  ;;  %v10895_v42 = vpop.f32.mrb[181].mxu1 }
0x175c   :  { %v5928_v49 = vpop.f32.mrb[182].mxu1 }
0x175d   :  { %v10896_v54 = vpop.f32.mrb[183].mxu1 }
0x1760   :  { %v5975_v2 = vpop.f32.mrb[184].mxu0 }
0x1761   :  { %v6331_v12 = vmul.f32 0.35355338, %v5975_v2  ;;  %v10901_v50 = vpop.f32.mrb[185].mxu0 }
0x1762   :  { %v5978_v58 = vpop.f32.mrb[186].mxu0  ;;  %v6025_v18 = vpop.f32.mrb[184].mxu1 }
0x1763   :  { %v13921_v44 = vadd.f32 %v6331_v12, %v12518_v41  ;;  %v6332_v38 = vmul.f32 0.35355338, %v6025_v18  ;;  %v10902_v47 = vpop.f32.mrb[187].mxu0  ;;  %v10907_v63 = vpop.f32.mrb[185].mxu1 }
0x1764   :  { %v6028_v33 = vpop.f32.mrb[186].mxu1 }
0x1765   :  { %v13924_v16 = vadd.f32 %v6332_v38, %v14981_v35  ;;  %v10908_v13 = vpop.f32.mrb[187].mxu1  ;;  %v6347_v31 = vsel %vm544_vm3, %v13921_v44, -inf }
0x1766   :  { %6348 = vmax.xlane.f32.xlu0 %v6347_v31 }
0x1767   :  { %v6350_v28 = vsel %vm544_vm3, %v13924_v16, -inf }
0x1768   :  { %6351 = vmax.xlane.f32.xlu1 %v6350_v28  ;;  %v6075_v34 = vpop.f32.mrb[188].mxu0 }
0x1769   :  { %v6333_v39 = vmul.f32 0.35355338, %v6075_v34  ;;  %v10913_v23 = vpop.f32.mrb[189].mxu0 }
0x176a   :  { %v6078_v22 = vpop.f32.mrb[190].mxu0  ;;  %v6125_v9 = vpop.f32.mrb[188].mxu1 }
0x176b   :  { %v6341_v43 = vadd.f32 %v6333_v39, %v12529_v3  ;;  %v6334_v15 = vmul.f32 0.35355338, %v6125_v9  ;;  %v10914_v29 = vpop.f32.mrb[191].mxu0  ;;  %v10919_v62 = vpop.f32.mrb[189].mxu1 }
0x176c   :  { %v6128_v10 = vpop.f32.mrb[190].mxu1 }
0x176d   :  { %v6342_v26 = vadd.f32 %v6334_v15, %v14982_v4  ;;  %v10920_v27 = vpop.f32.mrb[191].mxu1  ;;  %v6353_v32 = vsel %vm544_vm3, %v6341_v43, -inf }
0x176e   :  { %6354 = vmax.xlane.f32.xlu0 %v6353_v32 }
0x176f   :  { %v6356_v54 = vsel %vm544_vm3, %v6342_v26, -inf }
0x1770   :  { %v6175_v37 = vpop.f32.mrb[192].mxu0 }
0x1771   :  { %v6335_v42 = vmul.f32 0.35355338, %v6175_v37  ;;  %v10925_v49 = vpop.f32.mrb[193].mxu0 }
0x1772   :  { %v6225_v2 = vpop.f32.mrb[192].mxu1  ;;  %6357 = vmax.xlane.f32.xlu0 %v6356_v54  ;;  %v6178_v12 = vpop.f32.mrb[194].mxu0 }
0x1773   :  { %v6343_v50 = vadd.f32 %v6335_v42, %v14983_v21  ;;  %v6336_v58 = vmul.f32 0.35355338, %v6225_v2  ;;  %v10926_v18 = vpop.f32.mrb[195].mxu0  ;;  %v10931_v38 = vpop.f32.mrb[193].mxu1 }
0x1774   :  { %v6228_v47 = vpop.f32.mrb[194].mxu1  ;;  %v13949_v49 = vpop.permute.xlu1 %6539 }
0x1775   :  { %v6344_v63 = vadd.f32 %v6336_v58, %v12554_v52  ;;  %v10932_v33 = vpop.f32.mrb[195].mxu1  ;;  %v6359_v13 = vsel %vm544_vm3, %v6343_v50, -inf }
0x1776   :  { %6360 = vmax.xlane.f32.xlu1 %v6359_v13 }
0x1777   :  { %v6362_v31 = vsel %vm544_vm3, %v6344_v63, -inf }
0x1778   :  { %6363 = vmax.xlane.f32.xlu0 %v6362_v31  ;;  %v6275_v28 = vpop.f32.mrb[196].mxu0  ;;  %v13951_v54 = vpop.permute.xlu1 %6587 }
0x1779   :  { %v6337_v34 = vmul.f32 0.35355338, %v6275_v28  ;;  %v10937_v39 = vpop.f32.mrb[197].mxu0 }
0x177a   :  { %v6278_v23 = vpop.f32.mrb[198].mxu0  ;;  %v6325_v22 = vpop.f32.mrb[196].mxu1 }
0x177b   :  { %v13939_v9 = vadd.f32 %v6337_v34, %v12559_v6  ;;  %v6338_v15 = vmul.f32 0.35355338, %v6325_v22  ;;  %v10938_v29 = vpop.f32.mrb[199].mxu0  ;;  %v10943_v62 = vpop.f32.mrb[197].mxu1 }
0x177c   :  { %v6328_v10 = vpop.f32.mrb[198].mxu1 }
0x177d   :  { %v6346_v27 = vadd.f32 %v6338_v15, %v12566_v17  ;;  %v10944_v32 = vpop.f32.mrb[199].mxu1  ;;  %v6365_v37 = vsel %vm544_vm3, %v13939_v9, -inf }
0x177e   :  { %6366 = vmax.xlane.f32.xlu1 %v6365_v37 }
0x177f   :  { %v6368_v42 = vsel %vm544_vm3, %v6346_v27, -inf }
0x1780   :  { %6369 = vmax.xlane.f32.xlu0 %v6368_v42 }
0x178f   :  { %6683 = vrot.lane.b32.xlu1 %v13632_v55, %s12068_s22 }
0x1796   :  { %6635 = vrot.lane.b32.xlu0 %v13630_v53, %s12068_s22 }
0x17f3   :  { %v6349_v2 = vpop.xlane.xlu0 %6348 }
0x17f4   :  { %v6371_v12 = vsub.f32 %v13921_v44, %v6349_v2 }
0x17f5   :  { %v6352_v58 = vpop.xlane.xlu1 %6351 }
0x17f6   :  { %v6379_v18 = vmul.f32 1.442695, %v6371_v12  ;;  %v6372_v38 = vsub.f32 %v13924_v16, %v6352_v58 }
0x17f8   :  { %11647 = vpow2.f32 %v6379_v18  ;;  %v6381_v47 = vmul.f32 1.442695, %v6372_v38 }
0x17fa   :  { %11649 = vpow2.f32 %v6381_v47 }
0x17fb   :  { %v6355_v33 = vpop.xlane.xlu0 %6354 }
0x17fc   :  { %v6373_v13 = vsub.f32 %v6341_v43, %v6355_v33 }
0x17fe   :  { %v6383_v31 = vmul.f32 1.442695, %v6373_v13 }
0x17ff   :  { %v6358_v28 = vpop.xlane.xlu0 %6357 }
0x1800   :  { %11651 = vpow2.f32 %v6383_v31  ;;  %v6374_v34 = vsub.f32 %v6342_v26, %v6358_v28 }
0x1802   :  { %v13955_v39 = vpop.eup %11647  ;;  %v6385_v23 = vmul.f32 1.442695, %v6374_v34 }
0x1803   :  { %v6361_v22 = vpop.xlane.xlu1 %6360  ;;  %v6395_v44 = vsel %vm544_vm3, %v13955_v39, 0.0 }
0x1804   :  { %v13959_v15 = vpop.eup %11649  ;;  %11653 = vpow2.f32 %v6385_v23  ;;  %v6375_v16 = vsub.f32 %v6343_v50, %v6361_v22  ;;  %6396 = vadd.xlane.f32.xlu1 %v6395_v44 }
0x1805   :  { %v6364_v29 = vpop.xlane.xlu0 %6363  ;;  %v6398_v43 = vsel %vm544_vm3, %v13959_v15, 0.0 }
0x1806   :  { %v6387_v62 = vmul.f32 1.442695, %v6375_v16  ;;  %v6376_v10 = vsub.f32 %v6344_v63, %v6364_v29  ;;  %6399 = vadd.xlane.f32.xlu0 %v6398_v43 }
0x1808   :  { %11655 = vpow2.f32 %v6387_v62  ;;  %v6389_v26 = vmul.f32 1.442695, %v6376_v10 }
0x180a   :  { %v13963_v32 = vpop.eup %11651  ;;  %11657 = vpow2.f32 %v6389_v26 }
0x180b   :  { %v6401_v37 = vsel %vm544_vm3, %v13963_v32, 0.0  ;;  %v6367_v18 = vpop.xlane.xlu1 %6366 }
0x180c   :  { %6402 = vadd.xlane.f32.xlu1 %v6401_v37  ;;  %v6377_v47 = vsub.f32 %v13939_v9, %v6367_v18 }
0x180d   :  { %v6370_v38 = vpop.xlane.xlu0 %6369 }
0x180e   :  { %v13967_v42 = vpop.eup %11653  ;;  %v6378_v33 = vsub.f32 %v6346_v27, %v6370_v38  ;;  %v6391_v13 = vmul.f32 1.442695, %v6377_v47 }
0x180f   :  { %v6404_v50 = vsel %vm544_vm3, %v13967_v42, 0.0  ;;  %v6684_v9 = vpop.permute.xlu1 %6683 }
0x1810   :  { %6405 = vadd.xlane.f32.xlu0 %v6404_v50  ;;  %v6393_v31 = vmul.f32 1.442695, %v6378_v33  ;;  %11659 = vpow2.f32 %v6391_v13 }
0x1811   :  { %v6636_v27 = vpop.permute.xlu0 %6635 }
0x1812   :  { %v13971_v2 = vpop.eup %11655  ;;  %11661 = vpow2.f32 %v6393_v31  ;;  %v6641_v13 = vsel %vm1099_vm4, %v6636_v27, 0 }
0x1813   :  { %v6407_v63 = vsel %vm544_vm3, %v13971_v2, 0.0 }
0x1814   :  { %v13975_v12 = vpop.eup %11657  ;;  %6408 = vadd.xlane.f32.xlu1 %v6407_v63  ;;  %v6545_v63 = vsel %vm1099_vm4, %v13949_v49, 0 }
0x1815   :  { %v6410_v58 = vsel %vm544_vm3, %v13975_v12, 0.0 }
0x1816   :  { %6411 = vadd.xlane.f32.xlu0 %v6410_v58 }
0x181a   :  { %v13984_v28 = vpop.eup %11659 }
0x181b   :  { %v6413_v23 = vsel %vm544_vm3, %v13984_v28, 0.0 }
0x181c   :  { %v13986_v34 = vpop.eup %11661 }
0x181d   :  { %v6416_v22 = vsel %vm544_vm3, %v13986_v34, 0.0 }
0x1825   :  { %6779 = vrot.lane.b32.xlu1 %v13640_v36, %s12068_s22 }
0x182c   :  { %6731 = vrot.lane.b32.xlu0 %v13636_v48, %s12068_s22 }
0x1849   :  { %6414 = vadd.xlane.f32.xlu1 %v6413_v23 }
0x184b   :  { %6417 = vadd.xlane.f32.xlu0 %v6416_v22 }
0x185a   :  { %6879 = vrot.lane.b32.xlu1 %v13616_v0, %s12069_s1 }
0x185e   :  { %6877 = vrot.lane.b32.xlu1 %v13616_v0, %s12070_s10 }
0x1861   :  { %6829 = vrot.lane.b32.xlu0 %v13614_v60, %s12069_s1 }
0x1862   :  { %6979 = vrot.lane.b32.xlu1 %v13626_v40, %s12069_s1 }
0x1865   :  { %6827 = vrot.lane.b32.xlu0 %v13614_v60, %s12070_s10 }
0x1866   :  { %6977 = vrot.lane.b32.xlu1 %v13626_v40, %s12070_s10 }
0x1869   :  { %6929 = vrot.lane.b32.xlu0 %v13620_v25, %s12069_s1 }
0x186a   :  { %7079 = vrot.lane.b32.xlu1 %v13632_v55, %s12069_s1 }
0x186d   :  { %6927 = vrot.lane.b32.xlu0 %v13620_v25, %s12070_s10 }
0x186e   :  { %7077 = vrot.lane.b32.xlu1 %v13632_v55, %s12070_s10 }
0x1871   :  { %7029 = vrot.lane.b32.xlu0 %v13630_v53, %s12069_s1 }
0x1872   :  { %7179 = vrot.lane.b32.xlu1 %v13640_v36, %s12069_s1 }
0x1875   :  { %7027 = vrot.lane.b32.xlu0 %v13630_v53, %s12070_s10 }
0x1876   :  { %7177 = vrot.lane.b32.xlu1 %v13640_v36, %s12070_s10 }
0x1879   :  { %7129 = vrot.lane.b32.xlu0 %v13636_v48, %s12069_s1 }
0x187a   :  { %7339 = vrot.lane.b32.xlu1 %v13614_v60, %s12071_s25 }
0x187d   :  { %7127 = vrot.lane.b32.xlu0 %v13636_v48, %s12070_s10 }
0x187e   :  { %7435 = vrot.lane.b32.xlu1 %v13620_v25, %s12071_s25 }
0x1881   :  { %7387 = vrot.lane.b32.xlu0 %v13616_v0, %s12071_s25 }
0x1882   :  { %7483 = vrot.lane.b32.xlu1 %v13626_v40, %s12071_s25 }
0x1891   :  { %v6397_v44 = vpop.xlane.xlu1 %6396 }
0x1892   :  { %11663 = vrcp.f32 %v6397_v44 }
0x1893   :  { %v6400_v16 = vpop.xlane.xlu0 %6399 }
0x1894   :  { %11665 = vrcp.f32 %v6400_v16 }
0x1899   :  { %v6403_v29 = vpop.xlane.xlu1 %6402 }
0x189a   :  { %11667 = vrcp.f32 %v6403_v29 }
0x189c   :  { %v11664_v43 = vpop.eup %11663 }
0x189d   :  { %v6406_v62 = vpop.xlane.xlu0 %6405  ;;  %v6427_v10 = vmul.f32 %v11664_v43, %v13955_v39  ;;  %v6593_v39 = vsel %vm1099_vm4, %v13951_v54, 0 }
0x189e   :  { %v11666_v26 = vpop.eup %11665  ;;  %11669 = vrcp.f32 %v6406_v62 }
0x189f   :  { %v6435_v37 = vpack.c.bf16 %v6427_v10, %v6427_v10  ;;  %v6428_v50 = vmul.f32 %v11666_v26, %v13959_v15 }
0x18a1   :  { %10948 = vmatmul.mubr.msk.bf16.vlgmr.msra.gmra.mrb[200].mxu0 %vm544_vm3, %v6435_v37  ;;  %v6409_v58 = vpop.xlane.xlu1 %6408  ;;  %v6436_v18 = vpack.c.bf16 %v6428_v50, %v6428_v50 }
0x18a2   :  { %10958 = vmatpush3.bf16.msra.mxu0 %v6545_v63  ;;  %11671 = vrcp.f32 %v6409_v58  ;;  %10959 = vmatprep.mubr.msk.bf16.mxu0 %vm12063_vm2, %v14970_v5 }
0x18a3   :  { %10954 = vmatmul.mubr.msk.bf16.vlgmr.msra.gmra.mrb[200].mxu1 %vm544_vm3, %v6436_v18  ;;  %v6412_v38 = vpop.xlane.xlu0 %6411  ;;  %10969 = vmatprep.subr.bf16.mxu0 %v14970_v5 }
0x18a4   :  { %v11668_v15 = vpop.eup %11667  ;;  %10964 = vmatpush3.bf16.msra.mxu1 %v6593_v39  ;;  %11673 = vrcp.f32 %v6412_v38  ;;  %10965 = vmatprep.mubr.msk.bf16.mxu1 %vm12063_vm2, %v14970_v5 }
0x18a5   :  { %v6429_v49 = vmul.f32 %v11668_v15, %v13963_v32  ;;  %10975 = vmatprep.subr.bf16.mxu1 %v14970_v5  ;;  %v6689_v32 = vsel %vm1099_vm4, %v6684_v9, 0  ;;  %v6780_v9 = vpop.permute.xlu1 %6779 }
0x18a6   :  { %v6785_v43 = vsel %vm1099_vm4, %v6780_v9, 0 }
0x18a7   :  { %v6437_v47 = vpack.c.bf16 %v6429_v49, %v6429_v49  ;;  %v6732_v27 = vpop.permute.xlu0 %6731 }
0x18a8   :  { %v11670_v33 = vpop.eup %11669  ;;  %v6737_v29 = vsel %vm1099_vm4, %v6732_v27, 0 }
0x18a9   :  { %10960 = vmatmul.mubr.msk.bf16.vlgmr.msra.gmra.mrb[204].mxu0 %vm544_vm3, %v6437_v47  ;;  %v6430_v54 = vmul.f32 %v11670_v33, %v13967_v42 }
0x18aa   :  { %10970 = vmatpush3.bf16.msra.mxu0 %v6641_v13  ;;  %10971 = vmatprep.mubr.msk.bf16.mxu0 %vm12063_vm2, %v14970_v5 }
0x18ab   :  { %v6438_v31 = vpack.c.bf16 %v6430_v54, %v6430_v54  ;;  %10981 = vmatprep.subr.bf16.mxu0 %v14970_v5 }
0x18ac   :  { %v11672_v23 = vpop.eup %11671 }
0x18ad   :  { %10966 = vmatmul.mubr.msk.bf16.vlgmr.msra.gmra.mrb[204].mxu1 %vm544_vm3, %v6438_v31  ;;  %v6431_v22 = vmul.f32 %v11672_v23, %v13971_v2 }
0x18ae   :  { %v11674_v44 = vpop.eup %11673  ;;  %10976 = vmatpush3.bf16.msra.mxu1 %v6689_v32  ;;  %10977 = vmatprep.mubr.msk.bf16.mxu1 %vm12063_vm2, %v14970_v5 }
0x18af   :  { %v6439_v42 = vpack.c.bf16 %v6431_v22, %v6431_v22  ;;  %10987 = vmatprep.subr.bf16.mxu1 %v14970_v5  ;;  %v6432_v16 = vmul.f32 %v11674_v44, %v13975_v12 }
0x18b1   :  { %10972 = vmatmul.mubr.msk.bf16.vlgmr.msra.gmra.mrb[208].mxu0 %vm544_vm3, %v6439_v42  ;;  %v6440_v2 = vpack.c.bf16 %v6432_v16, %v6432_v16 }
0x18b2   :  { %10982 = vmatpush3.bf16.msra.mxu0 %v6737_v29  ;;  %10983 = vmatprep.mubr.msk.bf16.mxu0 %vm12063_vm2, %v14970_v5 }
0x18b3   :  { %10993 = vmatprep.subr.bf16.mxu0 %v14970_v5 }
0x18b5   :  { %10978 = vmatmul.mubr.msk.bf16.vlgmr.msra.gmra.mrb[208].mxu1 %vm544_vm3, %v6440_v2 }
0x18b6   :  { %10988 = vmatpush3.bf16.msra.mxu1 %v6785_v43  ;;  %10989 = vmatprep.mubr.msk.bf16.mxu1 %vm12063_vm2, %v14970_v5 }
0x18b7   :  { %10999 = vmatprep.subr.bf16.mxu1 %v14970_v5 }
0x18d6   :  { %v6415_v12 = vpop.xlane.xlu1 %6414 }
0x18d7   :  { %11675 = vrcp.f32 %v6415_v12 }
0x18d8   :  { %v6418_v62 = vpop.xlane.xlu0 %6417 }
0x18d9   :  { %11677 = vrcp.f32 %v6418_v62 }
0x18da   :  { %v6880_v10 = vpop.permute.xlu1 %6879 }
0x18db   :  { %v6885_v54 = vsel %vm544_vm3, %v6880_v10, 0 }
0x18dc   :  { %v6830_v26 = vpop.permute.xlu0 %6829 }
0x18dd   :  { %v6835_v47 = vsel %vm544_vm3, %v6830_v26, 0 }
0x18de   :  { %v6878_v37 = vpop.permute.xlu1 %6877 }
0x18e0   :  { %v6828_v50 = vpop.permute.xlu0 %6827 }
0x18e1   :  { %v11676_v63 = vpop.eup %11675 }
0x18e2   :  { %v6980_v58 = vpop.permute.xlu1 %6979  ;;  %v6433_v18 = vmul.f32 %v11676_v63, %v13984_v28 }
0x18e3   :  { %v11678_v39 = vpop.eup %11677  ;;  %v6985_v32 = vsel %vm544_vm3, %v6980_v58, 0 }
0x18e4   :  { %v6930_v38 = vpop.permute.xlu0 %6929  ;;  %v6441_v15 = vpack.c.bf16 %v6433_v18, %v6433_v18  ;;  %v6434_v49 = vmul.f32 %v11678_v39, %v13986_v34 }
0x18e5   :  { %v6935_v23 = vsel %vm544_vm3, %v6930_v38, 0 }
0x18e6   :  { %v6978_v33 = vpop.permute.xlu1 %6977  ;;  %10984 = vmatmul.mubr.msk.bf16.vlgmr.msra.gmra.mrb[212].mxu0 %vm544_vm3, %v6441_v15  ;;  %v6442_v13 = vpack.c.bf16 %v6434_v49, %v6434_v49 }
0x18e7   :  { %10994 = vmatpush3.bf16.xpose.msra.mxu0 %v6835_v47  ;;  %10995 = vmatprep.mubr.msk.bf16.mxu0 %vm12063_vm2, %v14970_v5 }
0x18e8   :  { %10990 = vmatmul.mubr.msk.bf16.vlgmr.msra.gmra.mrb[212].mxu1 %vm544_vm3, %v6442_v13  ;;  %v6928_v28 = vpop.permute.xlu0 %6927  ;;  %11005 = vmatprep.subr.bf16.mxu0 %v14970_v5 }
0x18e9   :  { %11000 = vmatpush3.bf16.xpose.msra.mxu1 %v6885_v54  ;;  %11001 = vmatprep.mubr.msk.bf16.mxu1 %vm12063_vm2, %v14970_v5 }
0x18ea   :  { %11011 = vmatprep.subr.bf16.mxu1 %v14970_v5  ;;  %v7080_v34 = vpop.permute.xlu1 %7079 }
0x18eb   :  { %v7085_v16 = vsel %vm544_vm3, %v7080_v34, 0 }
0x18ec   :  { %v7030_v31 = vpop.permute.xlu0 %7029 }
0x18ed   :  { %v7035_v27 = vsel %vm544_vm3, %v7030_v31, 0 }
0x18ee   :  { %10996 = vmatmul.mubr.msk.bf16.vlgmr.msra.gmra.mrb[216].mxu0 %vm544_vm3, %v6828_v50  ;;  %v7078_v22 = vpop.permute.xlu1 %7077 }
0x18ef   :  { %11006 = vmatpush3.bf16.xpose.msra.mxu0 %v6935_v23  ;;  %11007 = vmatprep.mubr.msk.bf16.mxu0 %vm12063_vm2, %v14970_v5 }
0x18f0   :  { %11002 = vmatmul.mubr.msk.bf16.vlgmr.msra.gmra.mrb[216].mxu1 %vm544_vm3, %v6878_v37  ;;  %11017 = vmatprep.subr.bf16.mxu0 %v14970_v5  ;;  %v7028_v44 = vpop.permute.xlu0 %7027 }
0x18f1   :  { %11012 = vmatpush3.bf16.xpose.msra.mxu1 %v6985_v32  ;;  %11013 = vmatprep.mubr.msk.bf16.mxu1 %vm12063_vm2, %v14970_v5 }
0x18f2   :  { %11023 = vmatprep.subr.bf16.mxu1 %v14970_v5  ;;  %v7180_v42 = vpop.permute.xlu1 %7179 }
0x18f3   :  { %v7185_v12 = vsel %vm544_vm3, %v7180_v42, 0 }
0x18f4   :  { %v7130_v29 = vpop.permute.xlu0 %7129 }
0x18f5   :  { %v7135_v2 = vsel %vm544_vm3, %v7130_v29, 0 }
0x18f6   :  { %11008 = vmatmul.mubr.msk.bf16.vlgmr.msra.gmra.mrb[220].mxu0 %vm544_vm3, %v6928_v28  ;;  %v7178_v9 = vpop.permute.xlu1 %7177 }
0x18f7   :  { %11018 = vmatpush3.bf16.xpose.msra.mxu0 %v7035_v27  ;;  %11019 = vmatprep.mubr.msk.bf16.mxu0 %vm12063_vm2, %v14970_v5 }
0x18f8   :  { %11014 = vmatmul.mubr.msk.bf16.vlgmr.msra.gmra.mrb[220].mxu1 %vm544_vm3, %v6978_v33  ;;  %11029 = vmatprep.subr.bf16.mxu0 %v14970_v5  ;;  %v7128_v43 = vpop.permute.xlu0 %7127 }
0x18f9   :  { %11024 = vmatpush3.bf16.xpose.msra.mxu1 %v7085_v16  ;;  %11025 = vmatprep.mubr.msk.bf16.mxu1 %vm12063_vm2, %v14970_v5 }
0x18fa   :  { %11035 = vmatprep.subr.bf16.mxu1 %v14970_v5  ;;  %v7340_v62 = vpop.permute.xlu1 %7339 }
0x18fb   :  { %v7345_v26 = vsel %vm1099_vm4, %v7340_v62, 0 }
0x18fc   :  { %v7388_v10 = vpop.permute.xlu0 %7387 }
0x18fd   :  { %v7393_v37 = vsel %vm1099_vm4, %v7388_v10, 0 }
0x18fe   :  { %11020 = vmatmul.mubr.msk.bf16.vlgmr.msra.gmra.mrb[224].mxu0 %vm544_vm3, %v7028_v44 }
0x18ff   :  { %11030 = vmatpush3.bf16.xpose.msra.mxu0 %v7135_v2  ;;  %11031 = vmatprep.mubr.msk.bf16.mxu0 %vm12063_vm2, %v14970_v5 }
0x1900   :  { %11026 = vmatmul.mubr.msk.bf16.vlgmr.msra.gmra.mrb[224].mxu1 %vm544_vm3, %v7078_v22  ;;  %11041 = vmatprep.subr.bf16.mxu0 %v14970_v5 }
0x1901   :  { %11036 = vmatpush3.bf16.xpose.msra.mxu1 %v7185_v12  ;;  %11037 = vmatprep.mubr.msk.bf16.mxu1 %vm12063_vm2, %v14970_v5 }
0x1902   :  { %11047 = vmatprep.subr.bf16.mxu1 %v14970_v5 }
0x1906   :  { %11032 = vmatmul.mubr.msk.bf16.vlgmr.msra.gmra.mrb[228].mxu0 %vm544_vm3, %v7128_v43 }
0x1907   :  { %11042 = vmatpush3.bf16.msra.mxu0 %v7345_v26  ;;  %11043 = vmatprep.mubr.msk.bf16.mxu0 %vm12063_vm2, %v14970_v5 }
0x1908   :  { %11038 = vmatmul.mubr.msk.bf16.vlgmr.msra.gmra.mrb[228].mxu1 %vm544_vm3, %v7178_v9  ;;  %11053 = vmatprep.subr.bf16.mxu0 %v14970_v5 }
0x1909   :  { %11048 = vmatpush3.bf16.msra.mxu1 %v7393_v37  ;;  %11049 = vmatprep.mubr.msk.bf16.mxu1 %vm12063_vm2, %v14970_v5 }
0x190a   :  { %11059 = vmatprep.subr.bf16.mxu1 %v14970_v5 }
0x1974   :  { %v14122_v50 = vpop.f32.mrb[200].mxu0 }
0x1975   :  { %v10949_v63 = vpop.f32.mrb[201].mxu0 }
0x1976   :  { %v6488_v58 = vpop.f32.mrb[202].mxu0  ;;  %v14124_v18 = vpop.f32.mrb[200].mxu1 }
0x1977   :  { %v10950_v38 = vpop.f32.mrb[203].mxu0  ;;  %v10955_v15 = vpop.f32.mrb[201].mxu1 }
0x1978   :  { %v6536_v49 = vpop.f32.mrb[202].mxu1 }
0x1979   :  { %v10956_v47 = vpop.f32.mrb[203].mxu1 }
0x197c   :  { %v14128_v33 = vpop.f32.mrb[204].mxu0 }
0x197d   :  { %v10961_v13 = vpop.f32.mrb[205].mxu0 }
0x197e   :  { %v6584_v54 = vpop.f32.mrb[206].mxu0 }
0x197f   :  { %v10962_v28 = vpop.f32.mrb[207].mxu0 }
0x1980   :  { %v14130_v34 = vpop.f32.mrb[204].mxu1 }
0x1981   :  { %v10967_v23 = vpop.f32.mrb[205].mxu1 }
0x1982   :  { %v6632_v32 = vpop.f32.mrb[206].mxu1 }
0x1983   :  { %v10968_v22 = vpop.f32.mrb[207].mxu1 }
0x1984   :  { %v14134_v44 = vpop.f32.mrb[208].mxu0 }
0x1985   :  { %v10973_v27 = vpop.f32.mrb[209].mxu0 }
0x1986   :  { %v6680_v42 = vpop.f32.mrb[210].mxu0 }
0x1987   :  { %v10974_v16 = vpop.f32.mrb[211].mxu0 }
0x1988   :  { %v14136_v29 = vpop.f32.mrb[208].mxu1 }
0x1989   :  { %v10979_v2 = vpop.f32.mrb[209].mxu1 }
0x198a   :  { %v6728_v43 = vpop.f32.mrb[210].mxu1 }
0x198b   :  { %v10980_v12 = vpop.f32.mrb[211].mxu1 }
0x19b9   :  { %v14140_v62 = vpop.f32.mrb[212].mxu0 }
0x19ba   :  { %v10985_v10 = vpop.f32.mrb[213].mxu0 }
0x19bb   :  { %v6776_v26 = vpop.f32.mrb[214].mxu0  ;;  %v14142_v37 = vpop.f32.mrb[212].mxu1 }
0x19bc   :  { %v10986_v58 = vpop.f32.mrb[215].mxu0  ;;  %v10991_v38 = vpop.f32.mrb[213].mxu1 }
0x19bd   :  { %v6824_v15 = vpop.f32.mrb[214].mxu1 }
0x19be   :  { %v10992_v49 = vpop.f32.mrb[215].mxu1 }
0x19c1   :  { %v6871_v47 = vpop.f32.mrb[216].mxu0 }
0x19c2   :  { %v7227_v13 = vmul.f32 0.35355338, %v6871_v47  ;;  %v10997_v54 = vpop.f32.mrb[217].mxu0 }
0x19c3   :  { %v6874_v28 = vpop.f32.mrb[218].mxu0  ;;  %v6921_v23 = vpop.f32.mrb[216].mxu1 }
0x19c4   :  { %v14147_v32 = vadd.f32 %v7227_v13, %v12518_v41  ;;  %v7228_v22 = vmul.f32 0.35355338, %v6921_v23  ;;  %v10998_v27 = vpop.f32.mrb[219].mxu0  ;;  %v11003_v42 = vpop.f32.mrb[217].mxu1 }
0x19c5   :  { %v6924_v16 = vpop.f32.mrb[218].mxu1 }
0x19c6   :  { %v14150_v2 = vadd.f32 %v7228_v22, %v14981_v35  ;;  %v11004_v43 = vpop.f32.mrb[219].mxu1  ;;  %v7243_v12 = vsel %vm544_vm3, %v14147_v32, -inf }
0x19c7   :  { %7244 = vmax.xlane.f32.xlu0 %v7243_v12 }
0x19c8   :  { %v7246_v10 = vsel %vm544_vm3, %v14150_v2, -inf }
0x19c9   :  { %7247 = vmax.xlane.f32.xlu1 %v7246_v10  ;;  %v6971_v26 = vpop.f32.mrb[220].mxu0 }
0x19ca   :  { %v7229_v58 = vmul.f32 0.35355338, %v6971_v26  ;;  %v11009_v38 = vpop.f32.mrb[221].mxu0 }
0x19cb   :  { %v6974_v15 = vpop.f32.mrb[222].mxu0  ;;  %v7021_v49 = vpop.f32.mrb[220].mxu1 }
0x19cc   :  { %v7237_v47 = vadd.f32 %v7229_v58, %v12529_v3  ;;  %v7230_v13 = vmul.f32 0.35355338, %v7021_v49  ;;  %v11010_v54 = vpop.f32.mrb[223].mxu0  ;;  %v11015_v28 = vpop.f32.mrb[221].mxu1 }
0x19cd   :  { %v7024_v23 = vpop.f32.mrb[222].mxu1 }
0x19ce   :  { %v7238_v22 = vadd.f32 %v7230_v13, %v14982_v4  ;;  %v11016_v27 = vpop.f32.mrb[223].mxu1  ;;  %v7249_v42 = vsel %vm544_vm3, %v7237_v47, -inf }
0x19cf   :  { %7250 = vmax.xlane.f32.xlu0 %v7249_v42 }
0x19d0   :  { %v7252_v10 = vsel %vm544_vm3, %v7238_v22, -inf }
0x19d1   :  { %v7071_v16 = vpop.f32.mrb[224].mxu0 }
0x19d2   :  { %v7231_v43 = vmul.f32 0.35355338, %v7071_v16  ;;  %v11021_v12 = vpop.f32.mrb[225].mxu0 }
0x19d3   :  { %v7121_v26 = vpop.f32.mrb[224].mxu1  ;;  %7253 = vmax.xlane.f32.xlu0 %v7252_v10  ;;  %v7074_v38 = vpop.f32.mrb[226].mxu0 }
0x19d4   :  { %v7239_v58 = vadd.f32 %v7231_v43, %v14983_v21  ;;  %v7232_v15 = vmul.f32 0.35355338, %v7121_v26  ;;  %v11022_v49 = vpop.f32.mrb[227].mxu0  ;;  %v11027_v54 = vpop.f32.mrb[225].mxu1 }
0x19d5   :  { %v7124_v28 = vpop.f32.mrb[226].mxu1 }
0x19d6   :  { %v7240_v13 = vadd.f32 %v7232_v15, %v12554_v52  ;;  %v11028_v23 = vpop.f32.mrb[227].mxu1  ;;  %v7255_v27 = vsel %vm544_vm3, %v7239_v58, -inf }
0x19d7   :  { %7256 = vmax.xlane.f32.xlu1 %v7255_v27 }
0x19d8   :  { %v7258_v42 = vsel %vm544_vm3, %v7240_v13, -inf }
0x19d9   :  { %7259 = vmax.xlane.f32.xlu0 %v7258_v42  ;;  %v7171_v16 = vpop.f32.mrb[228].mxu0 }
0x19da   :  { %v7233_v12 = vmul.f32 0.35355338, %v7171_v16  ;;  %v11033_v9 = vpop.f32.mrb[229].mxu0 }
0x19db   :  { %v7174_v10 = vpop.f32.mrb[230].mxu0  ;;  %v7221_v38 = vpop.f32.mrb[228].mxu1 }
0x19dc   :  { %v14165_v43 = vadd.f32 %v7233_v12, %v12559_v6  ;;  %v7234_v26 = vmul.f32 0.35355338, %v7221_v38  ;;  %v11034_v49 = vpop.f32.mrb[231].mxu0  ;;  %v11039_v54 = vpop.f32.mrb[229].mxu1 }
0x19dd   :  { %v7224_v28 = vpop.f32.mrb[230].mxu1  ;;  %v14175_v9 = vpop.permute.xlu1 %7435 }
0x19de   :  { %v7242_v15 = vadd.f32 %v7234_v26, %v12566_v17  ;;  %v11040_v23 = vpop.f32.mrb[231].mxu1  ;;  %v7261_v27 = vsel %vm544_vm3, %v14165_v43, -inf }
0x19df   :  { %7262 = vmax.xlane.f32.xlu1 %v7261_v27 }
0x19e0   :  { %v7264_v42 = vsel %vm544_vm3, %v7242_v15, -inf }
0x19e1   :  { %7265 = vmax.xlane.f32.xlu0 %v7264_v42  ;;  %v14177_v16 = vpop.permute.xlu1 %7483 }
0x19f0   :  { %7579 = vrot.lane.b32.xlu1 %v13632_v55, %s12071_s25 }
0x19f7   :  { %7531 = vrot.lane.b32.xlu0 %v13630_v53, %s12071_s25 }
0x1a54   :  { %v7245_v12 = vpop.xlane.xlu0 %7244 }
0x1a55   :  { %v7267_v10 = vsub.f32 %v14147_v32, %v7245_v12 }
0x1a56   :  { %v7248_v38 = vpop.xlane.xlu1 %7247 }
0x1a57   :  { %v7275_v26 = vmul.f32 1.442695, %v7267_v10  ;;  %v7268_v49 = vsub.f32 %v14150_v2, %v7248_v38 }
0x1a59   :  { %11679 = vpow2.f32 %v7275_v26  ;;  %v7277_v54 = vmul.f32 1.442695, %v7268_v49 }
0x1a5b   :  { %11681 = vpow2.f32 %v7277_v54 }
0x1a5c   :  { %v7251_v28 = vpop.xlane.xlu0 %7250 }
0x1a5d   :  { %v7269_v23 = vsub.f32 %v7237_v47, %v7251_v28 }
0x1a5f   :  { %v7279_v27 = vmul.f32 1.442695, %v7269_v23 }
0x1a60   :  { %v7254_v42 = vpop.xlane.xlu0 %7253 }
0x1a61   :  { %11683 = vpow2.f32 %v7279_v27  ;;  %v7270_v39 = vsub.f32 %v7238_v22, %v7254_v42 }
0x1a63   :  { %v14181_v63 = vpop.eup %11679  ;;  %v7281_v31 = vmul.f32 1.442695, %v7270_v39 }
0x1a64   :  { %v7257_v14 = vpop.xlane.xlu1 %7256  ;;  %v7291_v32 = vsel %vm544_vm3, %v14181_v63, 0.0 }
0x1a65   :  { %v14185_v12 = vpop.eup %11681  ;;  %11685 = vpow2.f32 %v7281_v31  ;;  %v7271_v2 = vsub.f32 %v7239_v58, %v7257_v14  ;;  %7292 = vadd.xlane.f32.xlu1 %v7291_v32 }
0x1a66   :  { %v7260_v10 = vpop.xlane.xlu0 %7259  ;;  %v7294_v47 = vsel %vm544_vm3, %v14185_v12, 0.0 }
0x1a67   :  { %v7283_v38 = vmul.f32 1.442695, %v7271_v2  ;;  %v7272_v26 = vsub.f32 %v7240_v13, %v7260_v10  ;;  %7295 = vadd.xlane.f32.xlu0 %v7294_v47 }
0x1a69   :  { %11687 = vpow2.f32 %v7283_v38  ;;  %v7285_v22 = vmul.f32 1.442695, %v7272_v26 }
0x1a6b   :  { %v14189_v49 = vpop.eup %11683  ;;  %11689 = vpow2.f32 %v7285_v22 }
0x1a6c   :  { %v7297_v39 = vsel %vm544_vm3, %v14189_v49, 0.0  ;;  %v7263_v23 = vpop.xlane.xlu1 %7262 }
0x1a6d   :  { %7298 = vadd.xlane.f32.xlu1 %v7297_v39  ;;  %v7273_v42 = vsub.f32 %v14165_v43, %v7263_v23 }
0x1a6e   :  { %v7266_v27 = vpop.xlane.xlu0 %7265 }
0x1a6f   :  { %v14193_v54 = vpop.eup %11685  ;;  %v7274_v32 = vsub.f32 %v7242_v15, %v7266_v27  ;;  %v7287_v2 = vmul.f32 1.442695, %v7273_v42 }
0x1a70   :  { %v7300_v14 = vsel %vm544_vm3, %v14193_v54, 0.0  ;;  %v7580_v43 = vpop.permute.xlu1 %7579 }
0x1a71   :  { %7301 = vadd.xlane.f32.xlu0 %v7300_v14  ;;  %v7289_v10 = vmul.f32 1.442695, %v7274_v32  ;;  %11691 = vpow2.f32 %v7287_v2  ;;  %v7441_v2 = vsel %vm1099_vm4, %v14175_v9, 0 }
0x1a72   :  { %v7532_v15 = vpop.permute.xlu0 %7531 }
0x1a73   :  { %v14197_v31 = vpop.eup %11687  ;;  %11693 = vpow2.f32 %v7289_v10 }
0x1a74   :  { %v7303_v58 = vsel %vm544_vm3, %v14197_v31, 0.0 }
0x1a75   :  { %v14201_v13 = vpop.eup %11689  ;;  %7304 = vadd.xlane.f32.xlu1 %v7303_v58 }
0x1a76   :  { %v7306_v28 = vsel %vm544_vm3, %v14201_v13, 0.0 }
0x1a77   :  { %7307 = vadd.xlane.f32.xlu0 %v7306_v28 }
0x1a7b   :  { %v14210_v47 = vpop.eup %11691 }
0x1a7c   :  { %v7309_v26 = vsel %vm544_vm3, %v14210_v47, 0.0 }
0x1a7d   :  { %v14212_v38 = vpop.eup %11693 }
0x1a7e   :  { %v7312_v22 = vsel %vm544_vm3, %v14212_v38, 0.0 }
0x1a86   :  { %7675 = vrot.lane.b32.xlu1 %v13640_v36, %s12071_s25 }
0x1a8d   :  { %7627 = vrot.lane.b32.xlu0 %v13636_v48, %s12071_s25 }
0x1aaa   :  { %7310 = vadd.xlane.f32.xlu1 %v7309_v26 }
0x1aac   :  { %7313 = vadd.xlane.f32.xlu0 %v7312_v22 }
0x1abb   :  { %7775 = vrot.lane.b32.xlu1 %v13616_v0, %s12072_s3 }
0x1abf   :  { %7773 = vrot.lane.b32.xlu1 %v13616_v0, %s12073_s29 }
0x1ac2   :  { %7725 = vrot.lane.b32.xlu0 %v13614_v60, %s12072_s3 }
0x1ac3   :  { %7875 = vrot.lane.b32.xlu1 %v13626_v40, %s12072_s3 }
0x1ac6   :  { %7723 = vrot.lane.b32.xlu0 %v13614_v60, %s12073_s29 }
0x1ac7   :  { %7873 = vrot.lane.b32.xlu1 %v13626_v40, %s12073_s29 }
0x1aca   :  { %7825 = vrot.lane.b32.xlu0 %v13620_v25, %s12072_s3 }
0x1acb   :  { %7975 = vrot.lane.b32.xlu1 %v13632_v55, %s12072_s3 }
0x1ace   :  { %7823 = vrot.lane.b32.xlu0 %v13620_v25, %s12073_s29 }
0x1acf   :  { %7973 = vrot.lane.b32.xlu1 %v13632_v55, %s12073_s29 }
0x1ad2   :  { %7925 = vrot.lane.b32.xlu0 %v13630_v53, %s12072_s3 }
0x1ad3   :  { %8075 = vrot.lane.b32.xlu1 %v13640_v36, %s12072_s3 }
0x1ad6   :  { %7923 = vrot.lane.b32.xlu0 %v13630_v53, %s12073_s29 }
0x1ad7   :  { %8073 = vrot.lane.b32.xlu1 %v13640_v36, %s12073_s29 }
0x1ada   :  { %8025 = vrot.lane.b32.xlu0 %v13636_v48, %s12072_s3 }
0x1adb   :  { %8235 = vrot.lane.b32.xlu1 %v13614_v60, %s12074_s8 }
0x1ade   :  { %8023 = vrot.lane.b32.xlu0 %v13636_v48, %s12073_s29 }
0x1af2   :  { %v7293_v39 = vpop.xlane.xlu1 %7292 }
0x1af3   :  { %11695 = vrcp.f32 %v7293_v39 }
0x1af4   :  { %v7296_v14 = vpop.xlane.xlu0 %7295 }
0x1af5   :  { %11697 = vrcp.f32 %v7296_v14 }
0x1afa   :  { %v7299_v58 = vpop.xlane.xlu1 %7298 }
0x1afb   :  { %11699 = vrcp.f32 %v7299_v58  ;;  %v7537_v58 = vsel %vm1099_vm4, %v7532_v15, 0 }
0x1afd   :  { %v11696_v28 = vpop.eup %11695 }
0x1afe   :  { %v7302_v23 = vpop.xlane.xlu0 %7301  ;;  %v7323_v27 = vmul.f32 %v11696_v28, %v14181_v63  ;;  %v7489_v63 = vsel %vm1099_vm4, %v14177_v16, 0 }
0x1aff   :  { %v11698_v42 = vpop.eup %11697  ;;  %11701 = vrcp.f32 %v7302_v23 }
0x1b00   :  { %v7331_v32 = vpack.c.bf16 %v7323_v27, %v7323_v27  ;;  %v7324_v60 = vmul.f32 %v11698_v42, %v14185_v12 }
0x1b02   :  { %11044 = vmatmul.mubr.msk.bf16.vlgmr.msra.gmra.mrb[232].mxu0 %vm544_vm3, %v7331_v32  ;;  %v7305_v10 = vpop.xlane.xlu1 %7304  ;;  %v7332_v26 = vpack.c.bf16 %v7324_v60, %v7324_v60 }
0x1b03   :  { %11054 = vmatpush3.bf16.msra.mxu0 %v7441_v2  ;;  %11703 = vrcp.f32 %v7305_v10  ;;  %11055 = vmatprep.mubr.msk.bf16.mxu0 %vm12063_vm2, %v14970_v5 }
0x1b04   :  { %11050 = vmatmul.mubr.msk.bf16.vlgmr.msra.gmra.mrb[232].mxu1 %vm544_vm3, %v7332_v26  ;;  %v7308_v22 = vpop.xlane.xlu0 %7307  ;;  %11065 = vmatprep.subr.bf16.mxu0 %v14970_v5 }
0x1b05   :  { %v11700_v12 = vpop.eup %11699  ;;  %11060 = vmatpush3.bf16.msra.mxu1 %v7489_v63  ;;  %11705 = vrcp.f32 %v7308_v22  ;;  %11061 = vmatprep.mubr.msk.bf16.mxu1 %vm12063_vm2, %v14970_v5 }
0x1b06   :  { %v7325_v9 = vmul.f32 %v11700_v12, %v14189_v49  ;;  %11071 = vmatprep.subr.bf16.mxu1 %v14970_v5  ;;  %v7585_v49 = vsel %vm1099_vm4, %v7580_v43, 0  ;;  %v7676_v43 = vpop.permute.xlu1 %7675 }
0x1b07   :  { %v7681_v2 = vsel %vm1099_vm4, %v7676_v43, 0 }
0x1b08   :  { %v7333_v39 = vpack.c.bf16 %v7325_v9, %v7325_v9  ;;  %v7628_v15 = vpop.permute.xlu0 %7627 }
0x1b09   :  { %v11702_v14 = vpop.eup %11701  ;;  %v7633_v60 = vsel %vm1099_vm4, %v7628_v15, 0 }
0x1b0a   :  { %11056 = vmatmul.mubr.msk.bf16.vlgmr.msra.gmra.mrb[236].mxu0 %vm544_vm3, %v7333_v39  ;;  %v7326_v16 = vmul.f32 %v11702_v14, %v14193_v54 }
0x1b0b   :  { %11066 = vmatpush3.bf16.msra.mxu0 %v7537_v58  ;;  %11067 = vmatprep.mubr.msk.bf16.mxu0 %vm12063_vm2, %v14970_v5 }
0x1b0c   :  { %v7334_v28 = vpack.c.bf16 %v7326_v16, %v7326_v16  ;;  %11077 = vmatprep.subr.bf16.mxu0 %v14970_v5 }
0x1b0d   :  { %v11704_v23 = vpop.eup %11703 }
0x1b0e   :  { %v7327_v27 = vmul.f32 %v11704_v23, %v14197_v31  ;;  %11062 = vmatmul.mubr.msk.bf16.vlgmr.msra.gmra.mrb[236].mxu1 %vm544_vm3, %v7334_v28 }
0x1b0f   :  { %v11706_v42 = vpop.eup %11705  ;;  %11072 = vmatpush3.bf16.msra.mxu1 %v7585_v49  ;;  %11073 = vmatprep.mubr.msk.bf16.mxu1 %vm12063_vm2, %v14970_v5 }
0x1b10   :  { %v7328_v54 = vmul.f32 %v11706_v42, %v14201_v13  ;;  %v7335_v32 = vpack.c.bf16 %v7327_v27, %v7327_v27  ;;  %11083 = vmatprep.subr.bf16.mxu1 %v14970_v5 }
0x1b12   :  { %11068 = vmatmul.mubr.msk.bf16.vlgmr.msra.gmra.mrb[240].mxu0 %vm544_vm3, %v7335_v32  ;;  %v7336_v31 = vpack.c.bf16 %v7328_v54, %v7328_v54 }
0x1b13   :  { %11078 = vmatpush3.bf16.msra.mxu0 %v7633_v60  ;;  %11079 = vmatprep.mubr.msk.bf16.mxu0 %vm12063_vm2, %v14970_v5 }
0x1b14   :  { %11089 = vmatprep.subr.bf16.mxu0 %v14970_v5 }
0x1b16   :  { %11074 = vmatmul.mubr.msk.bf16.vlgmr.msra.gmra.mrb[240].mxu1 %vm544_vm3, %v7336_v31 }
0x1b17   :  { %11084 = vmatpush3.bf16.msra.mxu1 %v7681_v2  ;;  %11085 = vmatprep.mubr.msk.bf16.mxu1 %vm12063_vm2, %v14970_v5 }
0x1b18   :  { %11095 = vmatprep.subr.bf16.mxu1 %v14970_v5 }
0x1b37   :  { %v7311_v13 = vpop.xlane.xlu1 %7310 }
0x1b38   :  { %11707 = vrcp.f32 %v7311_v13 }
0x1b39   :  { %v7314_v10 = vpop.xlane.xlu0 %7313 }
0x1b3a   :  { %11709 = vrcp.f32 %v7314_v10 }
0x1b3b   :  { %v7776_v26 = vpop.permute.xlu1 %7775 }
0x1b3c   :  { %v7781_v15 = vsel %vm544_vm3, %v7776_v26, 0 }
0x1b3d   :  { %v7726_v63 = vpop.permute.xlu0 %7725 }
0x1b3e   :  { %v7731_v49 = vsel %vm544_vm3, %v7726_v63, 0 }
0x1b3f   :  { %v7774_v22 = vpop.permute.xlu1 %7773 }
0x1b41   :  { %v7724_v12 = vpop.permute.xlu0 %7723 }
0x1b42   :  { %v11708_v9 = vpop.eup %11707 }
0x1b43   :  { %v7329_v39 = vmul.f32 %v11708_v9, %v14210_v47  ;;  %v7876_v14 = vpop.permute.xlu1 %7875 }
0x1b44   :  { %v11710_v58 = vpop.eup %11709  ;;  %v7881_v60 = vsel %vm544_vm3, %v7876_v14, 0 }
0x1b45   :  { %v7330_v16 = vmul.f32 %v11710_v58, %v14212_v38  ;;  %v7826_v28 = vpop.permute.xlu0 %7825  ;;  %v7337_v23 = vpack.c.bf16 %v7329_v39, %v7329_v39 }
0x1b46   :  { %v7831_v54 = vsel %vm544_vm3, %v7826_v28, 0 }
0x1b47   :  { %v7874_v27 = vpop.permute.xlu1 %7873  ;;  %11080 = vmatmul.mubr.msk.bf16.vlgmr.msra.gmra.mrb[244].mxu0 %vm544_vm3, %v7337_v23  ;;  %v7338_v42 = vpack.c.bf16 %v7330_v16, %v7330_v16 }
0x1b48   :  { %11090 = vmatpush3.bf16.xpose.msra.mxu0 %v7731_v49  ;;  %11091 = vmatprep.mubr.msk.bf16.mxu0 %vm12063_vm2, %v14970_v5 }
0x1b49   :  { %11086 = vmatmul.mubr.msk.bf16.vlgmr.msra.gmra.mrb[244].mxu1 %vm544_vm3, %v7338_v42  ;;  %11101 = vmatprep.subr.bf16.mxu0 %v14970_v5  ;;  %v7824_v47 = vpop.permute.xlu0 %7823 }
0x1b4a   :  { %11096 = vmatpush3.bf16.xpose.msra.mxu1 %v7781_v15  ;;  %11097 = vmatprep.mubr.msk.bf16.mxu1 %vm12063_vm2, %v14970_v5 }
0x1b4b   :  { %11107 = vmatprep.subr.bf16.mxu1 %v14970_v5  ;;  %v7976_v38 = vpop.permute.xlu1 %7975 }
0x1b4c   :  { %v7981_v10 = vsel %vm544_vm3, %v7976_v38, 0 }
0x1b4d   :  { %v7926_v32 = vpop.permute.xlu0 %7925 }
0x1b4e   :  { %v7931_v2 = vsel %vm544_vm3, %v7926_v32, 0 }
0x1b4f   :  { %11092 = vmatmul.mubr.msk.bf16.vlgmr.msra.gmra.mrb[248].mxu0 %vm544_vm3, %v7724_v12  ;;  %v7974_v43 = vpop.permute.xlu1 %7973 }
0x1b50   :  { %11102 = vmatpush3.bf16.xpose.msra.mxu0 %v7831_v54  ;;  %11103 = vmatprep.mubr.msk.bf16.mxu0 %vm12063_vm2, %v14970_v5 }
0x1b51   :  { %11098 = vmatmul.mubr.msk.bf16.vlgmr.msra.gmra.mrb[248].mxu1 %vm544_vm3, %v7774_v22  ;;  %11113 = vmatprep.subr.bf16.mxu0 %v14970_v5  ;;  %v7924_v31 = vpop.permute.xlu0 %7923 }
0x1b52   :  { %11108 = vmatpush3.bf16.xpose.msra.mxu1 %v7881_v60  ;;  %11109 = vmatprep.mubr.msk.bf16.mxu1 %vm12063_vm2, %v14970_v5 }
0x1b53   :  { %11119 = vmatprep.subr.bf16.mxu1 %v14970_v5  ;;  %v8076_v13 = vpop.permute.xlu1 %8075 }
0x1b54   :  { %v8081_v12 = vsel %vm544_vm3, %v8076_v13, 0 }
0x1b55   :  { %v8026_v26 = vpop.permute.xlu0 %8025 }
0x1b56   :  { %v8031_v22 = vsel %vm544_vm3, %v8026_v26, 0 }
0x1b57   :  { %11104 = vmatmul.mubr.msk.bf16.vlgmr.msra.gmra.mrb[252].mxu0 %vm544_vm3, %v7824_v47  ;;  %v8074_v63 = vpop.permute.xlu1 %8073 }
0x1b58   :  { %11114 = vmatpush3.bf16.xpose.msra.mxu0 %v7931_v2  ;;  %11115 = vmatprep.mubr.msk.bf16.mxu0 %vm12063_vm2, %v14970_v5 }
0x1b59   :  { %11110 = vmatmul.mubr.msk.bf16.vlgmr.msra.gmra.mrb[252].mxu1 %vm544_vm3, %v7874_v27  ;;  %11125 = vmatprep.subr.bf16.mxu0 %v14970_v5  ;;  %v8024_v39 = vpop.permute.xlu0 %8023 }
0x1b5a   :  { %11120 = vmatpush3.bf16.xpose.msra.mxu1 %v7981_v10  ;;  %11121 = vmatprep.mubr.msk.bf16.mxu1 %vm12063_vm2, %v14970_v5 }
0x1b5b   :  { %11131 = vmatprep.subr.bf16.mxu1 %v14970_v5  ;;  %v8236_v9 = vpop.permute.xlu1 %8235 }
0x1b5c   :  { %v8241_v14 = vsel %vm1099_vm4, %v8236_v9, 0 }
0x1b5f   :  { %11116 = vmatmul.mubr.msk.bf16.vlgmr.msra.gmra.mrb[0].mxu0 %vm544_vm3, %v7924_v31 }
0x1b60   :  { %11126 = vmatpush3.bf16.xpose.msra.mxu0 %v8031_v22  ;;  %11127 = vmatprep.mubr.msk.bf16.mxu0 %vm12063_vm2, %v14970_v5 }
0x1b61   :  { %11122 = vmatmul.mubr.msk.bf16.vlgmr.msra.gmra.mrb[0].mxu1 %vm544_vm3, %v7974_v43  ;;  %11137 = vmatprep.subr.bf16.mxu0 %v14970_v5 }
0x1b62   :  { %11132 = vmatpush3.bf16.xpose.msra.mxu1 %v8081_v12  ;;  %11133 = vmatprep.mubr.msk.bf16.mxu1 %vm12063_vm2, %v14970_v5 }
0x1b63   :  { %11143 = vmatprep.subr.bf16.mxu1 %v14970_v5 }
0x1b67   :  { %11128 = vmatmul.mubr.msk.bf16.vlgmr.msra.gmra.mrb[4].mxu0 %vm544_vm3, %v8024_v39 }
0x1b68   :  { %11138 = vmatpush3.bf16.msra.mxu0 %v8241_v14  ;;  %11139 = vmatprep.mubr.msk.bf16.mxu0 %vm12063_vm2, %v14970_v5 }
0x1b69   :  { %11134 = vmatmul.mubr.msk.bf16.vlgmr.msra.gmra.mrb[4].mxu1 %vm544_vm3, %v8074_v63  ;;  %11149 = vmatprep.subr.bf16.mxu0 %v14970_v5 }
0x1b6a   :  { %11145 = vmatprep.mubr.msk.bf16.mxu1 %vm12063_vm2, %v14970_v5 }
0x1bd5   :  { %v14340_v58 = vpop.f32.mrb[232].mxu0 }
0x1bd6   :  { %v11045_v16 = vpop.f32.mrb[233].mxu0 }
0x1bd7   :  { %v7384_v28 = vpop.f32.mrb[234].mxu0  ;;  %v14342_v23 = vpop.f32.mrb[232].mxu1 }
0x1bd8   :  { %v11046_v27 = vpop.f32.mrb[235].mxu0  ;;  %v11051_v42 = vpop.f32.mrb[233].mxu1 }
0x1bd9   :  { %v7432_v15 = vpop.f32.mrb[234].mxu1 }
0x1bda   :  { %v11052_v47 = vpop.f32.mrb[235].mxu1 }
0x1bdd   :  { %v14346_v38 = vpop.f32.mrb[236].mxu0 }
0x1bde   :  { %v11057_v54 = vpop.f32.mrb[237].mxu0 }
0x1bdf   :  { %v7480_v32 = vpop.f32.mrb[238].mxu0 }
0x1be0   :  { %v11058_v60 = vpop.f32.mrb[239].mxu0 }
0x1be1   :  { %v14348_v43 = vpop.f32.mrb[236].mxu1 }
0x1be2   :  { %v11370_v31 = vpack.i.bf16 %v14348_v43, %v14346_v38  ;;  %v11063_v2 = vpop.f32.mrb[237].mxu1 }
0x1be3   :  { %v7528_v13 = vpop.f32.mrb[238].mxu1 }
0x1be4   :  { %v11064_v10 = vpop.f32.mrb[239].mxu1 }
0x1be5   :  { %v14352_v26 = vpop.f32.mrb[240].mxu0 }
0x1be6   :  { %v11069_v63 = vpop.f32.mrb[241].mxu0 }
0x1be7   :  { %v7576_v22 = vpop.f32.mrb[242].mxu0 }
0x1be8   :  { %v11070_v12 = vpop.f32.mrb[243].mxu0 }
0x1be9   :  { %v14354_v9 = vpop.f32.mrb[240].mxu1 }
0x1bea   :  { %v11075_v14 = vpop.f32.mrb[241].mxu1 }
0x1beb   :  { %v7624_v16 = vpop.f32.mrb[242].mxu1 }
0x1bec   :  { %v11076_v28 = vpop.f32.mrb[243].mxu1 }
0x1c1a   :  { %v14358_v27 = vpop.f32.mrb[244].mxu0 }
0x1c1b   :  { %v11081_v42 = vpop.f32.mrb[245].mxu0 }
0x1c1c   :  { %v7672_v15 = vpop.f32.mrb[246].mxu0  ;;  %v14360_v47 = vpop.f32.mrb[244].mxu1 }
0x1c1d   :  { %v11082_v32 = vpop.f32.mrb[247].mxu0  ;;  %v11087_v60 = vpop.f32.mrb[245].mxu1 }
0x1c1e   :  { %v7720_v2 = vpop.f32.mrb[246].mxu1 }
0x1c1f   :  { %v11088_v13 = vpop.f32.mrb[247].mxu1 }
0x1c22   :  { %v7767_v10 = vpop.f32.mrb[248].mxu0 }
0x1c23   :  { %v8123_v63 = vmul.f32 0.35355338, %v7767_v10  ;;  %v11093_v22 = vpop.f32.mrb[249].mxu0 }
0x1c24   :  { %v7770_v12 = vpop.f32.mrb[250].mxu0  ;;  %v7817_v14 = vpop.f32.mrb[248].mxu1 }
0x1c25   :  { %v14365_v16 = vadd.f32 %v8123_v63, %v12518_v41  ;;  %v8124_v28 = vmul.f32 0.35355338, %v7817_v14  ;;  %v11094_v42 = vpop.f32.mrb[251].mxu0  ;;  %v11099_v15 = vpop.f32.mrb[249].mxu1 }
0x1c26   :  { %v7820_v39 = vpop.f32.mrb[250].mxu1 }
0x1c27   :  { %v14368_v49 = vadd.f32 %v8124_v28, %v14981_v35  ;;  %v11100_v54 = vpop.f32.mrb[251].mxu1  ;;  %v8139_v32 = vsel %vm544_vm3, %v14365_v16, -inf }
0x1c28   :  { %8140 = vmax.xlane.f32.xlu0 %v8139_v32 }
0x1c29   :  { %v8142_v60 = vsel %vm544_vm3, %v14368_v49, -inf }
0x1c2a   :  { %8143 = vmax.xlane.f32.xlu1 %v8142_v60  ;;  %v7867_v2 = vpop.f32.mrb[252].mxu0 }
0x1c2b   :  { %v8125_v13 = vmul.f32 0.35355338, %v7867_v2  ;;  %v11105_v41 = vpop.f32.mrb[253].mxu0 }
0x1c2c   :  { %v7870_v10 = vpop.f32.mrb[254].mxu0  ;;  %v7917_v63 = vpop.f32.mrb[252].mxu1 }
0x1c2d   :  { %v8133_v22 = vadd.f32 %v8125_v13, %v12529_v3  ;;  %v8126_v39 = vmul.f32 0.35355338, %v7917_v63  ;;  %v11106_v12 = vpop.f32.mrb[255].mxu0  ;;  %v11111_v35 = vpop.f32.mrb[253].mxu1 }
0x1c2e   :  { %v7920_v14 = vpop.f32.mrb[254].mxu1 }
0x1c2f   :  { %v8134_v54 = vadd.f32 %v8126_v39, %v14982_v4  ;;  %v11112_v28 = vpop.f32.mrb[255].mxu1  ;;  %v8145_v42 = vsel %vm544_vm3, %v8133_v22, -inf }
0x1c30   :  { %8146 = vmax.xlane.f32.xlu0 %v8145_v42 }
0x1c31   :  { %v8148_v2 = vsel %vm544_vm3, %v8134_v54, -inf }
0x1c32   :  { %v7967_v15 = vpop.f32.mrb[0].mxu0 }
0x1c33   :  { %v8127_v32 = vmul.f32 0.35355338, %v7967_v15  ;;  %v11117_v60 = vpop.f32.mrb[1].mxu0 }
0x1c34   :  { %v8017_v41 = vpop.f32.mrb[0].mxu1  ;;  %8149 = vmax.xlane.f32.xlu0 %v8148_v2  ;;  %v7970_v10 = vpop.f32.mrb[2].mxu0 }
0x1c35   :  { %v14379_v3 = vadd.f32 %v8127_v32, %v14983_v21  ;;  %v8128_v13 = vmul.f32 0.35355338, %v8017_v41  ;;  %v11118_v63 = vpop.f32.mrb[3].mxu0  ;;  %v11123_v12 = vpop.f32.mrb[1].mxu1 }
0x1c36   :  { %v8020_v35 = vpop.f32.mrb[2].mxu1 }
0x1c37   :  { %v14382_v4 = vadd.f32 %v8128_v13, %v12554_v52  ;;  %v11124_v39 = vpop.f32.mrb[3].mxu1  ;;  %v8151_v14 = vsel %vm544_vm3, %v14379_v3, -inf }
0x1c38   :  { %8152 = vmax.xlane.f32.xlu1 %v8151_v14 }
0x1c39   :  { %v8154_v28 = vsel %vm544_vm3, %v14382_v4, -inf }
0x1c3a   :  { %8155 = vmax.xlane.f32.xlu0 %v8154_v28  ;;  %v8067_v42 = vpop.f32.mrb[4].mxu0 }
0x1c3b   :  { %v8129_v15 = vmul.f32 0.35355338, %v8067_v42  ;;  %v11129_v21 = vpop.f32.mrb[5].mxu0 }
0x1c3c   :  { %v8070_v32 = vpop.f32.mrb[6].mxu0  ;;  %v8117_v60 = vpop.f32.mrb[4].mxu1 }
0x1c3d   :  { %v8137_v2 = vadd.f32 %v8129_v15, %v12559_v6  ;;  %v8130_v41 = vmul.f32 0.35355338, %v8117_v60  ;;  %v11130_v10 = vpop.f32.mrb[7].mxu0  ;;  %v11135_v52 = vpop.f32.mrb[5].mxu1 }
0x1c3e   :  { %v8120_v13 = vpop.f32.mrb[6].mxu1 }
0x1c3f   :  { %v8138_v63 = vadd.f32 %v8130_v41, %v12566_v17  ;;  %v11136_v12 = vpop.f32.mrb[7].mxu1  ;;  %v8157_v35 = vsel %vm544_vm3, %v8137_v2, -inf }
0x1c40   :  { %8158 = vmax.xlane.f32.xlu1 %v8157_v35 }
0x1c41   :  { %v8160_v39 = vsel %vm544_vm3, %v8138_v63, -inf }
0x1c42   :  { %8161 = vmax.xlane.f32.xlu0 %v8160_v39 }
0x1c51   :  { %8331 = vrot.lane.b32.xlu1 %v13620_v25, %s12074_s8 }
0x1c55   :  { %8379 = vrot.lane.b32.xlu1 %v13626_v40, %s12074_s8 }
0x1c58   :  { %8283 = vrot.lane.b32.xlu0 %v13616_v0, %s12074_s8 }
0x1cb5   :  { %v8141_v6 = vpop.xlane.xlu0 %8140 }
0x1cb6   :  { %v8163_v14 = vsub.f32 %v14365_v16, %v8141_v6 }
0x1cb7   :  { %v8144_v17 = vpop.xlane.xlu1 %8143 }
0x1cb8   :  { %v8171_v28 = vmul.f32 1.442695, %v8163_v14  ;;  %v8164_v42 = vsub.f32 %v14368_v49, %v8144_v17 }
0x1cba   :  { %11711 = vpow2.f32 %v8171_v28  ;;  %v8173_v15 = vmul.f32 1.442695, %v8164_v42 }
0x1cbc   :  { %11713 = vpow2.f32 %v8173_v15 }
0x1cbd   :  { %v8147_v21 = vpop.xlane.xlu0 %8146 }
0x1cbe   :  { %v8165_v32 = vsub.f32 %v8133_v22, %v8147_v21 }
0x1cc0   :  { %v8175_v60 = vmul.f32 1.442695, %v8165_v32 }
0x1cc1   :  { %v8150_v25 = vpop.xlane.xlu0 %8149 }
0x1cc2   :  { %11715 = vpow2.f32 %v8175_v60  ;;  %v8166_v41 = vsub.f32 %v8134_v54, %v8150_v25 }
0x1cc4   :  { %v14400_v40 = vpop.eup %11711  ;;  %v8177_v10 = vmul.f32 1.442695, %v8166_v41 }
0x1cc5   :  { %v8187_v0 = vsel %vm544_vm3, %v14400_v40, 0.0  ;;  %v8153_v14 = vpop.xlane.xlu1 %8152 }
0x1cc6   :  { %v14404_v16 = vpop.eup %11713  ;;  %11717 = vpow2.f32 %v8177_v10  ;;  %8188 = vadd.xlane.f32.xlu1 %v8187_v0  ;;  %v8167_v17 = vsub.f32 %v14379_v3, %v8153_v14 }
0x1cc7   :  { %v8190_v49 = vsel %vm544_vm3, %v14404_v16, 0.0  ;;  %v8156_v52 = vpop.xlane.xlu0 %8155 }
0x1cc8   :  { %8191 = vadd.xlane.f32.xlu0 %v8190_v49  ;;  %v8168_v42 = vsub.f32 %v14382_v4, %v8156_v52  ;;  %v8179_v15 = vmul.f32 1.442695, %v8167_v17  ;;  %v14984_v49 = vpack.i.bf16 %v14130_v34, %v14128_v33  ;;  %v14985_v52 = vpack.i.bf16 %v14142_v37, %v14140_v62 }
0x1cc9   :  { %v14987_v33 = vpack.i.bf16 %v14342_v23, %v14340_v58  ;;  %v14988_v34 = vpack.i.bf16 %v14136_v29, %v14134_v44 }
0x1cca   :  { %v8181_v32 = vmul.f32 1.442695, %v8168_v42  ;;  %11719 = vpow2.f32 %v8179_v15 }
0x1ccc   :  { %v14408_v22 = vpop.eup %11715  ;;  %11721 = vpow2.f32 %v8181_v32 }
0x1ccd   :  { %v8193_v54 = vsel %vm544_vm3, %v14408_v22, 0.0  ;;  %v8159_v28 = vpop.xlane.xlu1 %8158 }
0x1cce   :  { %8194 = vadd.xlane.f32.xlu1 %v8193_v54  ;;  %v8169_v21 = vsub.f32 %v8137_v2, %v8159_v28 }
0x1ccf   :  { %v8162_v13 = vpop.xlane.xlu0 %8161 }
0x1cd0   :  { %v14412_v12 = vpop.eup %11717  ;;  %v8183_v60 = vmul.f32 1.442695, %v8169_v21  ;;  %v8170_v25 = vsub.f32 %v8138_v63, %v8162_v13 }
0x1cd1   :  { %v8196_v35 = vsel %vm544_vm3, %v14412_v12, 0.0 }
0x1cd2   :  { %8197 = vadd.xlane.f32.xlu0 %v8196_v35  ;;  %11723 = vpow2.f32 %v8183_v60  ;;  %v8185_v41 = vmul.f32 1.442695, %v8170_v25 }
0x1cd3   :  { %v8284_v39 = vpop.permute.xlu0 %8283 }
0x1cd4   :  { %v8289_v6 = vsel %vm1099_vm4, %v8284_v39, 0  ;;  %11725 = vpow2.f32 %v8185_v41 }
0x1cd5   :  { %11144 = vmatpush3.bf16.msra.mxu1 %v8289_v6 }
0x1cd6   :  { %11155 = vmatprep.subr.bf16.mxu1 %v14970_v5 }
0x1cdf   :  { %8475 = vrot.lane.b32.xlu1 %v13632_v55, %s12074_s8  ;;  %v14424_v55 = vpop.eup %11719 }
0x1ce0   :  { %v14426_v10 = vpop.eup %11721 }
0x1ce1   :  { %v14430_v3 = vpop.eup %11723  ;;  %v8202_v2 = vsel %vm544_vm3, %v14426_v10, 0.0 }
0x1ce2   :  { %v8205_v4 = vsel %vm544_vm3, %v14430_v3, 0.0  ;;  %v14436_v63 = vpop.eup %11725 }
0x1ce3   :  { %v8208_v0 = vsel %vm544_vm3, %v14436_v63, 0.0 }
0x1ce8   :  { %8427 = vrot.lane.b32.xlu0 %v13630_v53, %s12074_s8  ;;  %v8199_v53 = vsel %vm544_vm3, %v14424_v55, 0.0 }
0x1d03   :  { %8200 = vadd.xlane.f32.xlu1 %v8199_v53 }
0x1d07   :  { %8206 = vadd.xlane.f32.xlu1 %v8205_v4  ;;  %8203 = vadd.xlane.f32.xlu0 %v8202_v2 }
0x1d0b   :  { %8209 = vadd.xlane.f32.xlu0 %v8208_v0 }
0x1d18   :  { %8571 = vrot.lane.b32.xlu1 %v13640_v36, %s12074_s8  ;;  %v14986_v36 = vpack.i.bf16 %v14124_v18, %v14122_v50 }
0x1d1c   :  { %11361 = vrot.lane.b32.xlu1 %v14984_v49, %s12075_s24 }
0x1d20   :  { %11371 = vrot.lane.b32.xlu1 %v11370_v31, %s12054_s23 }
0x1d21   :  { %8523 = vrot.lane.b32.xlu0 %v13636_v48, %s12074_s8  ;;  %v8332_v48 = vpop.permute.xlu1 %8331 }
0x1d22   :  { %v8337_v44 = vsel %vm1099_vm4, %v8332_v48, 0 }
0x1d24   :  { %11381 = vrot.lane.b32.xlu1 %v14985_v52, %s12075_s24 }
0x1d25   :  { %11356 = vrot.lane.b32.xlu0 %v14986_v36, %s12075_s24  ;;  %v8380_v38 = vpop.permute.xlu1 %8379 }
0x1d26   :  { %v8385_v13 = vsel %vm1099_vm4, %v8380_v38, 0 }
0x1d29   :  { %11366 = vrot.lane.b32.xlu0 %v14987_v33, %s12054_s23 }
0x1d2d   :  { %11376 = vrot.lane.b32.xlu0 %v14988_v34, %s12075_s24 }
0x1d53   :  { %v8189_v43 = vpop.xlane.xlu1 %8188 }
0x1d54   :  { %11727 = vrcp.f32 %v8189_v43 }
0x1d55   :  { %v8192_v62 = vpop.xlane.xlu0 %8191 }
0x1d56   :  { %11729 = vrcp.f32 %v8192_v62 }
0x1d5b   :  { %v8195_v37 = vpop.xlane.xlu1 %8194 }
0x1d5c   :  { %11731 = vrcp.f32 %v8195_v37 }
0x1d5e   :  { %v11728_v50 = vpop.eup %11727 }
0x1d5f   :  { %v8219_v18 = vmul.f32 %v11728_v50, %v14400_v40  ;;  %v8198_v31 = vpop.xlane.xlu0 %8197  ;;  %v8476_v28 = vpop.permute.xlu1 %8475 }
0x1d60   :  { %v11730_v54 = vpop.eup %11729  ;;  %11733 = vrcp.f32 %v8198_v31 }
0x1d61   :  { %v8227_v58 = vpack.c.bf16 %v8219_v18, %v8219_v18  ;;  %v8220_v23 = vmul.f32 %v11730_v54, %v14404_v16 }
0x1d63   :  { %v8228_v29 = vpack.c.bf16 %v8220_v23, %v8220_v23  ;;  %11140 = vmatmul.mubr.msk.bf16.vlgmr.msra.gmra.mrb[8].mxu0 %vm544_vm3, %v8227_v58  ;;  %v8428_v35 = vpop.permute.xlu0 %8427 }
0x1d64   :  { %11150 = vmatpush3.bf16.msra.mxu0 %v8337_v44  ;;  %11151 = vmatprep.mubr.msk.bf16.mxu0 %vm12063_vm2, %v14970_v5  ;;  %v8433_v17 = vsel %vm1099_vm4, %v8428_v35, 0 }
0x1d65   :  { %11146 = vmatmul.mubr.msk.bf16.vlgmr.msra.gmra.mrb[8].mxu1 %vm544_vm3, %v8228_v29  ;;  %11161 = vmatprep.subr.bf16.mxu0 %v14970_v5 }
0x1d66   :  { %v11732_v40 = vpop.eup %11731  ;;  %11156 = vmatpush3.bf16.msra.mxu1 %v8385_v13  ;;  %11157 = vmatprep.mubr.msk.bf16.mxu1 %vm12063_vm2, %v14970_v5 }
0x1d67   :  { %v8221_v16 = vmul.f32 %v11732_v40, %v14408_v22  ;;  %11167 = vmatprep.subr.bf16.mxu1 %v14970_v5  ;;  %v8481_v22 = vsel %vm1099_vm4, %v8476_v28, 0 }
0x1d69   :  { %v8229_v39 = vpack.c.bf16 %v8221_v16, %v8221_v16 }
0x1d6a   :  { %v11734_v6 = vpop.eup %11733 }
0x1d6b   :  { %v8222_v14 = vmul.f32 %v11734_v6, %v14412_v12  ;;  %11152 = vmatmul.mubr.msk.bf16.vlgmr.msra.gmra.mrb[12].mxu0 %vm544_vm3, %v8229_v39 }
0x1d6c   :  { %11162 = vmatpush3.bf16.msra.mxu0 %v8433_v17  ;;  %11163 = vmatprep.mubr.msk.bf16.mxu0 %vm12063_vm2, %v14970_v5  ;;  %v11434_v17 = vld [vmem:[#allocation8 + $0x18] sm:$0xff]  }
0x1d6d   :  { %v8230_v42 = vpack.c.bf16 %v8222_v14, %v8222_v14  ;;  %11173 = vmatprep.subr.bf16.mxu0 %v14970_v5 }
0x1d6f   :  { %11158 = vmatmul.mubr.msk.bf16.vlgmr.msra.gmra.mrb[12].mxu1 %vm544_vm3, %v8230_v42 }
0x1d70   :  { %11168 = vmatpush3.bf16.msra.mxu1 %v8481_v22  ;;  %11169 = vmatprep.mubr.msk.bf16.mxu1 %vm12063_vm2, %v14970_v5  ;;  %v14989_v22 = vpack.i.bf16 %v14354_v9, %v14352_v26 }
0x1d71   :  { %11179 = vmatprep.subr.bf16.mxu1 %v14970_v5 }
0x1d90   :  { %v8201_v12 = vpop.xlane.xlu1 %8200 }
0x1d91   :  { %11735 = vrcp.f32 %v8201_v12 }
0x1d94   :  { %v8207_v15 = vpop.xlane.xlu1 %8206  ;;  %v8204_v21 = vpop.xlane.xlu0 %8203 }
0x1d95   :  { %11737 = vrcp.f32 %v8207_v15 }
0x1d96   :  { %11739 = vrcp.f32 %v8204_v21 }
0x1d98   :  { %v8572_v32 = vpop.permute.xlu1 %8571  ;;  %v8210_v60 = vpop.xlane.xlu0 %8209 }
0x1d99   :  { %11741 = vrcp.f32 %v8210_v60  ;;  %v8577_v37 = vsel %vm1099_vm4, %v8572_v32, 0 }
0x1d9b   :  { %v11736_v25 = vpop.eup %11735 }
0x1d9c   :  { %v8223_v41 = vmul.f32 %v11736_v25, %v14424_v55  ;;  %v14493_v53 = vpop.permute.xlu1 %11361  ;;  %v8524_v4 = vpop.permute.xlu0 %8523 }
0x1d9d   :  { %v8529_v52 = vsel %vm1099_vm4, %v8524_v4, 0  ;;  %v14990_v4 = vpack.i.bf16 %v14360_v47, %v14358_v27 }
0x1d9e   :  { %v8231_v2 = vpack.c.bf16 %v8223_v41, %v8223_v41 }
0x1d9f   :  { %v11738_v0 = vpop.eup %11737 }
0x1da0   :  { %v11740_v49 = vpop.eup %11739  ;;  %v14496_v36 = vpop.permute.xlu1 %11371  ;;  %11164 = vmatmul.mubr.msk.bf16.vlgmr.msra.gmra.mrb[16].mxu0 %vm544_vm3, %v8231_v2  ;;  %v8225_v55 = vmul.f32 %v11738_v0, %v14430_v3 }
0x1da1   :  { %v14499_v33 = vpop.permute.xlu0 %11356  ;;  %v8224_v34 = vmul.f32 %v11740_v49, %v14426_v10  ;;  %11174 = vmatpush3.bf16.msra.mxu0 %v8529_v52  ;;  %11175 = vmatprep.mubr.msk.bf16.mxu0 %vm12063_vm2, %v14970_v5 }
0x1da2   :  { %v8233_v31 = vpack.c.bf16 %v8225_v55, %v8225_v55 }
0x1da3   :  { %v8232_v48 = vpack.c.bf16 %v8224_v34, %v8224_v34  ;;  %v11742_v38 = vpop.eup %11741 }
0x1da4   :  { %v11382_v43 = vpop.permute.xlu1 %11381  ;;  %v8226_v10 = vmul.f32 %v11742_v38, %v14436_v63 }
0x1da5   :  { %v14505_v62 = vpop.permute.xlu0 %11366  ;;  %v11384_v50 = vunpack.i.h.bf16 %v11382_v43  ;;  %v11383_v18 = vunpack.i.l.bf16 %v11382_v43  ;;  %11170 = vmatmul.mubr.msk.bf16.vlgmr.msra.gmra.mrb[16].mxu1 %vm544_vm3, %v8232_v48 }
0x1da6   :  { %11180 = vmatpush3.bf16.msra.mxu1 %v8577_v37  ;;  %11181 = vmatprep.mubr.msk.bf16.mxu1 %vm12063_vm2, %v14970_v5  ;;  %v8234_v29 = vpack.c.bf16 %v8226_v10, %v8226_v10 }
0x1da7   :  { %v14514_v3 = vsel %vm544_vm3, %v13918_v24, %v11384_v50  ;;  %v14518_v54 = vsel %vm544_vm3, %v13916_v45, %v11383_v18  ;;  %v11433_v24 = vld [vmem:[#allocation8 + $0x10] sm:$0xff]  }
0x1da8   :  { %11176 = vmatmul.mubr.msk.bf16.vlgmr.msra.gmra.mrb[20].mxu0 %vm544_vm3, %v8233_v31  ;;  %11185 = vmatprep.subr.bf16.mxu0 %v11433_v24 }
0x1da9   :  { %v11377_v58 = vpop.permute.xlu0 %11376  ;;  %11186 = vmatpush3.bf16.msra.mxu0 %v11433_v24 }
0x1daa   :  { %v11379_v23 = vunpack.i.h.bf16 %v11377_v58  ;;  %v11378_v44 = vunpack.i.l.bf16 %v11377_v58  ;;  %11187 = vmatprep.subr.bf16.mxu0 %v11434_v17  ;;  %v11359_v58 = vunpack.i.h.bf16 %v14499_v33 }
0x1dac   :  { %v14523_v13 = vsel %vm544_vm3, %v13914_v20, %v11379_v23  ;;  %v14527_v63 = vsel %vm544_vm3, %v13912_v30, %v11378_v44  ;;  %v11358_v23 = vunpack.i.l.bf16 %v14499_v33  ;;  %v11369_v44 = vunpack.i.h.bf16 %v14505_v62 }
0x1dad   :  { %11182 = vmatmul.mubr.msk.bf16.vlgmr.msra.gmra.mrb[20].mxu1 %vm544_vm3, %v8234_v29  ;;  %11188 = vmatpush3.bf16.msra.mxu0 %v11434_v17  ;;  %v11368_v29 = vunpack.i.l.bf16 %v14505_v62  ;;  %v11364_v62 = vunpack.i.h.bf16 %v14493_v53 }
0x1e36   :  { %v8277_v40 = vpop.f32.mrb[8].mxu0 }
0x1e37   :  { %v11141_v45 = vpop.f32.mrb[9].mxu0 }
0x1e38   :  { %v8280_v16 = vpop.f32.mrb[10].mxu0  ;;  %v8325_v35 = vpop.f32.mrb[8].mxu1  ;;  %v8715_v45 = vsel %vm544_vm3, %v13906_v51, %v11358_v23  ;;  %v11373_v51 = vunpack.i.l.bf16 %v14496_v36 }
0x1e39   :  { %v11385_v39 = vpack.i.bf16 %v8325_v35, %v8277_v40  ;;  %v11142_v6 = vpop.f32.mrb[11].mxu0  ;;  %v11147_v14 = vpop.f32.mrb[9].mxu1  ;;  %v8716_v40 = vsel %vm544_vm3, %v13904_v8, %v11359_v58  ;;  %v11363_v8 = vunpack.i.l.bf16 %v14493_v53 }
0x1e3a   :  { %v8328_v28 = vpop.f32.mrb[10].mxu1  ;;  %v8724_v6 = vsel %vm350_vm0, %v8716_v40, %v11369_v44 }
0x1e3b   :  { %11386 = vrot.lane.b32.xlu0 %v11385_v39, %s12076_s26  ;;  %v11148_v20 = vpop.f32.mrb[11].mxu1  ;;  %v8723_v39 = vsel %vm350_vm0, %v8715_v45, %v11368_v29  ;;  %v11374_v28 = vunpack.i.h.bf16 %v14496_v36 }
0x1e3e   :  { %v8373_v30 = vpop.f32.mrb[12].mxu0 }
0x1e3f   :  { %v11153_v42 = vpop.f32.mrb[13].mxu0  ;;  %11391 = vrot.lane.b32.xlu0 %v14989_v22, %s12054_s23 }
0x1e40   :  { %v8376_v12 = vpop.f32.mrb[14].mxu0  ;;  %v8717_v42 = vsel %vm544_vm3, %v13910_v57, %v11363_v8 }
0x1e41   :  { %v11154_v15 = vpop.f32.mrb[15].mxu0 }
0x1e42   :  { %v8421_v21 = vpop.f32.mrb[12].mxu1  ;;  %v8725_v15 = vsel %vm350_vm0, %v8717_v42, %v11373_v51 }
0x1e43   :  { %v11395_v32 = vpack.i.bf16 %v8421_v21, %v8373_v30  ;;  %v11159_v60 = vpop.f32.mrb[13].mxu1  ;;  %v8718_v30 = vsel %vm544_vm3, %v13908_v59, %v11364_v62 }
0x1e44   :  { %v8424_v25 = vpop.f32.mrb[14].mxu1  ;;  %v8726_v21 = vsel %vm350_vm0, %v8718_v30, %v11374_v28  ;;  %v14991_v30 = vld [vmem:[#allocation27_spill] sm:$0xff] }
0x1e45   :  { %11396 = vrot.lane.b32.xlu1 %v11395_v32, %s12076_s26  ;;  %v11160_v41 = vpop.f32.mrb[15].mxu1 }
0x1e49   :  { %11401 = vrot.lane.b32.xlu1 %v14990_v4, %s12054_s23 }
0x1e73   :  { %v8469_v2 = vpop.f32.mrb[16].mxu0 }
0x1e74   :  { %v11165_v0 = vpop.f32.mrb[17].mxu0 }
0x1e75   :  { %v8472_v49 = vpop.f32.mrb[18].mxu0 }
0x1e76   :  { %v11166_v52 = vpop.f32.mrb[19].mxu0 }
0x1e78   :  { %v8517_v26 = vpop.f32.mrb[16].mxu1 }
0x1e79   :  { %v11405_v9 = vpack.i.bf16 %v8517_v26, %v8469_v2  ;;  %v11171_v34 = vpop.f32.mrb[17].mxu1 }
0x1e7a   :  { %v8520_v55 = vpop.f32.mrb[18].mxu1 }
0x1e7b   :  { %11406 = vrot.lane.b32.xlu0 %v11405_v9, %s12076_s26  ;;  %v11172_v48 = vpop.f32.mrb[19].mxu1  ;;  %v8565_v38 = vpop.f32.mrb[20].mxu0 }
0x1e7c   :  { %v11177_v43 = vpop.f32.mrb[21].mxu0 }
0x1e7d   :  { %v8568_v37 = vpop.f32.mrb[22].mxu0 }
0x1e7e   :  { %v11178_v50 = vpop.f32.mrb[23].mxu0 }
0x1e80   :  { %v8613_v18 = vpop.f32.mrb[20].mxu1 }
0x1e81   :  { %v11410_v31 = vpack.i.bf16 %v8613_v18, %v8565_v38  ;;  %v11183_v10 = vpop.f32.mrb[21].mxu1 }
0x1e82   :  { %v8616_v27 = vpop.f32.mrb[22].mxu1 }
0x1e83   :  { %v11184_v47 = vpop.f32.mrb[23].mxu1  ;;  %11411 = vrot.lane.b32.xlu1 %v11410_v31, %s12076_s26  ;;  %v9945_v31 = vld [vmem:[%s14917_s7 + $0x1] ss:$0 sm:$0xff] }
0x1ead   :  { %v11387_v24 = vpop.permute.xlu0 %11386 }
0x1eae   :  { %v11389_v16 = vunpack.i.h.bf16 %v11387_v24  ;;  %v11388_v35 = vunpack.i.l.bf16 %v11387_v24 }
0x1eb0   :  { %v8731_v14 = vsel %vm4279_vm5, %v8723_v39, %v11388_v35  ;;  %v8732_v33 = vsel %vm4279_vm5, %v8724_v6, %v11389_v16 }
0x1eb1   :  { %v8739_v17 = vpack.c.bf16 %v8732_v33, %v8731_v14  ;;  %v11392_v36 = vpop.permute.xlu0 %11391 }
0x1eb2   :  { %v11394_v25 = vunpack.i.h.bf16 %v11392_v36  ;;  %v11393_v41 = vunpack.i.l.bf16 %v11392_v36 }
0x1eb3   :  { %11189 = vmatprep.mubr.msk.bf16.mxu0 %vm455_vm1, %v8739_v17 }
0x1eb4   :  { %v8727_v57 = vsel %vm350_vm0, %v14527_v63, %v11393_v41  ;;  %v8728_v0 = vsel %vm350_vm0, %v14523_v13, %v11394_v25 }
0x1eb7   :  { %v11397_v20 = vpop.permute.xlu1 %11396 }
0x1eb8   :  { %v11399_v22 = vunpack.i.h.bf16 %v11397_v20  ;;  %v11398_v12 = vunpack.i.l.bf16 %v11397_v20 }
0x1eba   :  { %v8734_v32 = vsel %vm4279_vm5, %v8726_v21, %v11399_v22  ;;  %v8733_v53 = vsel %vm4279_vm5, %v8725_v15, %v11398_v12 }
0x1ebb   :  { %v8740_v60 = vpack.c.bf16 %v8734_v32, %v8733_v53  ;;  %v11402_v49 = vpop.permute.xlu1 %11401 }
0x1ebc   :  { %v11404_v34 = vunpack.i.h.bf16 %v11402_v49  ;;  %v11403_v55 = vunpack.i.l.bf16 %v11402_v49 }
0x1ebd   :  { %11190 = vmatmul.mubr.msk.bf16.vlgmr.msra.gmra.mrb[24].mxu0 %vm455_vm1, %v8740_v60 }
0x1ebe   :  { %v8730_v37 = vsel %vm350_vm0, %v14514_v3, %v11404_v34  ;;  %v8729_v63 = vsel %vm350_vm0, %v14518_v54, %v11403_v55  ;;  %v11435_v55 = vld [vmem:[#allocation16 + $0x10] sm:$0xff]  }
0x1ebf   :  { %11197 = vmatprep.subr.bf16.mxu1 %v11435_v55 }
0x1ec0   :  { %11198 = vmatpush3.bf16.msra.mxu1 %v11435_v55 }
0x1eed   :  { %v11407_v59 = vpop.permute.xlu0 %11406 }
0x1eee   :  { %v11409_v4 = vunpack.i.h.bf16 %v11407_v59  ;;  %v11408_v2 = vunpack.i.l.bf16 %v11407_v59 }
0x1ef0   :  { %v8735_v52 = vsel %vm4279_vm5, %v8727_v57, %v11408_v2  ;;  %v8736_v26 = vsel %vm4279_vm5, %v8728_v0, %v11409_v4 }
0x1ef1   :  { %v8741_v9 = vpack.c.bf16 %v8736_v26, %v8735_v52 }
0x1ef3   :  { %11193 = vmatprep.mubr.msk.bf16.mxu0 %vm455_vm1, %v8741_v9 }
0x1ef5   :  { %v11412_v48 = vpop.permute.xlu1 %11411 }
0x1ef6   :  { %v11414_v38 = vunpack.i.h.bf16 %v11412_v48  ;;  %v11413_v43 = vunpack.i.l.bf16 %v11412_v48  ;;  %v11436_v48 = vld [vmem:[#allocation16 + $0x18] sm:$0xff]  }
0x1ef7   :  { %11199 = vmatprep.subr.bf16.mxu1 %v11436_v48 }
0x1ef8   :  { %v8738_v13 = vsel %vm4279_vm5, %v8730_v37, %v11414_v38  ;;  %v8737_v50 = vsel %vm4279_vm5, %v8729_v63, %v11413_v43  ;;  %11200 = vmatpush3.bf16.msra.mxu1 %v11436_v48 }
0x1ef9   :  { %v8742_v18 = vpack.c.bf16 %v8738_v13, %v8737_v50  ;;  %11233 = vmatprep.subr.bf16.mxu1 %v14970_v5 }
0x1efb   :  { %11194 = vmatmul.mubr.msk.bf16.gmra.mrb[28].mxu0 %vm455_vm1, %v8742_v18 }
0x1f90   :  { %v11191_v10 = vpop.f32.mrb[24].mxu0 }
0x1f91   :  { %v8814_v27 = vpop.f32.mrb[25].mxu0  ;;  %v8823_v47 = vadd.f32 %v11191_v10, %v9945_v31 }
0x1f92   :  { %v8815_v58 = vadd.f32 %v9945_v31, %v8814_v27  ;;  %v11192_v23 = vpop.f32.mrb[26].mxu0 }
0x1f93   :  { %v8817_v3 = vpop.f32.mrb[27].mxu0  ;;  %v8847_v29 = vadd.f32 %v8823_v47, %v13583_v56  ;;  %v8826_v24 = vadd.f32 %v11192_v23, %v9945_v31 }
0x1f94   :  { %v8845_v44 = vadd.f32 %v8815_v58, %v13577_v7  ;;  %v8818_v54 = vadd.f32 %v9945_v31, %v8817_v3 }
0x1f95   :  { %v8848_v35 = vadd.f32 %v8826_v24, %v13585_v11  ;;  %v8863_v39 = vsel %vm455_vm1, %v8847_v29, 0.0 }
0x1f96   :  { %v8846_v40 = vadd.f32 %v8818_v54, %v13579_v46  ;;  %v8857_v45 = vsel %vm455_vm1, %v8845_v44, 0.0 }
0x1f97   :  { %8858 = vadd.xlane.f32.xlu0 %v8857_v45  ;;  %v8866_v6 = vsel %vm455_vm1, %v8848_v35, 0.0 }
0x1f98   :  { %v8860_v16 = vsel %vm455_vm1, %v8846_v40, 0.0 }
0x1f99   :  { %8861 = vadd.xlane.f32.xlu1 %v8860_v16  ;;  %v11437_v16 = vld [vmem:[%s14924_s14 + $0x40] sm:$0xff]  }
0x1f9a   :  { %11209 = vmatprep.subr.bf16.mxu0 %v11437_v16 }
0x1f9b   :  { %8864 = vadd.xlane.f32.xlu0 %v8863_v39  ;;  %11210 = vmatpush3.bf16.msra.mxu0 %v11437_v16  ;;  %v11439_v39 = vld [vmem:[%s14924_s14 + $0x50] sm:$0xff]  }
0x1f9f   :  { %8867 = vadd.xlane.f32.xlu0 %v8866_v6  ;;  %v11440_v6 = vld [vmem:[%s14924_s14 + $0x58] sm:$0xff]  }
0x1fce   :  { %v11195_v7 = vpop.f32.mrb[28].mxu0 }
0x1fcf   :  { %v8830_v14 = vpop.f32.mrb[29].mxu0  ;;  %v8839_v56 = vadd.f32 %v11195_v7, %v9945_v31  ;;  %v11441_v7 = vld [vmem:[%s14924_s14 + $0x60] sm:$0xff]  }
0x1fd0   :  { %v8831_v33 = vadd.f32 %v9945_v31, %v8830_v14  ;;  %v11196_v17 = vpop.f32.mrb[30].mxu0  ;;  %v11442_v14 = vld [vmem:[%s14924_s14 + $0x68] sm:$0xff]  }
0x1fd1   :  { %v8833_v46 = vpop.f32.mrb[31].mxu0  ;;  %v8842_v8 = vadd.f32 %v11196_v17, %v9945_v31  ;;  %v8851_v51 = vadd.f32 %v8839_v56, %v13602_v61 }
0x1fd2   :  { %v8849_v62 = vadd.f32 %v8831_v33, %v13594_v19  ;;  %v8834_v28 = vadd.f32 %v9945_v31, %v8833_v46 }
0x1fd3   :  { %v8852_v42 = vadd.f32 %v8842_v8, %v14991_v30  ;;  %v8875_v12 = vsel %vm455_vm1, %v8851_v51, 0.0 }
0x1fd4   :  { %v8850_v11 = vadd.f32 %v8834_v28, %v13596_v1  ;;  %v8869_v20 = vsel %vm455_vm1, %v8849_v62, 0.0 }
0x1fd5   :  { %8870 = vadd.xlane.f32.xlu1 %v8869_v20  ;;  %v8878_v15 = vsel %vm455_vm1, %v8852_v42, 0.0 }
0x1fd6   :  { %v8872_v22 = vsel %vm455_vm1, %v8850_v11, 0.0 }
0x1fd7   :  { %8873 = vadd.xlane.f32.xlu0 %v8872_v22 }
0x1fd9   :  { %8876 = vadd.xlane.f32.xlu1 %v8875_v12  ;;  %v9952_v12 = vld [vmem:[#allocation10 + $0x1] ss:$0 sm:$0xff] }
0x1fdb   :  { %8879 = vadd.xlane.f32.xlu0 %v8878_v15 }
0x2024   :  { %v8859_v19 = vpop.xlane.xlu0 %8858 }
0x2025   :  { %v8881_v21 = vmul.f32 0.03125, %v8859_v19 }
0x2026   :  { %v8862_v32 = vpop.xlane.xlu1 %8861 }
0x2027   :  { %v14601_v61 = vsub.f32 %v8845_v44, %v8881_v21  ;;  %v8882_v1 = vmul.f32 0.03125, %v8862_v32 }
0x2028   :  { %v8865_v53 = vpop.xlane.xlu0 %8864 }
0x2029   :  { %v14603_v60 = vsub.f32 %v8846_v40, %v8882_v1  ;;  %v8883_v36 = vmul.f32 0.03125, %v8865_v53  ;;  %v8897_v25 = vmul.f32 %v14601_v61, %v14601_v61  ;;  %v9953_v53 = vld [vmem:[#allocation11 + $0x1] ss:$0 sm:$0xff] }
0x202b   :  { %v14607_v41 = vsub.f32 %v8847_v29, %v8883_v36  ;;  %v8905_v59 = vsel %vm455_vm1, %v8897_v25, 0.0  ;;  %v8898_v4 = vmul.f32 %v14603_v60, %v14603_v60 }
0x202c   :  { %8906 = vadd.xlane.f32.xlu1 %v8905_v59  ;;  %v8868_v2 = vpop.xlane.xlu0 %8867 }
0x202d   :  { %v8884_v57 = vmul.f32 0.03125, %v8868_v2  ;;  %v8908_v0 = vsel %vm455_vm1, %v8898_v4, 0.0  ;;  %v8899_v49 = vmul.f32 %v14607_v41, %v14607_v41 }
0x202e   :  { %8909 = vadd.xlane.f32.xlu0 %v8908_v0 }
0x202f   :  { %v14615_v52 = vsub.f32 %v8848_v35, %v8884_v57  ;;  %v8911_v26 = vsel %vm455_vm1, %v8899_v49, 0.0  ;;  %v11438_v35 = vld [vmem:[%s14924_s14 + $0x48] sm:$0xff]  }
0x2030   :  { %8912 = vadd.xlane.f32.xlu1 %v8911_v26  ;;  %11211 = vmatprep.subr.bf16.mxu0 %v11438_v35 }
0x2031   :  { %v8900_v9 = vmul.f32 %v14615_v52, %v14615_v52  ;;  %11212 = vmatpush3.bf16.msra.mxu0 %v11438_v35 }
0x2032   :  { %11213 = vmatprep.subr.bf16.mxu0 %v11439_v39 }
0x2033   :  { %v8914_v34 = vsel %vm455_vm1, %v8900_v9, 0.0 }
0x2034   :  { %8915 = vadd.xlane.f32.xlu0 %v8914_v34 }
0x2035   :  { %11214 = vmatpush3.bf16.msra.mxu0 %v11439_v39 }
0x2036   :  { %11215 = vmatprep.subr.bf16.mxu0 %v11440_v6 }
0x2039   :  { %11216 = vmatpush3.bf16.msra.mxu0 %v11440_v6 }
0x203a   :  { %11217 = vmatprep.subr.bf16.mxu0 %v11441_v7 }
0x203d   :  { %11218 = vmatpush3.bf16.msra.mxu0 %v11441_v7 }
0x203e   :  { %11219 = vmatprep.subr.bf16.mxu0 %v11442_v14 }
0x2041   :  { %11220 = vmatpush3.bf16.msra.mxu0 %v11442_v14 }
0x2062   :  { %v8871_v38 = vpop.xlane.xlu1 %8870 }
0x2063   :  { %v8885_v43 = vmul.f32 0.03125, %v8871_v38 }
0x2064   :  { %v8874_v37 = vpop.xlane.xlu0 %8873 }
0x2065   :  { %v14622_v63 = vsub.f32 %v8849_v62, %v8885_v43  ;;  %v8886_v13 = vmul.f32 0.03125, %v8874_v37 }
0x2066   :  { %v8877_v50 = vpop.xlane.xlu1 %8876 }
0x2067   :  { %v14624_v18 = vsub.f32 %v8850_v11, %v8886_v13  ;;  %v8887_v31 = vmul.f32 0.03125, %v8877_v50  ;;  %v8901_v10 = vmul.f32 %v14622_v63, %v14622_v63 }
0x2068   :  { %v8880_v27 = vpop.xlane.xlu0 %8879 }
0x2069   :  { %v14628_v47 = vsub.f32 %v8851_v51, %v8887_v31  ;;  %v8888_v58 = vmul.f32 0.03125, %v8880_v27  ;;  %v8917_v23 = vsel %vm455_vm1, %v8901_v10, 0.0  ;;  %v8902_v3 = vmul.f32 %v14624_v18, %v14624_v18 }
0x206a   :  { %8918 = vadd.xlane.f32.xlu1 %v8917_v23 }
0x206b   :  { %v14633_v44 = vsub.f32 %v8852_v42, %v8888_v58  ;;  %v8920_v54 = vsel %vm455_vm1, %v8902_v3, 0.0  ;;  %v8903_v29 = vmul.f32 %v14628_v47, %v14628_v47 }
0x206c   :  { %8921 = vadd.xlane.f32.xlu0 %v8920_v54 }
0x206d   :  { %v8923_v24 = vsel %vm455_vm1, %v8903_v29, 0.0  ;;  %v8904_v40 = vmul.f32 %v14633_v44, %v14633_v44 }
0x206e   :  { %8924 = vadd.xlane.f32.xlu1 %v8923_v24 }
0x206f   :  { %v8926_v45 = vsel %vm455_vm1, %v8904_v40, 0.0 }
0x2070   :  { %8927 = vadd.xlane.f32.xlu0 %v8926_v45 }
0x20b9   :  { %v8907_v56 = vpop.xlane.xlu1 %8906 }
0x20ba   :  { %v8929_v33 = vmul.f32 0.03125, %v8907_v56  ;;  %v11444_v56 = vld [vmem:[%s14924_s14 + $0x78] sm:$0xff]  }
0x20bb   :  { %v8910_v17 = vpop.xlane.xlu0 %8909 }
0x20bc   :  { %v8937_v46 = vadd.f32 1e-05, %v8929_v33  ;;  %v8930_v62 = vmul.f32 0.03125, %v8910_v17  ;;  %v9954_v33 = vld [vmem:[#allocation17 + $0x1] ss:$0 sm:$0xff] }
0x20bd   :  { %v8913_v8 = vpop.xlane.xlu1 %8912 }
0x20be   :  { %11743 = vrsqrt.f32 %v8937_v46  ;;  %v8938_v28 = vadd.f32 1e-05, %v8930_v62  ;;  %v8931_v51 = vmul.f32 0.03125, %v8913_v8 }
0x20c0   :  { %11745 = vrsqrt.f32 %v8938_v28  ;;  %v8939_v11 = vadd.f32 1e-05, %v8931_v51 }
0x20c1   :  { %v8916_v20 = vpop.xlane.xlu0 %8915 }
0x20c2   :  { %11747 = vrsqrt.f32 %v8939_v11  ;;  %v8932_v30 = vmul.f32 0.03125, %v8916_v20 }
0x20c4   :  { %v8940_v42 = vadd.f32 1e-05, %v8932_v30 }
0x20c6   :  { %11749 = vrsqrt.f32 %v8940_v42 }
0x20c8   :  { %v11744_v22 = vpop.eup %11743 }
0x20c9   :  { %v8953_v15 = vmul.f32 %v11744_v22, %v14601_v61 }
0x20ca   :  { %v11746_v19 = vpop.eup %11745 }
0x20cb   :  { %v8954_v21 = vmul.f32 %v11746_v19, %v14603_v60  ;;  %v8967_v32 = vmul.f32 %v9952_v12, %v8953_v15 }
0x20cc   :  { %v11748_v1 = vpop.eup %11747 }
0x20cd   :  { %v8955_v36 = vmul.f32 %v11748_v1, %v14607_v41  ;;  %v8968_v25 = vmul.f32 %v9952_v12, %v8954_v21  ;;  %v14663_v59 = vadd.f32 %v9953_v53, %v8967_v32 }
0x20cf   :  { %v14665_v4 = vadd.f32 %v9953_v53, %v8968_v25  ;;  %v8969_v57 = vmul.f32 %v9952_v12, %v8955_v36 }
0x20d0   :  { %v11750_v2 = vpop.eup %11749 }
0x20d1   :  { %v8956_v0 = vmul.f32 %v11750_v2, %v14615_v52  ;;  %v8989_v61 = vpack.c.bf16 %v14665_v4, %v14663_v59  ;;  %v14671_v60 = vadd.f32 %v9953_v53, %v8969_v57 }
0x20d3   :  { %v8970_v49 = vmul.f32 %v9952_v12, %v8956_v0  ;;  %11201 = vmatprep.mubr.msk.bf16.mxu1 %vm455_vm1, %v8989_v61 }
0x20d5   :  { %v14673_v26 = vadd.f32 %v9953_v53, %v8970_v49 }
0x20d7   :  { %v8990_v41 = vpack.c.bf16 %v14673_v26, %v14671_v60 }
0x20d9   :  { %11202 = vmatmul.mubr.msk.bf16.vlgmr.msra.gmra.mrb[24].mxu1 %vm455_vm1, %v8990_v41 }
0x20f7   :  { %v8919_v9 = vpop.xlane.xlu1 %8918 }
0x20f8   :  { %v8933_v34 = vmul.f32 0.03125, %v8919_v9 }
0x20f9   :  { %v8922_v55 = vpop.xlane.xlu0 %8921 }
0x20fa   :  { %v8941_v48 = vadd.f32 1e-05, %v8933_v34  ;;  %v8934_v52 = vmul.f32 0.03125, %v8922_v55  ;;  %v9978_v55 = vld [vmem:[%s14925_s15 + $0x1] ss:$0 sm:$0xff] }
0x20fb   :  { %v8925_v38 = vpop.xlane.xlu1 %8924 }
0x20fc   :  { %11751 = vrsqrt.f32 %v8941_v48  ;;  %v8942_v43 = vadd.f32 1e-05, %v8934_v52  ;;  %v8935_v37 = vmul.f32 0.03125, %v8925_v38 }
0x20fd   :  { %v8928_v13 = vpop.xlane.xlu0 %8927 }
0x20fe   :  { %11753 = vrsqrt.f32 %v8942_v43  ;;  %v8943_v50 = vadd.f32 1e-05, %v8935_v37  ;;  %v8936_v31 = vmul.f32 0.03125, %v8928_v13 }
0x2100   :  { %11755 = vrsqrt.f32 %v8943_v50  ;;  %v8944_v10 = vadd.f32 1e-05, %v8936_v31 }
0x2102   :  { %11757 = vrsqrt.f32 %v8944_v10 }
0x2106   :  { %v11752_v27 = vpop.eup %11751 }
0x2107   :  { %v8957_v58 = vmul.f32 %v11752_v27, %v14622_v63 }
0x2108   :  { %v11754_v23 = vpop.eup %11753 }
0x2109   :  { %v8958_v3 = vmul.f32 %v11754_v23, %v14624_v18  ;;  %v8971_v54 = vmul.f32 %v9952_v12, %v8957_v58 }
0x210a   :  { %v11756_v29 = vpop.eup %11755 }
0x210b   :  { %v8959_v24 = vmul.f32 %v11756_v29, %v14628_v47  ;;  %v8972_v40 = vmul.f32 %v9952_v12, %v8958_v3  ;;  %v14682_v39 = vadd.f32 %v9953_v53, %v8971_v54 }
0x210c   :  { %v11758_v45 = vpop.eup %11757 }
0x210d   :  { %v8973_v16 = vmul.f32 %v9952_v12, %v8959_v24  ;;  %v8960_v35 = vmul.f32 %v11758_v45, %v14633_v44  ;;  %v14684_v6 = vadd.f32 %v9953_v53, %v8972_v40  ;;  %v11443_v44 = vld [vmem:[%s14924_s14 + $0x70] sm:$0xff]  }
0x210e   :  { %11221 = vmatprep.subr.bf16.mxu0 %v11443_v44 }
0x210f   :  { %v8974_v7 = vmul.f32 %v9952_v12, %v8960_v35  ;;  %v8991_v63 = vpack.c.bf16 %v14684_v6, %v14682_v39  ;;  %v14688_v14 = vadd.f32 %v9953_v53, %v8973_v16  ;;  %11222 = vmatpush3.bf16.msra.mxu0 %v11443_v44 }
0x2110   :  { %11223 = vmatprep.subr.bf16.mxu0 %v11444_v56 }
0x2111   :  { %v14690_v18 = vadd.f32 %v9953_v53, %v8974_v7  ;;  %11205 = vmatprep.mubr.msk.bf16.mxu1 %vm455_vm1, %v8991_v63 }
0x2113   :  { %v8992_v47 = vpack.c.bf16 %v14690_v18, %v14688_v14  ;;  %11224 = vmatpush3.bf16.msra.mxu0 %v11444_v56 }
0x2115   :  { %11206 = vmatmul.mubr.msk.bf16.gmra.mrb[28].mxu1 %vm455_vm1, %v8992_v47 }
0x2116   :  { %11237 = vmatprep.mubr.msk.bf16.mxu1 %vm12063_vm2, %v14970_v5 }
0x21ac   :  { %v11203_v17 = vpop.f32.mrb[24].mxu1 }
0x21ad   :  { %v9073_v46 = vadd.f32 %v11203_v17, %v9954_v33  ;;  %v9064_v62 = vpop.f32.mrb[25].mxu1 }
0x21ae   :  { %v9065_v8 = vadd.f32 %v9954_v33, %v9064_v62  ;;  %v11204_v28 = vpop.f32.mrb[26].mxu1 }
0x21af   :  { %v9076_v51 = vadd.f32 %v11204_v28, %v9954_v33  ;;  %v9067_v11 = vpop.f32.mrb[27].mxu1  ;;  %v9097_v30 = vmax.f32 %v9073_v46, 0.0 }
0x21b0   :  { %v9068_v20 = vadd.f32 %v9954_v33, %v9067_v11  ;;  %v9095_v22 = vmax.f32 %v9065_v8, 0.0  ;;  %v14993_v8 = vld [vmem:[#allocation28_spill] sm:$0xff] }
0x21b1   :  { %v9098_v42 = vmax.f32 %v9076_v51, 0.0  ;;  %v290_v51 = vsub.s32 3, %v14993_v8  ;;  %v276_v11 = vsub.s32 1, %v14993_v8 }
0x21b2   :  { %v9096_v12 = vmax.f32 %v9068_v20, 0.0 }
0x21b3   :  { %v9104_v15 = vpack.c.bf16 %v9098_v42, %v9097_v30  ;;  %v304_v30 = vsub.s32 5, %v14993_v8 }
0x21b4   :  { %v9103_v19 = vpack.c.bf16 %v9096_v12, %v9095_v22  ;;  %v297_v22 = vsub.s32 4, %v14993_v8 }
0x21b6   :  { %11225 = vmatprep.mubr.bf16.mxu0 %v9103_v19 }
0x21b7   :  { %11226 = vmatmul.mubr.bf16.vlgmr.msra.gmra.mrb[32].mxu0 %v9104_v15 }
0x21e8   :  { %v11207_v21 = vpop.f32.mrb[28].mxu1 }
0x21e9   :  { %v9089_v32 = vadd.f32 %v11207_v21, %v9954_v33  ;;  %v9080_v1 = vpop.f32.mrb[29].mxu1 }
0x21ea   :  { %v9081_v53 = vadd.f32 %v9954_v33, %v9080_v1  ;;  %v11208_v36 = vpop.f32.mrb[30].mxu1 }
0x21eb   :  { %v9092_v25 = vadd.f32 %v11208_v36, %v9954_v33  ;;  %v9083_v2 = vpop.f32.mrb[31].mxu1  ;;  %v9101_v0 = vmax.f32 %v9089_v32, 0.0 }
0x21ec   :  { %v9084_v57 = vadd.f32 %v9954_v33, %v9083_v2  ;;  %v9099_v49 = vmax.f32 %v9081_v53, 0.0 }
0x21ed   :  { %v9102_v61 = vmax.f32 %v9092_v25, 0.0 }
0x21ee   :  { %v9100_v41 = vmax.f32 %v9084_v57, 0.0 }
0x21ef   :  { %v9106_v9 = vpack.c.bf16 %v9102_v61, %v9101_v0 }
0x21f0   :  { %v9105_v34 = vpack.c.bf16 %v9100_v41, %v9099_v49 }
0x21f2   :  { %11229 = vmatprep.mubr.bf16.mxu0 %v9105_v34 }
0x21f3   :  { %11230 = vmatmul.mubr.bf16.gmra.mrb[36].mxu0 %v9106_v9 }
0x228a   :  { %v11227_v48 = vpop.f32.mrb[32].mxu0 }
0x228b   :  { %v9223_v52 = vadd.f32 %v11227_v48, %v9978_v55  ;;  %v9214_v38 = vpop.f32.mrb[33].mxu0 }
0x228c   :  { %v9215_v43 = vadd.f32 %v9978_v55, %v9214_v38  ;;  %v11228_v37 = vpop.f32.mrb[34].mxu0 }
0x228d   :  { %v9247_v13 = vadd.f32 %v9223_v52, %v14671_v60  ;;  %v9226_v50 = vadd.f32 %v11228_v37, %v9978_v55  ;;  %v9217_v31 = vpop.f32.mrb[35].mxu0 }
0x228e   :  { %v9218_v10 = vadd.f32 %v9978_v55, %v9217_v31  ;;  %v9245_v27 = vadd.f32 %v9215_v43, %v14663_v59 }
0x228f   :  { %v9248_v58 = vadd.f32 %v9226_v50, %v14673_v26  ;;  %v9263_v23 = vsel %vm455_vm1, %v9247_v13, 0.0 }
0x2290   :  { %9264 = vadd.xlane.f32.xlu1 %v9263_v23  ;;  %v9246_v3 = vadd.f32 %v9218_v10, %v14665_v4  ;;  %v9257_v29 = vsel %vm455_vm1, %v9245_v27, 0.0 }
0x2291   :  { %v9266_v54 = vsel %vm455_vm1, %v9248_v58, 0.0 }
0x2292   :  { %9267 = vadd.xlane.f32.xlu0 %v9266_v54  ;;  %v9260_v60 = vsel %vm455_vm1, %v9246_v3, 0.0 }
0x2294   :  { %9258 = vadd.xlane.f32.xlu1 %v9257_v29 }
0x2296   :  { %9261 = vadd.xlane.f32.xlu0 %v9260_v60 }
0x22c6   :  { %v11231_v24 = vpop.f32.mrb[36].mxu0 }
0x22c7   :  { %v9239_v40 = vadd.f32 %v11231_v24, %v9978_v55  ;;  %v9230_v45 = vpop.f32.mrb[37].mxu0 }
0x22c8   :  { %v9231_v59 = vadd.f32 %v9978_v55, %v9230_v45  ;;  %v11232_v16 = vpop.f32.mrb[38].mxu0 }
0x22c9   :  { %v9251_v26 = vadd.f32 %v9239_v40, %v14688_v14  ;;  %v9242_v35 = vadd.f32 %v11232_v16, %v9978_v55  ;;  %v9233_v7 = vpop.f32.mrb[39].mxu0 }
0x22ca   :  { %v9234_v63 = vadd.f32 %v9978_v55, %v9233_v7  ;;  %v9249_v4 = vadd.f32 %v9231_v59, %v14682_v39  ;;  %v11791_v39 = vld [vmem:[#allocation2] sm:$0xff] }
0x22cb   :  { %v9275_v47 = vsel %vm455_vm1, %v9251_v26, 0.0  ;;  %v14722_v56 = vadd.f32 %v9242_v35, %v14690_v18  ;;  %v14729_v46 = vsub.f32 1.0, %v11791_v39  ;;  %v283_v18 = vsub.s32 2, %v14993_v8 }
0x22cc   :  { %v14719_v44 = vadd.f32 %v9234_v63, %v14684_v6  ;;  %9276 = vadd.xlane.f32.xlu1 %v9275_v47  ;;  %v9269_v14 = vsel %vm455_vm1, %v9249_v4, 0.0  ;;  %v14992_v6 = vld [vmem:[#allocation29_spill] sm:$0xff]  ;;  %v318_v63 = vsub.s32 7, %v14993_v8  ;;  %v311_v47 = vsub.s32 6, %v14993_v8 }
0x22cd   :  { %v9278_v17 = vsel %vm455_vm1, %v14722_v56, 0.0  ;;  %v270_v62 = vrot.slane %v14729_v46, %v14992_v6  ;;  %v284_v28 = vrot.slane %v14729_v46, %v283_v18  ;;  %v291_v20 = vrot.slane %v14729_v46, %v290_v51 }
0x22ce   :  { %v9272_v33 = vsel %vm455_vm1, %v14719_v44, 0.0  ;;  %v277_v42 = vrot.slane %v14729_v46, %v276_v11  ;;  %v305_v12 = vrot.slane %v14729_v46, %v304_v30  ;;  %v298_v15 = vrot.slane %v14729_v46, %v297_v22 }
0x22cf   :  { %9273 = vadd.xlane.f32.xlu0 %v9272_v33  ;;  %v11446_v33 = vld [vmem:[%s14926_s16 + $0x8] sm:$0xff]  }
0x22d0   :  { %9270 = vadd.xlane.f32.xlu1 %v9269_v14 }
0x22d3   :  { %9279 = vadd.xlane.f32.xlu0 %v9278_v17 }
0x22e1   :  { %272 = vbcast.lane.b32.xlu1 %v270_v62, 256 }
0x22e5   :  { %286 = vbcast.lane.b32.xlu1 %v284_v28, 256 }
0x22e9   :  { %293 = vbcast.lane.b32.xlu1 %v291_v20, 256  ;;  %279 = vbcast.lane.b32.xlu0 %v277_v42, 256 }
0x22ed   :  { %307 = vbcast.lane.b32.xlu1 %v305_v12, 256  ;;  %300 = vbcast.lane.b32.xlu0 %v298_v15, 256 }
0x231d   :  { %v9265_v19 = vpop.xlane.xlu1 %9264 }
0x231e   :  { %v9283_v21 = vmul.f32 0.03125, %v9265_v19 }
0x231f   :  { %v9268_v32 = vpop.xlane.xlu0 %9267 }
0x2320   :  { %v14743_v1 = vsub.f32 %v9247_v13, %v9283_v21  ;;  %v9284_v53 = vmul.f32 0.03125, %v9268_v32 }
0x2321   :  { %v9259_v36 = vpop.xlane.xlu1 %9258 }
0x2322   :  { %v14745_v25 = vsub.f32 %v9248_v58, %v9284_v53  ;;  %v9281_v2 = vmul.f32 0.03125, %v9259_v36  ;;  %v9299_v57 = vmul.f32 %v14743_v1, %v14743_v1 }
0x2323   :  { %v9262_v0 = vpop.xlane.xlu0 %9261 }
0x2324   :  { %v14749_v61 = vsub.f32 %v9245_v27, %v9281_v2  ;;  %v9282_v49 = vmul.f32 0.03125, %v9262_v0  ;;  %v9311_v41 = vsel %vm455_vm1, %v9299_v57, 0.0  ;;  %v9300_v9 = vmul.f32 %v14745_v25, %v14745_v25 }
0x2325   :  { %9312 = vadd.xlane.f32.xlu1 %v9311_v41 }
0x2326   :  { %v14754_v34 = vsub.f32 %v9246_v3, %v9282_v49  ;;  %v9314_v55 = vsel %vm455_vm1, %v9300_v9, 0.0  ;;  %v9297_v48 = vmul.f32 %v14749_v61, %v14749_v61 }
0x2327   :  { %9315 = vadd.xlane.f32.xlu0 %v9314_v55  ;;  %v14808_v55 = vld [vmem:[#allocation13 + $0x1] ss:$0 sm:$0xff] }
0x2328   :  { %v9305_v52 = vsel %vm455_vm1, %v9297_v48, 0.0  ;;  %v9298_v38 = vmul.f32 %v14754_v34, %v14754_v34 }
0x2329   :  { %9306 = vadd.xlane.f32.xlu1 %v9305_v52 }
0x232a   :  { %v9308_v43 = vsel %vm455_vm1, %v9298_v38, 0.0 }
0x232b   :  { %9309 = vadd.xlane.f32.xlu0 %v9308_v43 }
0x2359   :  { %v9277_v37 = vpop.xlane.xlu1 %9276 }
0x235a   :  { %v9287_v13 = vmul.f32 0.03125, %v9277_v37 }
0x235c   :  { %v14763_v50 = vsub.f32 %v9251_v26, %v9287_v13  ;;  %v9274_v31 = vpop.xlane.xlu0 %9273 }
0x235d   :  { %v9271_v10 = vpop.xlane.xlu1 %9270  ;;  %v9286_v23 = vmul.f32 0.03125, %v9274_v31 }
0x235e   :  { %v9285_v27 = vmul.f32 0.03125, %v9271_v10  ;;  %v9303_v58 = vmul.f32 %v14763_v50, %v14763_v50  ;;  %v14815_v10 = vld [vmem:[#allocation14 + $0x1] ss:$0 sm:$0xff] }
0x235f   :  { %v14773_v40 = vsub.f32 %v14719_v44, %v9286_v23  ;;  %v312_v44 = vrot.slane %v14729_v46, %v311_v47 }
0x2360   :  { %v14767_v3 = vsub.f32 %v9249_v4, %v9285_v27  ;;  %v9280_v54 = vpop.xlane.xlu0 %9279  ;;  %v9323_v29 = vsel %vm455_vm1, %v9303_v58, 0.0  ;;  %v319_v4 = vrot.slane %v14729_v46, %v318_v63 }
0x2361   :  { %v9288_v60 = vmul.f32 0.03125, %v9280_v54  ;;  %9324 = vadd.xlane.f32.xlu1 %v9323_v29  ;;  %v9302_v35 = vmul.f32 %v14773_v40, %v14773_v40  ;;  %v273_v14 = vpop.permute.xlu1 %272 }
0x2362   :  { %v9301_v24 = vmul.f32 %v14767_v3, %v14767_v3  ;;  %v9453_v32 = vrot.slane %v273_v14, 4 }
0x2363   :  { %v14776_v45 = vsub.f32 %v14722_v56, %v9288_v60  ;;  %v9320_v7 = vsel %vm455_vm1, %v9302_v35, 0.0  ;;  %v11445_v56 = vld [vmem:[%s14926_s16] sm:$0xff]  }
0x2364   :  { %v9317_v59 = vsel %vm455_vm1, %v9301_v24, 0.0  ;;  %11234 = vmatpush3.bf16.msra.mxu1 %v11445_v56  ;;  %v280_v39 = vpop.permute.xlu0 %279  ;;  %v9454_v0 = vadd.f32 %v9453_v32, %v273_v14 }
0x2365   :  { %9318 = vadd.xlane.f32.xlu1 %v9317_v59  ;;  %v9304_v16 = vmul.f32 %v14776_v45, %v14776_v45  ;;  %11235 = vmatprep.subr.bf16.mxu1 %v14970_v5  ;;  %v14797_v17 = vpop.permute.xlu1 %286  ;;  %v9459_v53 = vrot.slane %v280_v39, 4 }
0x2366   :  { %v9465_v49 = vrot.slane %v14797_v17, 4  ;;  %v9455_v43 = vrot.slane %v9454_v0, 2 }
0x2367   :  { %v9326_v26 = vsel %vm455_vm1, %v9304_v16, 0.0  ;;  %v9460_v41 = vadd.f32 %v9459_v53, %v280_v39 }
0x2368   :  { %9327 = vadd.xlane.f32.xlu0 %v9326_v26  ;;  %11236 = vmatpush3.bf16.msra.mxu1 %v11446_v33  ;;  %v14801_v6 = vpop.permute.xlu0 %300  ;;  %v9466_v37 = vadd.f32 %v9465_v49, %v14797_v17  ;;  %v9456_v23 = vadd.f32 %v9455_v43, %v9454_v0 }
0x2369   :  { %11241 = vmatprep.subr.bf16.mxu1 %v14970_v5  ;;  %v14799_v46 = vpop.permute.xlu1 %293  ;;  %v9461_v13 = vrot.slane %v9460_v41, 2 }
0x236a   :  { %v9471_v58 = vrot.slane %v14799_v46, 4  ;;  %v9467_v54 = vrot.slane %v9466_v37, 2 }
0x236b   :  { %v9462_v60 = vadd.f32 %v9461_v13, %v9460_v41 }
0x236c   :  { %9321 = vadd.xlane.f32.xlu0 %v9320_v7  ;;  %v9472_v7 = vadd.f32 %v9471_v58, %v14799_v46  ;;  %v9468_v47 = vadd.f32 %v9467_v54, %v9466_v37 }
0x236d   :  { %v14803_v62 = vpop.permute.xlu1 %307  ;;  %v9463_v56 = vrot.slane %v9462_v60, 1 }
0x2376   :  { %321 = vbcast.lane.b32.xlu1 %v319_v4, 256  ;;  %v9457_v4 = vrot.slane %v9456_v23, 1 }
0x2382   :  { %314 = vbcast.lane.b32.xlu0 %v312_v44, 256 }
0x23b2   :  { %v9313_v18 = vpop.xlane.xlu1 %9312 }
0x23b3   :  { %v9331_v30 = vmul.f32 0.03125, %v9313_v18 }
0x23b4   :  { %v9316_v8 = vpop.xlane.xlu0 %9315 }
0x23b5   :  { %v9339_v12 = vadd.f32 1e-05, %v9331_v30  ;;  %v9332_v15 = vmul.f32 0.03125, %v9316_v8 }
0x23b6   :  { %v9307_v51 = vpop.xlane.xlu1 %9306 }
0x23b7   :  { %v9329_v20 = vmul.f32 0.03125, %v9307_v51  ;;  %v9340_v19 = vadd.f32 1e-05, %v9332_v15 }
0x23b8   :  { %v9310_v28 = vpop.xlane.xlu0 %9309 }
0x23b9   :  { %v9330_v11 = vmul.f32 0.03125, %v9310_v28  ;;  %v9337_v22 = vadd.f32 1e-05, %v9329_v20  ;;  %v9483_v20 = vrot.slane %v14803_v62, 4 }
0x23bb   :  { %v9338_v42 = vadd.f32 1e-05, %v9330_v11  ;;  %v9473_v11 = vrot.slane %v9472_v7, 2  ;;  %v9484_v0 = vadd.f32 %v9483_v20, %v14803_v62 }
0x23bd   :  { %11759 = vrsqrt.f32 %v9338_v42  ;;  %v9485_v58 = vrot.slane %v9484_v0, 2 }
0x23be   :  { %11761 = vrsqrt.f32 %v9337_v22  ;;  %v9458_v22 = vadd.f32 %v9457_v4, %v9456_v23 }
0x23bf   :  { %11763 = vrsqrt.f32 %v9339_v12  ;;  %v9469_v12 = vrot.slane %v9468_v47, 1 }
0x23c0   :  { %11765 = vrsqrt.f32 %v9340_v19  ;;  %v9501_v13 = vmax.f32 %v9458_v22, 1e-09 }
0x23c7   :  { %v11760_v21 = vpop.eup %11759 }
0x23c8   :  { %v11762_v36 = vpop.eup %11761  ;;  %v9354_v57 = vmul.f32 %v11760_v21, %v14754_v34  ;;  %v9477_v34 = vrot.slane %v14801_v6, 4 }
0x23c9   :  { %v11764_v2 = vpop.eup %11763  ;;  %v9353_v9 = vmul.f32 %v11762_v36, %v14749_v61 }
0x23ca   :  { %v9355_v48 = vmul.f32 %v11764_v2, %v14743_v1  ;;  %v11766_v52 = vpop.eup %11765  ;;  %v9368_v38 = vmul.f32 %v14808_v55, %v9354_v57  ;;  %v9478_v16 = vadd.f32 %v9477_v34, %v14801_v6  ;;  %v9474_v57 = vadd.f32 %v9473_v11, %v9472_v7 }
0x23cb   :  { %v9367_v31 = vmul.f32 %v14808_v55, %v9353_v9  ;;  %v9356_v61 = vmul.f32 %v11766_v52, %v14745_v25 }
0x23cc   :  { %v9369_v27 = vmul.f32 %v14808_v55, %v9355_v48  ;;  %v9382_v1 = vadd.f32 %v14815_v10, %v9368_v38  ;;  %v9479_v18 = vrot.slane %v9478_v16, 2  ;;  %v9470_v38 = vadd.f32 %v9469_v12, %v9468_v47 }
0x23cd   :  { %v9381_v24 = vadd.f32 %v14815_v10, %v9367_v31  ;;  %v9370_v35 = vmul.f32 %v14808_v55, %v9356_v61  ;;  %v9475_v61 = vrot.slane %v9474_v57, 1 }
0x23ce   :  { %v9383_v26 = vadd.f32 %v14815_v10, %v9369_v27  ;;  %v9390_v25 = vmul.f32 %v9382_v1, %v280_v39  ;;  %v9480_v49 = vadd.f32 %v9479_v18, %v9478_v16 }
0x23cf   :  { %v9389_v33 = vmul.f32 %v9381_v24, %v273_v14  ;;  %v9384_v51 = vadd.f32 %v14815_v10, %v9370_v35  ;;  %v9464_v14 = vadd.f32 %v9463_v56, %v9462_v60  ;;  %v9476_v47 = vadd.f32 %v9475_v61, %v9474_v57 }
0x23d0   :  { %v9391_v28 = vmul.f32 %v9383_v26, %v14797_v17  ;;  %v9404_v30 = vsel %vm455_vm1, %v9390_v25, 0.0  ;;  %v9481_v23 = vrot.slane %v9480_v49, 1 }
0x23d1   :  { %v9397_v21 = vsel %vm455_vm1, %v9389_v33, 0.0  ;;  %v9392_v53 = vmul.f32 %v9384_v51, %v14799_v46  ;;  %v9405_v36 = vrot.slane %v9404_v30, 4  ;;  %v9502_v1 = vmax.f32 %v9464_v14, 1e-09 }
0x23d2   :  { %v9411_v32 = vsel %vm455_vm1, %v9391_v28, 0.0  ;;  %v9398_v48 = vrot.slane %v9397_v21, 4  ;;  %v9482_v56 = vadd.f32 %v9481_v23, %v9480_v49  ;;  %v9504_v12 = vmax.f32 %v9476_v47, 1e-09 }
0x23d3   :  { %v9412_v43 = vrot.slane %v9411_v32, 4  ;;  %v9418_v31 = vsel %vm455_vm1, %v9392_v53, 0.0  ;;  %v9406_v34 = vadd.f32 %v9405_v36, %v9404_v30 }
0x23d4   :  { %v9419_v26 = vrot.slane %v9418_v31, 4  ;;  %v9505_v14 = vmax.f32 %v9482_v56, 1e-09 }
0x23d5   :  { %v9413_v16 = vadd.f32 %v9412_v43, %v9411_v32  ;;  %v9407_v7 = vrot.slane %v9406_v34, 2 }
0x23d6   :  { %v9420_v51 = vadd.f32 %v9419_v26, %v9418_v31 }
0x23d7   :  { %v9414_v28 = vrot.slane %v9413_v16, 2  ;;  %v9408_v30 = vadd.f32 %v9407_v7, %v9406_v34 }
0x23d9   :  { %v9415_v36 = vadd.f32 %v9414_v28, %v9413_v16 }
0x23db   :  { %v9416_v23 = vrot.slane %v9415_v36, 1 }
0x23dd   :  { %v9417_v47 = vadd.f32 %v9416_v23, %v9415_v36 }
0x23ee   :  { %v9325_v29 = vpop.xlane.xlu1 %9324 }
0x23ef   :  { %v9335_v59 = vmul.f32 0.03125, %v9325_v29  ;;  %v9399_v29 = vadd.f32 %v9398_v48, %v9397_v21 }
0x23f1   :  { %v9343_v63 = vadd.f32 1e-05, %v9335_v59  ;;  %v9503_v59 = vmax.f32 %v9470_v38, 1e-09  ;;  %v9400_v33 = vrot.slane %v9399_v29, 2 }
0x23f2   :  { %v9319_v44 = vpop.xlane.xlu1 %9318 }
0x23f3   :  { %11767 = vrsqrt.f32 %v9343_v63  ;;  %v9333_v8 = vmul.f32 0.03125, %v9319_v44  ;;  %v9486_v44 = vadd.f32 %v9485_v58, %v9484_v0 }
0x23f5   :  { %v9341_v42 = vadd.f32 1e-05, %v9333_v8  ;;  %v9328_v39 = vpop.xlane.xlu0 %9327 }
0x23f6   :  { %v9336_v15 = vmul.f32 0.03125, %v9328_v39  ;;  %v14830_v19 = vpop.permute.xlu1 %321 }
0x23f7   :  { %11769 = vrsqrt.f32 %v9341_v42  ;;  %v9495_v17 = vrot.slane %v14830_v19, 4 }
0x23f8   :  { %v9344_v2 = vadd.f32 1e-05, %v9336_v15  ;;  %v9487_v15 = vrot.slane %v9486_v44, 1 }
0x23f9   :  { %v9322_v41 = vpop.xlane.xlu0 %9321  ;;  %v9496_v9 = vadd.f32 %v9495_v17, %v14830_v19  ;;  %v9401_v17 = vadd.f32 %v9400_v33, %v9399_v29 }
0x23fa   :  { %11771 = vrsqrt.f32 %v9344_v2  ;;  %v9334_v52 = vmul.f32 0.03125, %v9322_v41  ;;  %v9421_v41 = vrot.slane %v9420_v51, 2 }
0x23fb   :  { %v9497_v37 = vrot.slane %v9496_v9, 2  ;;  %v9402_v31 = vrot.slane %v9401_v17, 1 }
0x23fc   :  { %v9342_v46 = vadd.f32 1e-05, %v9334_v52 }
0x23fd   :  { %v11768_v27 = vpop.eup %11767  ;;  %v315_v54 = vpop.permute.xlu0 %314  ;;  %v9498_v35 = vadd.f32 %v9497_v37, %v9496_v9  ;;  %v9409_v9 = vrot.slane %v9408_v30, 1  ;;  %v9403_v26 = vadd.f32 %v9402_v31, %v9401_v17 }
0x23fe   :  { %11773 = vrsqrt.f32 %v9342_v46  ;;  %v9359_v60 = vmul.f32 %v11768_v27, %v14763_v50  ;;  %v9489_v24 = vrot.slane %v315_v54, 4 }
0x23ff   :  { %11775 = vrcp.f32 %v9501_v13  ;;  %v9499_v11 = vrot.slane %v9498_v35, 1  ;;  %v9488_v13 = vadd.f32 %v9487_v15, %v9486_v44 }
0x2400   :  { %v9373_v25 = vmul.f32 %v14808_v55, %v9359_v60  ;;  %v9490_v63 = vadd.f32 %v9489_v24, %v315_v54  ;;  %11777 = vrcp.f32 %v9502_v1 }
0x2401   :  { %v11770_v4 = vpop.eup %11769  ;;  %11779 = vrcp.f32 %v9503_v59  ;;  %v9500_v0 = vadd.f32 %v9499_v11, %v9498_v35  ;;  %v9506_v7 = vmax.f32 %v9488_v13, 1e-09 }
0x2402   :  { %v9357_v8 = vmul.f32 %v11770_v4, %v14767_v3  ;;  %v9387_v50 = vadd.f32 %v14815_v10, %v9373_v25  ;;  %v9491_v18 = vrot.slane %v9490_v63, 2  ;;  %11781 = vrcp.f32 %v9505_v14 }
0x2403   :  { %11783 = vrcp.f32 %v9504_v12 }
0x2404   :  { %v11772_v20 = vpop.eup %11771  ;;  %v9371_v42 = vmul.f32 %v14808_v55, %v9357_v8  ;;  %v9395_v39 = vmul.f32 %v9387_v50, %v315_v54  ;;  %v9492_v22 = vadd.f32 %v9491_v18, %v9490_v63  ;;  %v9422_v54 = vadd.f32 %v9421_v41, %v9420_v51 }
0x2405   :  { %v9360_v21 = vmul.f32 %v11772_v20, %v14776_v45 }
0x2406   :  { %v9385_v3 = vadd.f32 %v14815_v10, %v9371_v42  ;;  %v9439_v32 = vsel %vm455_vm1, %v9395_v39, 0.0  ;;  %v9493_v53 = vrot.slane %v9492_v22, 1 }
0x2407   :  { %v9440_v2 = vrot.slane %v9439_v32, 4  ;;  %v9374_v57 = vmul.f32 %v14808_v55, %v9360_v21 }
0x2408   :  { %v11774_v49 = vpop.eup %11773  ;;  %v9393_v48 = vmul.f32 %v9385_v3, %v14801_v6  ;;  %v9494_v52 = vadd.f32 %v9493_v53, %v9492_v22  ;;  %v9508_v6 = vmax.f32 %v9500_v0, 1e-09 }
0x2409   :  { %v9358_v45 = vmul.f32 %v11774_v49, %v14773_v40  ;;  %v9441_v38 = vadd.f32 %v9440_v2, %v9439_v32  ;;  %v9388_v43 = vadd.f32 %v14815_v10, %v9374_v57  ;;  %v11776_v37 = vpop.eup %11775  ;;  %v9410_v40 = vadd.f32 %v9409_v9, %v9408_v30 }
0x240a   :  { %v9425_v34 = vsel %vm455_vm1, %v9393_v48, 0.0  ;;  %v9507_v46 = vmax.f32 %v9494_v52, 1e-09  ;;  %v11778_v27 = vpop.eup %11777 }
0x240b   :  { %v9426_v61 = vrot.slane %v9425_v34, 4  ;;  %v9372_v58 = vmul.f32 %v14808_v55, %v9358_v45  ;;  %v9396_v1 = vmul.f32 %v9388_v43, %v14830_v19  ;;  %v11780_v29 = vpop.eup %11779  ;;  %v9442_v59 = vrot.slane %v9441_v38, 2 }
0x240c   :  { %11785 = vrcp.f32 %v9507_v46  ;;  %v9423_v19 = vrot.slane %v9422_v54, 1  ;;  %v9512_v63 = vmul.f32 %v11778_v27, %v9410_v40  ;;  %v11782_v18 = vpop.eup %11781 }
0x240d   :  { %v9427_v60 = vadd.f32 %v9426_v61, %v9425_v34  ;;  %v9386_v24 = vadd.f32 %v14815_v10, %v9372_v58  ;;  %v9446_v16 = vsel %vm455_vm1, %v9396_v1, 0.0  ;;  %11787 = vrcp.f32 %v9508_v6  ;;  %v11784_v22 = vpop.eup %11783 }
0x240e   :  { %v9447_v35 = vrot.slane %v9446_v16, 4  ;;  %v9443_v33 = vadd.f32 %v9442_v59, %v9441_v38  ;;  %v9510_v10 = vmul.f32 %v11776_v37, %v9403_v26  ;;  %11789 = vrcp.f32 %v9506_v7  ;;  %v11449_v7 = vld [vmem:[%s14928_s18 + $0x10] sm:$0xff]  }
0x240f   :  { %v9428_v25 = vrot.slane %v9427_v60, 2  ;;  %v9394_v55 = vmul.f32 %v9386_v24, %v14803_v62  ;;  %v9424_v51 = vadd.f32 %v9423_v19, %v9422_v54  ;;  %v9526_v11 = vpack.c.bf16 %v9512_v63, %v9512_v63  ;;  %v11452_v19 = vld [vmem:[%s14928_s18 + $0x28] sm:$0xff]   ;;  %v11453_v63 = vld [vmem:[%s14928_s18 + $0x30] sm:$0xff]  }
0x2410   :  { %v9448_v4 = vadd.f32 %v9447_v35, %v9446_v16  ;;  %v9514_v62 = vmul.f32 %v11780_v29, %v9417_v47  ;;  %v9444_v39 = vrot.slane %v9443_v33, 1  ;;  %v9525_v12 = vpack.c.bf16 %v9510_v10, %v9510_v10  ;;  %v11447_v16 = vld [vmem:[%s14928_s18] sm:$0xff]   ;;  %v11448_v35 = vld [vmem:[%s14928_s18 + $0x8] sm:$0xff]  }
0x2411   :  { %v9429_v44 = vadd.f32 %v9428_v25, %v9427_v60  ;;  %v9432_v56 = vsel %vm455_vm1, %v9394_v55, 0.0  ;;  %v9516_v3 = vmul.f32 %v11784_v22, %v9424_v51  ;;  %v9553_v32 = vunpack.c.l.b16 %v9526_v11  ;;  %v11450_v25 = vld [vmem:[%s14928_s18 + $0x18] sm:$0xff]   ;;  %v11451_v55 = vld [vmem:[%s14928_s18 + $0x20] sm:$0xff]  }
0x2412   :  { %v9433_v8 = vrot.slane %v9432_v56, 4  ;;  %v9449_v50 = vrot.slane %v9448_v4, 2  ;;  %v9527_v57 = vpack.c.bf16 %v9514_v62, %v9514_v62  ;;  %v9445_v0 = vadd.f32 %v9444_v39, %v9443_v33  ;;  %v9989_v47 = vld [vmem:[%s14927_s17] ss:$0 sm:$0xff]  ;;  %s12012_s17 = scalar_lea.vmem %s9751_s2, 128 }
0x2413   :  { %v9430_v28 = vrot.slane %v9429_v44, 1  ;;  %v9552_v49 = vunpack.c.l.b16 %v9525_v12  ;;  %v9528_v45 = vpack.c.bf16 %v9516_v3, %v9516_v3  ;;  %p12013_p10 = scmp.ne.s32.totalorder %s9751_s2, %s12012_s17  ;;  %p12018_p12 = scmp.lt.s32.totalorder %s12012_s17, %s12012_s17 }
0x2414   :  { %v9434_v20 = vadd.f32 %v9433_v8, %v9432_v56  ;;  %v9450_v30 = vadd.f32 %v9449_v50, %v9448_v4  ;;  %v9554_v13 = vunpack.c.l.b16 %v9527_v57  ;;  %v11454_v4 = vld [vmem:[%s14928_s18 + $0x38] sm:$0xff]  }
0x2415   :  { %v9431_v42 = vadd.f32 %v9430_v28, %v9429_v44  ;;  %v9561_v38 = vsel %vm9560_vm6, %v9553_v32, %v9552_v49  ;;  %v9555_v58 = vunpack.c.l.b16 %v9528_v45  ;;  %p12019_p13 = por %p12018_p12, %p12017_p11 }
0x2416   :  { %v9435_v15 = vrot.slane %v9434_v20, 2  ;;  %v9451_v14 = vrot.slane %v9450_v30, 1  ;;  %v11786_v17 = vpop.eup %11785  ;;  %v9563_v46 = vsel %vm9562_vm7, %v9554_v13, %v9561_v38 }
0x2417   :  { %v9518_v21 = vmul.f32 %v11782_v18, %v9431_v42  ;;  %v11788_v2 = vpop.eup %11787  ;;  %v9522_v48 = vmul.f32 %v11786_v17, %v9445_v0  ;;  %v9565_v23 = vsel %vm9564_vm8, %v9555_v58, %v9563_v46  ;;  %p12020_p0 = pnand %p12019_p13, %p12013_p10 }
0x2418   :  { %v9436_v53 = vadd.f32 %v9435_v15, %v9434_v20  ;;  %v9452_v36 = vadd.f32 %v9451_v14, %v9450_v30  ;;  %v11790_v37 = vpop.eup %11789 }
0x2419   :  { %v9529_v9 = vpack.c.bf16 %v9518_v21, %v9518_v21  ;;  %v9531_v27 = vpack.c.bf16 %v9522_v48, %v9522_v48 }
0x241a   :  { %v9437_v41 = vrot.slane %v9436_v53, 1  ;;  %v9524_v43 = vmul.f32 %v11788_v2, %v9452_v36 }
0x241b   :  { %v9556_v34 = vunpack.c.l.b16 %v9529_v9  ;;  %v9558_v40 = vunpack.c.l.b16 %v9531_v27 }
0x241c   :  { %v9438_v52 = vadd.f32 %v9437_v41, %v9436_v53  ;;  %v9532_v1 = vpack.c.bf16 %v9524_v43, %v9524_v43 }
0x241d   :  { %v9567_v54 = vsel %vm9566_vm9, %v9556_v34, %v9565_v23 }
0x241e   :  { %v9520_v31 = vmul.f32 %v11790_v37, %v9438_v52  ;;  %v9559_v60 = vunpack.c.l.b16 %v9532_v1 }
0x2420   :  { %v9530_v61 = vpack.c.bf16 %v9520_v31, %v9520_v31 }
0x2422   :  { %v9557_v6 = vunpack.c.l.b16 %v9530_v61 }
0x2424   :  { %v9569_v29 = vsel %vm9568_vm10, %v9557_v6, %v9567_v54 }
0x2425   :  { %v9571_v24 = vsel %vm9570_vm11, %v9558_v40, %v9569_v29 }
0x2426   :  { %v9573_v59 = vsel %vm9572_vm12, %v9559_v60, %v9571_v24 }
0x2427   :  { %v9574_v26 = vpack.c.b16 %v9573_v59, %v9573_v59 }
0x2429   :  { %11238 = vmatmul.mubr.msk.bf16.vlgmr.msra.gmra.mrb[32].mxu1 %vm455_vm1, %v9574_v26 }
0x242a   :  { %11242 = vmatpush3.bf16.msra.mxu1 %v11447_v16  ;;  %11257 = vmatprep.mubr.msk.bf16.mxu1 %vm12063_vm2, %v14970_v5 }
0x242b   :  { %11243 = vmatprep.subr.bf16.mxu1 %v14970_v5 }
0x242e   :  { %11244 = vmatpush3.bf16.msra.mxu1 %v11448_v35 }
0x242f   :  { %11245 = vmatprep.subr.bf16.mxu1 %v14970_v5 }
0x2432   :  { %11246 = vmatpush3.bf16.msra.mxu1 %v11449_v7 }
0x2433   :  { %11247 = vmatprep.subr.bf16.mxu1 %v14970_v5 }
0x2436   :  { %11248 = vmatpush3.bf16.msra.mxu1 %v11450_v25 }
0x2437   :  { %11249 = vmatprep.subr.bf16.mxu1 %v14970_v5 }
0x243a   :  { %11250 = vmatpush3.bf16.msra.mxu1 %v11451_v55 }
0x243b   :  { %11251 = vmatprep.subr.bf16.mxu1 %v14970_v5 }
0x243e   :  { %11252 = vmatpush3.bf16.msra.mxu1 %v11452_v19 }
0x243f   :  { %11253 = vmatprep.subr.bf16.mxu1 %v14970_v5 }
0x2442   :  { %11254 = vmatpush3.bf16.msra.mxu1 %v11453_v63 }
0x2443   :  { %11255 = vmatprep.subr.bf16.mxu1 %v14970_v5  ;;  %v9993_v5 = vld [vmem:[%s14929_s19] ss:$0 sm:$0xff] }
0x2446   :  { %11256 = vmatpush3.bf16.msra.mxu1 %v11454_v4 }
0x24fc   :  { %v9624_v44 = vpop.f32.mrb[32].mxu1 }
0x24fd   :  { %v9625_v56 = vadd.f32 %v9989_v47, %v9624_v44  ;;  %v11239_v33 = vpop.f32.mrb[33].mxu1 }
0x24fe   :  { %v9627_v10 = vpop.f32.mrb[34].mxu1 }
0x24ff   :  { %v9630_v8 = vmax.f32 %v9625_v56, 0.0  ;;  %v11240_v50 = vpop.f32.mrb[35].mxu1 }
0x2501   :  { %v9631_v18 = vpack.c.bf16 %v9630_v8, %v9630_v8 }
0x2503   :  { %11258 = vmatmul.mubr.bf16.vlgmr.msra.gmra.mrb[36].mxu1 %v9631_v18 }
0x25d6   :  { %v9737_v28 = vpop.f32.mrb[36].mxu1 }
0x25d7   :  { %v9738_v51 = vadd.f32 %v9993_v5, %v9737_v28  ;;  %v11259_v11 = vpop.f32.mrb[37].mxu1 }
0x25d8   :  { %v9740_v20 = vpop.f32.mrb[38].mxu1 }
0x25d9   :  { %9743 = vst [vmem:[#allocation19] sm:$0xff] %v9738_v51  ;;  %v11260_v30 = vpop.f32.mrb[39].mxu1 }
0x25da   :  { %12023 = shalt.err (!%p12020_p0)
}
0x25db   :  { %s14994_s12 = sld [smem:[#allocation38_spill]] }
0x25e1   :  { %s12024_s19 = scalar_lea.hbm %s14994_s12, 128 }
0x25e2   :  { %p12025_p1 = scmp.ne.s32.totalorder %s14994_s12, %s12024_s19  ;;  %p12028_p2 = scmp.lt.u32.totalorder %s12024_s19, %s14994_s12 }
0x25e4   :  { %p12030_p3 = pnand %p12028_p2, %p12025_p1 }
0x25e6   :  { %12033 = shalt.err (!%p12030_p3)
}
0x25e7   :  { %9753 = dma.vmem_to_hbm [thread:$0]  %s9751_s2, 128, %s14994_s12, [#allocation4]  }
0x25e8   :  { %12046 = dma.done.wait [#allocation4], 128  }
0x25e9   :  { %12047 = vsyncadd [#allocation4], 4294967168 }
0x25ea   :  { %9757 = vsyncpa [#allocation3], 1 }
0x25eb   :  { %9758 = vsyncpa [#allocation6], 1 }
0x25ec   :  { %9759 = vsyncpa [#allocation9], 1 }
0x25ed   :  { %9760 = vsyncpa [#allocation12], 1 }
0x25ee   :  { %9761 = vsyncpa [#allocation15], 1 }
0x25ef   :  { %9762 = vsyncpa [#allocation18], 1 }
0x25f0   :  { %9763 = vsyncpa [#allocation4], 1 }

</bundles_post_ra>
